<compile_context>
chip_gen: v5e
topology: v5e:2x2
jax: 0.10.0
libtpu: 0.0.40
codegen_flags: <defaults>
</compile_context>

<pallas_src>
import numpy as np
import jax
import jax.numpy as jnp
from jax import lax
from jax.experimental import pallas as pl
from jax.experimental.pallas import tpu as pltpu

HIGHEST = lax.Precision.HIGHEST


def _round_up(x, m):
    return (x + m - 1) // m * m


# ---------------------------------------------------------------------------
# Pallas kernel
# ---------------------------------------------------------------------------
def _make_kernel(Ch, Tb, Hb, GM):
    """Per-(batch, spatial-tile) kernel.  All arguments are Python ints.

    Ch : hidden channels
    Tb : output lanes per tile (multiple of 128)
    Hb : right-halo lanes (multiple of 128, >= 4*GM)
    GM : Wp + 1, largest |tap offset| on the padded grid (Wp = padded width)
    """
    NT = 9
    WL = Tb + Hb            # input window per tile (mid block + right halo)
    L1w = Tb + 2 * GM       # window on which r gates / r*h are evaluated
    OUT0 = 2 * GM           # local lane offset of the stored output window
    Wp = GM - 1
    offs = [((t // 3) - 1) * Wp + (t % 3) - 1 for t in range(NT)]

    def kernel(att_ref, hm_ref, hh_ref, xm_ref, xh_ref, w1_ref, w2_ref, out_ref):
        # ---- assemble the haloed per-tile window -------------------------------
        h_w = jnp.concatenate([hm_ref[0], hh_ref[0]], axis=-1)            # (Ch, WL) f32
        x_w = jnp.concatenate([xm_ref[0], xh_ref[0]], axis=-1)            # (Cx+pad, WL) bf16
        rhs = jnp.concatenate([h_w.astype(jnp.bfloat16), x_w], axis=0)    # (K1, WL) bf16

        # ---- fused matmul #1: 9 taps x {z_l,r_l,q_x_l} + {z_s,r_s,q_x_s} (+biases)
        r1 = jnp.dot(w1_ref[...], rhs, preferred_element_type=jnp.float32)  # (30*Ch, WL)

        # small (1x1) GRU pre-activations
        sm = r1[27 * Ch:30 * Ch]
        z_s = jax.nn.sigmoid(sm[0:Ch, OUT0:OUT0 + Tb])
        r_s = jax.nn.sigmoid(sm[Ch:2 * Ch, GM:GM + L1w])
        qx_s = sm[2 * Ch:3 * Ch, OUT0:OUT0 + Tb]

        # large (3x3) GRU: shift-and-add the 9 tap blocks via static lane slices.
        # r_l on the L1 window (feeds conv #2); z_l / q_x_l only on the output window.
        acc_z = r1[0:Ch, OUT0 + offs[0]:OUT0 + offs[0] + Tb]
        acc_r = r1[Ch:2 * Ch, GM + offs[0]:GM + offs[0] + L1w]
        acc_q = r1[2 * Ch:3 * Ch, OUT0 + offs[0]:OUT0 + offs[0] + Tb]
        for t in range(1, NT):
            rb = 3 * Ch * t
            acc_z = acc_z + r1[rb:rb + Ch, OUT0 + offs[t]:OUT0 + offs[t] + Tb]
            acc_r = acc_r + r1[rb + Ch:rb + 2 * Ch, GM + offs[t]:GM + offs[t] + L1w]
            acc_q = acc_q + r1[rb + 2 * Ch:rb + 3 * Ch,
                               OUT0 + offs[t]:OUT0 + offs[t] + Tb]
        z_l = jax.nn.sigmoid(acc_z)
        r_l = jax.nn.sigmoid(acc_r)

        # ---- fused matmul #2: q-gate hidden-state contributions ----------------
        h_l1 = h_w[:, GM:GM + L1w]                                         # (Ch, L1w) f32
        rrh = jnp.concatenate([r_s * h_l1, r_l * h_l1],
                              axis=0).astype(jnp.bfloat16)                 # (2*Ch, L1w)
        r2 = jnp.dot(w2_ref[...], rrh, preferred_element_type=jnp.float32)  # (10*Ch, L1w)

        qh_s = r2[0:Ch, GM:GM + Tb]
        acc2 = r2[Ch:2 * Ch, GM + offs[0]:GM + offs[0] + Tb]
        for t in range(1, NT):
            rb = Ch * (t + 1)
            acc2 = acc2 + r2[rb:rb + Ch, GM + offs[t]:GM + offs[t] + Tb]

        # ---- gates, blend, store (f32 on VPU/EUP) -------------------------------
        q_s = jnp.tanh(qh_s + qx_s)      # biases already folded in via matmul #1
        q_l = jnp.tanh(acc2 + acc_q)

        h_o = h_w[:, OUT0:OUT0 + Tb]
        h_small = (1.0 - z_s) * h_o + z_s * q_s
        h_large = (1.0 - z_l) * h_o + z_l * q_l

        a = att_ref[0]                                                     # (1, Tb)
        out_ref[0] = (h_small * a + h_large * (1.0 - a)).astype(out_ref.dtype)

    return kernel


# ---------------------------------------------------------------------------
# Weight repacking (PyTorch Conv2d OIHW -> fused matmul operands, biases folded)
# ---------------------------------------------------------------------------
def _pack_weights(small_params, large_params, Ch, Cx, K1):
    wz_s, bz_s, wr_s, br_s, wq_s, bq_s = small_params
    wz_l, bz_l, wr_l, br_l, wq_l, bq_l = large_params
    npad = K1 - (Ch + Cx + 1)                        # zero cols after the bias col
    zh = jnp.zeros((Ch, Ch), jnp.float32)
    zb = jnp.zeros((Ch, 1), jnp.float32)
    ztail = jnp.zeros((Ch, npad), jnp.float32)

    def row_block(w_hx, bias, use_bias):
        b = bias.reshape(Ch, 1) if use_bias else zb
        return jnp.concatenate([w_hx, b, ztail], axis=1)

    # W1 rows: [tap0: z_l|r_l|q_x_l, ..., tap8, z_s|r_s|q_x_s]
    # cols:    [h (Ch) | x (Cx) | 1 (bias) | zero-pad]
    blocks = []
    for t in range(9):
        i, j = divmod(t, 3)
        centre = (t == 4)                            # bias added exactly once
        blocks.append(row_block(wz_l[:, :, i, j], bz_l, centre))
        blocks.append(row_block(wr_l[:, :, i, j], br_l, centre))
        blocks.append(row_block(jnp.concatenate([zh, wq_l[:, Ch:, i, j]], axis=1),
                                bq_l, centre))
    blocks.append(row_block(wz_s[:, :, 0, 0], bz_s, True))
    blocks.append(row_block(wr_s[:, :, 0, 0], br_s, True))
    blocks.append(row_block(jnp.concatenate([zh, wq_s[:, Ch:, 0, 0]], axis=1),
                            bq_s, True))
    w1 = jnp.concatenate(blocks, axis=0).astype(jnp.bfloat16)        # (30*Ch, K1)

    # W2 rows: [q_h_s, q_h_l tap0..8]; cols: [r_s*h part | r_l*h part]
    w2b = [jnp.concatenate([wq_s[:, :Ch, 0, 0], zh], axis=1)]
    for t in range(9):
        i, j = divmod(t, 3)
        w2b.append(jnp.concatenate([zh, wq_l[:, :Ch, i, j]], axis=1))
    w2 = jnp.concatenate(w2b, axis=0).astype(jnp.bfloat16)           # (10*Ch, 2*Ch)
    return w1, w2


# ---------------------------------------------------------------------------
# Wrapper
# ---------------------------------------------------------------------------
def selective_conv_gru_pallas(att, h, xs, small_params, large_params,
                              tile_lanes=None, vmem_budget_bytes=40 * 2**20):
    """att: (N,1,H,W); h: (N,Ch,H,W); xs: list of NCHW tensors (concat on C)."""
    x = jnp.concatenate(xs, axis=1)
    N, Ch, H, W = h.shape
    Cx = x.shape[1]
    K1 = _round_up(Ch + Cx + 1, 8)         # [h | x | 1 | zero-pad] rows of matmul #1
    XE = K1 - Ch - Cx                      # extra channels appended to the x stream

    PAD = 2                                # two zero rings -> every tap (both conv
    Hp, Wp = H + 2 * PAD, W + 2 * PAD      # stages) is a static lane slice
    L = Hp * Wp
    GM = Wp + 1                            # largest |tap offset| on the padded grid
    Hb = _round_up(4 * GM, 128)            # right-halo lanes (covers both stages)

    # ---- spatial tile size (multiple of 128 and of Hb); auto-size from VMEM budget
    if tile_lanes is None:
        per_lane = 4 * (30 * Ch + 10 * Ch + 18 * Ch) + 8 * K1      # rough bytes/lane
        tile_lanes = max(Hb, vmem_budget_bytes // per_lane)
    Tb = _round_up(max(Hb, min(int(tile_lanes), _round_up(H * Wp, 128))), Hb)
    nt = int(pl.cdiv(H * Wp, Tb))          # spatial tiles per batch element
    R = Tb // Hb
    Lin = (nt + 1) * Tb                    # padded input lane length (>= L, >= nt*Tb+Hb)
    Lout_total = nt * Tb                   # stored output lane length (>= H*Wp)

    # ---- h stream: f32, 2-ring zero pad, flattened, lane-padded ----------------
    h_pad = jnp.pad(h, ((0, 0), (0, 0), (PAD, PAD), (PAD, PAD))).reshape(N, Ch, L)
    h_pad = jnp.pad(h_pad, ((0, 0), (0, 0), (0, Lin - L))).astype(jnp.float32)

    # ---- x stream (+ constant-one bias channel + zero pad channels): bf16 -------
    extra = jnp.zeros((N, XE, Hp, Wp), jnp.float32).at[:, 0:1].set(1.0)
    x_pack = jnp.concatenate(
        [jnp.pad(x, ((0, 0), (0, 0), (PAD, PAD), (PAD, PAD))), extra],
        axis=1).reshape(N, Cx + XE, L)
    x_pack = jnp.pad(x_pack, ((0, 0), (0, 0), (0, Lin - L))).astype(jnp.bfloat16)

    # ---- attention: pre-aligned with the output window (lane m <-> pixel m//Wp, m%Wp)
    att_flat = jnp.pad(att, ((0, 0), (0, 0), (0, 0), (0, Wp - W))).reshape(N, 1, H * Wp)
    att_flat = jnp.pad(att_flat,
                       ((0, 0), (0, 0), (0, Lout_total - H * Wp))).astype(jnp.float32)

    w1, w2 = _pack_weights(small_params, large_params, Ch, Cx, K1)
    kernel = _make_kernel(Ch, Tb, Hb, GM)

    # ---- explicit scoped-VMEM limit (estimate + headroom, capped for v7x) -------
    WL, L1w = Tb + Hb, Tb + 2 * GM
    est = (4 * 30 * Ch * WL                              # r1
           + 4 * 10 * Ch * L1w                           # r2
           + 4 * 18 * Ch * WL                            # h window, gates, blends
           + 2 * (2 * K1 + 2 * Ch) * WL                  # bf16 rhs / x window / r*h
           + 4 * (30 * Ch * K1 + 20 * Ch * Ch)           # weights (double-buffered)
           + 2 * (4 * Ch + 2 * (K1 - Ch) + 8) * WL)      # double-buffered streamed blocks
    vmem_limit = int(min(64 * 2**20, max(32 * 2**20, int(1.4 * est))))

    out_flat = pl.pallas_call(
        kernel,
        out_shape=jax.ShapeDtypeStruct((N, Ch, Lout_total), h.dtype),
        grid=(N, nt),
        in_specs=[
            pl.BlockSpec((1, 1, Tb), lambda b, j: (b, 0, j)),                 # att
            pl.BlockSpec((1, Ch, Tb), lambda b, j: (b, 0, j)),                # h mid
            pl.BlockSpec((1, Ch, Hb), lambda b, j: (b, 0, (j + 1) * R)),      # h halo
            pl.BlockSpec((1, Cx + XE, Tb), lambda b, j: (b, 0, j)),           # x mid
            pl.BlockSpec((1, Cx + XE, Hb), lambda b, j: (b, 0, (j + 1) * R)),  # x halo
            pl.BlockSpec((30 * Ch, K1), lambda b, j: (0, 0)),                 # W1 (bf16)
            pl.BlockSpec((10 * Ch, 2 * Ch), lambda b, j: (0, 0)),             # W2 (bf16)
        ],
        out_specs=pl.BlockSpec((1, Ch, Tb), lambda b, j: (b, 0, j)),
        compiler_params=pltpu.CompilerParams(
            dimension_semantics=("parallel", "parallel"),
            vmem_limit_bytes=vmem_limit),
    )(att_flat, h_pad, h_pad, x_pack, x_pack, w1, w2)

    # Output lane m corresponds to padded-flat lane m + 2*GM, i.e. pixel (m//Wp, m%Wp):
    # crop is a straight reshape + slice (no re-embed pad).
    out = out_flat[:, :, :H * Wp].reshape(N, Ch, H, Wp)[:, :, :, :W]
    return out


# ----------------------- pure-JAX reference (NCHW) --------------------------
def _conv2d_ref(x, w, b, pad):
    out = lax.conv_general_dilated(
        x, w, window_strides=(1, 1), padding=[(pad, pad), (pad, pad)],
        dimension_numbers=("NCHW", "OIHW", "NCHW"), precision=HIGHEST)
    return out + b[None, :, None, None]


def _raft_gru_ref(h, x, params, pad):
    wz, bz, wr, br, wq, bq = params
    hx = jnp.concatenate([h, x], axis=1)
    z = jax.nn.sigmoid(_conv2d_ref(hx, wz, bz, pad))
    r = jax.nn.sigmoid(_conv2d_ref(hx, wr, br, pad))
    q = jnp.tanh(_conv2d_ref(jnp.concatenate([r * h, x], axis=1), wq, bq, pad))
    return (1.0 - z) * h + z * q


def selective_gru_ref(att, h, xs, small_params, large_params):
    x = jnp.concatenate(xs, axis=1)
    return (_raft_gru_ref(h, x, small_params, 0) * att +
            _raft_gru_ref(h, x, large_params, 1) * (1.0 - att))


# ---------------------------- param init ------------------------------------
def init_raft_gru_params(key, hidden, inp, k):
    keys = jax.random.split(key, 6)
    cin = hidden + inp
    scale = 1.0 / np.sqrt(cin * k * k)

    def w(kk):
        return jax.random.normal(kk, (hidden, cin, k, k), jnp.float32) * scale

    def b(kk):
        return jax.random.normal(kk, (hidden,), jnp.float32) * scale

    return (w(keys[0]), b(keys[1]), w(keys[2]), b(keys[3]), w(keys[4]), b(keys[5]))


if __name__ == "__main__":
    key = jax.random.PRNGKey(0)
    N, Ch, H, W = 2, 32, 16, 16          # hidden_dim = 32
    C1, C2 = 32, 32                      # *x inputs -> input_dim = 64
    k_att, k_h, k_x1, k_x2, k_s, k_l = jax.random.split(key, 6)

    att = jax.random.uniform(k_att, (N, 1, H, W), jnp.float32)
    h0 = jax.random.normal(k_h, (N, Ch, H, W), jnp.float32)
    x1 = jax.random.normal(k_x1, (N, C1, H, W), jnp.float32)
    x2 = jax.random.normal(k_x2, (N, C2, H, W), jnp.float32)

    small_params = init_raft_gru_params(k_s, Ch, C1 + C2, 1)
    large_params = init_raft_gru_params(k_l, Ch, C1 + C2, 3)

    # single step, auto tile size (single spatial tile at this tiny resolution)
    out = jax.block_until_ready(
        selective_conv_gru_pallas(att, h0, [x1, x2], small_params, large_params))
    ref = jax.block_until_ready(
        selective_gru_ref(att, h0, [x1, x2], small_params, large_params))
    if not np.allclose(np.asarray(out), np.asarray(ref), atol=2.5e-2, rtol=2.5e-2):
        raise AssertionError(
            f"single-step mismatch, max abs err = {float(jnp.max(jnp.abs(out - ref)))}")

    # three recurrent steps with a small tile (2 spatial tiles -> exercises the
    # halo path) to validate hidden-state drift of the bf16-MXU kernel.
    h_k, h_r = h0, h0
    for _ in range(3):
        h_k = selective_conv_gru_pallas(att, h_k, [x1, x2], small_params,
                                        large_params, tile_lanes=256)
        h_r = selective_gru_ref(att, h_r, [x1, x2], small_params, large_params)
    h_k = jax.block_until_ready(h_k)
    h_r = jax.block_until_ready(h_r)
    if not np.allclose(np.asarray(h_k), np.asarray(h_r), atol=4e-2, rtol=4e-2):
        raise AssertionError(
            f"3-step mismatch, max abs err = {float(jnp.max(jnp.abs(h_k - h_r)))}")

    print("KERNEL_OK")
</pallas_src>

<mosaic_0001>
module attributes {stable_mosaic.version = 11 : i64} {
  func.func @kernel(%arg0: i32, %arg1: i32, %arg2: memref<1x1x384xf32, #tpu.memory_space<vmem>>, %arg3: memref<1x32x384xf32, #tpu.memory_space<vmem>>, %arg4: memref<1x32x128xf32, #tpu.memory_space<vmem>>, %arg5: memref<1x72x384xbf16, #tpu.memory_space<vmem>>, %arg6: memref<1x72x128xbf16, #tpu.memory_space<vmem>>, %arg7: memref<960x104xbf16, #tpu.memory_space<vmem>>, %arg8: memref<320x64xbf16, #tpu.memory_space<vmem>>, %arg9: memref<1x32x384xf32, #tpu.memory_space<vmem>>) attributes {dimension_semantics = [#tpu.dimension_semantics<parallel>, #tpu.dimension_semantics<parallel>], iteration_bounds = array<i64: 2, 1>, scalar_prefetch = 0 : i64, scratch_operands = 0 : i64, tpu.core_type = #tpu.core_type<tc>, window_params = [{transform_indices = @transform_0, window_bounds = array<i64: 1, 1, 384>}, {transform_indices = @transform_1, window_bounds = array<i64: 1, 32, 384>}, {transform_indices = @transform_2, window_bounds = array<i64: 1, 32, 128>}, {transform_indices = @transform_3, window_bounds = array<i64: 1, 72, 384>}, {transform_indices = @transform_4, window_bounds = array<i64: 1, 72, 128>}, {pipeline_mode = #tpu.pipeline_mode<synchronous>, transform_indices = @transform_5, window_bounds = array<i64: 960, 104>}, {pipeline_mode = #tpu.pipeline_mode<synchronous>, transform_indices = @transform_6, window_bounds = array<i64: 320, 64>}, {transform_indices = @transform_7, window_bounds = array<i64: 1, 32, 384>}]} {
    %c0 = arith.constant 0 : index
    %c0_0 = arith.constant 0 : index
    %c0_1 = arith.constant 0 : index
    %0 = vector.load %arg3[%c0, %c0_0, %c0_1] : memref<1x32x384xf32, #tpu.memory_space<vmem>>, vector<1x32x384xf32>
    %1 = vector.shape_cast %0 : vector<1x32x384xf32> to vector<32x384xf32>
    %c0_2 = arith.constant 0 : index
    %c0_3 = arith.constant 0 : index
    %c0_4 = arith.constant 0 : index
    %2 = vector.load %arg4[%c0_2, %c0_3, %c0_4] : memref<1x32x128xf32, #tpu.memory_space<vmem>>, vector<1x32x128xf32>
    %3 = vector.shape_cast %2 : vector<1x32x128xf32> to vector<32x128xf32>
    %4 = tpu.concatenate %1, %3 in 1 : vector<32x384xf32>, vector<32x128xf32> -> vector<32x512xf32>
    %c0_5 = arith.constant 0 : index
    %c0_6 = arith.constant 0 : index
    %c0_7 = arith.constant 0 : index
    %5 = vector.load %arg5[%c0_5, %c0_6, %c0_7] : memref<1x72x384xbf16, #tpu.memory_space<vmem>>, vector<1x72x384xbf16>
    %6 = vector.shape_cast %5 : vector<1x72x384xbf16> to vector<72x384xbf16>
    %c0_8 = arith.constant 0 : index
    %c0_9 = arith.constant 0 : index
    %c0_10 = arith.constant 0 : index
    %7 = vector.load %arg6[%c0_8, %c0_9, %c0_10] : memref<1x72x128xbf16, #tpu.memory_space<vmem>>, vector<1x72x128xbf16>
    %8 = vector.shape_cast %7 : vector<1x72x128xbf16> to vector<72x128xbf16>
    %9 = tpu.concatenate %6, %8 in 1 : vector<72x384xbf16>, vector<72x128xbf16> -> vector<72x512xbf16>
    %10 = arith.truncf %4 : vector<32x512xf32> to vector<32x512xbf16>
    %11 = tpu.concatenate %10, %9 in 0 : vector<32x512xbf16>, vector<72x512xbf16> -> vector<104x512xbf16>
    %c0_11 = arith.constant 0 : index
    %c0_12 = arith.constant 0 : index
    %12 = vector.load %arg7[%c0_11, %c0_12] : memref<960x104xbf16, #tpu.memory_space<vmem>>, vector<960x104xbf16>
    %cst = arith.constant dense<0.000000e+00> : vector<960x512xf32>
    %13 = tpu.matmul %12, %11, %cst {dimension_numbers = #tpu.dot_dimension_numbers<[1], [0], [0], [1], [0, 0, 1, 1], [], []>} : vector<960x104xbf16>, vector<104x512xbf16>, vector<960x512xf32> -> vector<960x512xf32>
    %14 = vector.extract_strided_slice %13 {offsets = [864, 0], sizes = [96, 512], strides = [1, 1]} : vector<960x512xf32> to vector<96x512xf32>
    %15 = vector.extract_strided_slice %14 {offsets = [0, 42], sizes = [32, 384], strides = [1, 1]} : vector<96x512xf32> to vector<32x384xf32>
    %16 = arith.negf %15 : vector<32x384xf32>
    %17 = math.exp %16 : vector<32x384xf32>
    %cst_13 = arith.constant 1.000000e+00 : f32
    %18 = vector.broadcast %cst_13 : f32 to vector<32x384xf32>
    %19 = arith.addf %18, %17 : vector<32x384xf32>
    %20 = arith.divf %18, %19 : vector<32x384xf32>
    %21 = vector.extract_strided_slice %14 {offsets = [32, 21], sizes = [32, 426], strides = [1, 1]} : vector<96x512xf32> to vector<32x426xf32>
    %22 = arith.negf %21 : vector<32x426xf32>
    %23 = math.exp %22 : vector<32x426xf32>
    %cst_14 = arith.constant 1.000000e+00 : f32
    %24 = vector.broadcast %cst_14 : f32 to vector<32x426xf32>
    %25 = arith.addf %24, %23 : vector<32x426xf32>
    %26 = arith.divf %24, %25 : vector<32x426xf32>
    %27 = vector.extract_strided_slice %14 {offsets = [64, 42], sizes = [32, 384], strides = [1, 1]} : vector<96x512xf32> to vector<32x384xf32>
    %28 = vector.extract_strided_slice %13 {offsets = [0, 21], sizes = [32, 384], strides = [1, 1]} : vector<960x512xf32> to vector<32x384xf32>
    %29 = vector.extract_strided_slice %13 {offsets = [32, 0], sizes = [32, 426], strides = [1, 1]} : vector<960x512xf32> to vector<32x426xf32>
    %30 = vector.extract_strided_slice %13 {offsets = [64, 21], sizes = [32, 384], strides = [1, 1]} : vector<960x512xf32> to vector<32x384xf32>
    %31 = vector.extract_strided_slice %13 {offsets = [96, 22], sizes = [32, 384], strides = [1, 1]} : vector<960x512xf32> to vector<32x384xf32>
    %32 = arith.addf %28, %31 : vector<32x384xf32>
    %33 = vector.extract_strided_slice %13 {offsets = [128, 1], sizes = [32, 426], strides = [1, 1]} : vector<960x512xf32> to vector<32x426xf32>
    %34 = arith.addf %29, %33 : vector<32x426xf32>
    %35 = vector.extract_strided_slice %13 {offsets = [160, 22], sizes = [32, 384], strides = [1, 1]} : vector<960x512xf32> to vector<32x384xf32>
    %36 = arith.addf %30, %35 : vector<32x384xf32>
    %37 = vector.extract_strided_slice %13 {offsets = [192, 23], sizes = [32, 384], strides = [1, 1]} : vector<960x512xf32> to vector<32x384xf32>
    %38 = arith.addf %32, %37 : vector<32x384xf32>
    %39 = vector.extract_strided_slice %13 {offsets = [224, 2], sizes = [32, 426], strides = [1, 1]} : vector<960x512xf32> to vector<32x426xf32>
    %40 = arith.addf %34, %39 : vector<32x426xf32>
    %41 = vector.extract_strided_slice %13 {offsets = [256, 23], sizes = [32, 384], strides = [1, 1]} : vector<960x512xf32> to vector<32x384xf32>
    %42 = arith.addf %36, %41 : vector<32x384xf32>
    %43 = vector.extract_strided_slice %13 {offsets = [288, 41], sizes = [32, 384], strides = [1, 1]} : vector<960x512xf32> to vector<32x384xf32>
    %44 = arith.addf %38, %43 : vector<32x384xf32>
    %45 = vector.extract_strided_slice %13 {offsets = [320, 20], sizes = [32, 426], strides = [1, 1]} : vector<960x512xf32> to vector<32x426xf32>
    %46 = arith.addf %40, %45 : vector<32x426xf32>
    %47 = vector.extract_strided_slice %13 {offsets = [352, 41], sizes = [32, 384], strides = [1, 1]} : vector<960x512xf32> to vector<32x384xf32>
    %48 = arith.addf %42, %47 : vector<32x384xf32>
    %49 = vector.extract_strided_slice %13 {offsets = [384, 42], sizes = [32, 384], strides = [1, 1]} : vector<960x512xf32> to vector<32x384xf32>
    %50 = arith.addf %44, %49 : vector<32x384xf32>
    %51 = vector.extract_strided_slice %13 {offsets = [416, 21], sizes = [32, 426], strides = [1, 1]} : vector<960x512xf32> to vector<32x426xf32>
    %52 = arith.addf %46, %51 : vector<32x426xf32>
    %53 = vector.extract_strided_slice %13 {offsets = [448, 42], sizes = [32, 384], strides = [1, 1]} : vector<960x512xf32> to vector<32x384xf32>
    %54 = arith.addf %48, %53 : vector<32x384xf32>
    %55 = vector.extract_strided_slice %13 {offsets = [480, 43], sizes = [32, 384], strides = [1, 1]} : vector<960x512xf32> to vector<32x384xf32>
    %56 = arith.addf %50, %55 : vector<32x384xf32>
    %57 = vector.extract_strided_slice %13 {offsets = [512, 22], sizes = [32, 426], strides = [1, 1]} : vector<960x512xf32> to vector<32x426xf32>
    %58 = arith.addf %52, %57 : vector<32x426xf32>
    %59 = vector.extract_strided_slice %13 {offsets = [544, 43], sizes = [32, 384], strides = [1, 1]} : vector<960x512xf32> to vector<32x384xf32>
    %60 = arith.addf %54, %59 : vector<32x384xf32>
    %61 = vector.extract_strided_slice %13 {offsets = [576, 61], sizes = [32, 384], strides = [1, 1]} : vector<960x512xf32> to vector<32x384xf32>
    %62 = arith.addf %56, %61 : vector<32x384xf32>
    %63 = vector.extract_strided_slice %13 {offsets = [608, 40], sizes = [32, 426], strides = [1, 1]} : vector<960x512xf32> to vector<32x426xf32>
    %64 = arith.addf %58, %63 : vector<32x426xf32>
    %65 = vector.extract_strided_slice %13 {offsets = [640, 61], sizes = [32, 384], strides = [1, 1]} : vector<960x512xf32> to vector<32x384xf32>
    %66 = arith.addf %60, %65 : vector<32x384xf32>
    %67 = vector.extract_strided_slice %13 {offsets = [672, 62], sizes = [32, 384], strides = [1, 1]} : vector<960x512xf32> to vector<32x384xf32>
    %68 = arith.addf %62, %67 : vector<32x384xf32>
    %69 = vector.extract_strided_slice %13 {offsets = [704, 41], sizes = [32, 426], strides = [1, 1]} : vector<960x512xf32> to vector<32x426xf32>
    %70 = arith.addf %64, %69 : vector<32x426xf32>
    %71 = vector.extract_strided_slice %13 {offsets = [736, 62], sizes = [32, 384], strides = [1, 1]} : vector<960x512xf32> to vector<32x384xf32>
    %72 = arith.addf %66, %71 : vector<32x384xf32>
    %73 = vector.extract_strided_slice %13 {offsets = [768, 63], sizes = [32, 384], strides = [1, 1]} : vector<960x512xf32> to vector<32x384xf32>
    %74 = arith.addf %68, %73 : vector<32x384xf32>
    %75 = vector.extract_strided_slice %13 {offsets = [800, 42], sizes = [32, 426], strides = [1, 1]} : vector<960x512xf32> to vector<32x426xf32>
    %76 = arith.addf %70, %75 : vector<32x426xf32>
    %77 = vector.extract_strided_slice %13 {offsets = [832, 63], sizes = [32, 384], strides = [1, 1]} : vector<960x512xf32> to vector<32x384xf32>
    %78 = arith.addf %72, %77 : vector<32x384xf32>
    %79 = arith.negf %74 : vector<32x384xf32>
    %80 = math.exp %79 : vector<32x384xf32>
    %cst_15 = arith.constant 1.000000e+00 : f32
    %81 = vector.broadcast %cst_15 : f32 to vector<32x384xf32>
    %82 = arith.addf %81, %80 : vector<32x384xf32>
    %83 = arith.divf %81, %82 : vector<32x384xf32>
    %84 = arith.negf %76 : vector<32x426xf32>
    %85 = math.exp %84 : vector<32x426xf32>
    %cst_16 = arith.constant 1.000000e+00 : f32
    %86 = vector.broadcast %cst_16 : f32 to vector<32x426xf32>
    %87 = arith.addf %86, %85 : vector<32x426xf32>
    %88 = arith.divf %86, %87 : vector<32x426xf32>
    %89 = vector.extract_strided_slice %4 {offsets = [0, 21], sizes = [32, 426], strides = [1, 1]} : vector<32x512xf32> to vector<32x426xf32>
    %90 = arith.mulf %26, %89 : vector<32x426xf32>
    %91 = arith.mulf %88, %89 : vector<32x426xf32>
    %92 = tpu.concatenate %90, %91 in 0 : vector<32x426xf32>, vector<32x426xf32> -> vector<64x426xf32>
    %93 = arith.truncf %92 : vector<64x426xf32> to vector<64x426xbf16>
    %c0_17 = arith.constant 0 : index
    %c0_18 = arith.constant 0 : index
    %94 = vector.load %arg8[%c0_17, %c0_18] : memref<320x64xbf16, #tpu.memory_space<vmem>>, vector<320x64xbf16>
    %cst_19 = arith.constant dense<0.000000e+00> : vector<320x426xf32>
    %95 = tpu.matmul %94, %93, %cst_19 {dimension_numbers = #tpu.dot_dimension_numbers<[1], [0], [0], [1], [0, 0, 1, 1], [], []>} : vector<320x64xbf16>, vector<64x426xbf16>, vector<320x426xf32> -> vector<320x426xf32>
    %96 = vector.extract_strided_slice %95 {offsets = [0, 21], sizes = [32, 384], strides = [1, 1]} : vector<320x426xf32> to vector<32x384xf32>
    %97 = vector.extract_strided_slice %95 {offsets = [32, 0], sizes = [32, 384], strides = [1, 1]} : vector<320x426xf32> to vector<32x384xf32>
    %98 = vector.extract_strided_slice %95 {offsets = [64, 1], sizes = [32, 384], strides = [1, 1]} : vector<320x426xf32> to vector<32x384xf32>
    %99 = arith.addf %97, %98 : vector<32x384xf32>
    %100 = vector.extract_strided_slice %95 {offsets = [96, 2], sizes = [32, 384], strides = [1, 1]} : vector<320x426xf32> to vector<32x384xf32>
    %101 = arith.addf %99, %100 : vector<32x384xf32>
    %102 = vector.extract_strided_slice %95 {offsets = [128, 20], sizes = [32, 384], strides = [1, 1]} : vector<320x426xf32> to vector<32x384xf32>
    %103 = arith.addf %101, %102 : vector<32x384xf32>
    %104 = vector.extract_strided_slice %95 {offsets = [160, 21], sizes = [32, 384], strides = [1, 1]} : vector<320x426xf32> to vector<32x384xf32>
    %105 = arith.addf %103, %104 : vector<32x384xf32>
    %106 = vector.extract_strided_slice %95 {offsets = [192, 22], sizes = [32, 384], strides = [1, 1]} : vector<320x426xf32> to vector<32x384xf32>
    %107 = arith.addf %105, %106 : vector<32x384xf32>
    %108 = vector.extract_strided_slice %95 {offsets = [224, 40], sizes = [32, 384], strides = [1, 1]} : vector<320x426xf32> to vector<32x384xf32>
    %109 = arith.addf %107, %108 : vector<32x384xf32>
    %110 = vector.extract_strided_slice %95 {offsets = [256, 41], sizes = [32, 384], strides = [1, 1]} : vector<320x426xf32> to vector<32x384xf32>
    %111 = arith.addf %109, %110 : vector<32x384xf32>
    %112 = vector.extract_strided_slice %95 {offsets = [288, 42], sizes = [32, 384], strides = [1, 1]} : vector<320x426xf32> to vector<32x384xf32>
    %113 = arith.addf %111, %112 : vector<32x384xf32>
    %114 = arith.addf %96, %27 : vector<32x384xf32>
    %115 = math.tanh %114 : vector<32x384xf32>
    %116 = arith.addf %113, %78 : vector<32x384xf32>
    %117 = math.tanh %116 : vector<32x384xf32>
    %118 = vector.extract_strided_slice %4 {offsets = [0, 42], sizes = [32, 384], strides = [1, 1]} : vector<32x512xf32> to vector<32x384xf32>
    %cst_20 = arith.constant 1.000000e+00 : f32
    %119 = vector.broadcast %cst_20 : f32 to vector<32x384xf32>
    %120 = arith.subf %119, %20 : vector<32x384xf32>
    %121 = arith.mulf %120, %118 : vector<32x384xf32>
    %122 = arith.mulf %20, %115 : vector<32x384xf32>
    %123 = arith.addf %121, %122 : vector<32x384xf32>
    %cst_21 = arith.constant 1.000000e+00 : f32
    %124 = vector.broadcast %cst_21 : f32 to vector<32x384xf32>
    %125 = arith.subf %124, %83 : vector<32x384xf32>
    %126 = arith.mulf %125, %118 : vector<32x384xf32>
    %127 = arith.mulf %83, %117 : vector<32x384xf32>
    %128 = arith.addf %126, %127 : vector<32x384xf32>
    %c0_22 = arith.constant 0 : index
    %c0_23 = arith.constant 0 : index
    %c0_24 = arith.constant 0 : index
    %129 = vector.load %arg2[%c0_22, %c0_23, %c0_24] : memref<1x1x384xf32, #tpu.memory_space<vmem>>, vector<1x1x384xf32>
    %130 = vector.shape_cast %129 : vector<1x1x384xf32> to vector<1x384xf32>
    %131 = vector.broadcast %130 : vector<1x384xf32> to vector<32x384xf32>
    %132 = arith.mulf %123, %131 : vector<32x384xf32>
    %cst_25 = arith.constant 1.000000e+00 : f32
    %133 = vector.broadcast %cst_25 : f32 to vector<1x384xf32>
    %134 = arith.subf %133, %130 : vector<1x384xf32>
    %135 = vector.broadcast %134 : vector<1x384xf32> to vector<32x384xf32>
    %136 = arith.mulf %128, %135 : vector<32x384xf32>
    %137 = arith.addf %132, %136 : vector<32x384xf32>
    %c0_26 = arith.constant 0 : index
    %c0_27 = arith.constant 0 : index
    %c0_28 = arith.constant 0 : index
    %138 = vector.load %arg9[%c0_26, %c0_27, %c0_28] : memref<1x32x384xf32, #tpu.memory_space<vmem>>, vector<1x32x384xf32>
    %139 = vector.shape_cast %138 : vector<1x32x384xf32> to vector<32x384xf32>
    %140 = vector.shape_cast %137 : vector<32x384xf32> to vector<1x32x384xf32>
    tpu.vector_store %arg9[%c0_26, %c0_27, %c0_28], %140 {strides = array<i32>} : memref<1x32x384xf32, #tpu.memory_space<vmem>>, vector<1x32x384xf32>,
    return
  }
  func.func @transform_0(%arg0: i32, %arg1: i32) -> (i32, i32, i32) {
    %c0_i32 = arith.constant 0 : i32
    %c0_i32_0 = arith.constant 0 : i32
    return %arg0, %c0_i32, %arg1 : i32, i32, i32
  }
  func.func @transform_1(%arg0: i32, %arg1: i32) -> (i32, i32, i32) {
    %c0_i32 = arith.constant 0 : i32
    %c0_i32_0 = arith.constant 0 : i32
    return %arg0, %c0_i32, %arg1 : i32, i32, i32
  }
  func.func @transform_2(%arg0: i32, %arg1: i32) -> (i32, i32, i32) {
    %c1_i32 = arith.constant 1 : i32
    %0 = arith.addi %arg1, %c1_i32 : i32
    %c3_i32 = arith.constant 3 : i32
    %1 = arith.muli %0, %c3_i32 : i32
    %c0_i32 = arith.constant 0 : i32
    %c0_i32_0 = arith.constant 0 : i32
    return %arg0, %c0_i32, %1 : i32, i32, i32
  }
  func.func @transform_3(%arg0: i32, %arg1: i32) -> (i32, i32, i32) {
    %c0_i32 = arith.constant 0 : i32
    %c0_i32_0 = arith.constant 0 : i32
    return %arg0, %c0_i32, %arg1 : i32, i32, i32
  }
  func.func @transform_4(%arg0: i32, %arg1: i32) -> (i32, i32, i32) {
    %c1_i32 = arith.constant 1 : i32
    %0 = arith.addi %arg1, %c1_i32 : i32
    %c3_i32 = arith.constant 3 : i32
    %1 = arith.muli %0, %c3_i32 : i32
    %c0_i32 = arith.constant 0 : i32
    %c0_i32_0 = arith.constant 0 : i32
    return %arg0, %c0_i32, %1 : i32, i32, i32
  }
  func.func @transform_5(%arg0: i32, %arg1: i32) -> (i32, i32) {
    %c0_i32 = arith.constant 0 : i32
    %c0_i32_0 = arith.constant 0 : i32
    %c0_i32_1 = arith.constant 0 : i32
    return %c0_i32, %c0_i32_0 : i32, i32
  }
  func.func @transform_6(%arg0: i32, %arg1: i32) -> (i32, i32) {
    %c0_i32 = arith.constant 0 : i32
    %c0_i32_0 = arith.constant 0 : i32
    %c0_i32_1 = arith.constant 0 : i32
    return %c0_i32, %c0_i32_0 : i32, i32
  }
  func.func @transform_7(%arg0: i32, %arg1: i32) -> (i32, i32, i32) {
    %c0_i32 = arith.constant 0 : i32
    %c0_i32_0 = arith.constant 0 : i32
    return %arg0, %c0_i32, %arg1 : i32, i32, i32
  }
}

</mosaic_0001>

<bundles_post_ra>
// kernel: tpu_custom_call.1
= control target key start
LH: loop header
LB: loop body
LE: loop exit
PB: predicated region body
PF: predicated region fallthrough
CT: control target
= control target key end

     0   :  { %s16330_s0 = inlined_call_operand.vmem [shape: f32[2,1,384], index: 0, kind: input, shape index: {}]   ;;  %s16331_s1 = inlined_call_operand.hbm [shape: f32[2,32,768], index: 1, kind: input, shape index: {}]   ;;  %s16332_s2 = inlined_call_operand.hbm [shape: f32[2,32,768], index: 2, kind: input, shape index: {}]   ;;  %s16333_s3 = inlined_call_operand.vmem [shape: bf16[2,72,768], index: 3, kind: input, shape index: {}]   ;;  %s16334_s4 = inlined_call_operand.vmem [shape: bf16[2,72,768], index: 4, kind: input, shape index: {}]   ;;  %s16335_s5 = inlined_call_operand.vmem [shape: bf16[960,104], index: 5, kind: input, shape index: {}]   ;;  %s16336_s6 = inlined_call_operand.vmem [shape: bf16[320,64], index: 6, kind: input, shape index: {}]   ;;  %s16337_s7 = inlined_call_operand.hbm [shape: f32[2,32,384], index: 7, kind: output, shape index: {}]  }
   0x1   :  { %16623 = sst [smem:[#allocation364_spill]] %s16331_s1 }
   0x2   :  { %16624 = sst [smem:[#allocation365_spill]] %s16337_s7 }
   0x3   :  { %12 = vsyncpa [#allocation3], 0 }
   0x4   :  { %14 = vsyncpa [#allocation3 + $0x1], 0 }
   0x5   :  { %15 = vsyncpa [#allocation6], 0 }
   0x6   :  { %17 = vsyncpa [#allocation6 + $0x1], 0 }
   0x7   :  { %18 = vsyncpa [#allocation4], 0 }
   0x8   :  { %20 = vsyncpa [#allocation4 + $0x1], 0  ;;  %s10154_s24 = smov 0   ;;  %s10156_s25 = smov 0  }
   0x9   :  { %s10158_s26 = smov 0   ;;  %s10160_s27 = smov 0  }
   0xa   :  { %s10162_s28 = smov 0   ;;  %s10164_s29 = smov 0  }
   0xb LB: > { %16625 = sst [smem:[#allocation13_spill]] %s10075_s24  ;;  %s8562_s30 = sadd.s32 4294967295, %s10095_s29   ;;  %s10095_s29 = sphi %s10164_s29, %s26_s29   ;;  %s10091_s28 = sphi %s10162_s28, %s17779_s28   ;;  %s10087_s27 = sphi %s10160_s27, %s17778_s27   ;;  %s10083_s26 = sphi %s10158_s26, %s17774_s26   ;;  %s10079_s25 = sphi %s10156_s25, %s17777_s25   ;;  %s10075_s24 = sphi %s10154_s24, %s17776_s24  }
   0xc   : > { %16626 = sst [smem:[#allocation14_spill]] %s10083_s26  ;;  %s8563_s8 = sadd.s32 4294967294, %s10095_s29  }
   0xd   : > { %s38_s9 = sadd.s32 1, %s10091_s28  ;;  %s75_s10 = sadd.s32 1, %s10083_s26 }
   0xe   : > { %p40_p0 = scmp.ge.s32.totalorder %s38_s9, 2  ;;  %p82_p1 = scmp.ne.s32.totalorder %s10083_s26, %s10079_s25 }
   0xf   : > { %p83_p2 = scmp.eq.s32.totalorder %s10095_s29, 0  ;;  %p88_p3 = scmp.ne.s32.totalorder %s10079_s25, %s10075_s24 }
  0x10   : > { %s17781_s9 = smov (%p40_p0, %s38_s9), 0  ;;  %p89_p5 = scmp.eq.s32.totalorder %s8562_s30, 0 }
  0x11   : > { %16627 = sst [smem:[#allocation15_spill]] %s17781_s9  ;;  %p10195_p4 = por %p83_p2, %p82_p1 }
  0x12   : > { %s70_s12 = ssub.s32 %s10091_s28, %s17781_s9  ;;  %p248_p6 = scmp.eq.s32.totalorder %s8562_s30, 1 }
  0x13   : > { %p73_p7 = scmp.eq.s32.totalorder %s70_s12, 0  ;;  %p10201_p8 = por %p89_p5, %p88_p3 }
  0x14   : > { %p10205_p9 = por %p248_p6, %p82_p1  ;;  %p254_p10 = scmp.eq.s32.totalorder %s8563_s8, 1 }
  0x15   : > { %s10210_s15 = scalar_select %p73_p7, %s10083_s26, %s75_s10  }
  0x16   : > { %s16630_s14 = scalar_select %p10205_p9, 1, 0 }
  0x17   : > { %16632 = sst [smem:[#allocation17_spill]] %s10210_s15  ;;  %p10212_p11 = por %p254_p10, %p88_p3 }
  0x18   : > { %16631 = sst [smem:[#allocation16_spill]] %s16630_s14  ;;  %p8565_p12 = scmp.ge.s32.totalorder %s10095_s29, 2 }
  0x19   : > { %s16633_s16 = scalar_select %p10212_p11, 1, 0 }
  0x1a   : > { %276 = sbr.rel (%p8565_p12) target bundleno = 78 (0x4e), region = 24  ;;  %s10220_s17 = sand.u32 (!%p8565_p12), 1, %s10083_s26  }
  0x1b   : > { %16634 = sst [smem:[#allocation18_spill]] %s16633_s16  ;;  %s9468_s18 = smul.u32 (!%p8565_p12), 192, %s10091_s28 }
  0x1c   : > { %s9467_s19 = smul.u32 (!%p8565_p12), 96, %s10220_s17  ;;  %s16635_s1 = sld [smem:[#allocation364_spill]] (!%p8565_p12) }
  0x1d   : > { %s293_s10 = scalar_lea.sflag (!%p8565_p12), [#allocation3], %s10220_s17  ;;  %s10097_s12 = smov (!%p8565_p12), 768  }
  0x1e   : > { %s296_s30 = scalar_lea.vmem (!%p8565_p12), [#allocation2], %s9467_s19  ;;  %s10098_s9 = smov (!%p8565_p12), 384  }
  0x1f   : > { %s306_s8 = sshll.u32 %s296_s30, 4  ;;  %s10099_s15 = smov 24   ;;  %s307_s8 = int_to_ptr.vmem [resolvable:$true] %s306_s8 }
  0x20   : > { %s8567_s26 = sshll.u32 %s10220_s17, 5  ;;  %s8434_s7 = scalar_lea.hbm %s16332_s2, %s9468_s18 }
  0x21   : > { %s8435_s20 = scalar_lea.hbm %s8434_s7, 24  ;;  %s317_s19 = scalar_lea.sflag [#allocation6], %s10220_s17 }
  0x22   : > { %s303_s22 = scalar_lea.hbm %s16635_s1, %s9468_s18  ;;  %s329_s21 = sshll.u32 %s8435_s20, 4  ;;  %s330_s21 = int_to_ptr.hbm [resolvable:$true] %s329_s21 }
  0x23   : > { %s304_s23 = sshll.u32 %s303_s22, 4  ;;  %s320_s22 = scalar_lea.vmem [#allocation5], %s8567_s26  ;;  %s305_s23 = int_to_ptr.hbm [resolvable:$true] %s304_s23 }
  0x24   : > { %9477 = dma.hbm_to_vmem [thread:$0]  (%p10195_p4), %s305_s23, 1536, %s307_s8, %s293_s10, %s10097_s12, %s10098_s9, %s10099_s15  }
  0x25   : > { %s331_s1 = sshll.u32 %s320_s22, 4  ;;  %s10100_s30 = smov 128   ;;  %s332_s1 = int_to_ptr.vmem [resolvable:$true] %s331_s1 }
  0x26   : > { %s10101_s14 = smov 8   ;;  %340 = sbr.rel (!%p10195_p4) target bundleno = 63 (0x3f), region = 40 }
  0x27   : > { %9478 = dma.hbm_to_vmem [thread:$0]  (%p10195_p4), %s330_s21, 512, %s332_s1, %s317_s19, %s10097_s12, %s10100_s30, %s10101_s14  }
  0x28   : > { %s9469_s9 = smul.u32 (%p10195_p4), 108, %s10220_s17 }
  0x29   : > { %s9470_s15 = smul.u32 (%p10195_p4), 216, %s10091_s28 }
  0x2a   : > { %s10249_s1 = scalar_lea.vmem (%p10195_p4), [#allocation7], %s9469_s9 }
  0x2b   : > { %s10244_s7 = scalar_lea.vmem %s16333_s3, %s9470_s15 }
  0x2c   : > { %v364_v0 = vld [vmem:[%s10244_s7] sm:$0xff]  ;;  %v366_v1 = vld [vmem:[%s10244_s7 + $0x18] sm:$0xff]  ;;  %v368_v2 = vld [vmem:[%s10244_s7 + $0x30] sm:$0xff] }
  0x2d   : > { %365 = vst [vmem:[%s10249_s1] sm:$0xff] %v364_v0  ;;  %v370_v3 = vld [vmem:[%s10244_s7 + $0x48] sm:$0xff]  ;;  %v372_v4 = vld [vmem:[%s10244_s7 + $0x60] sm:$0xff]  ;;  %v374_v5 = vld [vmem:[%s10244_s7 + $0x78] sm:$0xff] }
  0x2e   : > { %367 = vst [vmem:[%s10249_s1 + $0xc] sm:$0xff] %v366_v1  ;;  %v376_v6 = vld [vmem:[%s10244_s7 + $0x90] sm:$0xff]  ;;  %v378_v7 = vld [vmem:[%s10244_s7 + $0xa8] sm:$0xff]  ;;  %v380_v8 = vld [vmem:[%s10244_s7 + $0xc0] sm:$0xff] }
  0x2f   : > { %369 = vst [vmem:[%s10249_s1 + $0x18] sm:$0xff] %v368_v2  ;;  %v8570_v9 = vld [vmem:[%s10244_s7 + $0x8] sm:$0xf]  ;;  %v8572_v10 = vld [vmem:[%s10244_s7 + $0x20] sm:$0xf] }
  0x30   : > { %371 = vst [vmem:[%s10249_s1 + $0x24] sm:$0xff] %v370_v3  ;;  %v8574_v11 = vld [vmem:[%s10244_s7 + $0x38] sm:$0xf]  ;;  %v8576_v12 = vld [vmem:[%s10244_s7 + $0x50] sm:$0xf] }
  0x31   : > { %373 = vst [vmem:[%s10249_s1 + $0x30] sm:$0xff] %v372_v4  ;;  %v8578_v13 = vld [vmem:[%s10244_s7 + $0x68] sm:$0xf]  ;;  %v8580_v14 = vld [vmem:[%s10244_s7 + $0x80] sm:$0xf] }
  0x32   : > { %375 = vst [vmem:[%s10249_s1 + $0x3c] sm:$0xff] %v374_v5  ;;  %v8582_v15 = vld [vmem:[%s10244_s7 + $0x98] sm:$0xf]  ;;  %v8584_v16 = vld [vmem:[%s10244_s7 + $0xb0] sm:$0xf] }
  0x33   : > { %377 = vst [vmem:[%s10249_s1 + $0x48] sm:$0xff] %v376_v6  ;;  %v8586_v17 = vld [vmem:[%s10244_s7 + $0xc8] sm:$0xf] }
  0x34   : > { %379 = vst [vmem:[%s10249_s1 + $0x54] sm:$0xff] %v378_v7 }
  0x35   : > { %381 = vst [vmem:[%s10249_s1 + $0x60] sm:$0xff] %v380_v8 }
  0x36   : > { %8571 = vst [vmem:[%s10249_s1 + $0x8] sm:$0xf] %v8570_v9 }
  0x37   : > { %8573 = vst [vmem:[%s10249_s1 + $0x14] sm:$0xf] %v8572_v10 }
  0x38   : > { %8575 = vst [vmem:[%s10249_s1 + $0x20] sm:$0xf] %v8574_v11 }
  0x39   : > { %8577 = vst [vmem:[%s10249_s1 + $0x2c] sm:$0xf] %v8576_v12 }
  0x3a   : > { %8579 = vst [vmem:[%s10249_s1 + $0x38] sm:$0xf] %v8578_v13 }
  0x3b   : > { %8581 = vst [vmem:[%s10249_s1 + $0x44] sm:$0xf] %v8580_v14 }
  0x3c   : > { %8583 = vst [vmem:[%s10249_s1 + $0x50] sm:$0xf] %v8582_v15 }
  0x3d   : > { %8585 = vst [vmem:[%s10249_s1 + $0x5c] sm:$0xf] %v8584_v16 }
  0x3e   : > { %8587 = vst [vmem:[%s10249_s1 + $0x68] sm:$0xf] %v8586_v17 }
  0x3f PF: > { %413 = sbr.rel (!%p10195_p4) target bundleno = 78 (0x4e), region = 66 }
  0x40   : > { %s9471_s26 = smul.u32 (%p10195_p4), 36, %s10220_s17 }
  0x41   : > { %s8588_s14 = smul.u32 (%p10195_p4), 216, %s10091_s28 }
  0x42   : > { %s417_s10 = scalar_lea.vmem (%p10195_p4), [#allocation8], %s9471_s26 }
  0x43   : > { %s8449_s8 = scalar_lea.vmem (%p10195_p4), %s16334_s4, %s8588_s14 }
  0x44   : > { %v8589_v18 = vld [vmem:[%s8449_s8 + $0xc] sm:$0xf]  ;;  %v8590_v19 = vld [vmem:[%s8449_s8 + $0x24] sm:$0xf]  ;;  %v8591_v20 = vld [vmem:[%s8449_s8 + $0x3c] sm:$0xf] }
  0x45   : > { %441 = vst [vmem:[%s417_s10] sm:$0xf] %v8589_v18  ;;  %v8592_v21 = vld [vmem:[%s8449_s8 + $0x54] sm:$0xf]  ;;  %v8593_v22 = vld [vmem:[%s8449_s8 + $0x6c] sm:$0xf] }
  0x46   : > { %443 = vst [vmem:[%s417_s10 + $0x4] sm:$0xf] %v8590_v19  ;;  %v8594_v23 = vld [vmem:[%s8449_s8 + $0x84] sm:$0xf]  ;;  %v8595_v24 = vld [vmem:[%s8449_s8 + $0x9c] sm:$0xf] }
  0x47   : > { %445 = vst [vmem:[%s417_s10 + $0x8] sm:$0xf] %v8591_v20  ;;  %v8596_v25 = vld [vmem:[%s8449_s8 + $0xb4] sm:$0xf]  ;;  %v8597_v26 = vld [vmem:[%s8449_s8 + $0xcc] sm:$0xf] }
  0x48   : > { %447 = vst [vmem:[%s417_s10 + $0xc] sm:$0xf] %v8592_v21 }
  0x49   : > { %449 = vst [vmem:[%s417_s10 + $0x10] sm:$0xf] %v8593_v22 }
  0x4a   : > { %451 = vst [vmem:[%s417_s10 + $0x14] sm:$0xf] %v8594_v23 }
  0x4b   : > { %453 = vst [vmem:[%s417_s10 + $0x18] sm:$0xf] %v8595_v24 }
  0x4c   : > { %455 = vst [vmem:[%s417_s10 + $0x1c] sm:$0xf] %v8596_v25 }
  0x4d   : > { %457 = vst [vmem:[%s417_s10 + $0x20] sm:$0xf] %v8597_v26 }
  0x4e PF: > { %p8598_p13 = scmp.ge.s32.totalorder %s10095_s29, 1  ;;  %p498_p0 = scmp.lt.s32.totalorder %s10095_s29, 3 }
  0x50   : > { %p499_p1 = pnand %p8598_p13, %p498_p0 }
  0x52   : > { %502 = sbr.rel (%p499_p1) target bundleno = 2814 (0xafe), region = 107 }
  0x57   : > { %s10294_s11 = sand.u32 1, %s10079_s25  }
  0x58   : > { %s9472_s17 = smul.u32 96, %s10294_s11  ;;  %s505_s12 = scalar_lea.sflag [#allocation3], %s10294_s11 }
  0x5a   : > { %s10300_s20 = scalar_lea.vmem [#allocation2], %s9472_s17 }
  0x5b   : > { %10062 = dma.done.wait (%p10201_p8), %s505_s12, 1536  }
  0x5c   : > { %10064 = vsyncadd (%p10201_p8), %s505_s12, 4294965760  ;;  %s8599_s21 = sshll.u32 %s10294_s11, 5  ;;  %s515_s22 = scalar_lea.sflag [#allocation6], %s10294_s11 }
  0x5d   : > { %s10308_s19 = scalar_lea.vmem [#allocation5], %s8599_s21 }
  0x5e   : > { %10066 = dma.done.wait (%p10201_p8), %s515_s22, 512  }
  0x5f   : > { %10068 = vsyncadd (%p10201_p8), %s515_s22, 4294966784  ;;  %s9473_s30 = smul.u32 108, %s10294_s11  ;;  %vm1393_vm0 = vcmask 1043456   ;;  %v608_v6 = vld [vmem:[%s10300_s20 + $0x30] sm:$0xff]  ;;  %v609_v7 = vld [vmem:[%s10300_s20 + $0x38] sm:$0xff]  ;;  %vm1212_vm1 = vcmask 850944  }
  0x60   : > { %s9474_s9 = smul.u32 36, %s10294_s11  ;;  %v611_v8 = vld [vmem:[%s10300_s20 + $0x48] sm:$0xff]  ;;  %v612_v10 = vld [vmem:[%s10300_s20 + $0x50] sm:$0xff]  ;;  %v610_v11 = vld [vmem:[%s10300_s20 + $0x40] sm:$0xff]  ;;  %v748_v14 = vpack.c.bf16 %v609_v7, %v608_v6  ;;  %s10102_s21 = smov 127   ;;  %vm3298_vm2 = vcmask 1039360  }
  0x61   : > { %s10316_s15 = scalar_lea.vmem [#allocation7], %s9473_s30  ;;  %v613_v12 = vld [vmem:[%s10300_s20 + $0x58] sm:$0xff]  ;;  %v750_v15 = vpack.c.bf16 %v612_v10, %v611_v8  ;;  %v616_v16 = vld [vmem:[%s10308_s19 + $0x10] sm:$0xff]  ;;  %v602_v21 = vld [vmem:[%s10300_s20] sm:$0xff]  ;;  %s10103_s23 = smov 126   ;;  %vm3575_vm3 = vcmask 1031168  }
  0x62   : > { %v634_v27 = vld [vmem:[%s10316_s15 + $0x60] sm:$0xff]  ;;  %v635_v28 = vld [vmem:[%s10316_s15 + $0x68] sm:$0xf]  ;;  %s10320_s24 = scalar_lea.vmem [#allocation8], %s9474_s9  ;;  %v9381_v38 = vld [vmem:[%s10316_s15 + $0x50] sm:$0xf0]  ;;  %v749_v19 = vpack.c.bf16 %v616_v16, %v610_v11 }
  0x63   : > { %v644_v29 = vld [vmem:[%s10320_s24 + $0x20] sm:$0xf]  ;;  %v687_v30 = vunpack.c.l.b16 %v634_v27  ;;  %v689_v31 = vunpack.c.l.b16 %v635_v28  ;;  %v688_v33 = vunpack.c.h.b16 %v634_v27  ;;  %v8638_v34 = vld [vmem:[%s10316_s15 + $0x48] sm:$0xf]  ;;  %v9382_v40 = vld [vmem:[%s10316_s15 + $0x58] sm:$0xf0] }
  0x64   : > { %v734_v32 = vunpack.c.l.b16 %v644_v29  ;;  %v8646_v39 = vld [vmem:[%s10316_s15 + $0x50] sm:$0xf]  ;;  %v9380_v42 = vld [vmem:[%s10316_s15 + $0x4c] sm:$0xf]  ;;  %v8640_v43 = vld [vmem:[%s10316_s15 + $0x54] sm:$0xf0]  ;;  %v8639_v47 = vor.u32 %v9381_v38, %v8638_v34  ;;  %v768_v34 = vunpack.c.l.b16 %v748_v14 }
  0x65   : > { %v702_v35 = vpack.c.b16 %v687_v30, %v687_v30  ;;  %v704_v36 = vpack.c.b16 %v689_v31, %v689_v31  ;;  %v703_v41 = vpack.c.b16 %v688_v33, %v688_v33  ;;  %v8647_v48 = vor.u32 %v9382_v40, %v8646_v39  ;;  %v9386_v49 = vld [vmem:[%s10320_s24 + $0x18] sm:$0xff]  ;;  %v9378_v52 = vld [vmem:[%s10316_s15 + $0x38] sm:$0xf0]  ;;  %v8634_v53 = vld [vmem:[%s10316_s15 + $0x38] sm:$0xf]  ;;  %s10104_s26 = smov 108  }
  0x66   : > { %v739_v37 = vpack.c.b16 %v734_v32, %v734_v32  ;;  %v8626_v51 = vld [vmem:[%s10316_s15 + $0x30] sm:$0xf]  ;;  %v9379_v54 = vld [vmem:[%s10316_s15 + $0x40] sm:$0xf0]  ;;  %v8643_v55 = vor.u32 %v9380_v42, %v8640_v43  ;;  %v9377_v56 = vld [vmem:[%s10316_s15 + $0x34] sm:$0xf]  ;;  %v769_v39 = vunpack.c.h.b16 %v748_v14  ;;  %v770_v40 = vunpack.c.l.b16 %v749_v19 }
  0x67   : > { %v1395_v44 = vsel %vm1393_vm0, %v702_v35, 0  ;;  %v1401_v45 = vsel %vm1393_vm0, %v704_v36, 0  ;;  %v1398_v50 = vsel %vm1393_vm0, %v703_v41, 0  ;;  %v8628_v57 = vld [vmem:[%s10316_s15 + $0x3c] sm:$0xf0]  ;;  %v8627_v63 = vor.u32 %v9378_v52, %v8626_v51  ;;  %v617_v17 = vld [vmem:[%s10308_s19 + $0x18] sm:$0xff] }
  0x68   : > { %v1404_v46 = vsel %vm1393_vm0, %v739_v37, 0  ;;  %1407 = vmatpush.bf16.msra.mxu0 %v1395_v44  ;;  %2025 = vmatpush.bf16.msra.mxu2 %v1401_v45  ;;  %v9385_v58 = vld [vmem:[%s10320_s24 + $0x10] sm:$0xff]  ;;  %v8614_v59 = vld [vmem:[%s10316_s15 + $0x18] sm:$0xf]  ;;  %v8635_v0 = vor.u32 %v9379_v54, %v8634_v53  ;;  %v9373_v4 = vld [vmem:[%s10316_s15 + $0x10] sm:$0xf0]  ;;  %v8631_v9 = vor.u32 %v9377_v56, %v8628_v57  ;;  %v751_v20 = vpack.c.bf16 %v617_v17, %v613_v12 }
  0x69   : > { %2334 = vmatpush.bf16.msra.mxu3 %v1404_v46  ;;  %1716 = vmatpush.bf16.msra.mxu1 %v1398_v50  ;;  %v9375_v60 = vld [vmem:[%s10316_s15 + $0x20] sm:$0xf0]  ;;  %v8622_v61 = vld [vmem:[%s10316_s15 + $0x20] sm:$0xf]  ;;  %v9376_v62 = vld [vmem:[%s10316_s15 + $0x28] sm:$0xf0]  ;;  %v772_v35 = vunpack.c.l.b16 %v750_v15  ;;  %v771_v42 = vunpack.c.h.b16 %v749_v19 }
  0x6a   : > { %v10346_v1 = vld [vmem:[%s10316_s15] sm:$0xf]  ;;  %v9372_v2 = vld [vmem:[%s10316_s15 + $0x8] sm:$0xf0]  ;;  %v8610_v3 = vld [vmem:[%s10316_s15 + $0x8] sm:$0xf]  ;;  %v8615_v23 = vor.u32 %v9375_v60, %v8614_v59  ;;  %v8623_v24 = vor.u32 %v9376_v62, %v8622_v61  ;;  %v774_v41 = vunpack.c.l.b16 %v751_v20  ;;  %v775_v43 = vunpack.c.h.b16 %v751_v20 }
  0x6b   : > { %v9374_v5 = vld [vmem:[%s10316_s15 + $0x1c] sm:$0xf]  ;;  %v8616_v13 = vld [vmem:[%s10316_s15 + $0x24] sm:$0xf0]  ;;  %v606_v26 = vld [vmem:[%s10300_s20 + $0x20] sm:$0xff]  ;;  %v8603_v28 = vor.u32 %v9372_v2, %v10346_v1  ;;  %v8611_v29 = vor.u32 %v9373_v4, %v8610_v3  ;;  %v780_v50 = vpack.c.b16 %v772_v35, %v768_v34  ;;  %s10105_s7 = smov 107  }
  0x6c   : > { %1408 = vmatpush.bf16.msra.mxu0 %v8639_v47  ;;  %2026 = vmatpush.bf16.msra.mxu2 %v8647_v48  ;;  %v9384_v18 = vld [vmem:[%s10320_s24 + $0x8] sm:$0xff]  ;;  %v605_v25 = vld [vmem:[%s10300_s20 + $0x18] sm:$0xff]  ;;  %v604_v27 = vld [vmem:[%s10300_s20 + $0x10] sm:$0xff]  ;;  %v8619_v30 = vor.u32 %v9374_v5, %v8616_v13  ;;  %v773_v47 = vunpack.c.h.b16 %v750_v15  ;;  %v782_v51 = vpack.c.b16 %v774_v41, %v770_v40  ;;  %v783_v52 = vpack.c.b16 %v775_v43, %v771_v42  ;;  %s10106_s16 = smov 106   ;;  %s10107_s1 = smov 88  }
  0x6d   : > { %2335 = vmatpush.bf16.msra.mxu3 %v9386_v49  ;;  %1717 = vmatpush.bf16.msra.mxu1 %v8643_v55  ;;  %v603_v22 = vld [vmem:[%s10300_s20 + $0x8] sm:$0xff]  ;;  %v614_v32 = vld [vmem:[%s10308_s19] sm:$0xff]  ;;  %v8604_v37 = vld [vmem:[%s10316_s15 + $0xc] sm:$0xf0]  ;;  %v746_v44 = vpack.c.bf16 %v606_v26, %v605_v25  ;;  %s10108_s18 = smov 87   ;;  %s10109_s13 = smov 86  }
  0x6e   : > { %v607_v31 = vld [vmem:[%s10300_s20 + $0x28] sm:$0xff]  ;;  %v9371_v36 = vld [vmem:[%s10316_s15 + $0x4] sm:$0xf]  ;;  %v744_v38 = vpack.c.bf16 %v603_v22, %v602_v21  ;;  %v745_v45 = vpack.c.bf16 %v614_v32, %v604_v27  ;;  %v9383_v48 = vld [vmem:[%s10320_s24] sm:$0xff]  ;;  %v781_v57 = vpack.c.b16 %v773_v47, %v769_v39  ;;  %vm3852_vm4 = vcmask 883712   ;;  %s10110_s24 = smov 21  }
  0x6f   : > { %v615_v33 = vld [vmem:[%s10308_s19 + $0x8] sm:$0xff]  ;;  %v8607_v49 = vor.u32 %v9371_v36, %v8604_v37  ;;  %v764_v54 = vunpack.c.l.b16 %v746_v44  ;;  %v765_v61 = vunpack.c.h.b16 %v746_v44  ;;  %v9387_v2 = vld [vmem:[%s16335_s5] sm:$0xff]  ;;  %v9389_v4 = vld [vmem:[%s16335_s5 + $0x10] sm:$0xff]  ;;  %vm4129_vm5 = vcmask 875520   ;;  %p586_p2 = scmp.lt.s32.totalorder %s10087_s27, 1  ;;  %s10111_s8 = smov 42  }
  0x70   : > { %1409 = vmatpush.bf16.msra.mxu0 %v8627_v63  ;;  %2027 = vmatpush.bf16.msra.mxu2 %v8635_v0  ;;  %v747_v46 = vpack.c.bf16 %v615_v33, %v607_v31  ;;  %v760_v53 = vunpack.c.l.b16 %v744_v38  ;;  %v762_v55 = vunpack.c.l.b16 %v745_v45  ;;  %v761_v60 = vunpack.c.h.b16 %v744_v38  ;;  %v9388_v3 = vld [vmem:[%s16335_s5 + $0x8] sm:$0xff]  ;;  %v9390_v5 = vld [vmem:[%s16335_s5 + $0x18] sm:$0xff]  ;;  %v9391_v6 = vld [vmem:[%s16335_s5 + $0x20] sm:$0xff]  ;;  %s17769_s10 = sld [smem:[#allocation365_spill]] }
  0x71   : > { %2336 = vmatpush.bf16.msra.mxu3 %v9385_v58  ;;  %1718 = vmatpush.bf16.msra.mxu1 %v8631_v9  ;;  %v763_v58 = vunpack.c.h.b16 %v745_v45  ;;  %v9392_v7 = vld [vmem:[%s16335_s5 + $0x28] sm:$0xff]  ;;  %v9393_v8 = vld [vmem:[%s16335_s5 + $0x30] sm:$0xff]  ;;  %v9394_v9 = vld [vmem:[%s16335_s5 + $0x38] sm:$0xff]  ;;  %vm4406_vm6 = vcmask 867328   ;;  %vm16580_vm7 = vcmask 719872   ;;  %vm16579_vm8 = vcmask 711680  }
  0x72   : > { %v766_v56 = vunpack.c.l.b16 %v747_v46  ;;  %v767_v59 = vunpack.c.h.b16 %v747_v46  ;;  %v776_v62 = vpack.c.b16 %v764_v54, %v760_v53  ;;  %v777_v1 = vpack.c.b16 %v765_v61, %v761_v60  ;;  %v9395_v10 = vld [vmem:[%s16335_s5 + $0x40] sm:$0xff]  ;;  %v9396_v19 = vld [vmem:[%s16335_s5 + $0x48] sm:$0xff]  ;;  %v9398_v37 = vld [vmem:[%s16335_s5 + $0x58] sm:$0xff] }
  0x73   : > { %v9399_v47 = vld [vmem:[%s16335_s5 + $0x60] sm:$0xff]  ;;  %vm16578_vm9 = vcmask 703488  }
  0x74   : > { %1410 = vmatpush.bf16.msra.mxu0 %v8615_v23  ;;  %2028 = vmatpush.bf16.msra.mxu2 %v8623_v24  ;;  %v778_v63 = vpack.c.b16 %v766_v56, %v762_v55  ;;  %v779_v0 = vpack.c.b16 %v767_v59, %v763_v58 }
  0x75   : > { %2337 = vmatpush.bf16.msra.mxu3 %v9384_v18  ;;  %1719 = vmatpush.bf16.msra.mxu1 %v8619_v30 }
  0x78   : > { %1411 = vmatpush.bf16.msra.mxu0 %v8603_v28  ;;  %2029 = vmatpush.bf16.msra.mxu2 %v8611_v29  ;;  %v9397_v28 = vld [vmem:[%s16335_s5 + $0x50] sm:$0xff] }
  0x79   : > { %2338 = vmatpush.bf16.msra.mxu3 %v9383_v48  ;;  %1720 = vmatpush.bf16.msra.mxu1 %v8607_v49 }
  0x7c   : > { %1412 = vmatpush.bf16.msra.mxu0 %v780_v50  ;;  %2030 = vmatpush.bf16.msra.mxu2 %v782_v51 }
  0x7d   : > { %2339 = vmatpush.bf16.msra.mxu3 %v783_v52  ;;  %1721 = vmatpush.bf16.msra.mxu1 %v781_v57  ;;  %v9400_v57 = vld [vmem:[%s16335_s5 + $0x68] sm:$0xff] }
  0x80   : > { %1413 = vmatpush.bf16.msra.mxu0 %v776_v62  ;;  %2031 = vmatpush.bf16.msra.mxu2 %v778_v63 }
  0x81   : > { %2340 = vmatpush.bf16.msra.mxu3 %v779_v0  ;;  %1722 = vmatpush.bf16.msra.mxu1 %v777_v1 }
  0x83   : > { %8904 = vmatmul.msk.bf16.vlgmr.msra.gmra.mxu0 %vm1212_vm1, %v9387_v2  ;;  %9024 = vmatmul.msk.bf16.vlgmr.msra.gmra.mxu2 %vm1212_vm1, %v9387_v2 }
  0x84   : > { %9084 = vmatmul.msk.bf16.vlgmr.msra.gmra.mxu3 %vm1212_vm1, %v9387_v2  ;;  %8964 = vmatmul.msk.bf16.vlgmr.msra.gmra.mxu1 %vm1212_vm1, %v9387_v2 }
  0x93   : > { %8905 = vmatmul.msk.bf16.gmra.mxu0 %vm1212_vm1, %v9388_v3  ;;  %9025 = vmatmul.msk.bf16.gmra.mxu2 %vm1212_vm1, %v9388_v3 }
  0x94   : > { %9085 = vmatmul.msk.bf16.gmra.mxu3 %vm1212_vm1, %v9388_v3  ;;  %8965 = vmatmul.msk.bf16.gmra.mxu1 %vm1212_vm1, %v9388_v3  ;;  %v9401_v3 = vld [vmem:[%s16335_s5 + $0x70] sm:$0xff] }
  0xa3   : > { %8906 = vmatmul.msk.bf16.gmra.mxu0 %vm1212_vm1, %v9389_v4  ;;  %9026 = vmatmul.msk.bf16.gmra.mxu2 %vm1212_vm1, %v9389_v4 }
  0xa4   : > { %9086 = vmatmul.msk.bf16.gmra.mxu3 %vm1212_vm1, %v9389_v4  ;;  %8966 = vmatmul.msk.bf16.gmra.mxu1 %vm1212_vm1, %v9389_v4 }
  0xb3   : > { %8907 = vmatmul.msk.bf16.gmra.mxu0 %vm1212_vm1, %v9390_v5  ;;  %9027 = vmatmul.msk.bf16.gmra.mxu2 %vm1212_vm1, %v9390_v5 }
  0xb4   : > { %9087 = vmatmul.msk.bf16.gmra.mxu3 %vm1212_vm1, %v9390_v5  ;;  %8967 = vmatmul.msk.bf16.gmra.mxu1 %vm1212_vm1, %v9390_v5 }
  0xc3   : > { %8908 = vmatmul.msk.bf16.gmra.mxu0 %vm1212_vm1, %v9391_v6  ;;  %9028 = vmatmul.msk.bf16.gmra.mxu2 %vm1212_vm1, %v9391_v6 }
  0xc4   : > { %9088 = vmatmul.msk.bf16.gmra.mxu3 %vm1212_vm1, %v9391_v6  ;;  %8968 = vmatmul.msk.bf16.gmra.mxu1 %vm1212_vm1, %v9391_v6 }
  0xd3   : > { %8909 = vmatmul.msk.bf16.gmra.mxu0 %vm1212_vm1, %v9392_v7  ;;  %9029 = vmatmul.msk.bf16.gmra.mxu2 %vm1212_vm1, %v9392_v7 }
  0xd4   : > { %9089 = vmatmul.msk.bf16.gmra.mxu3 %vm1212_vm1, %v9392_v7  ;;  %8969 = vmatmul.msk.bf16.gmra.mxu1 %vm1212_vm1, %v9392_v7 }
  0xe3   : > { %8910 = vmatmul.msk.bf16.gmra.mxu0 %vm1212_vm1, %v9393_v8  ;;  %9030 = vmatmul.msk.bf16.gmra.mxu2 %vm1212_vm1, %v9393_v8 }
  0xe4   : > { %9090 = vmatmul.msk.bf16.gmra.mxu3 %vm1212_vm1, %v9393_v8  ;;  %8970 = vmatmul.msk.bf16.gmra.mxu1 %vm1212_vm1, %v9393_v8 }
  0xf3   : > { %9031 = vmatmul.msk.bf16.gmra.mxu2 %vm1212_vm1, %v9394_v9  ;;  %8911 = vmatmul.msk.bf16.gmra.mxu0 %vm1212_vm1, %v9394_v9 }
  0xf4   : > { %8971 = vmatmul.msk.bf16.gmra.mxu1 %vm1212_vm1, %v9394_v9  ;;  %9091 = vmatmul.msk.bf16.gmra.mxu3 %vm1212_vm1, %v9394_v9 }
 0x100   : > { %v10433_v11 = vpop.f32.mrf.mxu0 }
 0x101   : > { %16636 = vst [vmem:[#allocation19_spill] sm:$0xff] %v10433_v11  ;;  %v10435_v12 = vpop.f32.mrf.mxu1 }
 0x102   : > { %16637 = vst [vmem:[#allocation20_spill] sm:$0xff] %v10435_v12 }
 0x103   : > { %8912 = vmatmul.msk.bf16.gmra.mxu0 %vm1212_vm1, %v9395_v10  ;;  %9032 = vmatmul.msk.bf16.gmra.mxu2 %vm1212_vm1, %v9395_v10 }
 0x104   : > { %9092 = vmatmul.msk.bf16.gmra.mxu3 %vm1212_vm1, %v9395_v10  ;;  %8972 = vmatmul.msk.bf16.gmra.mxu1 %vm1212_vm1, %v9395_v10 }
 0x106   : > { %v10441_v13 = vpop.f32.mrf.mxu2 }
 0x107   : > { %16638 = vst [vmem:[#allocation21_spill] sm:$0xff] %v10441_v13  ;;  %v10443_v14 = vpop.f32.mrf.mxu3 }
 0x108   : > { %16639 = vst [vmem:[#allocation22_spill] sm:$0xff] %v10443_v14  ;;  %v10445_v15 = vpop.f32.mrf.mxu0 }
 0x109   : > { %16640 = vst [vmem:[#allocation23_spill] sm:$0xff] %v10445_v15  ;;  %v10447_v16 = vpop.f32.mrf.mxu1 }
 0x10a   : > { %16641 = vst [vmem:[#allocation24_spill] sm:$0xff] %v10447_v16 }
 0x10e   : > { %v10449_v17 = vpop.f32.mrf.mxu2 }
 0x10f   : > { %16642 = vst [vmem:[#allocation25_spill] sm:$0xff] %v10449_v17  ;;  %v10451_v18 = vpop.f32.mrf.mxu3 }
 0x110   : > { %16643 = vst [vmem:[#allocation26_spill] sm:$0xff] %v10451_v18  ;;  %v10456_v20 = vpop.f32.mrf.mxu0 }
 0x111   : > { %16644 = vst [vmem:[#allocation27_spill] sm:$0xff] %v10456_v20  ;;  %v10458_v21 = vpop.f32.mrf.mxu1 }
 0x112   : > { %16645 = vst [vmem:[#allocation28_spill] sm:$0xff] %v10458_v21 }
 0x113   : > { %8913 = vmatmul.msk.bf16.gmra.mxu0 %vm1212_vm1, %v9396_v19  ;;  %9033 = vmatmul.msk.bf16.gmra.mxu2 %vm1212_vm1, %v9396_v19 }
 0x114   : > { %8973 = vmatmul.msk.bf16.gmra.mxu1 %vm1212_vm1, %v9396_v19  ;;  %9093 = vmatmul.msk.bf16.gmra.mxu3 %vm1212_vm1, %v9396_v19 }
 0x116   : > { %v10464_v22 = vpop.f32.mrf.mxu2 }
 0x117   : > { %16646 = vst [vmem:[#allocation29_spill] sm:$0xff] %v10464_v22  ;;  %v10466_v23 = vpop.f32.mrf.mxu3 }
 0x118   : > { %16647 = vst [vmem:[#allocation30_spill] sm:$0xff] %v10466_v23  ;;  %v10468_v24 = vpop.f32.mrf.mxu0 }
 0x119   : > { %16648 = vst [vmem:[#allocation31_spill] sm:$0xff] %v10468_v24  ;;  %v10470_v25 = vpop.f32.mrf.mxu1 }
 0x11a   : > { %16649 = vst [vmem:[#allocation32_spill] sm:$0xff] %v10470_v25 }
 0x11e   : > { %v10472_v26 = vpop.f32.mrf.mxu2 }
 0x11f   : > { %16650 = vst [vmem:[#allocation33_spill] sm:$0xff] %v10472_v26  ;;  %v10474_v27 = vpop.f32.mrf.mxu3 }
 0x120   : > { %16651 = vst [vmem:[#allocation34_spill] sm:$0xff] %v10474_v27  ;;  %v10479_v29 = vpop.f32.mrf.mxu0 }
 0x121   : > { %v10481_v30 = vpop.f32.mrf.mxu1 }
 0x123   : > { %9034 = vmatmul.msk.bf16.gmra.mxu2 %vm1212_vm1, %v9397_v28  ;;  %8914 = vmatmul.msk.bf16.gmra.mxu0 %vm1212_vm1, %v9397_v28 }
 0x124   : > { %8974 = vmatmul.msk.bf16.gmra.mxu1 %vm1212_vm1, %v9397_v28  ;;  %9094 = vmatmul.msk.bf16.gmra.mxu3 %vm1212_vm1, %v9397_v28 }
 0x126   : > { %v10487_v31 = vpop.f32.mrf.mxu2 }
 0x127   : > { %v10489_v32 = vpop.f32.mrf.mxu3 }
 0x128   : > { %v10491_v33 = vpop.f32.mrf.mxu0 }
 0x129   : > { %v10493_v34 = vpop.f32.mrf.mxu1 }
 0x12e   : > { %v10495_v35 = vpop.f32.mrf.mxu2 }
 0x12f   : > { %v10497_v36 = vpop.f32.mrf.mxu3 }
 0x130   : > { %v10502_v38 = vpop.f32.mrf.mxu0 }
 0x131   : > { %v10504_v39 = vpop.f32.mrf.mxu1 }
 0x133   : > { %8915 = vmatmul.msk.bf16.gmra.mxu0 %vm1212_vm1, %v9398_v37  ;;  %9035 = vmatmul.msk.bf16.gmra.mxu2 %vm1212_vm1, %v9398_v37 }
 0x134   : > { %9095 = vmatmul.msk.bf16.gmra.mxu3 %vm1212_vm1, %v9398_v37  ;;  %8975 = vmatmul.msk.bf16.gmra.mxu1 %vm1212_vm1, %v9398_v37  ;;  %v9402_v37 = vld [vmem:[%s16335_s5 + $0x78] sm:$0xff] }
 0x136   : > { %v10510_v40 = vpop.f32.mrf.mxu2 }
 0x137   : > { %v10512_v41 = vpop.f32.mrf.mxu3 }
 0x138   : > { %v10514_v42 = vpop.f32.mrf.mxu0 }
 0x139   : > { %v10516_v43 = vpop.f32.mrf.mxu1 }
 0x13e   : > { %v10518_v44 = vpop.f32.mrf.mxu2 }
 0x13f   : > { %v10520_v45 = vpop.f32.mrf.mxu3 }
 0x140   : > { %v10522_v46 = vpop.f32.mrf.mxu0 }
 0x141   : > { %16652 = vst [vmem:[#allocation35_spill] sm:$0xff] %v10522_v46  ;;  %v10527_v48 = vpop.f32.mrf.mxu1 }
 0x142   : > { %16653 = vst [vmem:[#allocation36_spill] sm:$0xff] %v10527_v48 }
 0x143   : > { %8916 = vmatmul.msk.bf16.gmra.mxu0 %vm1212_vm1, %v9399_v47  ;;  %9036 = vmatmul.msk.bf16.gmra.mxu2 %vm1212_vm1, %v9399_v47 }
 0x144   : > { %8976 = vmatmul.msk.bf16.gmra.mxu1 %vm1212_vm1, %v9399_v47  ;;  %9096 = vmatmul.msk.bf16.gmra.mxu3 %vm1212_vm1, %v9399_v47 }
 0x146   : > { %v10533_v49 = vpop.f32.mrf.mxu2 }
 0x147   : > { %16654 = vst [vmem:[#allocation37_spill] sm:$0xff] %v10533_v49  ;;  %v10535_v50 = vpop.f32.mrf.mxu3 }
 0x148   : > { %16655 = vst [vmem:[#allocation38_spill] sm:$0xff] %v10535_v50  ;;  %v10537_v51 = vpop.f32.mrf.mxu0 }
 0x149   : > { %16656 = vst [vmem:[#allocation39_spill] sm:$0xff] %v10537_v51  ;;  %v10539_v52 = vpop.f32.mrf.mxu1 }
 0x14a   : > { %16657 = vst [vmem:[#allocation40_spill] sm:$0xff] %v10539_v52 }
 0x14e   : > { %v10541_v53 = vpop.f32.mrf.mxu2 }
 0x14f   : > { %16658 = vst [vmem:[#allocation41_spill] sm:$0xff] %v10541_v53  ;;  %v10543_v54 = vpop.f32.mrf.mxu3 }
 0x150   : > { %16659 = vst [vmem:[#allocation42_spill] sm:$0xff] %v10543_v54  ;;  %v10545_v55 = vpop.f32.mrf.mxu0 }
 0x151   : > { %16660 = vst [vmem:[#allocation43_spill] sm:$0xff] %v10545_v55  ;;  %v10547_v56 = vpop.f32.mrf.mxu1 }
 0x152   : > { %16661 = vst [vmem:[#allocation44_spill] sm:$0xff] %v10547_v56 }
 0x153   : > { %9037 = vmatmul.msk.bf16.gmra.mxu2 %vm1212_vm1, %v9400_v57  ;;  %8917 = vmatmul.msk.bf16.gmra.mxu0 %vm1212_vm1, %v9400_v57 }
 0x154   : > { %8977 = vmatmul.msk.bf16.gmra.mxu1 %vm1212_vm1, %v9400_v57  ;;  %9097 = vmatmul.msk.bf16.gmra.mxu3 %vm1212_vm1, %v9400_v57 }
 0x156   : > { %v10556_v58 = vpop.f32.mrf.mxu2 }
 0x157   : > { %16662 = vst [vmem:[#allocation45_spill] sm:$0xff] %v10556_v58  ;;  %v10558_v59 = vpop.f32.mrf.mxu3 }
 0x158   : > { %16663 = vst [vmem:[#allocation46_spill] sm:$0xff] %v10558_v59  ;;  %v10560_v60 = vpop.f32.mrf.mxu0 }
 0x159   : > { %16664 = vst [vmem:[#allocation47_spill] sm:$0xff] %v10560_v60  ;;  %v10562_v61 = vpop.f32.mrf.mxu1 }
 0x15a   : > { %16665 = vst [vmem:[#allocation48_spill] sm:$0xff] %v10562_v61 }
 0x15e   : > { %v10564_v62 = vpop.f32.mrf.mxu2 }
 0x15f   : > { %16666 = vst [vmem:[#allocation49_spill] sm:$0xff] %v10564_v62  ;;  %v10567_v0 = vpop.f32.mrf.mxu3  ;;  %v9411_v62 = vld [vmem:[%s16335_s5 + $0xc0] sm:$0xff] }
 0x160   : > { %v1445_v63 = vpop.f32.mrf.mxu0  ;;  %16667 = vst [vmem:[#allocation50_spill] sm:$0xff] %v10567_v0 }
 0x161   : > { %3266 = vrot.lane.b32.xlu0 %v1445_v63, %s10102_s21  ;;  %v1754_v1 = vpop.f32.mrf.mxu1 }
 0x163   : > { %8918 = vmatmul.msk.bf16.gmra.mxu0 %vm1212_vm1, %v9401_v3  ;;  %9038 = vmatmul.msk.bf16.gmra.mxu2 %vm1212_vm1, %v9401_v3 }
 0x164   : > { %9098 = vmatmul.msk.bf16.gmra.mxu3 %vm1212_vm1, %v9401_v3  ;;  %8978 = vmatmul.msk.bf16.gmra.mxu1 %vm1212_vm1, %v9401_v3 }
 0x166   : > { %v2063_v2 = vpop.f32.mrf.mxu2 }
 0x167   : > { %3270 = vrot.lane.b32.xlu1 %v2063_v2, %s10102_s21  ;;  %v2372_v5 = vpop.f32.mrf.mxu3 }
 0x168   : > { %v1447_v4 = vpop.f32.mrf.mxu0 }
 0x169   : > { %3268 = vrot.lane.b32.xlu0 %v1754_v1, %s10102_s21  ;;  %3274 = vrot.lane.b32.xlu2 %v1447_v4, %s10102_s21  ;;  %v1756_v6 = vpop.f32.mrf.mxu1 }
 0x16e   : > { %v2065_v7 = vpop.f32.mrf.mxu2 }
 0x16f   : > { %3272 = vrot.lane.b32.xlu1 %v2372_v5, %s10102_s21  ;;  %v2374_v8 = vpop.f32.mrf.mxu3  ;;  %v9403_v5 = vld [vmem:[%s16335_s5 + $0x80] sm:$0xff] }
 0x170   : > { %v1450_v9 = vpop.f32.mrf.mxu0 }
 0x171   : > { %3278 = vrot.lane.b32.xlu0 %v2065_v7, %s10102_s21  ;;  %3276 = vrot.lane.b32.xlu2 %v1756_v6, %s10102_s21  ;;  %v1759_v10 = vpop.f32.mrf.mxu1 }
 0x173   : > { %8919 = vmatmul.msk.bf16.gmra.mxu0 %vm1212_vm1, %v9402_v37  ;;  %9039 = vmatmul.msk.bf16.gmra.mxu2 %vm1212_vm1, %v9402_v37 }
 0x174   : > { %8979 = vmatmul.msk.bf16.gmra.mxu1 %vm1212_vm1, %v9402_v37  ;;  %9099 = vmatmul.msk.bf16.gmra.mxu3 %vm1212_vm1, %v9402_v37 }
 0x176   : > { %v2068_v19 = vpop.f32.mrf.mxu2 }
 0x177   : > { %3280 = vrot.lane.b32.xlu1 %v2374_v8, %s10102_s21  ;;  %v2377_v28 = vpop.f32.mrf.mxu3 }
 0x178   : > { %v1452_v47 = vpop.f32.mrf.mxu0 }
 0x179   : > { %3284 = vrot.lane.b32.xlu0 %v1759_v10, %s10102_s21  ;;  %3282 = vrot.lane.b32.xlu2 %v1450_v9, %s10102_s21  ;;  %v1761_v57 = vpop.f32.mrf.mxu1 }
 0x17e   : > { %v2070_v63 = vpop.f32.mrf.mxu2 }
 0x17f   : > { %3286 = vrot.lane.b32.xlu1 %v2068_v19, %s10102_s21  ;;  %v2379_v1 = vpop.f32.mrf.mxu3 }
 0x180   : > { %v1455_v2 = vpop.f32.mrf.mxu0 }
 0x181   : > { %3288 = vrot.lane.b32.xlu2 %v2377_v28, %s10102_s21  ;;  %3290 = vrot.lane.b32.xlu0 %v1452_v47, %s10102_s21  ;;  %v1764_v3 = vpop.f32.mrf.mxu1  ;;  %v9404_v47 = vld [vmem:[%s16335_s5 + $0x88] sm:$0xff] }
 0x183   : > { %9040 = vmatmul.msk.bf16.gmra.mxu2 %vm1212_vm1, %v9403_v5  ;;  %8920 = vmatmul.msk.bf16.gmra.mxu0 %vm1212_vm1, %v9403_v5 }
 0x184   : > { %8980 = vmatmul.msk.bf16.gmra.mxu1 %vm1212_vm1, %v9403_v5  ;;  %9100 = vmatmul.msk.bf16.gmra.mxu3 %vm1212_vm1, %v9403_v5 }
 0x186   : > { %v2073_v4 = vpop.f32.mrf.mxu2 }
 0x187   : > { %3292 = vrot.lane.b32.xlu1 %v1761_v57, %s10102_s21  ;;  %v2382_v6 = vpop.f32.mrf.mxu3 }
 0x188   : > { %v1457_v7 = vpop.f32.mrf.mxu0 }
 0x189   : > { %3294 = vrot.lane.b32.xlu2 %v2070_v63, %s10102_s21  ;;  %3296 = vrot.lane.b32.xlu0 %v2379_v1, %s10102_s21  ;;  %v1766_v8 = vpop.f32.mrf.mxu1 }
 0x18e   : > { %v2075_v9 = vpop.f32.mrf.mxu2 }
 0x18f   : > { %3359 = vrot.lane.b32.xlu1 %v1455_v2, %s10102_s21  ;;  %v2384_v10 = vpop.f32.mrf.mxu3 }
 0x190   : > { %v1460_v19 = vpop.f32.mrf.mxu0 }
 0x191   : > { %3361 = vrot.lane.b32.xlu2 %v1764_v3, %s10102_s21  ;;  %3363 = vrot.lane.b32.xlu0 %v2073_v4, %s10102_s21  ;;  %v1769_v28 = vpop.f32.mrf.mxu1 }
 0x193   : > { %8921 = vmatmul.msk.bf16.gmra.mxu0 %vm1212_vm1, %v9404_v47  ;;  %9041 = vmatmul.msk.bf16.gmra.mxu2 %vm1212_vm1, %v9404_v47 }
 0x194   : > { %9101 = vmatmul.msk.bf16.gmra.mxu3 %vm1212_vm1, %v9404_v47  ;;  %8981 = vmatmul.msk.bf16.gmra.mxu1 %vm1212_vm1, %v9404_v47 }
 0x196   : > { %v2078_v37 = vpop.f32.mrf.mxu2 }
 0x197   : > { %3365 = vrot.lane.b32.xlu1 %v2382_v6, %s10102_s21  ;;  %v2387_v57 = vpop.f32.mrf.mxu3 }
 0x198   : > { %v1462_v63 = vpop.f32.mrf.mxu0 }
 0x199   : > { %3369 = vrot.lane.b32.xlu0 %v1766_v8, %s10102_s21  ;;  %3367 = vrot.lane.b32.xlu2 %v1457_v7, %s10102_s21  ;;  %v1771_v1 = vpop.f32.mrf.mxu1 }
 0x19e   : > { %v2080_v2 = vpop.f32.mrf.mxu2 }
 0x19f   : > { %3371 = vrot.lane.b32.xlu1 %v2075_v9, %s10102_s21  ;;  %v2389_v3 = vpop.f32.mrf.mxu3  ;;  %v9405_v9 = vld [vmem:[%s16335_s5 + $0x90] sm:$0xff] }
 0x1a0   : > { %v1465_v4 = vpop.f32.mrf.mxu0 }
 0x1a1   : > { %3373 = vrot.lane.b32.xlu2 %v2384_v10, %s10102_s21  ;;  %3375 = vrot.lane.b32.xlu0 %v1460_v19, %s10102_s21  ;;  %v1774_v5 = vpop.f32.mrf.mxu1 }
 0x1a3   : > { %8922 = vmatmul.msk.bf16.gmra.mxu0 %vm1212_vm1, %v9405_v9  ;;  %9042 = vmatmul.msk.bf16.gmra.mxu2 %vm1212_vm1, %v9405_v9 }
 0x1a4   : > { %8982 = vmatmul.msk.bf16.gmra.mxu1 %vm1212_vm1, %v9405_v9  ;;  %9102 = vmatmul.msk.bf16.gmra.mxu3 %vm1212_vm1, %v9405_v9 }
 0x1a6   : > { %v2083_v6 = vpop.f32.mrf.mxu2 }
 0x1a7   : > { %3377 = vrot.lane.b32.xlu1 %v1769_v28, %s10102_s21  ;;  %v2392_v7 = vpop.f32.mrf.mxu3 }
 0x1a8   : > { %v1467_v8 = vpop.f32.mrf.mxu0 }
 0x1a9   : > { %3379 = vrot.lane.b32.xlu2 %v2078_v37, %s10102_s21  ;;  %3381 = vrot.lane.b32.xlu0 %v2387_v57, %s10102_s21  ;;  %v1776_v19 = vpop.f32.mrf.mxu1 }
 0x1ae   : > { %v2085_v28 = vpop.f32.mrf.mxu2 }
 0x1af   : > { %3383 = vrot.lane.b32.xlu1 %v1462_v63, %s10102_s21  ;;  %v2394_v37 = vpop.f32.mrf.mxu3 }
 0x1b0   : > { %v1470_v57 = vpop.f32.mrf.mxu0 }
 0x1b1   : > { %3385 = vrot.lane.b32.xlu2 %v1771_v1, %s10102_s21  ;;  %3387 = vrot.lane.b32.xlu0 %v2080_v2, %s10102_s21  ;;  %v1779_v63 = vpop.f32.mrf.mxu1  ;;  %v9406_v2 = vld [vmem:[%s16335_s5 + $0x98] sm:$0xff] }
 0x1b3   : > { %9043 = vmatmul.msk.bf16.gmra.mxu2 %vm1212_vm1, %v9406_v2  ;;  %8923 = vmatmul.msk.bf16.gmra.mxu0 %vm1212_vm1, %v9406_v2 }
 0x1b4   : > { %8983 = vmatmul.msk.bf16.gmra.mxu1 %vm1212_vm1, %v9406_v2  ;;  %9103 = vmatmul.msk.bf16.gmra.mxu3 %vm1212_vm1, %v9406_v2 }
 0x1b6   : > { %v2088_v1 = vpop.f32.mrf.mxu2 }
 0x1b7   : > { %3389 = vrot.lane.b32.xlu1 %v2389_v3, %s10102_s21 }
 0x1b9   : > { %3453 = vrot.lane.b32.xlu0 %v1774_v5, %s10102_s21  ;;  %3451 = vrot.lane.b32.xlu2 %v1465_v4, %s10102_s21  ;;  %v2397_v5 = vpop.f32.mrf.mxu3 }
 0x1bf   : > { %3455 = vrot.lane.b32.xlu1 %v2083_v6, %s10102_s21  ;;  %v1472_v6 = vpop.f32.mrf.mxu0 }
 0x1c1   : > { %3457 = vrot.lane.b32.xlu2 %v2392_v7, %s10102_s21  ;;  %3459 = vrot.lane.b32.xlu0 %v1467_v8, %s10102_s21  ;;  %v1781_v7 = vpop.f32.mrf.mxu1 }
 0x1c3   : > { %v10638_v10 = vpop.permute.xlu2 %3274 }
 0x1c4   : > { %16668 = vst [vmem:[#allocation51_spill] sm:$0xff] %v10638_v10 }
 0x1c7   : > { %3461 = vrot.lane.b32.xlu1 %v1776_v19, %s10102_s21 }
 0x1c9   : > { %3463 = vrot.lane.b32.xlu2 %v2085_v28, %s10102_s21  ;;  %3465 = vrot.lane.b32.xlu0 %v2394_v37, %s10102_s21  ;;  %v2090_v28 = vpop.f32.mrf.mxu2  ;;  %v2399_v37 = vpop.f32.mrf.mxu3 }
 0x1cb   : > { %v10645_v47 = vpop.permute.xlu2 %3276 }
 0x1cc   : > { %16669 = vst [vmem:[#allocation52_spill] sm:$0xff] %v10645_v47 }
 0x1cf   : > { %3467 = vrot.lane.b32.xlu1 %v1470_v57, %s10102_s21  ;;  %v1475_v57 = vpop.f32.mrf.mxu0 }
 0x1d1   : > { %3469 = vrot.lane.b32.xlu2 %v1779_v63, %s10102_s21  ;;  %3471 = vrot.lane.b32.xlu0 %v2088_v1, %s10102_s21 }
 0x1d3   : > { %v10653_v3 = vpop.permute.xlu0 %3266  ;;  %v10655_v4 = vpop.permute.xlu2 %3282 }
 0x1d4   : > { %16670 = vst [vmem:[#allocation53_spill] sm:$0xff] %v10653_v3 }
 0x1d5   : > { %16671 = vst [vmem:[#allocation54_spill] sm:$0xff] %v10655_v4 }
 0x1d7   : > { %3473 = vrot.lane.b32.xlu1 %v2397_v5, %s10102_s21  ;;  %v1784_v5 = vpop.f32.mrf.mxu1 }
 0x1d9   : > { %v10662_v8 = vpop.permute.xlu1 %3270  ;;  %3477 = vrot.lane.b32.xlu0 %v1781_v7, %s10102_s21  ;;  %3475 = vrot.lane.b32.xlu2 %v1472_v6, %s10102_s21  ;;  %v2093_v6 = vpop.f32.mrf.mxu2 }
 0x1da   : > { %16672 = vst [vmem:[#allocation55_spill] sm:$0xff] %v10662_v8  ;;  %v2402_v7 = vpop.f32.mrf.mxu3 }
 0x1db   : > { %v10666_v9 = vpop.permute.xlu0 %3268  ;;  %v10668_v19 = vpop.permute.xlu2 %3288 }
 0x1dc   : > { %16673 = vst [vmem:[#allocation56_spill] sm:$0xff] %v10666_v9 }
 0x1dd   : > { %16674 = vst [vmem:[#allocation57_spill] sm:$0xff] %v10668_v19 }
 0x1df   : > { %3479 = vrot.lane.b32.xlu1 %v2090_v28, %s10102_s21  ;;  %v9407_v28 = vld [vmem:[%s16335_s5 + $0xa0] sm:$0xff]  ;;  %v1786_v26 = vpop.f32.mrf.mxu1 }
 0x1e0   : > { %8924 = vmatmul.msk.bf16.gmra.mxu0 %vm1212_vm1, %v9407_v28  ;;  %9044 = vmatmul.msk.bf16.gmra.mxu2 %vm1212_vm1, %v9407_v28 }
 0x1e1   : > { %v10671_v63 = vpop.permute.xlu1 %3272  ;;  %3481 = vrot.lane.b32.xlu2 %v2399_v37, %s10102_s21  ;;  %3543 = vrot.lane.b32.xlu0 %v1475_v57, %s10103_s23  ;;  %v2095_v25 = vpop.f32.mrf.mxu2 }
 0x1e2   : > { %16675 = vst [vmem:[#allocation58_spill] sm:$0xff] %v10671_v63  ;;  %9104 = vmatmul.msk.bf16.gmra.mxu3 %vm1212_vm1, %v9407_v28  ;;  %8984 = vmatmul.msk.bf16.gmra.mxu1 %vm1212_vm1, %v9407_v28  ;;  %v2404_v22 = vpop.f32.mrf.mxu3 }
 0x1e3   : > { %v10675_v1 = vpop.permute.xlu0 %3278  ;;  %v10677_v2 = vpop.permute.xlu2 %3294 }
 0x1e4   : > { %16676 = vst [vmem:[#allocation59_spill] sm:$0xff] %v10675_v1 }
 0x1e5   : > { %16677 = vst [vmem:[#allocation60_spill] sm:$0xff] %v10677_v2 }
 0x1e7   : > { %3545 = vrot.lane.b32.xlu1 %v1784_v5, %s10103_s23  ;;  %v1477_v5 = vpop.f32.mrf.mxu0  ;;  %v1789_v28 = vpop.f32.mrf.mxu1 }
 0x1e9   : > { %v10683_v27 = vpop.permute.xlu1 %3280  ;;  %3547 = vrot.lane.b32.xlu2 %v2093_v6, %s10103_s23  ;;  %3549 = vrot.lane.b32.xlu0 %v2402_v7, %s10103_s23 }
 0x1ea   : > { %16678 = vst [vmem:[#allocation61_spill] sm:$0xff] %v10683_v27  ;;  %v2407_v20 = vpop.f32.mrf.mxu3 }
 0x1eb   : > { %v10689_v37 = vpop.permute.xlu0 %3284  ;;  %v10691_v57 = vpop.permute.xlu2 %3361 }
 0x1ec   : > { %16679 = vst [vmem:[#allocation62_spill] sm:$0xff] %v10689_v37 }
 0x1ef   : > { %3551 = vrot.lane.b32.xlu1 %v1477_v5, %s10103_s23  ;;  %v1480_v2 = vpop.f32.mrf.mxu0 }
 0x1f1   : > { %v10696_v6 = vpop.permute.xlu1 %3286  ;;  %3553 = vrot.lane.b32.xlu2 %v1786_v26, %s10103_s23  ;;  %3555 = vrot.lane.b32.xlu0 %v2095_v25, %s10103_s23  ;;  %v2098_v25 = vpop.f32.mrf.mxu2 }
 0x1f2   : > { %16680 = vst [vmem:[#allocation63_spill] sm:$0xff] %v10696_v6 }
 0x1f3   : > { %v10700_v7 = vpop.permute.xlu0 %3290  ;;  %v10702_v24 = vpop.permute.xlu2 %3367 }
 0x1f4   : > { %16681 = vst [vmem:[#allocation64_spill] sm:$0xff] %v10700_v7  ;;  %v9408_v7 = vld [vmem:[%s16335_s5 + $0xa8] sm:$0xff] }
 0x1f5   : > { %8985 = vmatmul.msk.bf16.gmra.mxu1 %vm1212_vm1, %v9408_v7  ;;  %8925 = vmatmul.msk.bf16.gmra.mxu0 %vm1212_vm1, %v9408_v7 }
 0x1f6   : > { %9045 = vmatmul.msk.bf16.gmra.mxu2 %vm1212_vm1, %v9408_v7  ;;  %9105 = vmatmul.msk.bf16.gmra.mxu3 %vm1212_vm1, %v9408_v7 }
 0x1f7   : > { %3557 = vrot.lane.b32.xlu1 %v2404_v22, %s10103_s23  ;;  %v1482_v22 = vpop.f32.mrf.mxu0 }
 0x1f9   : > { %v10705_v21 = vpop.permute.xlu1 %3292  ;;  %3561 = vrot.lane.b32.xlu0 %v1789_v28, %s10103_s23  ;;  %3559 = vrot.lane.b32.xlu2 %v1480_v2, %s10103_s23 }
 0x1fa   : > { %16682 = vst [vmem:[#allocation65_spill] sm:$0xff] %v10705_v21  ;;  %v2409_v21 = vpop.f32.mrf.mxu3 }
 0x1fb   : > { %v10709_v5 = vpop.permute.xlu0 %3296  ;;  %v10711_v26 = vpop.permute.xlu2 %3373 }
 0x1fc   : > { %16683 = vst [vmem:[#allocation66_spill] sm:$0xff] %v10709_v5  ;;  %v2100_v5 = vpop.f32.mrf.mxu2 }
 0x1ff   : > { %3563 = vrot.lane.b32.xlu1 %v2098_v25, %s10103_s23  ;;  %v1791_v25 = vpop.f32.mrf.mxu1  ;;  %v1485_v18 = vpop.f32.mrf.mxu0 }
 0x201   : > { %v10717_v17 = vpop.permute.xlu1 %3359  ;;  %3565 = vrot.lane.b32.xlu2 %v2407_v20, %s10103_s23  ;;  %3567 = vrot.lane.b32.xlu0 %v1482_v22, %s10103_s23 }
 0x203   : > { %v10723_v2 = vpop.permute.xlu0 %3363  ;;  %v10725_v28 = vpop.permute.xlu2 %3379 }
 0x204   : > { %v2103_v7 = vpop.f32.mrf.mxu2 }
 0x207   : > { %3569 = vrot.lane.b32.xlu1 %v1791_v25, %s10103_s23  ;;  %v1794_v16 = vpop.f32.mrf.mxu1 }
 0x209   : > { %v10730_v20 = vpop.permute.xlu1 %3365  ;;  %3571 = vrot.lane.b32.xlu2 %v2100_v5, %s10103_s23  ;;  %3573 = vrot.lane.b32.xlu0 %v2409_v21, %s10103_s23  ;;  %v9409_v5 = vld [vmem:[%s16335_s5 + $0xb0] sm:$0xff] }
 0x20a   : > { %9046 = vmatmul.msk.bf16.gmra.mxu2 %vm1212_vm1, %v9409_v5  ;;  %8986 = vmatmul.msk.bf16.gmra.mxu1 %vm1212_vm1, %v9409_v5 }
 0x20b   : > { %v10734_v22 = vpop.permute.xlu0 %3369  ;;  %v10736_v6 = vpop.permute.xlu2 %3385  ;;  %8926 = vmatmul.msk.bf16.gmra.mxu0 %vm1212_vm1, %v9409_v5  ;;  %9106 = vmatmul.msk.bf16.gmra.mxu3 %vm1212_vm1, %v9409_v5 }
 0x20c   : > { %v2105_v1 = vpop.f32.mrf.mxu2 }
 0x20f   : > { %3636 = vrot.lane.b32.xlu1 %v1485_v18, %s10103_s23  ;;  %v2412_v18 = vpop.f32.mrf.mxu3 }
 0x211   : > { %v10739_v4 = vpop.permute.xlu1 %3371  ;;  %3638 = vrot.lane.b32.xlu2 %v1794_v16, %s10103_s23  ;;  %3640 = vrot.lane.b32.xlu0 %v2103_v7, %s10103_s23  ;;  %v1487_v16 = vpop.f32.mrf.mxu0 }
 0x212   : > { %v1796_v7 = vpop.f32.mrf.mxu1 }
 0x213   : > { %v10746_v21 = vpop.permute.xlu0 %3375  ;;  %v10748_v25 = vpop.permute.xlu2 %3451 }
 0x214   : > { %16684 = vst [vmem:[#allocation67_spill] sm:$0xff] %v10748_v25  ;;  %v2108_v12 = vpop.f32.mrf.mxu2 }
 0x217   : > { %3642 = vrot.lane.b32.xlu1 %v2412_v18, %s10103_s23  ;;  %v2414_v14 = vpop.f32.mrf.mxu3 }
 0x219   : > { %v10755_v37 = vpop.permute.xlu1 %3377  ;;  %3646 = vrot.lane.b32.xlu0 %v1796_v7, %s10103_s23  ;;  %3644 = vrot.lane.b32.xlu2 %v1487_v16, %s10103_s23  ;;  %v1490_v5 = vpop.f32.mrf.mxu0 }
 0x21a   : > { %v1799_v16 = vpop.f32.mrf.mxu1 }
 0x21b   : > { %v10759_v13 = vpop.permute.xlu0 %3381  ;;  %v10761_v27 = vpop.permute.xlu2 %3457 }
 0x21c   : > { %16685 = vst [vmem:[#allocation68_spill] sm:$0xff] %v10761_v27  ;;  %v2110_v15 = vpop.f32.mrf.mxu2 }
 0x21f   : > { %3648 = vrot.lane.b32.xlu1 %v2105_v1, %s10103_s23  ;;  %v2417_v19 = vpop.f32.mrf.mxu3  ;;  %v9410_v1 = vld [vmem:[%s16335_s5 + $0xb8] sm:$0xff] }
 0x220   : > { %8927 = vmatmul.msk.bf16.gmra.mxu0 %vm1212_vm1, %v9410_v1  ;;  %9047 = vmatmul.msk.bf16.gmra.mxu2 %vm1212_vm1, %v9410_v1 }
 0x221   : > { %v10764_v63 = vpop.permute.xlu1 %3383  ;;  %3650 = vrot.lane.b32.xlu2 %v2414_v14, %s10103_s23  ;;  %3652 = vrot.lane.b32.xlu0 %v1490_v5, %s10103_s23 }
 0x222   : > { %9107 = vmatmul.msk.bf16.gmra.mxu3 %vm1212_vm1, %v9410_v1  ;;  %8987 = vmatmul.msk.bf16.gmra.mxu1 %vm1212_vm1, %v9410_v1  ;;  %v1801_v11 = vpop.f32.mrf.mxu1 }
 0x223   : > { %v10768_v18 = vpop.permute.xlu0 %3387  ;;  %v10770_v7 = vpop.permute.xlu2 %3463 }
 0x224   : > { %16686 = vst [vmem:[#allocation69_spill] sm:$0xff] %v10770_v7 }
 0x227   : > { %3654 = vrot.lane.b32.xlu1 %v1799_v16, %s10103_s23  ;;  %v1492_v16 = vpop.f32.mrf.mxu0  ;;  %v2419_v3 = vpop.f32.mrf.mxu3 }
 0x229   : > { %v10776_v23 = vpop.permute.xlu1 %3389  ;;  %3656 = vrot.lane.b32.xlu2 %v2108_v12, %s10103_s23  ;;  %3658 = vrot.lane.b32.xlu0 %v2417_v19, %s10103_s23 }
 0x22a   : > { %v1804_v1 = vpop.f32.mrf.mxu1 }
 0x22b   : > { %v10782_v14 = vpop.permute.xlu0 %3453  ;;  %v10784_v5 = vpop.permute.xlu2 %3469 }
 0x22c   : > { %16687 = vst [vmem:[#allocation70_spill] sm:$0xff] %v10782_v14 }
 0x22d   : > { %16688 = vst [vmem:[#allocation71_spill] sm:$0xff] %v10784_v5 }
 0x22f   : > { %3660 = vrot.lane.b32.xlu1 %v1492_v16, %s10103_s23  ;;  %v1495_v9 = vpop.f32.mrf.mxu0  ;;  %v2422_v47 = vpop.f32.mrf.mxu3 }
 0x230   : > { %8928 = vmatmul.msk.bf16.gmra.mxu0 %vm1212_vm1, %v9411_v62  ;;  %9048 = vmatmul.msk.bf16.gmra.mxu2 %vm1212_vm1, %v9411_v62 }
 0x231   : > { %v10789_v12 = vpop.permute.xlu1 %3455  ;;  %3662 = vrot.lane.b32.xlu2 %v1801_v11, %s10103_s23  ;;  %3664 = vrot.lane.b32.xlu0 %v2110_v15, %s10103_s23  ;;  %v2113_v15 = vpop.f32.mrf.mxu2 }
 0x232   : > { %16689 = vst [vmem:[#allocation72_spill] sm:$0xff] %v10789_v12  ;;  %8988 = vmatmul.msk.bf16.gmra.mxu1 %vm1212_vm1, %v9411_v62  ;;  %9108 = vmatmul.msk.bf16.gmra.mxu3 %vm1212_vm1, %v9411_v62 }
 0x233   : > { %v10793_v19 = vpop.permute.xlu0 %3459  ;;  %v10795_v8 = vpop.permute.xlu2 %3475 }
 0x234   : > { %16690 = vst [vmem:[#allocation73_spill] sm:$0xff] %v10793_v19 }
 0x235   : > { %16691 = vst [vmem:[#allocation74_spill] sm:$0xff] %v10795_v8 }
 0x237   : > { %3666 = vrot.lane.b32.xlu1 %v2419_v3, %s10103_s23  ;;  %v1497_v3 = vpop.f32.mrf.mxu0  ;;  %v2424_v60 = vpop.f32.mrf.mxu3 }
 0x239   : > { %v10798_v10 = vpop.permute.xlu1 %3461  ;;  %3730 = vrot.lane.b32.xlu0 %v1804_v1, %s10103_s23  ;;  %3728 = vrot.lane.b32.xlu2 %v1495_v9, %s10103_s23  ;;  %v2115_v61 = vpop.f32.mrf.mxu2 }
 0x23a   : > { %16692 = vst [vmem:[#allocation75_spill] sm:$0xff] %v10798_v10 }
 0x23b   : > { %v10802_v16 = vpop.permute.xlu0 %3465  ;;  %v10804_v11 = vpop.permute.xlu2 %3481 }
 0x23c   : > { %16693 = vst [vmem:[#allocation76_spill] sm:$0xff] %v10802_v16 }
 0x23d   : > { %16694 = vst [vmem:[#allocation77_spill] sm:$0xff] %v10804_v11 }
 0x23f   : > { %3732 = vrot.lane.b32.xlu1 %v2113_v15, %s10103_s23  ;;  %v1806_v15 = vpop.f32.mrf.mxu1 }
 0x241   : > { %v10810_v59 = vpop.permute.xlu1 %3467  ;;  %3734 = vrot.lane.b32.xlu2 %v2422_v47, %s10103_s23  ;;  %3736 = vrot.lane.b32.xlu0 %v1497_v3, %s10103_s23  ;;  %v2118_v62 = vpop.f32.mrf.mxu2 }
 0x242   : > { %16695 = vst [vmem:[#allocation78_spill] sm:$0xff] %v10810_v59 }
 0x243   : > { %v10816_v9 = vpop.permute.xlu0 %3471  ;;  %v10818_v1 = vpop.permute.xlu2 %3547 }
 0x244   : > { %16696 = vst [vmem:[#allocation79_spill] sm:$0xff] %v10816_v9 }
 0x245   : > { %16697 = vst [vmem:[#allocation80_spill] sm:$0xff] %v10818_v1  ;;  %v1500_v1 = vpop.f32.mrf.mxu0 }
 0x247   : > { %3738 = vrot.lane.b32.xlu1 %v1806_v15, %s10103_s23  ;;  %v1809_v56 = vpop.f32.mrf.mxu1 }
 0x249   : > { %v10823_v47 = vpop.permute.xlu1 %3473  ;;  %3740 = vrot.lane.b32.xlu2 %v2115_v61, %s10103_s23  ;;  %3742 = vrot.lane.b32.xlu0 %v2424_v60, %s10103_s23  ;;  %v9412_v61 = vld [vmem:[%s16335_s5 + $0xc8] sm:$0xff] }
 0x24a   : > { %16698 = vst [vmem:[#allocation81_spill] sm:$0xff] %v10823_v47  ;;  %9049 = vmatmul.msk.bf16.gmra.mxu2 %vm1212_vm1, %v9412_v61  ;;  %8989 = vmatmul.msk.bf16.gmra.mxu1 %vm1212_vm1, %v9412_v61 }
 0x24b   : > { %v10827_v3 = vpop.permute.xlu0 %3477  ;;  %v10829_v58 = vpop.permute.xlu2 %3553  ;;  %8929 = vmatmul.msk.bf16.gmra.mxu0 %vm1212_vm1, %v9412_v61  ;;  %9109 = vmatmul.msk.bf16.gmra.mxu3 %vm1212_vm1, %v9412_v61 }
 0x24c   : > { %16699 = vst [vmem:[#allocation82_spill] sm:$0xff] %v10827_v3 }
 0x24d   : > { %16700 = vst [vmem:[#allocation83_spill] sm:$0xff] %v10829_v58 }
 0x24f   : > { %3744 = vrot.lane.b32.xlu1 %v1500_v1, %s10103_s23  ;;  %v2427_v1 = vpop.f32.mrf.mxu3 }
 0x251   : > { %v10832_v55 = vpop.permute.xlu1 %3479  ;;  %3746 = vrot.lane.b32.xlu2 %v1809_v56, %s10103_s23  ;;  %3748 = vrot.lane.b32.xlu0 %v2118_v62, %s10103_s23  ;;  %v1502_v56 = vpop.f32.mrf.mxu0 }
 0x252   : > { %16701 = vst [vmem:[#allocation84_spill] sm:$0xff] %v10832_v55  ;;  %v1811_v62 = vpop.f32.mrf.mxu1  ;;  %v2120_v55 = vpop.f32.mrf.mxu2 }
 0x253   : > { %v10839_v60 = vpop.permute.xlu0 %3543  ;;  %v10841_v15 = vpop.permute.xlu2 %3559 }
 0x254   : > { %16702 = vst [vmem:[#allocation85_spill] sm:$0xff] %v10839_v60 }
 0x255   : > { %16703 = vst [vmem:[#allocation86_spill] sm:$0xff] %v10841_v15 }
 0x257   : > { %3750 = vrot.lane.b32.xlu1 %v2427_v1, %s10103_s23  ;;  %v2429_v53 = vpop.f32.mrf.mxu3 }
 0x259   : > { %v10848_v58 = vpop.permute.xlu1 %3545  ;;  %3754 = vrot.lane.b32.xlu0 %v1811_v62, %s10103_s23  ;;  %3752 = vrot.lane.b32.xlu2 %v1502_v56, %s10103_s23  ;;  %v1505_v61 = vpop.f32.mrf.mxu0 }
 0x25a   : > { %16704 = vst [vmem:[#allocation87_spill] sm:$0xff] %v10848_v58  ;;  %v1814_v56 = vpop.f32.mrf.mxu1 }
 0x25b   : > { %v10852_v15 = vpop.permute.xlu0 %3549  ;;  %v10854_v60 = vpop.permute.xlu2 %3565 }
 0x25c   : > { %16705 = vst [vmem:[#allocation88_spill] sm:$0xff] %v10852_v15  ;;  %v2123_v15 = vpop.f32.mrf.mxu2 }
 0x25d   : > { %16706 = vst [vmem:[#allocation89_spill] sm:$0xff] %v10854_v60 }
 0x25f   : > { %3756 = vrot.lane.b32.xlu1 %v2120_v55, %s10103_s23  ;;  %v2432_v60 = vpop.f32.mrf.mxu3  ;;  %v9413_v55 = vld [vmem:[%s16335_s5 + $0xd0] sm:$0xff] }
 0x260   : > { %8930 = vmatmul.msk.bf16.gmra.mxu0 %vm1212_vm1, %v9413_v55  ;;  %9050 = vmatmul.msk.bf16.gmra.mxu2 %vm1212_vm1, %v9413_v55 }
 0x261   : > { %v10857_v8 = vpop.permute.xlu1 %3551  ;;  %3758 = vrot.lane.b32.xlu2 %v2429_v53, %s10103_s23  ;;  %3820 = vrot.lane.b32.xlu0 %v1505_v61, %s10104_s26 }
 0x262   : > { %16707 = vst [vmem:[#allocation90_spill] sm:$0xff] %v10857_v8  ;;  %9110 = vmatmul.msk.bf16.gmra.mxu3 %vm1212_vm1, %v9413_v55  ;;  %8990 = vmatmul.msk.bf16.gmra.mxu1 %vm1212_vm1, %v9413_v55 }
 0x263   : > { %v10861_v1 = vpop.permute.xlu0 %3555  ;;  %v10863_v62 = vpop.permute.xlu2 %3571 }
 0x264   : > { %16708 = vst [vmem:[#allocation91_spill] sm:$0xff] %v10861_v1 }
 0x265   : > { %16709 = vst [vmem:[#allocation92_spill] sm:$0xff] %v10863_v62  ;;  %v1816_v62 = vpop.f32.mrf.mxu1 }
 0x267   : > { %3822 = vrot.lane.b32.xlu1 %v1814_v56, %s10104_s26  ;;  %v1507_v56 = vpop.f32.mrf.mxu0  ;;  %v2434_v1 = vpop.f32.mrf.mxu3 }
 0x269   : > { %v10869_v58 = vpop.permute.xlu1 %3557  ;;  %3824 = vrot.lane.b32.xlu2 %v2123_v15, %s10104_s26  ;;  %3826 = vrot.lane.b32.xlu0 %v2432_v60, %s10104_s26 }
 0x26a   : > { %16710 = vst [vmem:[#allocation93_spill] sm:$0xff] %v10869_v58  ;;  %v2125_v58 = vpop.f32.mrf.mxu2 }
 0x26b   : > { %v10875_v53 = vpop.permute.xlu0 %3561  ;;  %v10877_v61 = vpop.permute.xlu2 %3638 }
 0x26c   : > { %16711 = vst [vmem:[#allocation94_spill] sm:$0xff] %v10875_v53 }
 0x26d   : > { %v1819_v55 = vpop.f32.mrf.mxu1 }
 0x26f   : > { %3828 = vrot.lane.b32.xlu1 %v1507_v56, %s10104_s26  ;;  %v1510_v8 = vpop.f32.mrf.mxu0 }
 0x271   : > { %v10882_v15 = vpop.permute.xlu1 %3563  ;;  %3830 = vrot.lane.b32.xlu2 %v1816_v62, %s10104_s26  ;;  %3832 = vrot.lane.b32.xlu0 %v2125_v58, %s10104_s26 }
 0x272   : > { %16712 = vst [vmem:[#allocation95_spill] sm:$0xff] %v10882_v15  ;;  %v2128_v58 = vpop.f32.mrf.mxu2  ;;  %v2437_v15 = vpop.f32.mrf.mxu3 }
 0x273   : > { %v10886_v60 = vpop.permute.xlu0 %3567  ;;  %v10888_v53 = vpop.permute.xlu2 %3644 }
 0x274   : > { %16713 = vst [vmem:[#allocation96_spill] sm:$0xff] %v10886_v60  ;;  %v9414_v60 = vld [vmem:[%s16335_s5 + $0xd8] sm:$0xff] }
 0x275   : > { %8991 = vmatmul.msk.bf16.gmra.mxu1 %vm1212_vm1, %v9414_v60  ;;  %8931 = vmatmul.msk.bf16.gmra.mxu0 %vm1212_vm1, %v9414_v60 }
 0x276   : > { %9051 = vmatmul.msk.bf16.gmra.mxu2 %vm1212_vm1, %v9414_v60  ;;  %9111 = vmatmul.msk.bf16.gmra.mxu3 %vm1212_vm1, %v9414_v60 }
 0x277   : > { %3834 = vrot.lane.b32.xlu1 %v2434_v1, %s10104_s26  ;;  %v1512_v1 = vpop.f32.mrf.mxu0 }
 0x279   : > { %v10891_v3 = vpop.permute.xlu1 %3569  ;;  %3838 = vrot.lane.b32.xlu0 %v1819_v55, %s10104_s26  ;;  %3836 = vrot.lane.b32.xlu2 %v1510_v8, %s10104_s26 }
 0x27a   : > { %16714 = vst [vmem:[#allocation97_spill] sm:$0xff] %v10891_v3  ;;  %v2439_v3 = vpop.f32.mrf.mxu3 }
 0x27b   : > { %v10895_v56 = vpop.permute.xlu0 %3573  ;;  %v10897_v62 = vpop.permute.xlu2 %3650 }
 0x27c   : > { %16715 = vst [vmem:[#allocation98_spill] sm:$0xff] %v10895_v56  ;;  %v2130_v56 = vpop.f32.mrf.mxu2 }
 0x27f   : > { %3840 = vrot.lane.b32.xlu1 %v2128_v58, %s10104_s26  ;;  %v1821_v58 = vpop.f32.mrf.mxu1  ;;  %v1515_v54 = vpop.f32.mrf.mxu0 }
 0x281   : > { %v10903_v11 = vpop.permute.xlu1 %3636  ;;  %3842 = vrot.lane.b32.xlu2 %v2437_v15, %s10104_s26  ;;  %3844 = vrot.lane.b32.xlu0 %v1512_v1, %s10104_s26 }
 0x283   : > { %v10909_v8 = vpop.permute.xlu0 %3640  ;;  %v10911_v55 = vpop.permute.xlu2 %3656 }
 0x284   : > { %v2133_v60 = vpop.f32.mrf.mxu2 }
 0x287   : > { %3846 = vrot.lane.b32.xlu1 %v1821_v58, %s10104_s26  ;;  %v1824_v52 = vpop.f32.mrf.mxu1 }
 0x289   : > { %v10916_v15 = vpop.permute.xlu1 %3642  ;;  %3848 = vrot.lane.b32.xlu2 %v2130_v56, %s10104_s26  ;;  %3850 = vrot.lane.b32.xlu0 %v2439_v3, %s10104_s26  ;;  %v9415_v56 = vld [vmem:[%s16335_s5 + $0xe0] sm:$0xff] }
 0x28a   : > { %9052 = vmatmul.msk.bf16.gmra.mxu2 %vm1212_vm1, %v9415_v56  ;;  %8992 = vmatmul.msk.bf16.gmra.mxu1 %vm1212_vm1, %v9415_v56 }
 0x28b   : > { %v10920_v1 = vpop.permute.xlu0 %3646  ;;  %v10922_v0 = vpop.permute.xlu2 %3662  ;;  %8932 = vmatmul.msk.bf16.gmra.mxu0 %vm1212_vm1, %v9415_v56  ;;  %9112 = vmatmul.msk.bf16.gmra.mxu3 %vm1212_vm1, %v9415_v56 }
 0x28c   : > { %v2135_v5 = vpop.f32.mrf.mxu2 }
 0x28f   : > { %3913 = vrot.lane.b32.xlu1 %v1515_v54, %s10104_s26  ;;  %v2442_v54 = vpop.f32.mrf.mxu3 }
 0x291   : > { %v10925_v47 = vpop.permute.xlu1 %3648  ;;  %3915 = vrot.lane.b32.xlu2 %v1824_v52, %s10104_s26  ;;  %3917 = vrot.lane.b32.xlu0 %v2133_v60, %s10104_s26  ;;  %v1517_v52 = vpop.f32.mrf.mxu0 }
 0x292   : > { %v1826_v60 = vpop.f32.mrf.mxu1 }
 0x293   : > { %v10932_v3 = vpop.permute.xlu0 %3652  ;;  %v10934_v58 = vpop.permute.xlu2 %3728 }
 0x294   : > { %16716 = vst [vmem:[#allocation99_spill] sm:$0xff] %v10934_v58  ;;  %v2138_v49 = vpop.f32.mrf.mxu2 }
 0x297   : > { %3919 = vrot.lane.b32.xlu1 %v2442_v54, %s10104_s26  ;;  %v2444_v51 = vpop.f32.mrf.mxu3 }
 0x299   : > { %v10941_v9 = vpop.permute.xlu1 %3654  ;;  %3923 = vrot.lane.b32.xlu0 %v1826_v60, %s10104_s26  ;;  %3921 = vrot.lane.b32.xlu2 %v1517_v52, %s10104_s26  ;;  %v1520_v56 = vpop.f32.mrf.mxu0 }
 0x29a   : > { %v1829_v52 = vpop.f32.mrf.mxu1 }
 0x29b   : > { %v10945_v58 = vpop.permute.xlu0 %3658  ;;  %v10947_v59 = vpop.permute.xlu2 %3734 }
 0x29c   : > { %16717 = vst [vmem:[#allocation100_spill] sm:$0xff] %v10947_v59  ;;  %v2140_v46 = vpop.f32.mrf.mxu2 }
 0x29f   : > { %3925 = vrot.lane.b32.xlu1 %v2135_v5, %s10104_s26  ;;  %v2447_v59 = vpop.f32.mrf.mxu3  ;;  %v9416_v5 = vld [vmem:[%s16335_s5 + $0xe8] sm:$0xff] }
 0x2a0   : > { %8933 = vmatmul.msk.bf16.gmra.mxu0 %vm1212_vm1, %v9416_v5  ;;  %9053 = vmatmul.msk.bf16.gmra.mxu2 %vm1212_vm1, %v9416_v5 }
 0x2a1   : > { %v10950_v16 = vpop.permute.xlu1 %3660  ;;  %3927 = vrot.lane.b32.xlu2 %v2444_v51, %s10104_s26  ;;  %3929 = vrot.lane.b32.xlu0 %v1520_v56, %s10104_s26 }
 0x2a2   : > { %9113 = vmatmul.msk.bf16.gmra.mxu3 %vm1212_vm1, %v9416_v5  ;;  %8993 = vmatmul.msk.bf16.gmra.mxu1 %vm1212_vm1, %v9416_v5 }
 0x2a3   : > { %v10954_v54 = vpop.permute.xlu0 %3664  ;;  %v10956_v60 = vpop.permute.xlu2 %3740 }
 0x2a4   : > { %16718 = vst [vmem:[#allocation101_spill] sm:$0xff] %v10956_v60  ;;  %v1831_v60 = vpop.f32.mrf.mxu1 }
 0x2a7   : > { %3931 = vrot.lane.b32.xlu1 %v1829_v52, %s10104_s26  ;;  %v1522_v52 = vpop.f32.mrf.mxu0 }
 0x2a9   : > { %v10962_v48 = vpop.permute.xlu1 %3666  ;;  %3933 = vrot.lane.b32.xlu2 %v2138_v49, %s10104_s26  ;;  %3935 = vrot.lane.b32.xlu0 %v2447_v59, %s10104_s26 }
 0x2ab   : > { %v10968_v51 = vpop.permute.xlu0 %3730  ;;  %v10970_v56 = vpop.permute.xlu2 %3746 }
 0x2ac   : > { %16719 = vst [vmem:[#allocation102_spill] sm:$0xff] %v10968_v51  ;;  %v1834_v5 = vpop.f32.mrf.mxu1 }
 0x2ad   : > { %16720 = vst [vmem:[#allocation103_spill] sm:$0xff] %v10970_v56  ;;  %v2449_v56 = vpop.f32.mrf.mxu3 }
 0x2af   : > { %3937 = vrot.lane.b32.xlu1 %v1522_v52, %s10104_s26  ;;  %v1525_v7 = vpop.f32.mrf.mxu0 }
 0x2b1   : > { %v10975_v49 = vpop.permute.xlu1 %3732  ;;  %3939 = vrot.lane.b32.xlu2 %v1831_v60, %s10104_s26  ;;  %3941 = vrot.lane.b32.xlu0 %v2140_v46, %s10104_s26  ;;  %v2143_v46 = vpop.f32.mrf.mxu2 }
 0x2b2   : > { %16721 = vst [vmem:[#allocation104_spill] sm:$0xff] %v10975_v49 }
 0x2b3   : > { %v10979_v59 = vpop.permute.xlu0 %3736  ;;  %v10981_v51 = vpop.permute.xlu2 %3752 }
 0x2b4   : > { %16722 = vst [vmem:[#allocation105_spill] sm:$0xff] %v10979_v59 }
 0x2b5   : > { %16723 = vst [vmem:[#allocation106_spill] sm:$0xff] %v10981_v51  ;;  %v2452_v49 = vpop.f32.mrf.mxu3  ;;  %v9417_v51 = vld [vmem:[%s16335_s5 + $0xf0] sm:$0xff] }
 0x2b6   : > { %8994 = vmatmul.msk.bf16.gmra.mxu1 %vm1212_vm1, %v9417_v51  ;;  %8934 = vmatmul.msk.bf16.gmra.mxu0 %vm1212_vm1, %v9417_v51 }
 0x2b7   : > { %3943 = vrot.lane.b32.xlu1 %v2449_v56, %s10104_s26  ;;  %v1527_v56 = vpop.f32.mrf.mxu0  ;;  %9054 = vmatmul.msk.bf16.gmra.mxu2 %vm1212_vm1, %v9417_v51 }
 0x2b8   : > { %9114 = vmatmul.msk.bf16.gmra.mxu3 %vm1212_vm1, %v9417_v51 }
 0x2b9   : > { %v10984_v50 = vpop.permute.xlu1 %3738  ;;  %4007 = vrot.lane.b32.xlu0 %v1834_v5, %s10104_s26  ;;  %4005 = vrot.lane.b32.xlu2 %v1525_v7, %s10104_s26 }
 0x2ba   : > { %16724 = vst [vmem:[#allocation107_spill] sm:$0xff] %v10984_v50 }
 0x2bb   : > { %v10988_v52 = vpop.permute.xlu0 %3742  ;;  %v10990_v60 = vpop.permute.xlu2 %3758 }
 0x2bc   : > { %16725 = vst [vmem:[#allocation108_spill] sm:$0xff] %v10988_v52 }
 0x2bd   : > { %16726 = vst [vmem:[#allocation109_spill] sm:$0xff] %v10990_v60  ;;  %v2145_v60 = vpop.f32.mrf.mxu2 }
 0x2bf   : > { %4009 = vrot.lane.b32.xlu1 %v2143_v46, %s10104_s26  ;;  %v1836_v46 = vpop.f32.mrf.mxu1 }
 0x2c1   : > { %v10996_v59 = vpop.permute.xlu1 %3744  ;;  %4011 = vrot.lane.b32.xlu2 %v2452_v49, %s10104_s26  ;;  %4013 = vrot.lane.b32.xlu0 %v1527_v56, %s10104_s26 }
 0x2c2   : > { %16727 = vst [vmem:[#allocation110_spill] sm:$0xff] %v10996_v59  ;;  %v2454_v59 = vpop.f32.mrf.mxu3 }
 0x2c3   : > { %v11002_v7 = vpop.permute.xlu0 %3748  ;;  %v11004_v5 = vpop.permute.xlu2 %3824 }
 0x2c4   : > { %16728 = vst [vmem:[#allocation111_spill] sm:$0xff] %v11002_v7 }
 0x2c5   : > { %16729 = vst [vmem:[#allocation112_spill] sm:$0xff] %v11004_v5  ;;  %v1530_v5 = vpop.f32.mrf.mxu0  ;;  %v2148_v51 = vpop.f32.mrf.mxu2 }
 0x2c7   : > { %4015 = vrot.lane.b32.xlu1 %v1836_v46, %s10104_s26  ;;  %v1839_v52 = vpop.f32.mrf.mxu1 }
 0x2c9   : > { %v11009_v49 = vpop.permute.xlu1 %3750  ;;  %4017 = vrot.lane.b32.xlu2 %v2145_v60, %s10104_s26  ;;  %4019 = vrot.lane.b32.xlu0 %v2454_v59, %s10104_s26  ;;  %v9418_v60 = vld [vmem:[%s16335_s5 + $0xf8] sm:$0xff] }
 0x2ca   : > { %16730 = vst [vmem:[#allocation113_spill] sm:$0xff] %v11009_v49  ;;  %9055 = vmatmul.msk.bf16.gmra.mxu2 %vm1212_vm1, %v9418_v60  ;;  %8995 = vmatmul.msk.bf16.gmra.mxu1 %vm1212_vm1, %v9418_v60 }
 0x2cb   : > { %v11013_v56 = vpop.permute.xlu0 %3754  ;;  %v11015_v7 = vpop.permute.xlu2 %3830  ;;  %8935 = vmatmul.msk.bf16.gmra.mxu0 %vm1212_vm1, %v9418_v60  ;;  %9115 = vmatmul.msk.bf16.gmra.mxu3 %vm1212_vm1, %v9418_v60 }
 0x2cc   : > { %16731 = vst [vmem:[#allocation114_spill] sm:$0xff] %v11013_v56 }
 0x2cd   : > { %16732 = vst [vmem:[#allocation115_spill] sm:$0xff] %v11015_v7 }
 0x2cf   : > { %4021 = vrot.lane.b32.xlu1 %v1530_v5, %s10104_s26  ;;  %v2457_v5 = vpop.f32.mrf.mxu3 }
 0x2d1   : > { %v11018_v50 = vpop.permute.xlu1 %3756  ;;  %4023 = vrot.lane.b32.xlu2 %v1839_v52, %s10104_s26  ;;  %4025 = vrot.lane.b32.xlu0 %v2148_v51, %s10104_s26  ;;  %v1532_v52 = vpop.f32.mrf.mxu0 }
 0x2d2   : > { %16733 = vst [vmem:[#allocation116_spill] sm:$0xff] %v11018_v50  ;;  %v1841_v51 = vpop.f32.mrf.mxu1  ;;  %v2150_v50 = vpop.f32.mrf.mxu2 }
 0x2d3   : > { %v11025_v59 = vpop.permute.xlu0 %3820  ;;  %v11027_v46 = vpop.permute.xlu2 %3836 }
 0x2d4   : > { %16734 = vst [vmem:[#allocation117_spill] sm:$0xff] %v11025_v59 }
 0x2d5   : > { %16735 = vst [vmem:[#allocation118_spill] sm:$0xff] %v11027_v46 }
 0x2d7   : > { %4027 = vrot.lane.b32.xlu1 %v2457_v5, %s10104_s26  ;;  %v2459_v56 = vpop.f32.mrf.mxu3 }
 0x2d9   : > { %v11034_v7 = vpop.permute.xlu1 %3822  ;;  %4031 = vrot.lane.b32.xlu0 %v1841_v51, %s10104_s26  ;;  %4029 = vrot.lane.b32.xlu2 %v1532_v52, %s10104_s26  ;;  %v1535_v60 = vpop.f32.mrf.mxu0 }
 0x2da   : > { %16736 = vst [vmem:[#allocation119_spill] sm:$0xff] %v11034_v7  ;;  %v1844_v52 = vpop.f32.mrf.mxu1 }
 0x2db   : > { %v11038_v46 = vpop.permute.xlu0 %3826  ;;  %v11040_v59 = vpop.permute.xlu2 %3842 }
 0x2dc   : > { %16737 = vst [vmem:[#allocation120_spill] sm:$0xff] %v11038_v46  ;;  %v2153_v46 = vpop.f32.mrf.mxu2 }
 0x2dd   : > { %16738 = vst [vmem:[#allocation121_spill] sm:$0xff] %v11040_v59 }
 0x2df   : > { %4033 = vrot.lane.b32.xlu1 %v2150_v50, %s10104_s26  ;;  %v2462_v59 = vpop.f32.mrf.mxu3  ;;  %v9419_v50 = vld [vmem:[%s16335_s5 + $0x100] sm:$0xff] }
 0x2e0   : > { %8936 = vmatmul.msk.bf16.gmra.mxu0 %vm1212_vm1, %v9419_v50  ;;  %9056 = vmatmul.msk.bf16.gmra.mxu2 %vm1212_vm1, %v9419_v50 }
 0x2e1   : > { %v11043_v49 = vpop.permute.xlu1 %3828  ;;  %4035 = vrot.lane.b32.xlu2 %v2459_v56, %s10104_s26  ;;  %4097 = vrot.lane.b32.xlu0 %v1535_v60, %s10105_s7 }
 0x2e2   : > { %16739 = vst [vmem:[#allocation122_spill] sm:$0xff] %v11043_v49  ;;  %9116 = vmatmul.msk.bf16.gmra.mxu3 %vm1212_vm1, %v9419_v50  ;;  %8996 = vmatmul.msk.bf16.gmra.mxu1 %vm1212_vm1, %v9419_v50 }
 0x2e3   : > { %v11047_v5 = vpop.permute.xlu0 %3832  ;;  %v11049_v51 = vpop.permute.xlu2 %3848 }
 0x2e4   : > { %16740 = vst [vmem:[#allocation123_spill] sm:$0xff] %v11047_v5 }
 0x2e5   : > { %16741 = vst [vmem:[#allocation124_spill] sm:$0xff] %v11049_v51  ;;  %v1846_v51 = vpop.f32.mrf.mxu1 }
 0x2e7   : > { %4099 = vrot.lane.b32.xlu1 %v1844_v52, %s10105_s7  ;;  %v1537_v52 = vpop.f32.mrf.mxu0  ;;  %v2464_v5 = vpop.f32.mrf.mxu3 }
 0x2e9   : > { %v11055_v7 = vpop.permute.xlu1 %3834  ;;  %4101 = vrot.lane.b32.xlu2 %v2153_v46, %s10105_s7  ;;  %4103 = vrot.lane.b32.xlu0 %v2462_v59, %s10105_s7 }
 0x2ea   : > { %16742 = vst [vmem:[#allocation125_spill] sm:$0xff] %v11055_v7  ;;  %v2155_v7 = vpop.f32.mrf.mxu2 }
 0x2eb   : > { %v11061_v56 = vpop.permute.xlu0 %3838  ;;  %v11063_v60 = vpop.permute.xlu2 %3915 }
 0x2ec   : > { %16743 = vst [vmem:[#allocation126_spill] sm:$0xff] %v11061_v56 }
 0x2ed   : > { %v1849_v50 = vpop.f32.mrf.mxu1 }
 0x2ef   : > { %4105 = vrot.lane.b32.xlu1 %v1537_v52, %s10105_s7  ;;  %v1540_v49 = vpop.f32.mrf.mxu0 }
 0x2f1   : > { %v11068_v46 = vpop.permute.xlu1 %3840  ;;  %4107 = vrot.lane.b32.xlu2 %v1846_v51, %s10105_s7  ;;  %4109 = vrot.lane.b32.xlu0 %v2155_v7, %s10105_s7 }
 0x2f2   : > { %16744 = vst [vmem:[#allocation127_spill] sm:$0xff] %v11068_v46  ;;  %v2158_v7 = vpop.f32.mrf.mxu2  ;;  %v2467_v46 = vpop.f32.mrf.mxu3 }
 0x2f3   : > { %v11072_v59 = vpop.permute.xlu0 %3844  ;;  %v11074_v56 = vpop.permute.xlu2 %3921 }
 0x2f4   : > { %16745 = vst [vmem:[#allocation128_spill] sm:$0xff] %v11072_v59  ;;  %v9420_v59 = vld [vmem:[%s16335_s5 + $0x108] sm:$0xff] }
 0x2f5   : > { %8997 = vmatmul.msk.bf16.gmra.mxu1 %vm1212_vm1, %v9420_v59  ;;  %8937 = vmatmul.msk.bf16.gmra.mxu0 %vm1212_vm1, %v9420_v59 }
 0x2f6   : > { %9057 = vmatmul.msk.bf16.gmra.mxu2 %vm1212_vm1, %v9420_v59  ;;  %9117 = vmatmul.msk.bf16.gmra.mxu3 %vm1212_vm1, %v9420_v59 }
 0x2f7   : > { %4111 = vrot.lane.b32.xlu1 %v2464_v5, %s10105_s7  ;;  %v1542_v5 = vpop.f32.mrf.mxu0 }
 0x2f9   : > { %v11077_v19 = vpop.permute.xlu1 %3846  ;;  %4115 = vrot.lane.b32.xlu0 %v1849_v50, %s10105_s7  ;;  %4113 = vrot.lane.b32.xlu2 %v1540_v49, %s10105_s7 }
 0x2fa   : > { %16746 = vst [vmem:[#allocation129_spill] sm:$0xff] %v11077_v19  ;;  %v2469_v19 = vpop.f32.mrf.mxu3 }
 0x2fb   : > { %v11081_v52 = vpop.permute.xlu0 %3850  ;;  %v11083_v51 = vpop.permute.xlu2 %3927 }
 0x2fc   : > { %16747 = vst [vmem:[#allocation130_spill] sm:$0xff] %v11081_v52  ;;  %v2160_v52 = vpop.f32.mrf.mxu2 }
 0x2fd   : > { %16748 = vst [vmem:[#allocation131_spill] sm:$0xff] %v11083_v51 }
 0x2ff   : > { %4117 = vrot.lane.b32.xlu1 %v2158_v7, %s10105_s7  ;;  %v1851_v7 = vpop.f32.mrf.mxu1  ;;  %v1545_v12 = vpop.f32.mrf.mxu0 }
 0x301   : > { %v11089_v10 = vpop.permute.xlu1 %3913  ;;  %4119 = vrot.lane.b32.xlu2 %v2467_v46, %s10105_s7  ;;  %4121 = vrot.lane.b32.xlu0 %v1542_v5, %s10105_s7 }
 0x303   : > { %v11095_v49 = vpop.permute.xlu0 %3917  ;;  %v11097_v50 = vpop.permute.xlu2 %3933 }
 0x304   : > { %16749 = vst [vmem:[#allocation132_spill] sm:$0xff] %v11097_v50  ;;  %v2163_v59 = vpop.f32.mrf.mxu2 }
 0x307   : > { %4123 = vrot.lane.b32.xlu1 %v1851_v7, %s10105_s7  ;;  %v1854_v25 = vpop.f32.mrf.mxu1 }
 0x309   : > { %v11102_v46 = vpop.permute.xlu1 %3919  ;;  %4125 = vrot.lane.b32.xlu2 %v2160_v52, %s10105_s7  ;;  %4127 = vrot.lane.b32.xlu0 %v2469_v19, %s10105_s7  ;;  %v9421_v52 = vld [vmem:[%s16335_s5 + $0x110] sm:$0xff] }
 0x30a   : > { %9058 = vmatmul.msk.bf16.gmra.mxu2 %vm1212_vm1, %v9421_v52  ;;  %8998 = vmatmul.msk.bf16.gmra.mxu1 %vm1212_vm1, %v9421_v52 }
 0x30b   : > { %v11106_v5 = vpop.permute.xlu0 %3923  ;;  %v11108_v27 = vpop.permute.xlu2 %3939  ;;  %8938 = vmatmul.msk.bf16.gmra.mxu0 %vm1212_vm1, %v9421_v52  ;;  %9118 = vmatmul.msk.bf16.gmra.mxu3 %vm1212_vm1, %v9421_v52 }
 0x30c   : > { %16750 = vst [vmem:[#allocation133_spill] sm:$0xff] %v11108_v27 }
 0x30f   : > { %4190 = vrot.lane.b32.xlu1 %v1545_v12, %s10105_s7  ;;  %v2472_v12 = vpop.f32.mrf.mxu3 }
 0x311   : > { %v11111_v14 = vpop.permute.xlu1 %3925  ;;  %4192 = vrot.lane.b32.xlu2 %v1854_v25, %s10105_s7  ;;  %4194 = vrot.lane.b32.xlu0 %v2163_v59, %s10105_s7  ;;  %v1547_v25 = vpop.f32.mrf.mxu0 }
 0x312   : > { %16751 = vst [vmem:[#allocation134_spill] sm:$0xff] %v11111_v14  ;;  %v1856_v59 = vpop.f32.mrf.mxu1 }
 0x313   : > { %v11118_v19 = vpop.permute.xlu0 %3929  ;;  %v11120_v7 = vpop.permute.xlu2 %4005 }
 0x314   : > { %16752 = vst [vmem:[#allocation135_spill] sm:$0xff] %v11118_v19  ;;  %v2165_v19 = vpop.f32.mrf.mxu2 }
 0x315   : > { %16753 = vst [vmem:[#allocation136_spill] sm:$0xff] %v11120_v7 }
 0x317   : > { %4196 = vrot.lane.b32.xlu1 %v2472_v12, %s10105_s7  ;;  %v2474_v14 = vpop.f32.mrf.mxu3 }
 0x319   : > { %v11127_v27 = vpop.permute.xlu1 %3931  ;;  %4200 = vrot.lane.b32.xlu0 %v1856_v59, %s10105_s7  ;;  %4198 = vrot.lane.b32.xlu2 %v1547_v25, %s10105_s7  ;;  %v1550_v52 = vpop.f32.mrf.mxu0 }
 0x31a   : > { %16754 = vst [vmem:[#allocation137_spill] sm:$0xff] %v11127_v27  ;;  %v1859_v25 = vpop.f32.mrf.mxu1 }
 0x31b   : > { %v11131_v7 = vpop.permute.xlu0 %3935  ;;  %v11133_v50 = vpop.permute.xlu2 %4011 }
 0x31c   : > { %16755 = vst [vmem:[#allocation138_spill] sm:$0xff] %v11131_v7  ;;  %v2168_v27 = vpop.f32.mrf.mxu2 }
 0x31d   : > { %16756 = vst [vmem:[#allocation139_spill] sm:$0xff] %v11133_v50 }
 0x31f   : > { %4202 = vrot.lane.b32.xlu1 %v2165_v19, %s10105_s7  ;;  %v2477_v50 = vpop.f32.mrf.mxu3  ;;  %v9422_v19 = vld [vmem:[%s16335_s5 + $0x118] sm:$0xff] }
 0x320   : > { %8939 = vmatmul.msk.bf16.gmra.mxu0 %vm1212_vm1, %v9422_v19  ;;  %9059 = vmatmul.msk.bf16.gmra.mxu2 %vm1212_vm1, %v9422_v19 }
 0x321   : > { %v11136_v51 = vpop.permute.xlu1 %3937  ;;  %4204 = vrot.lane.b32.xlu2 %v2474_v14, %s10105_s7  ;;  %4206 = vrot.lane.b32.xlu0 %v1550_v52, %s10105_s7 }
 0x322   : > { %16757 = vst [vmem:[#allocation140_spill] sm:$0xff] %v11136_v51  ;;  %9119 = vmatmul.msk.bf16.gmra.mxu3 %vm1212_vm1, %v9422_v19  ;;  %8999 = vmatmul.msk.bf16.gmra.mxu1 %vm1212_vm1, %v9422_v19 }
 0x323   : > { %v11140_v12 = vpop.permute.xlu0 %3941  ;;  %v11142_v59 = vpop.permute.xlu2 %4017 }
 0x324   : > { %16758 = vst [vmem:[#allocation141_spill] sm:$0xff] %v11140_v12 }
 0x325   : > { %16759 = vst [vmem:[#allocation142_spill] sm:$0xff] %v11142_v59  ;;  %v1861_v59 = vpop.f32.mrf.mxu1 }
 0x327   : > { %4208 = vrot.lane.b32.xlu1 %v1859_v25, %s10105_s7  ;;  %v1552_v25 = vpop.f32.mrf.mxu0 }
 0x329   : > { %v11148_v7 = vpop.permute.xlu1 %3943  ;;  %4210 = vrot.lane.b32.xlu2 %v2168_v27, %s10105_s7  ;;  %4212 = vrot.lane.b32.xlu0 %v2477_v50, %s10105_s7 }
 0x32a   : > { %16760 = vst [vmem:[#allocation143_spill] sm:$0xff] %v11148_v7  ;;  %v2170_v7 = vpop.f32.mrf.mxu2 }
 0x32b   : > { %v11154_v14 = vpop.permute.xlu0 %4007  ;;  %v11156_v52 = vpop.permute.xlu2 %4023 }
 0x32c   : > { %16761 = vst [vmem:[#allocation144_spill] sm:$0xff] %v11154_v14 }
 0x32d   : > { %16762 = vst [vmem:[#allocation145_spill] sm:$0xff] %v11156_v52  ;;  %v2479_v52 = vpop.f32.mrf.mxu3  ;;  %v1864_v19 = vpop.f32.mrf.mxu1 }
 0x32f   : > { %4214 = vrot.lane.b32.xlu1 %v1552_v25, %s10105_s7  ;;  %v1555_v12 = vpop.f32.mrf.mxu0 }
 0x331   : > { %v11161_v27 = vpop.permute.xlu1 %4009  ;;  %4216 = vrot.lane.b32.xlu2 %v1861_v59, %s10105_s7  ;;  %4218 = vrot.lane.b32.xlu0 %v2170_v7, %s10105_s7 }
 0x332   : > { %16763 = vst [vmem:[#allocation146_spill] sm:$0xff] %v11161_v27  ;;  %v2173_v7 = vpop.f32.mrf.mxu2 }
 0x333   : > { %v11165_v50 = vpop.permute.xlu0 %4013  ;;  %v11167_v14 = vpop.permute.xlu2 %4029 }
 0x334   : > { %16764 = vst [vmem:[#allocation147_spill] sm:$0xff] %v11165_v50 }
 0x335   : > { %16765 = vst [vmem:[#allocation148_spill] sm:$0xff] %v11167_v14  ;;  %v2482_v27 = vpop.f32.mrf.mxu3  ;;  %v9423_v14 = vld [vmem:[%s16335_s5 + $0x120] sm:$0xff] }
 0x336   : > { %9000 = vmatmul.msk.bf16.gmra.mxu1 %vm1212_vm1, %v9423_v14  ;;  %8940 = vmatmul.msk.bf16.gmra.mxu0 %vm1212_vm1, %v9423_v14 }
 0x337   : > { %4220 = vrot.lane.b32.xlu1 %v2479_v52, %s10105_s7  ;;  %v1557_v52 = vpop.f32.mrf.mxu0  ;;  %9060 = vmatmul.msk.bf16.gmra.mxu2 %vm1212_vm1, %v9423_v14 }
 0x338   : > { %9120 = vmatmul.msk.bf16.gmra.mxu3 %vm1212_vm1, %v9423_v14 }
 0x339   : > { %v11170_v51 = vpop.permute.xlu1 %4015  ;;  %4284 = vrot.lane.b32.xlu0 %v1864_v19, %s10105_s7  ;;  %4282 = vrot.lane.b32.xlu2 %v1555_v12, %s10105_s7 }
 0x33a   : > { %16766 = vst [vmem:[#allocation149_spill] sm:$0xff] %v11170_v51 }
 0x33b   : > { %v11174_v25 = vpop.permute.xlu0 %4019  ;;  %v11176_v59 = vpop.permute.xlu2 %4035 }
 0x33c   : > { %16767 = vst [vmem:[#allocation150_spill] sm:$0xff] %v11174_v25 }
 0x33d   : > { %16768 = vst [vmem:[#allocation151_spill] sm:$0xff] %v11176_v59  ;;  %v2175_v59 = vpop.f32.mrf.mxu2 }
 0x33f   : > { %4286 = vrot.lane.b32.xlu1 %v2173_v7, %s10105_s7  ;;  %v1866_v7 = vpop.f32.mrf.mxu1 }
 0x341   : > { %v11182_v50 = vpop.permute.xlu1 %4021  ;;  %4288 = vrot.lane.b32.xlu2 %v2482_v27, %s10105_s7  ;;  %4290 = vrot.lane.b32.xlu0 %v1557_v52, %s10105_s7 }
 0x342   : > { %16769 = vst [vmem:[#allocation152_spill] sm:$0xff] %v11182_v50  ;;  %v2484_v50 = vpop.f32.mrf.mxu3 }
 0x343   : > { %v11188_v12 = vpop.permute.xlu0 %4025  ;;  %v11190_v19 = vpop.permute.xlu2 %4101 }
 0x344   : > { %16770 = vst [vmem:[#allocation153_spill] sm:$0xff] %v11188_v12 }
 0x345   : > { %16771 = vst [vmem:[#allocation154_spill] sm:$0xff] %v11190_v19  ;;  %v1560_v19 = vpop.f32.mrf.mxu0  ;;  %v2178_v14 = vpop.f32.mrf.mxu2 }
 0x347   : > { %4292 = vrot.lane.b32.xlu1 %v1866_v7, %s10105_s7  ;;  %v1869_v25 = vpop.f32.mrf.mxu1 }
 0x349   : > { %v11195_v27 = vpop.permute.xlu1 %4027  ;;  %4294 = vrot.lane.b32.xlu2 %v2175_v59, %s10105_s7  ;;  %4296 = vrot.lane.b32.xlu0 %v2484_v50, %s10105_s7  ;;  %v9424_v59 = vld [vmem:[%s16335_s5 + $0x128] sm:$0xff] }
 0x34a   : > { %16772 = vst [vmem:[#allocation155_spill] sm:$0xff] %v11195_v27  ;;  %9061 = vmatmul.msk.bf16.gmra.mxu2 %vm1212_vm1, %v9424_v59  ;;  %9001 = vmatmul.msk.bf16.gmra.mxu1 %vm1212_vm1, %v9424_v59 }
 0x34b   : > { %v11199_v52 = vpop.permute.xlu0 %4031  ;;  %v11201_v12 = vpop.permute.xlu2 %4107  ;;  %8941 = vmatmul.msk.bf16.gmra.mxu0 %vm1212_vm1, %v9424_v59  ;;  %9121 = vmatmul.msk.bf16.gmra.mxu3 %vm1212_vm1, %v9424_v59 }
 0x34c   : > { %16773 = vst [vmem:[#allocation156_spill] sm:$0xff] %v11199_v52 }
 0x34d   : > { %16774 = vst [vmem:[#allocation157_spill] sm:$0xff] %v11201_v12 }
 0x34f   : > { %4298 = vrot.lane.b32.xlu1 %v1560_v19, %s10105_s7  ;;  %v2487_v19 = vpop.f32.mrf.mxu3 }
 0x351   : > { %v11204_v51 = vpop.permute.xlu1 %4033  ;;  %4300 = vrot.lane.b32.xlu2 %v1869_v25, %s10105_s7  ;;  %4302 = vrot.lane.b32.xlu0 %v2178_v14, %s10105_s7  ;;  %v1562_v25 = vpop.f32.mrf.mxu0 }
 0x352   : > { %16775 = vst [vmem:[#allocation158_spill] sm:$0xff] %v11204_v51  ;;  %v1871_v14 = vpop.f32.mrf.mxu1  ;;  %v2180_v51 = vpop.f32.mrf.mxu2 }
 0x353   : > { %v11211_v50 = vpop.permute.xlu0 %4097  ;;  %v11213_v7 = vpop.permute.xlu2 %4113 }
 0x354   : > { %16776 = vst [vmem:[#allocation159_spill] sm:$0xff] %v11211_v50 }
 0x355   : > { %16777 = vst [vmem:[#allocation160_spill] sm:$0xff] %v11213_v7 }
 0x357   : > { %4304 = vrot.lane.b32.xlu1 %v2487_v19, %s10105_s7  ;;  %v2489_v52 = vpop.f32.mrf.mxu3 }
 0x359   : > { %v11220_v12 = vpop.permute.xlu1 %4099  ;;  %4308 = vrot.lane.b32.xlu0 %v1871_v14, %s10105_s7  ;;  %4306 = vrot.lane.b32.xlu2 %v1562_v25, %s10105_s7  ;;  %v1565_v59 = vpop.f32.mrf.mxu0 }
 0x35a   : > { %16778 = vst [vmem:[#allocation161_spill] sm:$0xff] %v11220_v12  ;;  %v1874_v25 = vpop.f32.mrf.mxu1 }
 0x35b   : > { %v11224_v7 = vpop.permute.xlu0 %4103  ;;  %v11226_v50 = vpop.permute.xlu2 %4119 }
 0x35c   : > { %16779 = vst [vmem:[#allocation162_spill] sm:$0xff] %v11224_v7  ;;  %v2183_v7 = vpop.f32.mrf.mxu2 }
 0x35d   : > { %16780 = vst [vmem:[#allocation163_spill] sm:$0xff] %v11226_v50 }
 0x35f   : > { %4310 = vrot.lane.b32.xlu1 %v2180_v51, %s10105_s7  ;;  %v2492_v50 = vpop.f32.mrf.mxu3  ;;  %v9425_v51 = vld [vmem:[%s16335_s5 + $0x130] sm:$0xff] }
 0x360   : > { %8942 = vmatmul.msk.bf16.gmra.mxu0 %vm1212_vm1, %v9425_v51  ;;  %9062 = vmatmul.msk.bf16.gmra.mxu2 %vm1212_vm1, %v9425_v51 }
 0x361   : > { %v11229_v27 = vpop.permute.xlu1 %4105  ;;  %4312 = vrot.lane.b32.xlu2 %v2489_v52, %s10105_s7  ;;  %4374 = vrot.lane.b32.xlu0 %v1565_v59, %s10106_s16 }
 0x362   : > { %16781 = vst [vmem:[#allocation164_spill] sm:$0xff] %v11229_v27  ;;  %9122 = vmatmul.msk.bf16.gmra.mxu3 %vm1212_vm1, %v9425_v51  ;;  %9002 = vmatmul.msk.bf16.gmra.mxu1 %vm1212_vm1, %v9425_v51 }
 0x363   : > { %v11233_v19 = vpop.permute.xlu0 %4109  ;;  %v11235_v14 = vpop.permute.xlu2 %4125 }
 0x364   : > { %16782 = vst [vmem:[#allocation165_spill] sm:$0xff] %v11233_v19 }
 0x365   : > { %16783 = vst [vmem:[#allocation166_spill] sm:$0xff] %v11235_v14  ;;  %v1876_v14 = vpop.f32.mrf.mxu1 }
 0x367   : > { %4376 = vrot.lane.b32.xlu1 %v1874_v25, %s10106_s16  ;;  %v1567_v25 = vpop.f32.mrf.mxu0  ;;  %v2494_v19 = vpop.f32.mrf.mxu3 }
 0x369   : > { %v11241_v12 = vpop.permute.xlu1 %4111  ;;  %4378 = vrot.lane.b32.xlu2 %v2183_v7, %s10106_s16  ;;  %4380 = vrot.lane.b32.xlu0 %v2492_v50, %s10106_s16 }
 0x36a   : > { %16784 = vst [vmem:[#allocation167_spill] sm:$0xff] %v11241_v12  ;;  %v2185_v12 = vpop.f32.mrf.mxu2 }
 0x36b   : > { %v11247_v52 = vpop.permute.xlu0 %4115  ;;  %v11249_v59 = vpop.permute.xlu2 %4192 }
 0x36c   : > { %16785 = vst [vmem:[#allocation168_spill] sm:$0xff] %v11247_v52 }
 0x36d   : > { %16786 = vst [vmem:[#allocation169_spill] sm:$0xff] %v11249_v59  ;;  %v1879_v51 = vpop.f32.mrf.mxu1 }
 0x36f   : > { %4382 = vrot.lane.b32.xlu1 %v1567_v25, %s10106_s16  ;;  %v1570_v27 = vpop.f32.mrf.mxu0 }
 0x371   : > { %v11254_v7 = vpop.permute.xlu1 %4117  ;;  %4384 = vrot.lane.b32.xlu2 %v1876_v14, %s10106_s16  ;;  %4386 = vrot.lane.b32.xlu0 %v2185_v12, %s10106_s16 }
 0x372   : > { %16787 = vst [vmem:[#allocation170_spill] sm:$0xff] %v11254_v7  ;;  %v2188_v12 = vpop.f32.mrf.mxu2  ;;  %v2497_v7 = vpop.f32.mrf.mxu3 }
 0x373   : > { %v11258_v50 = vpop.permute.xlu0 %4121  ;;  %v11260_v52 = vpop.permute.xlu2 %4198 }
 0x374   : > { %16788 = vst [vmem:[#allocation171_spill] sm:$0xff] %v11258_v50  ;;  %v9426_v50 = vld [vmem:[%s16335_s5 + $0x138] sm:$0xff] }
 0x375   : > { %16789 = vst [vmem:[#allocation172_spill] sm:$0xff] %v11260_v52  ;;  %9003 = vmatmul.msk.bf16.gmra.mxu1 %vm1212_vm1, %v9426_v50  ;;  %8943 = vmatmul.msk.bf16.gmra.mxu0 %vm1212_vm1, %v9426_v50 }
 0x376   : > { %9063 = vmatmul.msk.bf16.gmra.mxu2 %vm1212_vm1, %v9426_v50  ;;  %9123 = vmatmul.msk.bf16.gmra.mxu3 %vm1212_vm1, %v9426_v50 }
 0x377   : > { %4388 = vrot.lane.b32.xlu1 %v2494_v19, %s10106_s16  ;;  %v1572_v19 = vpop.f32.mrf.mxu0 }
 0x379   : > { %v11263_v59 = vpop.permute.xlu1 %4123  ;;  %4392 = vrot.lane.b32.xlu0 %v1879_v51, %s10106_s16  ;;  %4390 = vrot.lane.b32.xlu2 %v1570_v27, %s10106_s16 }
 0x37a   : > { %16790 = vst [vmem:[#allocation173_spill] sm:$0xff] %v11263_v59  ;;  %v2499_v59 = vpop.f32.mrf.mxu3 }
 0x37b   : > { %v11267_v25 = vpop.permute.xlu0 %4127  ;;  %v11269_v14 = vpop.permute.xlu2 %4204 }
 0x37c   : > { %16791 = vst [vmem:[#allocation174_spill] sm:$0xff] %v11267_v25  ;;  %v2190_v25 = vpop.f32.mrf.mxu2 }
 0x37d   : > { %16792 = vst [vmem:[#allocation175_spill] sm:$0xff] %v11269_v14 }
 0x37f   : > { %4394 = vrot.lane.b32.xlu1 %v2188_v12, %s10106_s16  ;;  %v1881_v12 = vpop.f32.mrf.mxu1 }
 0x381   : > { %v11275_v52 = vpop.permute.xlu1 %4190  ;;  %4396 = vrot.lane.b32.xlu2 %v2497_v7, %s10106_s16  ;;  %4398 = vrot.lane.b32.xlu0 %v1572_v19, %s10106_s16 }
 0x382   : > { %16793 = vst [vmem:[#allocation176_spill] sm:$0xff] %v11275_v52 }
 0x383   : > { %v11281_v27 = vpop.permute.xlu0 %4194  ;;  %v11283_v51 = vpop.permute.xlu2 %4210 }
 0x384   : > { %16794 = vst [vmem:[#allocation177_spill] sm:$0xff] %v11281_v27  ;;  %v2193_v50 = vpop.f32.mrf.mxu2 }
 0x385   : > { %16795 = vst [vmem:[#allocation178_spill] sm:$0xff] %v11283_v51  ;;  %v1575_v51 = vpop.f32.mrf.mxu0 }
 0x387   : > { %4400 = vrot.lane.b32.xlu1 %v1881_v12, %s10106_s16  ;;  %v1884_v27 = vpop.f32.mrf.mxu1 }
 0x389   : > { %v11288_v7 = vpop.permute.xlu1 %4196  ;;  %4402 = vrot.lane.b32.xlu2 %v2190_v25, %s10106_s16  ;;  %4404 = vrot.lane.b32.xlu0 %v2499_v59, %s10106_s16  ;;  %v9427_v25 = vld [vmem:[%s16335_s5 + $0x140] sm:$0xff] }
 0x38a   : > { %16796 = vst [vmem:[#allocation179_spill] sm:$0xff] %v11288_v7  ;;  %9064 = vmatmul.msk.bf16.gmra.mxu2 %vm1212_vm1, %v9427_v25  ;;  %9004 = vmatmul.msk.bf16.gmra.mxu1 %vm1212_vm1, %v9427_v25 }
 0x38b   : > { %v11292_v19 = vpop.permute.xlu0 %4200  ;;  %v11294_v14 = vpop.permute.xlu2 %4216  ;;  %8944 = vmatmul.msk.bf16.gmra.mxu0 %vm1212_vm1, %v9427_v25  ;;  %9124 = vmatmul.msk.bf16.gmra.mxu3 %vm1212_vm1, %v9427_v25 }
 0x38c   : > { %16797 = vst [vmem:[#allocation180_spill] sm:$0xff] %v11292_v19 }
 0x38d   : > { %16798 = vst [vmem:[#allocation181_spill] sm:$0xff] %v11294_v14 }
 0x38f   : > { %4467 = vrot.lane.b32.xlu1 %v1575_v51, %s10106_s16  ;;  %v2502_v51 = vpop.f32.mrf.mxu3 }
 0x391   : > { %v11297_v52 = vpop.permute.xlu1 %4202  ;;  %4469 = vrot.lane.b32.xlu2 %v1884_v27, %s10106_s16  ;;  %4471 = vrot.lane.b32.xlu0 %v2193_v50, %s10106_s16  ;;  %v1577_v27 = vpop.f32.mrf.mxu0 }
 0x392   : > { %16799 = vst [vmem:[#allocation182_spill] sm:$0xff] %v11297_v52  ;;  %v1886_v50 = vpop.f32.mrf.mxu1  ;;  %v2195_v52 = vpop.f32.mrf.mxu2 }
 0x393   : > { %v11304_v59 = vpop.permute.xlu0 %4206  ;;  %v11306_v12 = vpop.permute.xlu2 %4282 }
 0x394   : > { %16800 = vst [vmem:[#allocation183_spill] sm:$0xff] %v11304_v59 }
 0x395   : > { %16801 = vst [vmem:[#allocation184_spill] sm:$0xff] %v11306_v12 }
 0x397   : > { %4473 = vrot.lane.b32.xlu1 %v2502_v51, %s10106_s16  ;;  %v2504_v19 = vpop.f32.mrf.mxu3 }
 0x399   : > { %v11313_v14 = vpop.permute.xlu1 %4208  ;;  %4477 = vrot.lane.b32.xlu0 %v1886_v50, %s10106_s16  ;;  %4475 = vrot.lane.b32.xlu2 %v1577_v27, %s10106_s16  ;;  %v1580_v25 = vpop.f32.mrf.mxu0 }
 0x39a   : > { %16802 = vst [vmem:[#allocation185_spill] sm:$0xff] %v11313_v14  ;;  %v1889_v27 = vpop.f32.mrf.mxu1  ;;  %v2198_v14 = vpop.f32.mrf.mxu2 }
 0x39b   : > { %v11317_v12 = vpop.permute.xlu0 %4212  ;;  %v11319_v59 = vpop.permute.xlu2 %4288 }
 0x39c   : > { %16803 = vst [vmem:[#allocation186_spill] sm:$0xff] %v11317_v12 }
 0x39d   : > { %16804 = vst [vmem:[#allocation187_spill] sm:$0xff] %v11319_v59 }
 0x39f   : > { %4479 = vrot.lane.b32.xlu1 %v2195_v52, %s10106_s16  ;;  %v2507_v59 = vpop.f32.mrf.mxu3  ;;  %v9428_v52 = vld [vmem:[%s16335_s5 + $0x148] sm:$0xff] }
 0x3a0   : > { %8945 = vmatmul.msk.bf16.gmra.mxu0 %vm1212_vm1, %v9428_v52  ;;  %9065 = vmatmul.msk.bf16.gmra.mxu2 %vm1212_vm1, %v9428_v52 }
 0x3a1   : > { %v11322_v7 = vpop.permute.xlu1 %4214  ;;  %4481 = vrot.lane.b32.xlu2 %v2504_v19, %s10106_s16  ;;  %4483 = vrot.lane.b32.xlu0 %v1580_v25, %s10106_s16 }
 0x3a2   : > { %16805 = vst [vmem:[#allocation188_spill] sm:$0xff] %v11322_v7  ;;  %9125 = vmatmul.msk.bf16.gmra.mxu3 %vm1212_vm1, %v9428_v52  ;;  %9005 = vmatmul.msk.bf16.gmra.mxu1 %vm1212_vm1, %v9428_v52 }
 0x3a3   : > { %v11326_v51 = vpop.permute.xlu0 %4218  ;;  %v11328_v50 = vpop.permute.xlu2 %4294 }
 0x3a4   : > { %16806 = vst [vmem:[#allocation189_spill] sm:$0xff] %v11326_v51 }
 0x3a5   : > { %16807 = vst [vmem:[#allocation190_spill] sm:$0xff] %v11328_v50  ;;  %v1891_v50 = vpop.f32.mrf.mxu1 }
 0x3a7   : > { %4485 = vrot.lane.b32.xlu1 %v1889_v27, %s10106_s16  ;;  %v1582_v27 = vpop.f32.mrf.mxu0 }
 0x3a9   : > { %v11334_v12 = vpop.permute.xlu1 %4220  ;;  %4487 = vrot.lane.b32.xlu2 %v2198_v14, %s10106_s16  ;;  %4489 = vrot.lane.b32.xlu0 %v2507_v59, %s10106_s16 }
 0x3aa   : > { %16808 = vst [vmem:[#allocation191_spill] sm:$0xff] %v11334_v12  ;;  %v2200_v12 = vpop.f32.mrf.mxu2 }
 0x3ab   : > { %v11340_v19 = vpop.permute.xlu0 %4284  ;;  %v11342_v25 = vpop.permute.xlu2 %4300 }
 0x3ac   : > { %16809 = vst [vmem:[#allocation192_spill] sm:$0xff] %v11340_v19 }
 0x3ad   : > { %16810 = vst [vmem:[#allocation193_spill] sm:$0xff] %v11342_v25  ;;  %v2509_v25 = vpop.f32.mrf.mxu3  ;;  %v1894_v52 = vpop.f32.mrf.mxu1 }
 0x3af   : > { %4491 = vrot.lane.b32.xlu1 %v1582_v27, %s10106_s16  ;;  %v1585_v51 = vpop.f32.mrf.mxu0 }
 0x3b1   : > { %v11347_v14 = vpop.permute.xlu1 %4286  ;;  %4493 = vrot.lane.b32.xlu2 %v1891_v50, %s10106_s16  ;;  %4495 = vrot.lane.b32.xlu0 %v2200_v12, %s10106_s16 }
 0x3b2   : > { %16811 = vst [vmem:[#allocation194_spill] sm:$0xff] %v11347_v14  ;;  %v2203_v12 = vpop.f32.mrf.mxu2 }
 0x3b3   : > { %v11351_v59 = vpop.permute.xlu0 %4290  ;;  %v11353_v19 = vpop.permute.xlu2 %4306 }
 0x3b4   : > { %16812 = vst [vmem:[#allocation195_spill] sm:$0xff] %v11351_v59 }
 0x3b5   : > { %16813 = vst [vmem:[#allocation196_spill] sm:$0xff] %v11353_v19  ;;  %v2512_v14 = vpop.f32.mrf.mxu3  ;;  %v9429_v19 = vld [vmem:[%s16335_s5 + $0x150] sm:$0xff] }
 0x3b6   : > { %9006 = vmatmul.msk.bf16.gmra.mxu1 %vm1212_vm1, %v9429_v19  ;;  %8946 = vmatmul.msk.bf16.gmra.mxu0 %vm1212_vm1, %v9429_v19 }
 0x3b7   : > { %4497 = vrot.lane.b32.xlu1 %v2509_v25, %s10106_s16  ;;  %v1587_v25 = vpop.f32.mrf.mxu0  ;;  %9066 = vmatmul.msk.bf16.gmra.mxu2 %vm1212_vm1, %v9429_v19 }
 0x3b8   : > { %9126 = vmatmul.msk.bf16.gmra.mxu3 %vm1212_vm1, %v9429_v19 }
 0x3b9   : > { %v11356_v7 = vpop.permute.xlu1 %4292  ;;  %4561 = vrot.lane.b32.xlu0 %v1894_v52, %s10106_s16  ;;  %4559 = vrot.lane.b32.xlu2 %v1585_v51, %s10106_s16 }
 0x3ba   : > { %16814 = vst [vmem:[#allocation197_spill] sm:$0xff] %v11356_v7 }
 0x3bb   : > { %v11360_v27 = vpop.permute.xlu0 %4296  ;;  %v11362_v50 = vpop.permute.xlu2 %4312 }
 0x3bc   : > { %16815 = vst [vmem:[#allocation198_spill] sm:$0xff] %v11360_v27 }
 0x3bd   : > { %16816 = vst [vmem:[#allocation199_spill] sm:$0xff] %v11362_v50  ;;  %v2205_v50 = vpop.f32.mrf.mxu2 }
 0x3bf   : > { %4563 = vrot.lane.b32.xlu1 %v2203_v12, %s10106_s16  ;;  %v1896_v12 = vpop.f32.mrf.mxu1 }
 0x3c1   : > { %v11368_v59 = vpop.permute.xlu1 %4298  ;;  %4565 = vrot.lane.b32.xlu2 %v2512_v14, %s10106_s16  ;;  %4567 = vrot.lane.b32.xlu0 %v1587_v25, %s10106_s16 }
 0x3c2   : > { %16817 = vst [vmem:[#allocation200_spill] sm:$0xff] %v11368_v59  ;;  %v2514_v59 = vpop.f32.mrf.mxu3 }
 0x3c3   : > { %v11374_v51 = vpop.permute.xlu0 %4302  ;;  %v11376_v52 = vpop.permute.xlu2 %4378 }
 0x3c4   : > { %16818 = vst [vmem:[#allocation201_spill] sm:$0xff] %v11374_v51 }
 0x3c5   : > { %16819 = vst [vmem:[#allocation202_spill] sm:$0xff] %v11376_v52  ;;  %v1590_v52 = vpop.f32.mrf.mxu0  ;;  %v2208_v19 = vpop.f32.mrf.mxu2 }
 0x3c7   : > { %4569 = vrot.lane.b32.xlu1 %v1896_v12, %s10106_s16  ;;  %v1899_v27 = vpop.f32.mrf.mxu1 }
 0x3c9   : > { %v11381_v14 = vpop.permute.xlu1 %4304  ;;  %4571 = vrot.lane.b32.xlu2 %v2205_v50, %s10106_s16  ;;  %4573 = vrot.lane.b32.xlu0 %v2514_v59, %s10106_s16  ;;  %v9430_v50 = vld [vmem:[%s16335_s5 + $0x158] sm:$0xff] }
 0x3ca   : > { %16820 = vst [vmem:[#allocation203_spill] sm:$0xff] %v11381_v14  ;;  %9067 = vmatmul.msk.bf16.gmra.mxu2 %vm1212_vm1, %v9430_v50  ;;  %9007 = vmatmul.msk.bf16.gmra.mxu1 %vm1212_vm1, %v9430_v50 }
 0x3cb   : > { %v11385_v25 = vpop.permute.xlu0 %4308  ;;  %v11387_v51 = vpop.permute.xlu2 %4384  ;;  %8947 = vmatmul.msk.bf16.gmra.mxu0 %vm1212_vm1, %v9430_v50  ;;  %9127 = vmatmul.msk.bf16.gmra.mxu3 %vm1212_vm1, %v9430_v50 }
 0x3cc   : > { %16821 = vst [vmem:[#allocation204_spill] sm:$0xff] %v11385_v25 }
 0x3cd   : > { %16822 = vst [vmem:[#allocation205_spill] sm:$0xff] %v11387_v51 }
 0x3cf   : > { %4575 = vrot.lane.b32.xlu1 %v1590_v52, %s10106_s16  ;;  %v2517_v52 = vpop.f32.mrf.mxu3 }
 0x3d1   : > { %v11390_v7 = vpop.permute.xlu1 %4310  ;;  %4577 = vrot.lane.b32.xlu2 %v1899_v27, %s10106_s16  ;;  %4579 = vrot.lane.b32.xlu0 %v2208_v19, %s10106_s16  ;;  %v1592_v27 = vpop.f32.mrf.mxu0 }
 0x3d2   : > { %16823 = vst [vmem:[#allocation206_spill] sm:$0xff] %v11390_v7  ;;  %v1901_v19 = vpop.f32.mrf.mxu1  ;;  %v2210_v7 = vpop.f32.mrf.mxu2 }
 0x3d3   : > { %v11397_v59 = vpop.permute.xlu0 %4374  ;;  %v11399_v12 = vpop.permute.xlu2 %4390 }
 0x3d4   : > { %16824 = vst [vmem:[#allocation207_spill] sm:$0xff] %v11397_v59 }
 0x3d5   : > { %16825 = vst [vmem:[#allocation208_spill] sm:$0xff] %v11399_v12 }
 0x3d7   : > { %4581 = vrot.lane.b32.xlu1 %v2517_v52, %s10106_s16  ;;  %v2519_v25 = vpop.f32.mrf.mxu3 }
 0x3d9   : > { %v11406_v51 = vpop.permute.xlu1 %4376  ;;  %4585 = vrot.lane.b32.xlu0 %v1901_v19, %s10106_s16  ;;  %4583 = vrot.lane.b32.xlu2 %v1592_v27, %s10106_s16  ;;  %v1595_v50 = vpop.f32.mrf.mxu0 }
 0x3da   : > { %16826 = vst [vmem:[#allocation209_spill] sm:$0xff] %v11406_v51  ;;  %v1904_v27 = vpop.f32.mrf.mxu1 }
 0x3db   : > { %v11410_v12 = vpop.permute.xlu0 %4380  ;;  %v11412_v59 = vpop.permute.xlu2 %4396 }
 0x3dc   : > { %16827 = vst [vmem:[#allocation210_spill] sm:$0xff] %v11410_v12  ;;  %v2213_v12 = vpop.f32.mrf.mxu2 }
 0x3dd   : > { %16828 = vst [vmem:[#allocation211_spill] sm:$0xff] %v11412_v59 }
 0x3df   : > { %4587 = vrot.lane.b32.xlu1 %v2210_v7, %s10106_s16  ;;  %v2522_v59 = vpop.f32.mrf.mxu3  ;;  %v9431_v7 = vld [vmem:[%s16335_s5 + $0x160] sm:$0xff] }
 0x3e0   : > { %8948 = vmatmul.msk.bf16.gmra.mxu0 %vm1212_vm1, %v9431_v7  ;;  %9068 = vmatmul.msk.bf16.gmra.mxu2 %vm1212_vm1, %v9431_v7 }
 0x3e1   : > { %v11415_v14 = vpop.permute.xlu1 %4382  ;;  %4589 = vrot.lane.b32.xlu2 %v2519_v25, %s10106_s16  ;;  %4651 = vrot.lane.b32.xlu0 %v1595_v50, %s10107_s1 }
 0x3e2   : > { %16829 = vst [vmem:[#allocation212_spill] sm:$0xff] %v11415_v14  ;;  %9128 = vmatmul.msk.bf16.gmra.mxu3 %vm1212_vm1, %v9431_v7  ;;  %9008 = vmatmul.msk.bf16.gmra.mxu1 %vm1212_vm1, %v9431_v7 }
 0x3e3   : > { %v11419_v52 = vpop.permute.xlu0 %4386  ;;  %v11421_v19 = vpop.permute.xlu2 %4402 }
 0x3e4   : > { %16830 = vst [vmem:[#allocation213_spill] sm:$0xff] %v11419_v52 }
 0x3e5   : > { %16831 = vst [vmem:[#allocation214_spill] sm:$0xff] %v11421_v19  ;;  %v1906_v19 = vpop.f32.mrf.mxu1 }
 0x3e7   : > { %4653 = vrot.lane.b32.xlu1 %v1904_v27, %s10107_s1  ;;  %v1597_v27 = vpop.f32.mrf.mxu0  ;;  %v2524_v52 = vpop.f32.mrf.mxu3 }
 0x3e9   : > { %v11427_v51 = vpop.permute.xlu1 %4388  ;;  %4655 = vrot.lane.b32.xlu2 %v2213_v12, %s10107_s1  ;;  %4657 = vrot.lane.b32.xlu0 %v2522_v59, %s10107_s1 }
 0x3ea   : > { %16832 = vst [vmem:[#allocation215_spill] sm:$0xff] %v11427_v51  ;;  %v2215_v51 = vpop.f32.mrf.mxu2 }
 0x3eb   : > { %v11433_v25 = vpop.permute.xlu0 %4392  ;;  %v11435_v50 = vpop.permute.xlu2 %4469 }
 0x3ec   : > { %16833 = vst [vmem:[#allocation216_spill] sm:$0xff] %v11433_v25 }
 0x3ed   : > { %16834 = vst [vmem:[#allocation217_spill] sm:$0xff] %v11435_v50  ;;  %v1909_v7 = vpop.f32.mrf.mxu1 }
 0x3ef   : > { %4659 = vrot.lane.b32.xlu1 %v1597_v27, %s10107_s1  ;;  %v1600_v14 = vpop.f32.mrf.mxu0 }
 0x3f1   : > { %v11440_v12 = vpop.permute.xlu1 %4394  ;;  %4661 = vrot.lane.b32.xlu2 %v1906_v19, %s10107_s1  ;;  %4663 = vrot.lane.b32.xlu0 %v2215_v51, %s10107_s1 }
 0x3f2   : > { %16835 = vst [vmem:[#allocation218_spill] sm:$0xff] %v11440_v12  ;;  %v2218_v51 = vpop.f32.mrf.mxu2  ;;  %v2527_v12 = vpop.f32.mrf.mxu3 }
 0x3f3   : > { %v11444_v59 = vpop.permute.xlu0 %4398  ;;  %v11446_v25 = vpop.permute.xlu2 %4475 }
 0x3f4   : > { %16836 = vst [vmem:[#allocation219_spill] sm:$0xff] %v11444_v59  ;;  %v9432_v59 = vld [vmem:[%s16335_s5 + $0x168] sm:$0xff] }
 0x3f5   : > { %16837 = vst [vmem:[#allocation220_spill] sm:$0xff] %v11446_v25  ;;  %9009 = vmatmul.msk.bf16.gmra.mxu1 %vm1212_vm1, %v9432_v59  ;;  %8949 = vmatmul.msk.bf16.gmra.mxu0 %vm1212_vm1, %v9432_v59 }
 0x3f6   : > { %9069 = vmatmul.msk.bf16.gmra.mxu2 %vm1212_vm1, %v9432_v59  ;;  %9129 = vmatmul.msk.bf16.gmra.mxu3 %vm1212_vm1, %v9432_v59 }
 0x3f7   : > { %4665 = vrot.lane.b32.xlu1 %v2524_v52, %s10107_s1  ;;  %v1602_v52 = vpop.f32.mrf.mxu0 }
 0x3f9   : > { %v11449_v50 = vpop.permute.xlu1 %4400  ;;  %4669 = vrot.lane.b32.xlu0 %v1909_v7, %s10107_s1  ;;  %4667 = vrot.lane.b32.xlu2 %v1600_v14, %s10107_s1 }
 0x3fa   : > { %16838 = vst [vmem:[#allocation221_spill] sm:$0xff] %v11449_v50  ;;  %v2529_v50 = vpop.f32.mrf.mxu3 }
 0x3fb   : > { %v11453_v27 = vpop.permute.xlu0 %4404  ;;  %v11455_v19 = vpop.permute.xlu2 %4481 }
 0x3fc   : > { %16839 = vst [vmem:[#allocation222_spill] sm:$0xff] %v11453_v27  ;;  %v2220_v27 = vpop.f32.mrf.mxu2 }
 0x3fd   : > { %16840 = vst [vmem:[#allocation223_spill] sm:$0xff] %v11455_v19 }
 0x3ff   : > { %4671 = vrot.lane.b32.xlu1 %v2218_v51, %s10107_s1  ;;  %v1911_v51 = vpop.f32.mrf.mxu1 }
 0x401   : > { %v11461_v25 = vpop.permute.xlu1 %4467  ;;  %4673 = vrot.lane.b32.xlu2 %v2527_v12, %s10107_s1  ;;  %4675 = vrot.lane.b32.xlu0 %v1602_v52, %s10107_s1 }
 0x402   : > { %16841 = vst [vmem:[#allocation224_spill] sm:$0xff] %v11461_v25 }
 0x403   : > { %v11467_v14 = vpop.permute.xlu0 %4471  ;;  %v11469_v7 = vpop.permute.xlu2 %4487 }
 0x404   : > { %16842 = vst [vmem:[#allocation225_spill] sm:$0xff] %v11467_v14  ;;  %v2223_v59 = vpop.f32.mrf.mxu2 }
 0x405   : > { %16843 = vst [vmem:[#allocation226_spill] sm:$0xff] %v11469_v7  ;;  %v1605_v7 = vpop.f32.mrf.mxu0 }
 0x407   : > { %4677 = vrot.lane.b32.xlu1 %v1911_v51, %s10107_s1  ;;  %v1914_v14 = vpop.f32.mrf.mxu1 }
 0x409   : > { %v11474_v12 = vpop.permute.xlu1 %4473  ;;  %4679 = vrot.lane.b32.xlu2 %v2220_v27, %s10107_s1  ;;  %4681 = vrot.lane.b32.xlu0 %v2529_v50, %s10107_s1  ;;  %v9433_v27 = vld [vmem:[%s16335_s5 + $0x170] sm:$0xff] }
 0x40a   : > { %16844 = vst [vmem:[#allocation227_spill] sm:$0xff] %v11474_v12  ;;  %9070 = vmatmul.msk.bf16.gmra.mxu2 %vm1212_vm1, %v9433_v27  ;;  %9010 = vmatmul.msk.bf16.gmra.mxu1 %vm1212_vm1, %v9433_v27 }
 0x40b   : > { %v11478_v52 = vpop.permute.xlu0 %4477  ;;  %v11480_v19 = vpop.permute.xlu2 %4493  ;;  %8950 = vmatmul.msk.bf16.gmra.mxu0 %vm1212_vm1, %v9433_v27  ;;  %9130 = vmatmul.msk.bf16.gmra.mxu3 %vm1212_vm1, %v9433_v27 }
 0x40c   : > { %16845 = vst [vmem:[#allocation228_spill] sm:$0xff] %v11478_v52 }
 0x40d   : > { %16846 = vst [vmem:[#allocation229_spill] sm:$0xff] %v11480_v19 }
 0x40f   : > { %4744 = vrot.lane.b32.xlu1 %v1605_v7, %s10107_s1  ;;  %v2532_v7 = vpop.f32.mrf.mxu3 }
 0x411   : > { %v11483_v25 = vpop.permute.xlu1 %4479  ;;  %4746 = vrot.lane.b32.xlu2 %v1914_v14, %s10107_s1  ;;  %4748 = vrot.lane.b32.xlu0 %v2223_v59, %s10107_s1  ;;  %v1607_v14 = vpop.f32.mrf.mxu0 }
 0x412   : > { %16847 = vst [vmem:[#allocation230_spill] sm:$0xff] %v11483_v25  ;;  %v1916_v59 = vpop.f32.mrf.mxu1  ;;  %v2225_v25 = vpop.f32.mrf.mxu2 }
 0x413   : > { %v11490_v50 = vpop.permute.xlu0 %4483  ;;  %v11492_v51 = vpop.permute.xlu2 %4559 }
 0x414   : > { %16848 = vst [vmem:[#allocation231_spill] sm:$0xff] %v11490_v50 }
 0x415   : > { %16849 = vst [vmem:[#allocation232_spill] sm:$0xff] %v11492_v51 }
 0x417   : > { %4750 = vrot.lane.b32.xlu1 %v2532_v7, %s10107_s1  ;;  %v2534_v52 = vpop.f32.mrf.mxu3 }
 0x419   : > { %v11499_v19 = vpop.permute.xlu1 %4485  ;;  %4754 = vrot.lane.b32.xlu0 %v1916_v59, %s10107_s1  ;;  %4752 = vrot.lane.b32.xlu2 %v1607_v14, %s10107_s1  ;;  %v1610_v27 = vpop.f32.mrf.mxu0 }
 0x41a   : > { %16850 = vst [vmem:[#allocation233_spill] sm:$0xff] %v11499_v19  ;;  %v1919_v14 = vpop.f32.mrf.mxu1  ;;  %v2228_v19 = vpop.f32.mrf.mxu2 }
 0x41b   : > { %v11503_v51 = vpop.permute.xlu0 %4489  ;;  %v11505_v50 = vpop.permute.xlu2 %4565 }
 0x41c   : > { %16851 = vst [vmem:[#allocation234_spill] sm:$0xff] %v11503_v51 }
 0x41d   : > { %16852 = vst [vmem:[#allocation235_spill] sm:$0xff] %v11505_v50 }
 0x41f   : > { %4756 = vrot.lane.b32.xlu1 %v2225_v25, %s10107_s1  ;;  %v2537_v50 = vpop.f32.mrf.mxu3  ;;  %v9434_v25 = vld [vmem:[%s16335_s5 + $0x178] sm:$0xff] }
 0x420   : > { %8951 = vmatmul.msk.bf16.gmra.mxu0 %vm1212_vm1, %v9434_v25  ;;  %9071 = vmatmul.msk.bf16.gmra.mxu2 %vm1212_vm1, %v9434_v25 }
 0x421   : > { %v11508_v12 = vpop.permute.xlu1 %4491  ;;  %4758 = vrot.lane.b32.xlu2 %v2534_v52, %s10107_s1  ;;  %4760 = vrot.lane.b32.xlu0 %v1610_v27, %s10107_s1 }
 0x422   : > { %16853 = vst [vmem:[#allocation236_spill] sm:$0xff] %v11508_v12  ;;  %9131 = vmatmul.msk.bf16.gmra.mxu3 %vm1212_vm1, %v9434_v25  ;;  %9011 = vmatmul.msk.bf16.gmra.mxu1 %vm1212_vm1, %v9434_v25 }
 0x423   : > { %v11512_v7 = vpop.permute.xlu0 %4495  ;;  %v11514_v59 = vpop.permute.xlu2 %4571 }
 0x424   : > { %16854 = vst [vmem:[#allocation237_spill] sm:$0xff] %v11512_v7 }
 0x425   : > { %16855 = vst [vmem:[#allocation238_spill] sm:$0xff] %v11514_v59  ;;  %v1921_v59 = vpop.f32.mrf.mxu1 }
 0x427   : > { %4762 = vrot.lane.b32.xlu1 %v1919_v14, %s10107_s1  ;;  %v1612_v14 = vpop.f32.mrf.mxu0 }
 0x429   : > { %v11520_v51 = vpop.permute.xlu1 %4497  ;;  %4764 = vrot.lane.b32.xlu2 %v2228_v19, %s10107_s1  ;;  %4766 = vrot.lane.b32.xlu0 %v2537_v50, %s10107_s1 }
 0x42a   : > { %16856 = vst [vmem:[#allocation239_spill] sm:$0xff] %v11520_v51  ;;  %v2230_v51 = vpop.f32.mrf.mxu2 }
 0x42b   : > { %v11526_v52 = vpop.permute.xlu0 %4561  ;;  %v11528_v27 = vpop.permute.xlu2 %4577 }
 0x42c   : > { %16857 = vst [vmem:[#allocation240_spill] sm:$0xff] %v11526_v52 }
 0x42d   : > { %16858 = vst [vmem:[#allocation241_spill] sm:$0xff] %v11528_v27  ;;  %v2539_v27 = vpop.f32.mrf.mxu3  ;;  %v1924_v25 = vpop.f32.mrf.mxu1 }
 0x42f   : > { %4768 = vrot.lane.b32.xlu1 %v1612_v14, %s10107_s1  ;;  %v1615_v7 = vpop.f32.mrf.mxu0 }
 0x431   : > { %v11533_v19 = vpop.permute.xlu1 %4563  ;;  %4770 = vrot.lane.b32.xlu2 %v1921_v59, %s10107_s1  ;;  %4772 = vrot.lane.b32.xlu0 %v2230_v51, %s10107_s1 }
 0x432   : > { %16859 = vst [vmem:[#allocation242_spill] sm:$0xff] %v11533_v19  ;;  %v2233_v51 = vpop.f32.mrf.mxu2 }
 0x433   : > { %v11537_v50 = vpop.permute.xlu0 %4567  ;;  %v11539_v52 = vpop.permute.xlu2 %4583 }
 0x434   : > { %16860 = vst [vmem:[#allocation243_spill] sm:$0xff] %v11537_v50 }
 0x435   : > { %16861 = vst [vmem:[#allocation244_spill] sm:$0xff] %v11539_v52  ;;  %v2542_v19 = vpop.f32.mrf.mxu3  ;;  %v9435_v52 = vld [vmem:[%s16335_s5 + $0x180] sm:$0xff] }
 0x436   : > { %9012 = vmatmul.msk.bf16.gmra.mxu1 %vm1212_vm1, %v9435_v52  ;;  %8952 = vmatmul.msk.bf16.gmra.mxu0 %vm1212_vm1, %v9435_v52 }
 0x437   : > { %4774 = vrot.lane.b32.xlu1 %v2539_v27, %s10107_s1  ;;  %v1617_v27 = vpop.f32.mrf.mxu0  ;;  %9072 = vmatmul.msk.bf16.gmra.mxu2 %vm1212_vm1, %v9435_v52 }
 0x438   : > { %9132 = vmatmul.msk.bf16.gmra.mxu3 %vm1212_vm1, %v9435_v52 }
 0x439   : > { %v11542_v12 = vpop.permute.xlu1 %4569  ;;  %4838 = vrot.lane.b32.xlu0 %v1924_v25, %s10107_s1  ;;  %4836 = vrot.lane.b32.xlu2 %v1615_v7, %s10107_s1 }
 0x43a   : > { %16862 = vst [vmem:[#allocation245_spill] sm:$0xff] %v11542_v12 }
 0x43b   : > { %v11546_v14 = vpop.permute.xlu0 %4573  ;;  %v11548_v59 = vpop.permute.xlu2 %4589 }
 0x43c   : > { %16863 = vst [vmem:[#allocation246_spill] sm:$0xff] %v11546_v14 }
 0x43d   : > { %16864 = vst [vmem:[#allocation247_spill] sm:$0xff] %v11548_v59  ;;  %v2235_v59 = vpop.f32.mrf.mxu2 }
 0x43f   : > { %4840 = vrot.lane.b32.xlu1 %v2233_v51, %s10107_s1  ;;  %v1926_v51 = vpop.f32.mrf.mxu1 }
 0x441   : > { %v11554_v50 = vpop.permute.xlu1 %4575  ;;  %4842 = vrot.lane.b32.xlu2 %v2542_v19, %s10107_s1  ;;  %4844 = vrot.lane.b32.xlu0 %v1617_v27, %s10107_s1 }
 0x442   : > { %16865 = vst [vmem:[#allocation248_spill] sm:$0xff] %v11554_v50  ;;  %v2544_v50 = vpop.f32.mrf.mxu3 }
 0x443   : > { %v11560_v7 = vpop.permute.xlu0 %4579  ;;  %v11562_v25 = vpop.permute.xlu2 %4655 }
 0x444   : > { %16866 = vst [vmem:[#allocation249_spill] sm:$0xff] %v11560_v7 }
 0x445   : > { %16867 = vst [vmem:[#allocation250_spill] sm:$0xff] %v11562_v25  ;;  %v1620_v25 = vpop.f32.mrf.mxu0  ;;  %v2238_v52 = vpop.f32.mrf.mxu2 }
 0x447   : > { %4846 = vrot.lane.b32.xlu1 %v1926_v51, %s10107_s1  ;;  %v1929_v14 = vpop.f32.mrf.mxu1 }
 0x449   : > { %v11567_v19 = vpop.permute.xlu1 %4581  ;;  %4848 = vrot.lane.b32.xlu2 %v2235_v59, %s10107_s1  ;;  %4850 = vrot.lane.b32.xlu0 %v2544_v50, %s10107_s1  ;;  %v9436_v59 = vld [vmem:[%s16335_s5 + $0x188] sm:$0xff] }
 0x44a   : > { %16868 = vst [vmem:[#allocation251_spill] sm:$0xff] %v11567_v19  ;;  %9073 = vmatmul.msk.bf16.gmra.mxu2 %vm1212_vm1, %v9436_v59  ;;  %9013 = vmatmul.msk.bf16.gmra.mxu1 %vm1212_vm1, %v9436_v59 }
 0x44b   : > { %v11571_v27 = vpop.permute.xlu0 %4585  ;;  %v11573_v7 = vpop.permute.xlu2 %4661  ;;  %8953 = vmatmul.msk.bf16.gmra.mxu0 %vm1212_vm1, %v9436_v59  ;;  %9133 = vmatmul.msk.bf16.gmra.mxu3 %vm1212_vm1, %v9436_v59 }
 0x44c   : > { %16869 = vst [vmem:[#allocation252_spill] sm:$0xff] %v11571_v27 }
 0x44d   : > { %16870 = vst [vmem:[#allocation253_spill] sm:$0xff] %v11573_v7 }
 0x44f   : > { %4852 = vrot.lane.b32.xlu1 %v1620_v25, %s10107_s1  ;;  %v2547_v25 = vpop.f32.mrf.mxu3 }
 0x451   : > { %v11576_v12 = vpop.permute.xlu1 %4587  ;;  %4854 = vrot.lane.b32.xlu2 %v1929_v14, %s10107_s1  ;;  %4856 = vrot.lane.b32.xlu0 %v2238_v52, %s10107_s1  ;;  %v1622_v14 = vpop.f32.mrf.mxu0 }
 0x452   : > { %16871 = vst [vmem:[#allocation254_spill] sm:$0xff] %v11576_v12  ;;  %v1931_v52 = vpop.f32.mrf.mxu1  ;;  %v2240_v12 = vpop.f32.mrf.mxu2 }
 0x453   : > { %v11583_v50 = vpop.permute.xlu0 %4651  ;;  %v11585_v51 = vpop.permute.xlu2 %4667 }
 0x454   : > { %16872 = vst [vmem:[#allocation255_spill] sm:$0xff] %v11583_v50 }
 0x455   : > { %16873 = vst [vmem:[#allocation256_spill] sm:$0xff] %v11585_v51 }
 0x457   : > { %4858 = vrot.lane.b32.xlu1 %v2547_v25, %s10107_s1  ;;  %v2549_v27 = vpop.f32.mrf.mxu3 }
 0x459   : > { %v11592_v7 = vpop.permute.xlu1 %4653  ;;  %4862 = vrot.lane.b32.xlu0 %v1931_v52, %s10107_s1  ;;  %4860 = vrot.lane.b32.xlu2 %v1622_v14, %s10107_s1  ;;  %v1625_v59 = vpop.f32.mrf.mxu0 }
 0x45a   : > { %16874 = vst [vmem:[#allocation257_spill] sm:$0xff] %v11592_v7  ;;  %v1934_v14 = vpop.f32.mrf.mxu1 }
 0x45b   : > { %v11596_v51 = vpop.permute.xlu0 %4657  ;;  %v11598_v50 = vpop.permute.xlu2 %4673 }
 0x45c   : > { %16875 = vst [vmem:[#allocation258_spill] sm:$0xff] %v11596_v51  ;;  %v2243_v51 = vpop.f32.mrf.mxu2 }
 0x45d   : > { %16876 = vst [vmem:[#allocation259_spill] sm:$0xff] %v11598_v50 }
 0x45f   : > { %4864 = vrot.lane.b32.xlu1 %v2240_v12, %s10107_s1  ;;  %v2552_v50 = vpop.f32.mrf.mxu3  ;;  %v9437_v12 = vld [vmem:[%s16335_s5 + $0x190] sm:$0xff] }
 0x460   : > { %8954 = vmatmul.msk.bf16.gmra.mxu0 %vm1212_vm1, %v9437_v12  ;;  %9074 = vmatmul.msk.bf16.gmra.mxu2 %vm1212_vm1, %v9437_v12 }
 0x461   : > { %v11601_v19 = vpop.permute.xlu1 %4659  ;;  %4866 = vrot.lane.b32.xlu2 %v2549_v27, %s10107_s1  ;;  %4928 = vrot.lane.b32.xlu0 %v1625_v59, %s10108_s18 }
 0x462   : > { %16877 = vst [vmem:[#allocation260_spill] sm:$0xff] %v11601_v19  ;;  %9134 = vmatmul.msk.bf16.gmra.mxu3 %vm1212_vm1, %v9437_v12  ;;  %9014 = vmatmul.msk.bf16.gmra.mxu1 %vm1212_vm1, %v9437_v12 }
 0x463   : > { %v11605_v25 = vpop.permute.xlu0 %4663  ;;  %v11607_v52 = vpop.permute.xlu2 %4679 }
 0x464   : > { %16878 = vst [vmem:[#allocation261_spill] sm:$0xff] %v11605_v25  ;;  %v2245_v25 = vpop.f32.mrf.mxu2 }
 0x465   : > { %16879 = vst [vmem:[#allocation262_spill] sm:$0xff] %v11607_v52  ;;  %v1936_v52 = vpop.f32.mrf.mxu1 }
 0x467   : > { %4930 = vrot.lane.b32.xlu1 %v1934_v14, %s10108_s18  ;;  %v1627_v14 = vpop.f32.mrf.mxu0 }
 0x469   : > { %v11613_v7 = vpop.permute.xlu1 %4665  ;;  %4932 = vrot.lane.b32.xlu2 %v2243_v51, %s10108_s18  ;;  %4934 = vrot.lane.b32.xlu0 %v2552_v50, %s10108_s18 }
 0x46a   : > { %16880 = vst [vmem:[#allocation263_spill] sm:$0xff] %v11613_v7  ;;  %v2554_v7 = vpop.f32.mrf.mxu3 }
 0x46b   : > { %v11619_v27 = vpop.permute.xlu0 %4669  ;;  %v11621_v59 = vpop.permute.xlu2 %4746 }
 0x46c   : > { %16881 = vst [vmem:[#allocation264_spill] sm:$0xff] %v11619_v27 }
 0x46d   : > { %16882 = vst [vmem:[#allocation265_spill] sm:$0xff] %v11621_v59  ;;  %v1939_v12 = vpop.f32.mrf.mxu1 }
 0x46f   : > { %4936 = vrot.lane.b32.xlu1 %v1627_v14, %s10108_s18  ;;  %v1630_v19 = vpop.f32.mrf.mxu0 }
 0x471   : > { %v11626_v51 = vpop.permute.xlu1 %4671  ;;  %4938 = vrot.lane.b32.xlu2 %v1936_v52, %s10108_s18  ;;  %4940 = vrot.lane.b32.xlu0 %v2245_v25, %s10108_s18  ;;  %v2248_v25 = vpop.f32.mrf.mxu2 }
 0x472   : > { %16883 = vst [vmem:[#allocation266_spill] sm:$0xff] %v11626_v51  ;;  %v2557_v51 = vpop.f32.mrf.mxu3 }
 0x473   : > { %v11630_v50 = vpop.permute.xlu0 %4675  ;;  %v11632_v27 = vpop.permute.xlu2 %4752 }
 0x474   : > { %16884 = vst [vmem:[#allocation267_spill] sm:$0xff] %v11630_v50  ;;  %v9438_v50 = vld [vmem:[%s16335_s5 + $0x198] sm:$0xff] }
 0x475   : > { %16885 = vst [vmem:[#allocation268_spill] sm:$0xff] %v11632_v27  ;;  %9015 = vmatmul.msk.bf16.gmra.mxu1 %vm1212_vm1, %v9438_v50  ;;  %8955 = vmatmul.msk.bf16.gmra.mxu0 %vm1212_vm1, %v9438_v50 }
 0x476   : > { %9075 = vmatmul.msk.bf16.gmra.mxu2 %vm1212_vm1, %v9438_v50  ;;  %9135 = vmatmul.msk.bf16.gmra.mxu3 %vm1212_vm1, %v9438_v50 }
 0x477   : > { %4942 = vrot.lane.b32.xlu1 %v2554_v7, %s10108_s18  ;;  %v1632_v7 = vpop.f32.mrf.mxu0 }
 0x479   : > { %v11635_v59 = vpop.permute.xlu1 %4677  ;;  %4946 = vrot.lane.b32.xlu0 %v1939_v12, %s10108_s18  ;;  %4944 = vrot.lane.b32.xlu2 %v1630_v19, %s10108_s18 }
 0x47a   : > { %16886 = vst [vmem:[#allocation269_spill] sm:$0xff] %v11635_v59  ;;  %v2559_v59 = vpop.f32.mrf.mxu3 }
 0x47b   : > { %v11639_v14 = vpop.permute.xlu0 %4681  ;;  %v11641_v52 = vpop.permute.xlu2 %4758 }
 0x47c   : > { %16887 = vst [vmem:[#allocation270_spill] sm:$0xff] %v11639_v14  ;;  %v2250_v14 = vpop.f32.mrf.mxu2 }
 0x47d   : > { %16888 = vst [vmem:[#allocation271_spill] sm:$0xff] %v11641_v52 }
 0x47f   : > { %4948 = vrot.lane.b32.xlu1 %v2248_v25, %s10108_s18  ;;  %v1941_v25 = vpop.f32.mrf.mxu1 }
 0x481   : > { %v11647_v27 = vpop.permute.xlu1 %4744  ;;  %4950 = vrot.lane.b32.xlu2 %v2557_v51, %s10108_s18  ;;  %4952 = vrot.lane.b32.xlu0 %v1632_v7, %s10108_s18 }
 0x482   : > { %16889 = vst [vmem:[#allocation272_spill] sm:$0xff] %v11647_v27 }
 0x483   : > { %v11653_v19 = vpop.permute.xlu0 %4748  ;;  %v11655_v12 = vpop.permute.xlu2 %4764 }
 0x484   : > { %16890 = vst [vmem:[#allocation273_spill] sm:$0xff] %v11653_v19  ;;  %v2253_v50 = vpop.f32.mrf.mxu2 }
 0x485   : > { %16891 = vst [vmem:[#allocation274_spill] sm:$0xff] %v11655_v12  ;;  %v1635_v12 = vpop.f32.mrf.mxu0 }
 0x487   : > { %4954 = vrot.lane.b32.xlu1 %v1941_v25, %s10108_s18  ;;  %v1944_v19 = vpop.f32.mrf.mxu1 }
 0x489   : > { %v11660_v51 = vpop.permute.xlu1 %4750  ;;  %4956 = vrot.lane.b32.xlu2 %v2250_v14, %s10108_s18  ;;  %4958 = vrot.lane.b32.xlu0 %v2559_v59, %s10108_s18  ;;  %v9439_v14 = vld [vmem:[%s16335_s5 + $0x1a0] sm:$0xff] }
 0x48a   : > { %16892 = vst [vmem:[#allocation275_spill] sm:$0xff] %v11660_v51  ;;  %9076 = vmatmul.msk.bf16.gmra.mxu2 %vm1212_vm1, %v9439_v14  ;;  %9016 = vmatmul.msk.bf16.gmra.mxu1 %vm1212_vm1, %v9439_v14 }
 0x48b   : > { %v11664_v7 = vpop.permute.xlu0 %4754  ;;  %v11666_v52 = vpop.permute.xlu2 %4770  ;;  %8956 = vmatmul.msk.bf16.gmra.mxu0 %vm1212_vm1, %v9439_v14  ;;  %9136 = vmatmul.msk.bf16.gmra.mxu3 %vm1212_vm1, %v9439_v14 }
 0x48c   : > { %16893 = vst [vmem:[#allocation276_spill] sm:$0xff] %v11664_v7 }
 0x48d   : > { %16894 = vst [vmem:[#allocation277_spill] sm:$0xff] %v11666_v52 }
 0x48f   : > { %5021 = vrot.lane.b32.xlu1 %v1635_v12, %s10108_s18  ;;  %v2562_v12 = vpop.f32.mrf.mxu3 }
 0x491   : > { %v11669_v27 = vpop.permute.xlu1 %4756  ;;  %5023 = vrot.lane.b32.xlu2 %v1944_v19, %s10108_s18  ;;  %5025 = vrot.lane.b32.xlu0 %v2253_v50, %s10108_s18  ;;  %v1637_v19 = vpop.f32.mrf.mxu0 }
 0x492   : > { %16895 = vst [vmem:[#allocation278_spill] sm:$0xff] %v11669_v27  ;;  %v1946_v50 = vpop.f32.mrf.mxu1  ;;  %v2255_v27 = vpop.f32.mrf.mxu2 }
 0x493   : > { %v11676_v59 = vpop.permute.xlu0 %4760  ;;  %v11678_v25 = vpop.permute.xlu2 %4836 }
 0x494   : > { %16896 = vst [vmem:[#allocation279_spill] sm:$0xff] %v11676_v59 }
 0x495   : > { %16897 = vst [vmem:[#allocation280_spill] sm:$0xff] %v11678_v25 }
 0x497   : > { %5027 = vrot.lane.b32.xlu1 %v2562_v12, %s10108_s18  ;;  %v2564_v7 = vpop.f32.mrf.mxu3 }
 0x499   : > { %v11685_v52 = vpop.permute.xlu1 %4762  ;;  %5031 = vrot.lane.b32.xlu0 %v1946_v50, %s10108_s18  ;;  %5029 = vrot.lane.b32.xlu2 %v1637_v19, %s10108_s18  ;;  %v1640_v14 = vpop.f32.mrf.mxu0 }
 0x49a   : > { %16898 = vst [vmem:[#allocation281_spill] sm:$0xff] %v11685_v52  ;;  %v1949_v19 = vpop.f32.mrf.mxu1  ;;  %v2258_v52 = vpop.f32.mrf.mxu2 }
 0x49b   : > { %v11689_v25 = vpop.permute.xlu0 %4766  ;;  %v11691_v59 = vpop.permute.xlu2 %4842 }
 0x49c   : > { %16899 = vst [vmem:[#allocation282_spill] sm:$0xff] %v11689_v25 }
 0x49d   : > { %16900 = vst [vmem:[#allocation283_spill] sm:$0xff] %v11691_v59 }
 0x49f   : > { %5033 = vrot.lane.b32.xlu1 %v2255_v27, %s10108_s18  ;;  %v2567_v59 = vpop.f32.mrf.mxu3  ;;  %v9440_v27 = vld [vmem:[%s16335_s5 + $0x1a8] sm:$0xff] }
 0x4a0   : > { %8957 = vmatmul.msk.bf16.gmra.mxu0 %vm1212_vm1, %v9440_v27  ;;  %9077 = vmatmul.msk.bf16.gmra.mxu2 %vm1212_vm1, %v9440_v27 }
 0x4a1   : > { %v11694_v51 = vpop.permute.xlu1 %4768  ;;  %5035 = vrot.lane.b32.xlu2 %v2564_v7, %s10108_s18  ;;  %5037 = vrot.lane.b32.xlu0 %v1640_v14, %s10108_s18 }
 0x4a2   : > { %16901 = vst [vmem:[#allocation284_spill] sm:$0xff] %v11694_v51  ;;  %9137 = vmatmul.msk.bf16.gmra.mxu3 %vm1212_vm1, %v9440_v27  ;;  %9017 = vmatmul.msk.bf16.gmra.mxu1 %vm1212_vm1, %v9440_v27 }
 0x4a3   : > { %v11698_v12 = vpop.permute.xlu0 %4772  ;;  %v11700_v50 = vpop.permute.xlu2 %4848 }
 0x4a4   : > { %16902 = vst [vmem:[#allocation285_spill] sm:$0xff] %v11698_v12 }
 0x4a5   : > { %16903 = vst [vmem:[#allocation286_spill] sm:$0xff] %v11700_v50  ;;  %v1951_v50 = vpop.f32.mrf.mxu1 }
 0x4a7   : > { %5039 = vrot.lane.b32.xlu1 %v1949_v19, %s10108_s18  ;;  %v1642_v19 = vpop.f32.mrf.mxu0 }
 0x4a9   : > { %v11706_v25 = vpop.permute.xlu1 %4774  ;;  %5041 = vrot.lane.b32.xlu2 %v2258_v52, %s10108_s18  ;;  %5043 = vrot.lane.b32.xlu0 %v2567_v59, %s10108_s18 }
 0x4aa   : > { %16904 = vst [vmem:[#allocation287_spill] sm:$0xff] %v11706_v25  ;;  %v2260_v25 = vpop.f32.mrf.mxu2 }
 0x4ab   : > { %v11712_v7 = vpop.permute.xlu0 %4838  ;;  %v11714_v14 = vpop.permute.xlu2 %4854 }
 0x4ac   : > { %16905 = vst [vmem:[#allocation288_spill] sm:$0xff] %v11712_v7 }
 0x4ad   : > { %16906 = vst [vmem:[#allocation289_spill] sm:$0xff] %v11714_v14  ;;  %v2569_v14 = vpop.f32.mrf.mxu3  ;;  %v1954_v27 = vpop.f32.mrf.mxu1 }
 0x4af   : > { %5045 = vrot.lane.b32.xlu1 %v1642_v19, %s10108_s18  ;;  %v1645_v12 = vpop.f32.mrf.mxu0 }
 0x4b1   : > { %v11719_v52 = vpop.permute.xlu1 %4840  ;;  %5047 = vrot.lane.b32.xlu2 %v1951_v50, %s10108_s18  ;;  %5049 = vrot.lane.b32.xlu0 %v2260_v25, %s10108_s18 }
 0x4b2   : > { %16907 = vst [vmem:[#allocation290_spill] sm:$0xff] %v11719_v52  ;;  %v2263_v25 = vpop.f32.mrf.mxu2 }
 0x4b3   : > { %v11723_v59 = vpop.permute.xlu0 %4844  ;;  %v11725_v7 = vpop.permute.xlu2 %4860 }
 0x4b4   : > { %16908 = vst [vmem:[#allocation291_spill] sm:$0xff] %v11723_v59 }
 0x4b5   : > { %16909 = vst [vmem:[#allocation292_spill] sm:$0xff] %v11725_v7  ;;  %v2572_v52 = vpop.f32.mrf.mxu3 }
 0x4b7   : > { %5051 = vrot.lane.b32.xlu1 %v2569_v14, %s10108_s18  ;;  %v1647_v7 = vpop.f32.mrf.mxu0 }
 0x4b9   : > { %v11728_v51 = vpop.permute.xlu1 %4846  ;;  %5115 = vrot.lane.b32.xlu0 %v1954_v27, %s10108_s18  ;;  %5113 = vrot.lane.b32.xlu2 %v1645_v12, %s10108_s18  ;;  %v1956_v12 = vpop.f32.mrf.mxu1 }
 0x4ba   : > { %16910 = vst [vmem:[#allocation293_spill] sm:$0xff] %v11728_v51 }
 0x4bb   : > { %v11732_v19 = vpop.permute.xlu0 %4850  ;;  %v11734_v50 = vpop.permute.xlu2 %4866 }
 0x4bc   : > { %16911 = vst [vmem:[#allocation294_spill] sm:$0xff] %v11732_v19  ;;  %v2265_v19 = vpop.f32.mrf.mxu2 }
 0x4bd   : > { %16912 = vst [vmem:[#allocation295_spill] sm:$0xff] %v11734_v50  ;;  %v2574_v50 = vpop.f32.mrf.mxu3 }
 0x4bf   : > { %5117 = vrot.lane.b32.xlu1 %v2263_v25, %s10108_s18 }
 0x4c1   : > { %v11737_v59 = vpop.permute.xlu1 %4852  ;;  %5119 = vrot.lane.b32.xlu2 %v2572_v52, %s10108_s18  ;;  %5121 = vrot.lane.b32.xlu0 %v1647_v7, %s10108_s18  ;;  %v1650_v7 = vpop.f32.mrf.mxu0 }
 0x4c2   : > { %16913 = vst [vmem:[#allocation296_spill] sm:$0xff] %v11737_v59  ;;  %v1959_v59 = vpop.f32.mrf.mxu1 }
 0x4c3   : > { %v11741_v14 = vpop.permute.xlu0 %4856  ;;  %v11743_v27 = vpop.permute.xlu2 %4932 }
 0x4c4   : > { %16914 = vst [vmem:[#allocation297_spill] sm:$0xff] %v11741_v14 }
 0x4c5   : > { %16915 = vst [vmem:[#allocation298_spill] sm:$0xff] %v11743_v27  ;;  %v2268_v27 = vpop.f32.mrf.mxu2 }
 0x4c7   : > { %5123 = vrot.lane.b32.xlu1 %v1956_v12, %s10108_s18 }
 0x4c9   : > { %v11746_v51 = vpop.permute.xlu1 %4858  ;;  %5125 = vrot.lane.b32.xlu2 %v2265_v19, %s10108_s18  ;;  %5127 = vrot.lane.b32.xlu0 %v2574_v50, %s10108_s18  ;;  %v2577_v50 = vpop.f32.mrf.mxu3 }
 0x4ca   : > { %16916 = vst [vmem:[#allocation299_spill] sm:$0xff] %v11746_v51 }
 0x4cb   : > { %v11750_v25 = vpop.permute.xlu0 %4862  ;;  %v11752_v52 = vpop.permute.xlu2 %4938 }
 0x4cc   : > { %16917 = vst [vmem:[#allocation300_spill] sm:$0xff] %v11750_v25  ;;  %v1652_v25 = vpop.f32.mrf.mxu0 }
 0x4cd   : > { %16918 = vst [vmem:[#allocation301_spill] sm:$0xff] %v11752_v52  ;;  %v1961_v52 = vpop.f32.mrf.mxu1 }
 0x4cf   : > { %5129 = vrot.lane.b32.xlu1 %v1650_v7, %s10108_s18 }
 0x4d1   : > { %v11755_v14 = vpop.permute.xlu1 %4864  ;;  %5131 = vrot.lane.b32.xlu2 %v1959_v59, %s10108_s18  ;;  %5133 = vrot.lane.b32.xlu0 %v2268_v27, %s10108_s18  ;;  %v2270_v27 = vpop.f32.mrf.mxu2 }
 0x4d2   : > { %16919 = vst [vmem:[#allocation302_spill] sm:$0xff] %v11755_v14 }
 0x4d3   : > { %v11759_v12 = vpop.permute.xlu0 %4928  ;;  %v11761_v19 = vpop.permute.xlu2 %4944 }
 0x4d4   : > { %16920 = vst [vmem:[#allocation303_spill] sm:$0xff] %v11759_v12  ;;  %v2579_v12 = vpop.f32.mrf.mxu3 }
 0x4d5   : > { %16921 = vst [vmem:[#allocation304_spill] sm:$0xff] %v11761_v19  ;;  %v1655_v19 = vpop.f32.mrf.mxu0 }
 0x4d7   : > { %5135 = vrot.lane.b32.xlu1 %v2577_v50, %s10108_s18 }
 0x4d9   : > { %v11764_v51 = vpop.permute.xlu1 %4930  ;;  %5139 = vrot.lane.b32.xlu0 %v1961_v52, %s10108_s18  ;;  %5137 = vrot.lane.b32.xlu2 %v1652_v25, %s10108_s18  ;;  %v1964_v25 = vpop.f32.mrf.mxu1 }
 0x4da   : > { %16922 = vst [vmem:[#allocation305_spill] sm:$0xff] %v11764_v51 }
 0x4db   : > { %v11768_v7 = vpop.permute.xlu0 %4934  ;;  %v11770_v59 = vpop.permute.xlu2 %4950 }
 0x4dc   : > { %16923 = vst [vmem:[#allocation306_spill] sm:$0xff] %v11768_v7  ;;  %v2273_v7 = vpop.f32.mrf.mxu2 }
 0x4dd   : > { %16924 = vst [vmem:[#allocation307_spill] sm:$0xff] %v11770_v59  ;;  %v2582_v59 = vpop.f32.mrf.mxu3 }
 0x4df   : > { %5141 = vrot.lane.b32.xlu1 %v2270_v27, %s10108_s18 }
 0x4e1   : > { %v11773_v14 = vpop.permute.xlu1 %4936  ;;  %5143 = vrot.lane.b32.xlu2 %v2579_v12, %s10108_s18  ;;  %5205 = vrot.lane.b32.xlu0 %v1655_v19, %s10109_s13  ;;  %v1657_v19 = vpop.f32.mrf.mxu0 }
 0x4e2   : > { %16925 = vst [vmem:[#allocation308_spill] sm:$0xff] %v11773_v14 }
 0x4e3   : > { %v11777_v50 = vpop.permute.xlu0 %4940  ;;  %v11779_v52 = vpop.permute.xlu2 %4956 }
 0x4e4   : > { %16926 = vst [vmem:[#allocation309_spill] sm:$0xff] %v11777_v50  ;;  %v1966_v50 = vpop.f32.mrf.mxu1 }
 0x4e5   : > { %16927 = vst [vmem:[#allocation310_spill] sm:$0xff] %v11779_v52  ;;  %v2275_v52 = vpop.f32.mrf.mxu2 }
 0x4e7   : > { %5207 = vrot.lane.b32.xlu1 %v1964_v25, %s10109_s13 }
 0x4e9   : > { %v11782_v51 = vpop.permute.xlu1 %4942  ;;  %5209 = vrot.lane.b32.xlu2 %v2273_v7, %s10109_s13  ;;  %5211 = vrot.lane.b32.xlu0 %v2582_v59, %s10109_s13  ;;  %v2584_v59 = vpop.f32.mrf.mxu3 }
 0x4ea   : > { %16928 = vst [vmem:[#allocation311_spill] sm:$0xff] %v11782_v51  ;;  %v1660_v51 = vpop.f32.mrf.mxu0 }
 0x4eb   : > { %v11786_v27 = vpop.permute.xlu0 %4946  ;;  %v11788_v12 = vpop.permute.xlu2 %5023 }
 0x4ec   : > { %16929 = vst [vmem:[#allocation312_spill] sm:$0xff] %v11786_v27  ;;  %v1969_v27 = vpop.f32.mrf.mxu1 }
 0x4ed   : > { %16930 = vst [vmem:[#allocation313_spill] sm:$0xff] %v11788_v12 }
 0x4ef   : > { %5213 = vrot.lane.b32.xlu1 %v1657_v19, %s10109_s13 }
 0x4f1   : > { %v11791_v14 = vpop.permute.xlu1 %4948  ;;  %5215 = vrot.lane.b32.xlu2 %v1966_v50, %s10109_s13  ;;  %5217 = vrot.lane.b32.xlu0 %v2275_v52, %s10109_s13  ;;  %v2278_v52 = vpop.f32.mrf.mxu2 }
 0x4f2   : > { %16931 = vst [vmem:[#allocation314_spill] sm:$0xff] %v11791_v14  ;;  %v2587_v14 = vpop.f32.mrf.mxu3 }
 0x4f3   : > { %v11795_v25 = vpop.permute.xlu0 %4952  ;;  %v11797_v7 = vpop.permute.xlu2 %5029 }
 0x4f4   : > { %16932 = vst [vmem:[#allocation315_spill] sm:$0xff] %v11795_v25  ;;  %v1662_v25 = vpop.f32.mrf.mxu0 }
 0x4f5   : > { %16933 = vst [vmem:[#allocation316_spill] sm:$0xff] %v11797_v7 }
 0x4f7   : > { %5219 = vrot.lane.b32.xlu1 %v2584_v59, %s10109_s13 }
 0x4f9   : > { %v11800_v12 = vpop.permute.xlu1 %4954  ;;  %5223 = vrot.lane.b32.xlu0 %v1969_v27, %s10109_s13  ;;  %5221 = vrot.lane.b32.xlu2 %v1660_v51, %s10109_s13  ;;  %v1971_v51 = vpop.f32.mrf.mxu1 }
 0x4fa   : > { %16934 = vst [vmem:[#allocation317_spill] sm:$0xff] %v11800_v12  ;;  %v2589_v12 = vpop.f32.mrf.mxu3 }
 0x4fb   : > { %v11804_v19 = vpop.permute.xlu0 %4958  ;;  %v11806_v50 = vpop.permute.xlu2 %5035 }
 0x4fc   : > { %16935 = vst [vmem:[#allocation318_spill] sm:$0xff] %v11804_v19  ;;  %v2280_v19 = vpop.f32.mrf.mxu2 }
 0x4fd   : > { %16936 = vst [vmem:[#allocation319_spill] sm:$0xff] %v11806_v50 }
 0x4ff   : > { %5225 = vrot.lane.b32.xlu1 %v2278_v52, %s10109_s13 }
 0x501   : > { %v11809_v7 = vpop.permute.xlu1 %5021  ;;  %5227 = vrot.lane.b32.xlu2 %v2587_v14, %s10109_s13  ;;  %5229 = vrot.lane.b32.xlu0 %v1662_v25, %s10109_s13  ;;  %v1665_v25 = vpop.f32.mrf.mxu0 }
 0x502   : > { %16937 = vst [vmem:[#allocation320_spill] sm:$0xff] %v11809_v7  ;;  %v1974_v7 = vpop.f32.mrf.mxu1 }
 0x503   : > { %v11813_v59 = vpop.permute.xlu0 %5025  ;;  %v11815_v27 = vpop.permute.xlu2 %5041 }
 0x504   : > { %16938 = vst [vmem:[#allocation321_spill] sm:$0xff] %v11813_v59 }
 0x505   : > { %16939 = vst [vmem:[#allocation322_spill] sm:$0xff] %v11815_v27  ;;  %v2283_v27 = vpop.f32.mrf.mxu2 }
 0x507   : > { %5231 = vrot.lane.b32.xlu1 %v1971_v51, %s10109_s13 }
 0x509   : > { %v11818_v50 = vpop.permute.xlu1 %5027  ;;  %5233 = vrot.lane.b32.xlu2 %v2280_v19, %s10109_s13  ;;  %5235 = vrot.lane.b32.xlu0 %v2589_v12, %s10109_s13  ;;  %v2592_v12 = vpop.f32.mrf.mxu3 }
 0x50a   : > { %16940 = vst [vmem:[#allocation323_spill] sm:$0xff] %v11818_v50 }
 0x50b   : > { %v11822_v52 = vpop.permute.xlu0 %5031  ;;  %v11824_v14 = vpop.permute.xlu2 %5047 }
 0x50c   : > { %16941 = vst [vmem:[#allocation324_spill] sm:$0xff] %v11822_v52  ;;  %v1667_v52 = vpop.f32.mrf.mxu0 }
 0x50d   : > { %16942 = vst [vmem:[#allocation325_spill] sm:$0xff] %v11824_v14  ;;  %v1976_v14 = vpop.f32.mrf.mxu1 }
 0x50f   : > { %5298 = vrot.lane.b32.xlu1 %v1665_v25, %s10109_s13 }
 0x511   : > { %v11827_v59 = vpop.permute.xlu1 %5033  ;;  %5300 = vrot.lane.b32.xlu2 %v1974_v7, %s10109_s13  ;;  %5302 = vrot.lane.b32.xlu0 %v2283_v27, %s10109_s13  ;;  %v2285_v27 = vpop.f32.mrf.mxu2 }
 0x512   : > { %16943 = vst [vmem:[#allocation326_spill] sm:$0xff] %v11827_v59 }
 0x513   : > { %v11831_v51 = vpop.permute.xlu0 %5037  ;;  %v11833_v19 = vpop.permute.xlu2 %5113 }
 0x514   : > { %16944 = vst [vmem:[#allocation327_spill] sm:$0xff] %v11831_v51  ;;  %v2594_v51 = vpop.f32.mrf.mxu3 }
 0x515   : > { %16945 = vst [vmem:[#allocation328_spill] sm:$0xff] %v11833_v19  ;;  %v1670_v19 = vpop.f32.mrf.mxu0 }
 0x517   : > { %5304 = vrot.lane.b32.xlu1 %v2592_v12, %s10109_s13 }
 0x519   : > { %v11836_v50 = vpop.permute.xlu1 %5039  ;;  %5308 = vrot.lane.b32.xlu0 %v1976_v14, %s10109_s13  ;;  %5306 = vrot.lane.b32.xlu2 %v1667_v52, %s10109_s13  ;;  %v1979_v52 = vpop.f32.mrf.mxu1 }
 0x51a   : > { %16946 = vst [vmem:[#allocation329_spill] sm:$0xff] %v11836_v50  ;;  %v2288_v50 = vpop.f32.mrf.mxu2 }
 0x51b   : > { %v11840_v25 = vpop.permute.xlu0 %5043  ;;  %v11842_v7 = vpop.permute.xlu2 %5119 }
 0x51c   : > { %16947 = vst [vmem:[#allocation330_spill] sm:$0xff] %v11840_v25 }
 0x51d   : > { %16948 = vst [vmem:[#allocation331_spill] sm:$0xff] %v11842_v7  ;;  %v2597_v7 = vpop.f32.mrf.mxu3 }
 0x51f   : > { %5310 = vrot.lane.b32.xlu1 %v2285_v27, %s10109_s13 }
 0x521   : > { %v11845_v59 = vpop.permute.xlu1 %5045  ;;  %5312 = vrot.lane.b32.xlu2 %v2594_v51, %s10109_s13  ;;  %5314 = vrot.lane.b32.xlu0 %v1670_v19, %s10109_s13  ;;  %v1672_v19 = vpop.f32.mrf.mxu0 }
 0x522   : > { %16949 = vst [vmem:[#allocation332_spill] sm:$0xff] %v11845_v59 }
 0x523   : > { %v11849_v12 = vpop.permute.xlu0 %5049  ;;  %v11851_v14 = vpop.permute.xlu2 %5125 }
 0x524   : > { %16950 = vst [vmem:[#allocation333_spill] sm:$0xff] %v11849_v12  ;;  %v1981_v12 = vpop.f32.mrf.mxu1 }
 0x525   : > { %16951 = vst [vmem:[#allocation334_spill] sm:$0xff] %v11851_v14  ;;  %v2290_v14 = vpop.f32.mrf.mxu2 }
 0x527   : > { %5316 = vrot.lane.b32.xlu1 %v1979_v52, %s10109_s13 }
 0x529   : > { %v11854_v25 = vpop.permute.xlu1 %5051  ;;  %5318 = vrot.lane.b32.xlu2 %v2288_v50, %s10109_s13  ;;  %5320 = vrot.lane.b32.xlu0 %v2597_v7, %s10109_s13  ;;  %v2599_v7 = vpop.f32.mrf.mxu3 }
 0x52a   : > { %16952 = vst [vmem:[#allocation335_spill] sm:$0xff] %v11854_v25  ;;  %v1675_v25 = vpop.f32.mrf.mxu0 }
 0x52b   : > { %v11858_v27 = vpop.permute.xlu0 %5115  ;;  %v11860_v51 = vpop.permute.xlu2 %5131 }
 0x52c   : > { %16953 = vst [vmem:[#allocation336_spill] sm:$0xff] %v11858_v27 }
 0x52d   : > { %16954 = vst [vmem:[#allocation337_spill] sm:$0xff] %v11860_v51  ;;  %v1984_v51 = vpop.f32.mrf.mxu1 }
 0x52f   : > { %5322 = vrot.lane.b32.xlu1 %v1672_v19, %s10109_s13 }
 0x531   : > { %v11863_v59 = vpop.permute.xlu1 %5117  ;;  %5324 = vrot.lane.b32.xlu2 %v1981_v12, %s10109_s13  ;;  %5326 = vrot.lane.b32.xlu0 %v2290_v14, %s10109_s13  ;;  %v9441_v12 = vld [vmem:[%s16335_s5 + $0x1b0] sm:$0xff] }
 0x532   : > { %16955 = vst [vmem:[#allocation338_spill] sm:$0xff] %v11863_v59  ;;  %8958 = vmatmul.msk.bf16.gmra.mxu0 %vm1212_vm1, %v9441_v12  ;;  %9138 = vmatmul.msk.bf16.gmra.mxu3 %vm1212_vm1, %v9441_v12 }
 0x533   : > { %v11867_v52 = vpop.permute.xlu0 %5121  ;;  %v11869_v50 = vpop.permute.xlu2 %5137  ;;  %9018 = vmatmul.msk.bf16.gmra.mxu1 %vm1212_vm1, %v9441_v12  ;;  %9078 = vmatmul.msk.bf16.gmra.mxu2 %vm1212_vm1, %v9441_v12 }
 0x534   : > { %16956 = vst [vmem:[#allocation339_spill] sm:$0xff] %v11867_v52 }
 0x535   : > { %16957 = vst [vmem:[#allocation340_spill] sm:$0xff] %v11869_v50  ;;  %v1986_v52 = vpop.f32.mrf.mxu1 }
 0x537   : > { %5328 = vrot.lane.b32.xlu1 %v2599_v7, %s10109_s13  ;;  %v2293_v7 = vpop.f32.mrf.mxu2 }
 0x539   : > { %v11872_v27 = vpop.permute.xlu1 %5123  ;;  %5392 = vrot.lane.b32.xlu0 %v1984_v51, %s10109_s13  ;;  %5390 = vrot.lane.b32.xlu2 %v1675_v25, %s10109_s13  ;;  %v2602_v51 = vpop.f32.mrf.mxu3 }
 0x53a   : > { %16958 = vst [vmem:[#allocation341_spill] sm:$0xff] %v11872_v27  ;;  %v1677_v25 = vpop.f32.mrf.mxu0 }
 0x53b   : > { %v11879_v14 = vpop.permute.xlu0 %5127  ;;  %v11881_v19 = vpop.permute.xlu2 %5143 }
 0x53c   : > { %16959 = vst [vmem:[#allocation342_spill] sm:$0xff] %v11879_v14 }
 0x53d   : > { %16960 = vst [vmem:[#allocation343_spill] sm:$0xff] %v11881_v19 }
 0x53f   : > { %5394 = vrot.lane.b32.xlu1 %v2293_v7, %s10109_s13  ;;  %v2295_v27 = vpop.f32.mrf.mxu2 }
 0x541   : > { %v11888_v50 = vpop.permute.xlu1 %5129  ;;  %5396 = vrot.lane.b32.xlu2 %v2602_v51, %s10109_s13  ;;  %5398 = vrot.lane.b32.xlu0 %v1677_v25, %s10109_s13  ;;  %v2604_v12 = vpop.f32.mrf.mxu3  ;;  %v9442_v25 = vld [vmem:[%s16335_s5 + $0x1b8] sm:$0xff] }
 0x542   : > { %16961 = vst [vmem:[#allocation344_spill] sm:$0xff] %v11888_v50  ;;  %v1989_v50 = vpop.f32.mrf.mxu1  ;;  %8959 = vmatmul.msk.bf16.gmra.mxu0 %vm1212_vm1, %v9442_v25  ;;  %9139 = vmatmul.msk.bf16.gmra.mxu3 %vm1212_vm1, %v9442_v25 }
 0x543   : > { %v11892_v19 = vpop.permute.xlu0 %5133  ;;  %v11894_v14 = vpop.permute.xlu2 %5209  ;;  %9019 = vmatmul.msk.bf16.gmra.mxu1 %vm1212_vm1, %v9442_v25  ;;  %9079 = vmatmul.msk.bf16.gmra.mxu2 %vm1212_vm1, %v9442_v25 }
 0x544   : > { %16962 = vst [vmem:[#allocation345_spill] sm:$0xff] %v11892_v19 }
 0x545   : > { %16963 = vst [vmem:[#allocation346_spill] sm:$0xff] %v11894_v14  ;;  %v1680_v14 = vpop.f32.mrf.mxu0 }
 0x547   : > { %5400 = vrot.lane.b32.xlu1 %v1986_v52, %s10109_s13  ;;  %v2298_v52 = vpop.f32.mrf.mxu2 }
 0x549   : > { %v11897_v59 = vpop.permute.xlu1 %5135  ;;  %5402 = vrot.lane.b32.xlu2 %v2295_v27, %s10109_s13  ;;  %5404 = vrot.lane.b32.xlu0 %v2604_v12, %s10109_s13 }
 0x54a   : > { %16964 = vst [vmem:[#allocation347_spill] sm:$0xff] %v11897_v59  ;;  %v1991_v59 = vpop.f32.mrf.mxu1 }
 0x54b   : > { %v11901_v7 = vpop.permute.xlu0 %5139  ;;  %v11903_v51 = vpop.permute.xlu2 %5215 }
 0x54c   : > { %16965 = vst [vmem:[#allocation348_spill] sm:$0xff] %v11901_v7 }
 0x54d   : > { %16966 = vst [vmem:[#allocation349_spill] sm:$0xff] %v11903_v51  ;;  %v1682_v7 = vpop.f32.mrf.mxu0 }
 0x54f   : > { %5406 = vrot.lane.b32.xlu1 %v1680_v14, %s10109_s13  ;;  %v2607_v14 = vpop.f32.mrf.mxu3 }
 0x551   : > { %v11912_v27 = vpop.permute.xlu1 %5141  ;;  %5408 = vrot.lane.b32.xlu2 %v1989_v50, %s10109_s13  ;;  %5410 = vrot.lane.b32.xlu0 %v2298_v52, %s10109_s13  ;;  %v9443_v52 = vld [vmem:[%s16335_s5 + $0x1c0] sm:$0xff] }
 0x552   : > { %8960 = vmatmul.msk.bf16.gmra.mxu0 %vm1212_vm1, %v9443_v52  ;;  %9140 = vmatmul.msk.bf16.gmra.mxu3 %vm1212_vm1, %v9443_v52 }
 0x553   : > { %v11917_v12 = vpop.permute.xlu0 %5205  ;;  %v11919_v51 = vpop.permute.xlu2 %5221  ;;  %9020 = vmatmul.msk.bf16.gmra.mxu1 %vm1212_vm1, %v9443_v52  ;;  %9080 = vmatmul.msk.bf16.gmra.mxu2 %vm1212_vm1, %v9443_v52  ;;  %v9909_v52 = vld [vmem:[%s10300_s20 + $0x18] sm:$0xff] }
 0x554   : > { %16967 = vst [vmem:[#allocation350_spill] sm:$0xff] %v11917_v12 }
 0x555   : > { %16968 = vst [vmem:[#allocation351_spill] sm:$0xff] %v11919_v51  ;;  %v9905_v51 = vld [vmem:[%s10300_s20 + $0x8] sm:$0xff] }
 0x557   : > { %5412 = vrot.lane.b32.xlu1 %v2607_v14, %s10109_s13  ;;  %v9907_v14 = vld [vmem:[%s10300_s20 + $0x10] sm:$0xff]  ;;  %v2609_v12 = vpop.f32.mrf.mxu3 }
 0x559   : > { %v11922_v19 = vpop.permute.xlu1 %5207  ;;  %5416 = vrot.lane.b32.xlu0 %v1991_v59, %s10109_s13  ;;  %5414 = vrot.lane.b32.xlu2 %v1682_v7, %s10109_s13  ;;  %v9906_v7 = vld [vmem:[%s10300_s20] sm:$0xff] }
 0x55a   : > { %16969 = vst [vmem:[#allocation352_spill] sm:$0xff] %v11922_v19  ;;  %v9908_v19 = vld [vmem:[%s10308_s19] sm:$0xff] }
 0x55b   : > { %v11926_v50 = vpop.permute.xlu0 %5211  ;;  %v11928_v25 = vpop.permute.xlu2 %5227 }
 0x55c   : > { %16970 = vst [vmem:[#allocation353_spill] sm:$0xff] %v11926_v50  ;;  %v2300_v50 = vpop.f32.mrf.mxu2 }
 0x55d   : > { %16971 = vst [vmem:[#allocation354_spill] sm:$0xff] %v11928_v25 }
 0x55f   : > { %6108 = vrot.lane.b32.xlu1 %v9905_v51, %s10105_s7 }
 0x561   : > { %v11938_v59 = vpop.permute.xlu1 %5213  ;;  %6106 = vrot.lane.b32.xlu0 %v9906_v7, %s10105_s7  ;;  %6110 = vrot.lane.b32.xlu2 %v9907_v14, %s10105_s7 }
 0x562   : > { %16972 = vst [vmem:[#allocation355_spill] sm:$0xff] %v11938_v59 }
 0x563   : > { %v11945_v51 = vpop.permute.xlu0 %5217  ;;  %v11947_v25 = vpop.permute.xlu2 %5233 }
 0x564   : > { %16973 = vst [vmem:[#allocation356_spill] sm:$0xff] %v11945_v51 }
 0x565   : > { %16974 = vst [vmem:[#allocation357_spill] sm:$0xff] %v11947_v25  ;;  %v9910_v25 = vld [vmem:[%s10300_s20 + $0x28] sm:$0xff] }
 0x567   : > { %5418 = vrot.lane.b32.xlu1 %v2300_v50, %s10109_s13  ;;  %v9911_v50 = vld [vmem:[%s10300_s20 + $0x20] sm:$0xff] }
 0x569   : > { %v11950_v59 = vpop.permute.xlu1 %5219  ;;  %6112 = vrot.lane.b32.xlu0 %v9908_v19, %s10105_s7  ;;  %5420 = vrot.lane.b32.xlu2 %v2609_v12, %s10109_s13 }
 0x56a   : > { %16975 = vst [vmem:[#allocation358_spill] sm:$0xff] %v11950_v59 }
 0x56b   : > { %v11955_v7 = vpop.permute.xlu0 %5223  ;;  %v11957_v14 = vpop.permute.xlu2 %5300 }
 0x56c   : > { %16976 = vst [vmem:[#allocation359_spill] sm:$0xff] %v11955_v7  ;;  %v3391_v7 = vsel %vm3298_vm2, %v10717_v17, %v10691_v57  ;;  %v3395_v17 = vsel %vm3298_vm2, %v10734_v22, %v10739_v4 }
 0x56f   : > { %6114 = vrot.lane.b32.xlu1 %v9909_v52, %s10105_s7  ;;  %v3392_v52 = vsel %vm3298_vm2, %v10691_v57, %v10723_v2  ;;  %v3396_v57 = vsel %vm3298_vm2, %v10739_v4, %v10711_v26 }
 0x570   : > { %v3420_v59 = vadd.f32 %v3392_v52, %v10481_v30  ;;  %v3402_v52 = vsel %vm3298_vm2, %v10768_v18, %v10776_v23 }
 0x571   : > { %v11961_v51 = vpop.permute.xlu1 %5225  ;;  %6118 = vrot.lane.b32.xlu0 %v9910_v25, %s10105_s7  ;;  %6116 = vrot.lane.b32.xlu2 %v9911_v50, %s10105_s7  ;;  %v3393_v25 = vsel %vm3298_vm2, %v10723_v2, %v10730_v20  ;;  %v3394_v50 = vsel %vm3298_vm2, %v10702_v24, %v10734_v22  ;;  %v9912_v2 = vld [vmem:[%s10308_s19 + $0x8] sm:$0xff]  ;;  %v3422_v24 = vadd.f32 %v10730_v20, %v10489_v32  ;;  %v9914_v32 = vld [vmem:[%s10300_s20 + $0x30] sm:$0xff] }
 0x572   : > { %16977 = vst [vmem:[#allocation360_spill] sm:$0xff] %v11961_v51  ;;  %v3419_v51 = vadd.f32 %v3391_v7, %v10479_v29  ;;  %v3397_v29 = vsel %vm3298_vm2, %v10746_v21, %v10755_v37  ;;  %v3421_v22 = vadd.f32 %v3393_v25, %v10487_v31  ;;  %v3423_v4 = vadd.f32 %v3394_v50, %v10491_v33  ;;  %v9913_v7 = vld [vmem:[%s10300_s20 + $0x38] sm:$0xff] }
 0x573   : > { %v11967_v19 = vpop.permute.xlu0 %5229  ;;  %v11969_v12 = vpop.permute.xlu2 %5306  ;;  %v3424_v20 = vadd.f32 %v3395_v17, %v10493_v34  ;;  %v3400_v31 = vsel %vm3298_vm2, %v10764_v63, %v10736_v6  ;;  %v3401_v33 = vsel %vm3298_vm2, %v10736_v6, %v10768_v18  ;;  %v3430_v63 = vadd.f32 %v10759_v13, %v10512_v41  ;;  %v9917_v17 = vld [vmem:[%s10308_s19 + $0x10] sm:$0xff] }
 0x574   : > { %16978 = vst [vmem:[#allocation361_spill] sm:$0xff] %v11967_v19  ;;  %v3426_v19 = vadd.f32 %v10711_v26, %v10497_v36  ;;  %v3398_v36 = vsel %vm3298_vm2, %v10755_v37, %v10725_v28  ;;  %v3399_v26 = vsel %vm3298_vm2, %v10725_v28, %v10759_v13  ;;  %v3425_v37 = vadd.f32 %v3396_v57, %v10495_v35 }
 0x575   : > { %v3427_v28 = vadd.f32 %v3397_v29, %v10502_v38  ;;  %v3428_v21 = vadd.f32 %v3398_v36, %v10504_v39  ;;  %v3429_v25 = vadd.f32 %v3399_v26, %v10510_v40  ;;  %v3668_v38 = vsel %vm3575_vm3, %v10903_v11, %v10877_v61 }
 0x576   : > { %v3669_v39 = vsel %vm3575_vm3, %v10877_v61, %v10909_v8  ;;  %v3431_v6 = vadd.f32 %v3400_v31, %v10514_v42  ;;  %v3432_v18 = vadd.f32 %v3401_v33, %v10516_v43  ;;  %v3670_v40 = vsel %vm3575_vm3, %v10909_v8, %v10916_v15  ;;  %v16982_v33 = vld [vmem:[#allocation134_spill] sm:$0xff] }
 0x577   : > { %6120 = vrot.lane.b32.xlu1 %v9912_v2, %s10105_s7  ;;  %v3671_v13 = vsel %vm3575_vm3, %v10888_v53, %v10920_v1  ;;  %v3433_v41 = vadd.f32 %v3402_v52, %v10518_v44  ;;  %v3434_v11 = vadd.f32 %v10776_v23, %v10520_v45  ;;  %v3703_v50 = vadd.f32 %v10897_v62, %v3426_v19  ;;  %v9915_v44 = vld [vmem:[%s10300_s20 + $0x40] sm:$0xff] }
 0x578   : > { %v3672_v42 = vsel %vm3575_vm3, %v10920_v1, %v10925_v47  ;;  %v3696_v43 = vadd.f32 %v3668_v38, %v3419_v51  ;;  %v3697_v61 = vadd.f32 %v3669_v39, %v3420_v59  ;;  %v3699_v8 = vadd.f32 %v10916_v15, %v3422_v24  ;;  %v9916_v51 = vld [vmem:[%s10300_s20 + $0x48] sm:$0xff]  ;;  %v16984_v52 = vld [vmem:[#allocation135_spill] sm:$0xff] }
 0x579   : > { %v12008_v30 = vpop.permute.xlu1 %5231  ;;  %6124 = vrot.lane.b32.xlu0 %v9913_v7, %s10105_s7  ;;  %6122 = vrot.lane.b32.xlu2 %v9914_v32, %s10105_s7  ;;  %v3673_v53 = vsel %vm3575_vm3, %v10925_v47, %v10897_v62  ;;  %v3698_v23 = vadd.f32 %v3670_v40, %v3421_v22  ;;  %v3700_v45 = vadd.f32 %v3671_v13, %v3423_v4  ;;  %v16981_v32 = vld [vmem:[#allocation131_spill] sm:$0xff]  ;;  %v16985_v38 = vld [vmem:[#allocation132_spill] sm:$0xff]  ;;  %v16987_v40 = vld [vmem:[#allocation133_spill] sm:$0xff] }
 0x57a   : > { %16979 = vst [vmem:[#allocation362_spill] sm:$0xff] %v12008_v30  ;;  %v3674_v19 = vsel %vm3575_vm3, %v10932_v3, %v10941_v9  ;;  %v3675_v1 = vsel %vm3575_vm3, %v10941_v9, %v10911_v55  ;;  %v3701_v59 = vadd.f32 %v3672_v42, %v3424_v20  ;;  %v3676_v15 = vsel %vm3575_vm3, %v10911_v55, %v10945_v58  ;;  %v16988_v13 = vld [vmem:[#allocation140_spill] sm:$0xff] }
 0x57b   : > { %v12027_v34 = vpop.permute.xlu0 %5235  ;;  %v12029_v35 = vpop.permute.xlu2 %5312  ;;  %v3677_v47 = vsel %vm3575_vm3, %v10950_v16, %v10922_v0  ;;  %v3702_v3 = vadd.f32 %v3673_v53, %v3425_v37  ;;  %v3678_v9 = vsel %vm3575_vm3, %v10922_v0, %v10954_v54  ;;  %v3679_v55 = vsel %vm3575_vm3, %v10954_v54, %v10962_v48 }
 0x57c   : > { %16980 = vst [vmem:[#allocation363_spill] sm:$0xff] %v12027_v34  ;;  %v3704_v57 = vadd.f32 %v3674_v19, %v3427_v28  ;;  %v3705_v16 = vadd.f32 %v3675_v1, %v3428_v21  ;;  %v3945_v2 = vsel %vm3852_vm4, %v11089_v10, %v11063_v60  ;;  %v3946_v24 = vsel %vm3852_vm4, %v11063_v60, %v11095_v49  ;;  %v16983_v21 = vld [vmem:[#allocation137_spill] sm:$0xff] }
 0x57d   : > { %v3706_v0 = vadd.f32 %v3676_v15, %v3429_v25  ;;  %v3707_v22 = vadd.f32 %v10945_v58, %v3430_v63  ;;  %v3708_v54 = vadd.f32 %v3677_v47, %v3431_v6  ;;  %v3947_v4 = vsel %vm3852_vm4, %v11095_v49, %v11102_v46  ;;  %v9444_v49 = vld [vmem:[%s16335_s5 + $0x1c8] sm:$0xff]  ;;  %v9918_v63 = vld [vmem:[%s10300_s20 + $0x50] sm:$0xff]  ;;  %v16986_v6 = vld [vmem:[#allocation138_spill] sm:$0xff] }
 0x57e   : > { %v3709_v26 = vadd.f32 %v3678_v9, %v3432_v18  ;;  %v3710_v7 = vadd.f32 %v3679_v55, %v3433_v41  ;;  %v3711_v10 = vadd.f32 %v10962_v48, %v3434_v11  ;;  %v3948_v60 = vsel %vm3852_vm4, %v11074_v56, %v11106_v5  ;;  %8961 = vmatmul.msk.bf16.gmra.mxu0 %vm1212_vm1, %v9444_v49  ;;  %v16989_v11 = vld [vmem:[#allocation141_spill] sm:$0xff]  ;;  %v16992_v15 = vld [vmem:[#allocation176_spill] sm:$0xff] }
 0x57f   : > { %6126 = vrot.lane.b32.xlu1 %v9915_v44, %s10105_s7  ;;  %v3980_v20 = vadd.f32 %v16981_v32, %v3703_v50  ;;  %v3973_v37 = vadd.f32 %v3945_v2, %v3696_v43  ;;  %v3974_v31 = vadd.f32 %v3946_v24, %v3697_v61  ;;  %v3949_v58 = vsel %vm3852_vm4, %v11106_v5, %v16982_v33  ;;  %v9919_v43 = vld [vmem:[%s10308_s19 + $0x18] sm:$0xff]  ;;  %v16990_v44 = vld [vmem:[#allocation143_spill] sm:$0xff]  ;;  %v16993_v55 = vld [vmem:[#allocation177_spill] sm:$0xff] }
 0x580   : > { %v3975_v28 = vadd.f32 %v3947_v4, %v3698_v23  ;;  %v3976_v48 = vadd.f32 %v11102_v46, %v3699_v8  ;;  %v3950_v56 = vsel %vm3852_vm4, %v16982_v33, %v16981_v32  ;;  %v3951_v25 = vsel %vm3852_vm4, %v16984_v52, %v16983_v21  ;;  %9081 = vmatmul.msk.bf16.gmra.mxu2 %vm1212_vm1, %v9444_v49  ;;  %v9920_v61 = vld [vmem:[%s10300_s20 + $0x58] sm:$0xff]  ;;  %v16994_v24 = vld [vmem:[#allocation179_spill] sm:$0xff]  ;;  %v16996_v4 = vld [vmem:[#allocation224_spill] sm:$0xff] }
 0x581   : > { %v12073_v62 = vpop.permute.xlu1 %5298  ;;  %6130 = vrot.lane.b32.xlu0 %v9916_v51, %s10105_s7  ;;  %6128 = vrot.lane.b32.xlu2 %v9917_v17, %s10105_s7  ;;  %v12119_v5 = vadd.f32 %v3948_v60, %v3700_v45  ;;  %v3952_v39 = vsel %vm3852_vm4, %v16983_v21, %v16985_v38  ;;  %v3953_v46 = vsel %vm3852_vm4, %v16985_v38, %v16986_v6  ;;  %v16998_v33 = vld [vmem:[#allocation225_spill] sm:$0xff]  ;;  %v17001_v52 = vld [vmem:[#allocation272_spill] sm:$0xff] }
 0x582   : > { %v12129_v18 = vadd.f32 %v3949_v58, %v3701_v59  ;;  %v3954_v41 = vsel %vm3852_vm4, %v16988_v13, %v16987_v40  ;;  %v3955_v50 = vsel %vm3852_vm4, %v16987_v40, %v16989_v11  ;;  %v3979_v8 = vadd.f32 %v3950_v56, %v3702_v3  ;;  %9141 = vmatmul.msk.bf16.gmra.mxu3 %vm1212_vm1, %v9444_v49  ;;  %v16991_v59 = vld [vmem:[#allocation169_spill] sm:$0xff] }
 0x583   : > { %v12091_v29 = vpop.permute.xlu0 %5302  ;;  %v12093_v36 = vpop.permute.xlu2 %5318  ;;  %v3981_v53 = vadd.f32 %v3951_v25, %v3704_v57  ;;  %v3956_v23 = vsel %vm3852_vm4, %v16989_v11, %v16990_v44  ;;  %9021 = vmatmul.msk.bf16.gmra.mxu1 %vm1212_vm1, %v9444_v49  ;;  %v3982_v45 = vadd.f32 %v3952_v39, %v3705_v16  ;;  %v12148_v19 = vadd.f32 %v3953_v46, %v3706_v0  ;;  %v16999_v49 = vld [vmem:[#allocation227_spill] sm:$0xff]  ;;  %v17000_v21 = vld [vmem:[#allocation265_spill] sm:$0xff]  ;;  %v17003_v39 = vld [vmem:[#allocation180_spill] sm:$0xff] }
 0x584   : > { %v12151_v1 = vadd.f32 %v16986_v6, %v3707_v22  ;;  %v4222_v47 = vsel %vm4129_vm5, %v16992_v15, %v16991_v59  ;;  %v12160_v3 = vadd.f32 %v3954_v41, %v3708_v54  ;;  %v12162_v9 = vadd.f32 %v3955_v50, %v3709_v26  ;;  %v16995_v22 = vld [vmem:[#allocation217_spill] sm:$0xff]  ;;  %v16997_v26 = vld [vmem:[#allocation175_spill] sm:$0xff]  ;;  %v17004_v6 = vld [vmem:[#allocation172_spill] sm:$0xff] }
 0x585   : > { %v4223_v57 = vsel %vm4129_vm5, %v16991_v59, %v16993_v55  ;;  %v12167_v16 = vadd.f32 %v3956_v23, %v3710_v7  ;;  %v12170_v2 = vadd.f32 %v16990_v44, %v3711_v10  ;;  %v4224_v0 = vsel %vm4129_vm5, %v16993_v55, %v16994_v24  ;;  %v17005_v46 = vld [vmem:[#allocation275_spill] sm:$0xff]  ;;  %v17006_v13 = vld [vmem:[#allocation313_spill] sm:$0xff]  ;;  %v17007_v41 = vld [vmem:[#allocation320_spill] sm:$0xff] }
 0x586   : > { %v4499_v54 = vsel %vm4406_vm6, %v16996_v4, %v16995_v22  ;;  %v4257_v60 = vadd.f32 %v16997_v26, %v3980_v20  ;;  %v4250_v32 = vadd.f32 %v4222_v47, %v3973_v37  ;;  %v4500_v58 = vsel %vm4406_vm6, %v16995_v22, %v16998_v33  ;;  %v17002_v20 = vld [vmem:[#allocation273_spill] sm:$0xff]  ;;  %v17009_v23 = vld [vmem:[#allocation182_spill] sm:$0xff]  ;;  %v17010_v47 = vld [vmem:[#allocation323_spill] sm:$0xff] }
 0x587   : > { %6132 = vrot.lane.b32.xlu1 %v9918_v63, %s10105_s7  ;;  %v4251_v7 = vadd.f32 %v4223_v57, %v3974_v31  ;;  %v4253_v10 = vadd.f32 %v16994_v24, %v3976_v48  ;;  %v4501_v56 = vsel %vm4406_vm6, %v16998_v33, %v16999_v49  ;;  %v4776_v25 = vsel %vm16580_vm7, %v17001_v52, %v17000_v21  ;;  %v17013_v52 = vld [vmem:[#allocation178_spill] sm:$0xff] }
 0x588   : > { %v4252_v63 = vadd.f32 %v4224_v0, %v3975_v28  ;;  %v4527_v38 = vadd.f32 %v4499_v54, %v4250_v32  ;;  %v4777_v37 = vsel %vm16580_vm7, %v17000_v21, %v17002_v20  ;;  %v4225_v31 = vsel %vm4129_vm5, %v17004_v6, %v17003_v39 }
 0x589   : > { %v12137_v42 = vpop.permute.xlu1 %5304  ;;  %6136 = vrot.lane.b32.xlu0 %v9919_v43, %s10105_s7  ;;  %6134 = vrot.lane.b32.xlu2 %v9920_v61, %s10105_s7  ;;  %v4528_v48 = vadd.f32 %v4500_v58, %v4251_v7  ;;  %v4778_v40 = vsel %vm16580_vm7, %v17002_v20, %v17005_v46  ;;  %v5053_v11 = vsel %vm16579_vm8, %v17007_v41, %v17006_v13  ;;  %v17008_v61 = vld [vmem:[#allocation321_spill] sm:$0xff]  ;;  %v17012_v7 = vld [vmem:[#allocation183_spill] sm:$0xff] }
 0x58a   : > { %v4529_v50 = vadd.f32 %v4501_v56, %v4252_v63  ;;  %v4804_v43 = vadd.f32 %v4776_v25, %v4527_v38  ;;  %v5054_v44 = vsel %vm16579_vm8, %v17006_v13, %v17008_v61  ;;  %v4226_v59 = vsel %vm4129_vm5, %v17003_v39, %v17009_v23  ;;  %v17011_v58 = vld [vmem:[#allocation185_spill] sm:$0xff]  ;;  %v17014_v25 = vld [vmem:[#allocation223_spill] sm:$0xff] }
 0x58b   : > { %v12156_v51 = vpop.permute.xlu0 %5308  ;;  %v12158_v17 = vpop.permute.xlu2 %5324  ;;  %v4805_v15 = vadd.f32 %v4777_v37, %v4528_v48  ;;  %v5055_v55 = vsel %vm16579_vm8, %v17008_v61, %v17010_v47  ;;  %v5330_v57 = vsel %vm16578_vm9, %v12073_v62, %v11957_v14  ;;  %v4227_v22 = vsel %vm4129_vm5, %v17009_v23, %v16997_v26  ;;  %v17020_v61 = vld [vmem:[#allocation220_spill] sm:$0xff] }
 0x58c   : > { %v4806_v4 = vadd.f32 %v4778_v40, %v4529_v50  ;;  %v5081_v54 = vadd.f32 %v5053_v11, %v4804_v43  ;;  %v5331_v32 = vsel %vm16578_vm9, %v11957_v14, %v12091_v29  ;;  %v4254_v33 = vadd.f32 %v4225_v31, %v12119_v5  ;;  %v17015_v31 = vld [vmem:[#allocation186_spill] sm:$0xff]  ;;  %v17017_v11 = vld [vmem:[#allocation181_spill] sm:$0xff]  ;;  %v17018_v50 = vld [vmem:[#allocation188_spill] sm:$0xff] }
 0x58d   : > { %v4228_v62 = vsel %vm4129_vm5, %v17012_v7, %v17011_v58  ;;  %v5082_v56 = vadd.f32 %v5054_v44, %v4805_v15  ;;  %v5332_v21 = vsel %vm16578_vm9, %v12091_v29, %v12137_v42  ;;  %v4229_v26 = vsel %vm4129_vm5, %v17011_v58, %v17013_v52  ;;  %v17016_v29 = vld [vmem:[#allocation271_spill] sm:$0xff]  ;;  %v17019_v43 = vld [vmem:[#allocation228_spill] sm:$0xff] }
 0x58e   : > { %v4534_v63 = vadd.f32 %v17014_v25, %v4257_v60  ;;  %v5083_v38 = vadd.f32 %v5055_v55, %v4806_v4  ;;  %v5358_v20 = vadd.f32 %v5330_v57, %v5081_v54  ;;  %v4255_v14 = vadd.f32 %v4226_v59, %v12129_v18  ;;  %v17023_v55 = vld [vmem:[#allocation276_spill] sm:$0xff] }
 0x58f   : > { %v4256_v5 = vadd.f32 %v4227_v22, %v3979_v8  ;;  %v4530_v37 = vadd.f32 %v16999_v49, %v4253_v10  ;;  %v5359_v39 = vadd.f32 %v5331_v32, %v5082_v56  ;;  %v4258_v6 = vadd.f32 %v4228_v62, %v3981_v53  ;;  %v17021_v49 = vld [vmem:[#allocation189_spill] sm:$0xff]  ;;  %v17024_v57 = vld [vmem:[#allocation268_spill] sm:$0xff] }
 0x590   : > { %v4230_v48 = vsel %vm4129_vm5, %v17013_v52, %v17015_v31  ;;  %v4811_v40 = vadd.f32 %v17016_v29, %v4534_v63  ;;  %v5360_v13 = vadd.f32 %v5332_v21, %v5083_v38  ;;  %v4259_v41 = vadd.f32 %v4229_v26, %v3982_v45  ;;  %v17022_v45 = vld [vmem:[#allocation319_spill] sm:$0xff]  ;;  %v17026_v52 = vld [vmem:[#allocation324_spill] sm:$0xff]  ;;  %v17028_v38 = vld [vmem:[#allocation230_spill] sm:$0xff] }
 0x591   : > { %v12201_v28 = vpop.permute.xlu1 %5310  ;;  %v4231_v60 = vsel %vm4129_vm5, %v17018_v50, %v17017_v11  ;;  %v4502_v18 = vsel %vm4406_vm6, %v17020_v61, %v17019_v43  ;;  %v4807_v8 = vadd.f32 %v17005_v46, %v4530_v37  ;;  %v4261_v53 = vadd.f32 %v17015_v31, %v12151_v1  ;;  %v17027_v26 = vld [vmem:[#allocation316_spill] sm:$0xff]  ;;  %v17029_v37 = vld [vmem:[#allocation233_spill] sm:$0xff]  ;;  %v17032_v61 = vld [vmem:[#allocation226_spill] sm:$0xff] }
 0x592   : > { %v4232_v44 = vsel %vm4129_vm5, %v17017_v11, %v17021_v49  ;;  %v5088_v23 = vadd.f32 %v17022_v45, %v4811_v40  ;;  %v9192_v59 = vmul.f32 -1.442695, %v5358_v20  ;;  %v4260_v15 = vadd.f32 %v4230_v48, %v12148_v19  ;;  %v17025_v19 = vld [vmem:[#allocation191_spill] sm:$0xff]  ;;  %v17031_v48 = vld [vmem:[#allocation278_spill] sm:$0xff] }
 0x593   : > { %v12215_v24 = vpop.permute.xlu0 %5314  ;;  %v12217_v0 = vpop.permute.xlu2 %5390  ;;  %v4779_v22 = vsel %vm16580_vm7, %v17024_v57, %v17023_v55  ;;  %v5084_v46 = vadd.f32 %v17010_v47, %v4807_v8  ;;  %v9193_v4 = vmul.f32 -1.442695, %v5359_v39  ;;  %v4262_v1 = vadd.f32 %v4231_v60, %v12160_v3  ;;  %v17030_v39 = vld [vmem:[#allocation231_spill] sm:$0xff]  ;;  %v17033_v8 = vld [vmem:[#allocation234_spill] sm:$0xff] }
 0x594   : > { %v4531_v58 = vadd.f32 %v4502_v18, %v4254_v33  ;;  %v5365_v7 = vadd.f32 %v12029_v35, %v5088_v23  ;;  %v9194_v62 = vmul.f32 -1.442695, %v5360_v13  ;;  %v4263_v56 = vadd.f32 %v4232_v44, %v12162_v9 }
 0x595   : > { %v4233_v21 = vsel %vm4129_vm5, %v17021_v49, %v17025_v19  ;;  %v5056_v47 = vsel %vm16579_vm8, %v17027_v26, %v17026_v52  ;;  %v5361_v63 = vadd.f32 %v12137_v42, %v5084_v46  ;;  %v4503_v3 = vsel %vm4406_vm6, %v17019_v43, %v17028_v38  ;;  %v17034_v49 = vld [vmem:[#allocation326_spill] sm:$0xff] }
 0x596   : > { %v4504_v33 = vsel %vm4406_vm6, %v17028_v38, %v17014_v25  ;;  %v4808_v20 = vadd.f32 %v4779_v22, %v4531_v58  ;;  %9593 = vpow2.f32 %v9192_v59  ;;  %v4265_v9 = vadd.f32 %v17025_v19, %v12170_v2  ;;  %v17037_v58 = vld [vmem:[#allocation282_spill] sm:$0xff] }
 0x597   : > { %v4505_v31 = vsel %vm4406_vm6, %v17030_v39, %v17029_v37  ;;  %9595 = vpow2.f32 %v9193_v4  ;;  %v5333_v42 = vsel %vm16578_vm9, %v11969_v12, %v12156_v51  ;;  %v4780_v40 = vsel %vm16580_vm7, %v17023_v55, %v17031_v48  ;;  %v17039_v38 = vld [vmem:[#allocation330_spill] sm:$0xff] }
 0x598   : > { %v5085_v13 = vadd.f32 %v5056_v47, %v4808_v20  ;;  %v9199_v25 = vmul.f32 -1.442695, %v5365_v7  ;;  %9597 = vpow2.f32 %v9194_v62  ;;  %v4264_v11 = vadd.f32 %v4233_v21, %v12167_v16  ;;  %v17038_v21 = vld [vmem:[#allocation237_spill] sm:$0xff] }
 0x599   : > { %v12249_v10 = vpop.permute.xlu1 %5316  ;;  %v4532_v50 = vadd.f32 %v4503_v3, %v4255_v14  ;;  %v4533_v2 = vadd.f32 %v4504_v33, %v4256_v5  ;;  %v9195_v60 = vmul.f32 -1.442695, %v5361_v63  ;;  %v4506_v18 = vsel %vm4406_vm6, %v17029_v37, %v17032_v61  ;;  %v17035_v14 = vld [vmem:[#allocation229_spill] sm:$0xff]  ;;  %v17036_v5 = vld [vmem:[#allocation236_spill] sm:$0xff] }
 0x59a   : > { %v4538_v12 = vadd.f32 %v17033_v8, %v4261_v53  ;;  %v5057_v44 = vsel %vm16579_vm8, %v17026_v52, %v17034_v49  ;;  %v5362_v23 = vadd.f32 %v5333_v42, %v5085_v13  ;;  %v4535_v59 = vadd.f32 %v4505_v31, %v4258_v6 }
 0x59b   : > { %v12262_v54 = vpop.permute.xlu0 %5320  ;;  %v12264_v32 = vpop.permute.xlu2 %5396  ;;  %v4507_v16 = vsel %vm4406_vm6, %v17032_v61, %v17033_v8  ;;  %v4508_v55 = vsel %vm4406_vm6, %v17036_v5, %v17035_v14  ;;  %v4809_v57 = vadd.f32 %v4780_v40, %v4532_v50  ;;  %v4781_v4 = vsel %vm16580_vm7, %v17031_v48, %v17016_v29  ;;  %v17040_v48 = vld [vmem:[#allocation239_spill] sm:$0xff]  ;;  %v17041_v50 = vld [vmem:[#allocation281_spill] sm:$0xff]  ;;  %v17043_v61 = vld [vmem:[#allocation274_spill] sm:$0xff] }
 0x59c   : > { %v9594_v53 = vpop.eup %9593  ;;  %v4815_v6 = vadd.f32 %v17037_v58, %v4538_v12  ;;  %9599 = vpow2.f32 %v9199_v25  ;;  %v5334_v7 = vsel %vm16578_vm9, %v12156_v51, %v12201_v28  ;;  %v4536_v19 = vadd.f32 %v4506_v18, %v4259_v41  ;;  %v17044_v18 = vld [vmem:[#allocation277_spill] sm:$0xff]  ;;  %v17045_v8 = vld [vmem:[#allocation284_spill] sm:$0xff] }
 0x59d   : > { %v9596_v62 = vpop.eup %9595  ;;  %v4509_v52 = vsel %vm4406_vm6, %v17035_v14, %v17038_v21  ;;  %v5086_v26 = vadd.f32 %v5057_v44, %v4809_v57  ;;  %9601 = vpow2.f32 %v9195_v60  ;;  %v4537_v63 = vadd.f32 %v4507_v16, %v4260_v15  ;;  %v17046_v14 = vld [vmem:[#allocation285_spill] sm:$0xff] }
 0x59e   : > { %v9598_v47 = vpop.eup %9597  ;;  %v5058_v29 = vsel %vm16579_vm8, %v17034_v49, %v17022_v45  ;;  %v5092_v3 = vadd.f32 %v17039_v38, %v4815_v6  ;;  %v9196_v33 = vmul.f32 -1.442695, %v5362_v23  ;;  %v4539_v20 = vadd.f32 %v4508_v55, %v4262_v1 }
 0x59f   : > { %v4810_v37 = vadd.f32 %v4781_v4, %v4533_v2  ;;  %v12327_v51 = vadd.f32 1.0, %v9594_v53  ;;  %v5363_v41 = vadd.f32 %v5334_v7, %v5086_v26  ;;  %v4540_v39 = vadd.f32 %v4509_v52, %v4263_v56  ;;  %v17042_v2 = vld [vmem:[#allocation279_spill] sm:$0xff] }
 0x5a0   : > { %v12329_v31 = vadd.f32 1.0, %v9596_v62  ;;  %v5335_v42 = vsel %vm16578_vm9, %v12201_v28, %v12029_v35  ;;  %v5369_v15 = vadd.f32 %v12262_v54, %v5092_v3  ;;  %v4510_v45 = vsel %vm4406_vm6, %v17038_v21, %v17040_v48  ;;  %v17047_v62 = vld [vmem:[#allocation329_spill] sm:$0xff]  ;;  %v17048_v21 = vld [vmem:[#allocation327_spill] sm:$0xff] }
 0x5a1   : > { %v12294_v43 = vpop.permute.xlu1 %5322  ;;  %v4542_v40 = vadd.f32 %v17040_v48, %v4265_v9  ;;  %v5087_v1 = vadd.f32 %v5058_v29, %v4810_v37  ;;  %v12339_v13 = vadd.f32 1.0, %v9598_v47  ;;  %v4782_v60 = vsel %vm16580_vm7, %v17042_v2, %v17041_v50  ;;  %v17049_v47 = vld [vmem:[#allocation287_spill] sm:$0xff] }
 0x5a2   : > { %v9600_v56 = vpop.eup %9599  ;;  %v4783_v35 = vsel %vm16580_vm7, %v17041_v50, %v17043_v61  ;;  %v4784_v28 = vsel %vm16580_vm7, %v17043_v61, %v17037_v58  ;;  %9603 = vpow2.f32 %v9196_v33  ;;  %v4785_v12 = vsel %vm16580_vm7, %v17045_v8, %v17044_v18  ;;  %v17050_v33 = vld [vmem:[#allocation322_spill] sm:$0xff]  ;;  %v17054_v50 = vld [vmem:[#allocation335_spill] sm:$0xff] }
 0x5a3   : > { %v12309_v22 = vpop.permute.xlu0 %5326  ;;  %v12311_v46 = vpop.permute.xlu2 %5402  ;;  %9605 = vrcp.f32 %v12327_v51  ;;  %v5364_v49 = vadd.f32 %v5335_v42, %v5087_v1  ;;  %v9197_v44 = vmul.f32 -1.442695, %v5363_v41  ;;  %v4541_v16 = vadd.f32 %v4510_v45, %v4264_v11  ;;  %v17051_v42 = vld [vmem:[#allocation325_spill] sm:$0xff] }
 0x5a4   : > { %v9602_v9 = vpop.eup %9601  ;;  %v4786_v5 = vsel %vm16580_vm7, %v17044_v18, %v17046_v14  ;;  %9607 = vrcp.f32 %v12329_v31  ;;  %v9203_v55 = vmul.f32 -1.442695, %v5369_v15  ;;  %v4812_v57 = vadd.f32 %v4782_v60, %v4535_v59  ;;  %v17052_v15 = vld [vmem:[#allocation332_spill] sm:$0xff] }
 0x5a5   : > { %v4813_v53 = vadd.f32 %v4783_v35, %v4536_v19  ;;  %v12362_v4 = vadd.f32 1.0, %v9600_v56  ;;  %9609 = vrcp.f32 %v12339_v13  ;;  %v4814_v6 = vadd.f32 %v4784_v28, %v4537_v63 }
 0x5a6   : > { %v4816_v7 = vadd.f32 %v4785_v12, %v4539_v20  ;;  %v5059_v11 = vsel %vm16579_vm8, %v17048_v21, %v17047_v62  ;;  %v12370_v52 = vadd.f32 1.0, %v9602_v9  ;;  %v4817_v26 = vadd.f32 %v4786_v5, %v4540_v39 }
 0x5a7   : > { %v4787_v59 = vsel %vm16580_vm7, %v17046_v14, %v17049_v47  ;;  %9611 = vpow2.f32 %v9197_v44  ;;  %v9198_v19 = vmul.f32 -1.442695, %v5364_v49  ;;  %v4819_v3 = vadd.f32 %v17049_v47, %v4542_v40 }
 0x5a8   : > { %v9604_v29 = vpop.eup %9603  ;;  %v5060_v63 = vsel %vm16579_vm8, %v17047_v62, %v17050_v33  ;;  %v5336_v20 = vsel %vm16578_vm9, %v12215_v24, %v12249_v10  ;;  %9613 = vpow2.f32 %v9203_v55  ;;  %v5089_v41 = vadd.f32 %v5059_v11, %v4812_v57  ;;  %v17053_v24 = vld [vmem:[#allocation333_spill] sm:$0xff] }
 0x5a9   : > { %v12341_v25 = vpop.permute.xlu1 %5328  ;;  %v12382_v37 = vpop.eup %9605  ;;  %v5061_v39 = vsel %vm16579_vm8, %v17050_v33, %v17039_v38  ;;  %v5062_v48 = vsel %vm16579_vm8, %v17052_v15, %v17051_v42  ;;  %9615 = vrcp.f32 %v12362_v4  ;;  %v4818_v1 = vadd.f32 %v4787_v59, %v4541_v16 }
 0x5aa   : > { %v12393_v40 = vpop.eup %9607  ;;  %v5063_v56 = vsel %vm16579_vm8, %v17051_v42, %v17053_v24  ;;  %v5064_v2 = vsel %vm16579_vm8, %v17053_v24, %v17054_v50  ;;  %9617 = vrcp.f32 %v12370_v52  ;;  %v12404_v60 = vadd.f32 1.0, %v9604_v29 }
 0x5ab   : > { %v12356_v23 = vpop.permute.xlu0 %5392  ;;  %v12365_v58 = vpop.permute.xlu2 %5408  ;;  %9619 = vpow2.f32 %v9198_v19  ;;  %v5337_v61 = vsel %vm16578_vm9, %v12249_v10, %v12093_v36  ;;  %v5366_v35 = vadd.f32 %v5336_v20, %v5089_v41  ;;  %v5090_v9 = vadd.f32 %v5060_v63, %v4813_v53 }
 0x5ac   : > { %v12402_v38 = vpop.eup %9609  ;;  %v5091_v18 = vadd.f32 %v5061_v39, %v4814_v6  ;;  %v5093_v8 = vadd.f32 %v5062_v48, %v4816_v7  ;;  %v5835_v12 = vmul.f32 %v12382_v37, %v12327_v51  ;;  %v5094_v44 = vadd.f32 %v5063_v56, %v4817_v26 }
 0x5ad   : > { %v9612_v49 = vpop.eup %9611  ;;  %v5096_v16 = vadd.f32 %v17054_v50, %v4819_v3  ;;  %v5850_v14 = vmul.f32 %v12393_v40, %v12329_v31  ;;  %v5845_v5 = vand.u32 2147483648, %v12327_v51  ;;  %v12417_v10 = vadd.f32 %v5064_v2, %v4818_v1 }
 0x5ae   : > { %v9614_v55 = vpop.eup %9613  ;;  %v5367_v57 = vadd.f32 %v5337_v61, %v5090_v9  ;;  %v5338_v53 = vsel %vm16578_vm9, %v12093_v36, %v12262_v54  ;;  %v5865_v6 = vmul.f32 %v12402_v38, %v12339_v13  ;;  %9621 = vrcp.f32 %v12404_v60 }
 0x5af   : > { %v12424_v7 = vpop.eup %9615  ;;  %v9200_v62 = vmul.f32 -1.442695, %v5366_v35  ;;  %v5339_v21 = vsel %vm16578_vm9, %v12294_v43, %v12158_v17  ;;  %v5843_v26 = vand.u32 2147483647, %v12327_v51  ;;  %v12435_v59 = vadd.f32 1.0, %v9612_v49  ;;  %v12447_v41 = vpop.f32.mrf.mxu0 }
 0x5b0   : > { %v12433_v47 = vpop.eup %9617  ;;  %v5340_v36 = vsel %vm16578_vm9, %v12158_v17, %v12309_v22  ;;  %v5860_v54 = vand.u32 2147483648, %v12329_v31  ;;  %v5836_v19 = vsub.f32 1.0, %v5835_v12  ;;  %v5368_v3 = vadd.f32 %v5338_v53, %v5091_v18  ;;  %17055 = vst [vmem:[#allocation131_spill] sm:$0xff] %v12447_v41 }
 0x5b1   : > { %v12391_v45 = vpop.permute.xlu1 %5394  ;;  %v9620_v29 = vpop.eup %9619  ;;  %v12441_v33 = vadd.f32 1.0, %v9614_v55  ;;  %v5851_v63 = vsub.f32 1.0, %v5850_v14  ;;  %v12445_v20 = vor.u32 1.1754944e-38, %v5845_v5  ;;  %v9201_v39 = vmul.f32 -1.442695, %v5367_v57 }
 0x5b2   : > { %v5370_v42 = vadd.f32 %v5339_v21, %v5093_v8  ;;  %v5858_v15 = vand.u32 2147483647, %v12329_v31  ;;  %vm5839_vm10 = vweird.f32 %v12327_v51  ;;  %v5866_v17 = vsub.f32 1.0, %v5865_v6  ;;  %v12471_v8 = vpop.f32.mrf.mxu1 }
 0x5b3   : > { %v12409_v28 = vpop.permute.xlu0 %5398  ;;  %v12430_v11 = vpop.permute.xlu2 %5414  ;;  %9623 = vpow2.f32 %v9200_v62  ;;  %v5371_v48 = vadd.f32 %v5340_v36, %v5094_v44  ;;  %vm5854_vm11 = vweird.f32 %v12329_v31  ;;  %v5880_v24 = vmul.f32 %v12433_v47, %v12370_v52  ;;  %17056 = vst [vmem:[#allocation134_spill] sm:$0xff] %v12471_v8 }
 0x5b4   : > { %v12458_v56 = vmul.f32 %v12424_v7, %v12362_v4  ;;  %v12460_v50 = vadd.f32 1.0, %v9620_v29  ;;  %9625 = vrcp.f32 %v12435_v59  ;;  %v12463_v2 = vor.u32 1.1754944e-38, %v5860_v54  ;;  %v12466_v35 = vpop.eup %9621 }
 0x5b5   : > { %v5837_v61 = vmul.f32 %v12382_v37, %v5836_v19  ;;  %v9202_v9 = vmul.f32 -1.442695, %v5368_v3  ;;  %9627 = vrcp.f32 %v12441_v33  ;;  %v5852_v18 = vmul.f32 %v12393_v40, %v5851_v63  ;;  %v12490_v36 = vpop.f32.mrf.mxu3 }
 0x5b6   : > { %vm5840_vm12 = vweird.f32 %v12382_v37  ;;  %9629 = vpow2.f32 %v9201_v39  ;;  %v9204_v12 = vmul.f32 -1.442695, %v5370_v42  ;;  %v5867_v49 = vmul.f32 %v12402_v38, %v5866_v17  ;;  %17061 = vst [vmem:[#allocation137_spill] sm:$0xff] %v12490_v36 }
 0x5b7   : > { %v5873_v44 = vand.u32 2147483647, %v12339_v13  ;;  %v9205_v14 = vmul.f32 -1.442695, %v5371_v48  ;;  %v5341_v5 = vsel %vm16578_vm9, %v12309_v22, %v12341_v25  ;;  %v5373_v55 = vadd.f32 %v12341_v25, %v5096_v16  ;;  %v12506_v39 = vpop.f32.mrf.mxu0  ;;  %vm12516_vm9 = vmor %vm5839_vm10, %vm5840_vm12 }
 0x5b8   : > { %vm12479_vm13 = vcmp.eq.f32.partialorder %v5858_v15, 8.507059e+37  ;;  %vm12483_vm14 = vcmp.eq.f32.partialorder %v5843_v26, 8.507059e+37  ;;  %v5881_v6 = vsub.f32 1.0, %v5880_v24  ;;  %9631 = vrcp.f32 %v12460_v50  ;;  %17062 = vst [vmem:[#allocation135_spill] sm:$0xff] %v12506_v39 }
 0x5b9   : > { %v12443_v43 = vpop.permute.xlu1 %5400  ;;  %v5838_v62 = vadd.f32 %v12382_v37, %v5837_v61  ;;  %v5875_v21 = vand.u32 2147483648, %v12339_v13  ;;  %v5895_v22 = vmul.f32 %v12466_v35, %v12404_v60  ;;  %v9624_v25 = vpop.eup %9623  ;;  %9633 = vpow2.f32 %v9202_v9 }
 0x5ba   : > { %v5853_v54 = vadd.f32 %v12393_v40, %v5852_v18  ;;  %vm5855_vm15 = vweird.f32 %v12393_v40  ;;  %v12501_v29 = vpop.eup %9625  ;;  %9635 = vpow2.f32 %v9204_v12  ;;  %v5372_v3 = vadd.f32 %v5341_v5, %v12417_v10 }
 0x5bb   : > { %v12451_v1 = vpop.permute.xlu0 %5404  ;;  %v12494_v16 = vpop.permute.xlu2 %6110  ;;  %v5868_v63 = vadd.f32 %v12402_v38, %v5867_v49  ;;  %vm5870_vm0 = vweird.f32 %v12402_v38  ;;  %9637 = vpow2.f32 %v9205_v14  ;;  %v9207_v15 = vmul.f32 -1.442695, %v5373_v55  ;;  %vm12526_vm7 = vmor %vm5854_vm11, %vm5855_vm15 }
 0x5bc   : > { %v12508_v42 = vpop.eup %9627  ;;  %vm5869_vm8 = vweird.f32 %v12339_v13  ;;  %v5882_v10 = vmul.f32 %v12433_v47, %v5881_v6  ;;  %v5842_v51 = vsel %vm12516_vm9, %v12382_v37, %v5838_v62  ;;  %vm12533_vm10 = vcmp.eq.f32.partialorder %v5873_v44, 8.507059e+37 }
 0x5bd   : > { %v9630_v24 = vpop.eup %9629  ;;  %v5876_v13 = vor.u32 1.1754944e-38, %v5875_v21  ;;  %v5896_v18 = vsub.f32 1.0, %v5895_v22  ;;  %v12537_v12 = vadd.f32 1.0, %v9624_v25  ;;  %v5857_v31 = vsel %vm12526_vm7, %v12393_v40, %v5853_v54  ;;  %vm12544_vm11 = vmor %vm5869_vm8, %vm5870_vm0  ;;  %v12563_v22 = vpop.f32.mrf.mxu1 }
 0x5be   : > { %vm5884_vm9 = vweird.f32 %v12370_v52  ;;  %v5888_v37 = vand.u32 2147483647, %v12370_v52  ;;  %v12550_v44 = vpop.eup %9631  ;;  %v9206_v14 = vmul.f32 -1.442695, %v5372_v3  ;;  %v5872_v5 = vsel %vm12544_vm11, %v12402_v38, %v5868_v63  ;;  %17071 = vst [vmem:[#allocation132_spill] sm:$0xff] %v12563_v22 }
 0x5bf   : > { %v6000_v40 = vmul.f32 %v12508_v42, %v12441_v33  ;;  %v5910_v55 = vmul.f32 %v12501_v29, %v12435_v59  ;;  %v9634_v6 = vpop.eup %9633  ;;  %v12559_v62 = vadd.f32 1.0, %v9630_v24  ;;  %9639 = vpow2.f32 %v9207_v15 }
 0x5c0   : > { %v5883_v21 = vadd.f32 %v12433_v47, %v5882_v10  ;;  %vm5885_vm7 = vweird.f32 %v12433_v47  ;;  %v9636_v25 = vpop.eup %9635  ;;  %v12568_v38 = vsel %vm12479_vm13, %v12463_v2, %v5857_v31  ;;  %v12573_v54 = vsel %vm12483_vm14, %v12445_v20, %v5842_v51  ;;  %v12600_v51 = vpop.f32.mrf.mxu3 }
 0x5c1   : > { %v12496_v26 = vpop.permute.xlu1 %5406  ;;  %v5890_v3 = vand.u32 2147483648, %v12370_v52  ;;  %v5897_v63 = vmul.f32 %v12466_v35, %v5896_v18  ;;  %v9638_v15 = vpop.eup %9637  ;;  %9641 = vrcp.f32 %v12537_v12  ;;  %v12582_v10 = vsel %vm12533_vm10, %v5876_v13, %v5872_v5  ;;  %vm12596_vm12 = vmor %vm5884_vm9, %vm5885_vm7  ;;  %17076 = vst [vmem:[#allocation138_spill] sm:$0xff] %v12600_v51 }
 0x5c2   : > { %vm12584_vm8 = vcmp.eq.f32.partialorder %v5888_v37, 8.507059e+37  ;;  %v5925_v20 = vmul.f32 %v12550_v44, %v12460_v50  ;;  %v12590_v57 = vadd.f32 1.0, %v9634_v6  ;;  %9643 = vpow2.f32 %v9206_v14  ;;  %v12620_v5 = vpop.f32.mrf.mxu0 }
 0x5c3   : > { %v12510_v17 = vpop.permute.xlu0 %5410  ;;  %v6001_v24 = vsub.f32 1.0, %v6000_v40  ;;  %v5911_v61 = vsub.f32 1.0, %v5910_v55  ;;  %9645 = vrcp.f32 %v12559_v62  ;;  %v12603_v9 = vadd.f32 1.0, %v9636_v25  ;;  %v12605_v13 = vpop.permute.xlu2 %5420  ;;  %17078 = vst [vmem:[#allocation140_spill] sm:$0xff] %v12620_v5 }
 0x5c4   : > { %17077 = vst [vmem:[#allocation133_spill] sm:$0xff] %v12605_v13  ;;  %v5887_v52 = vsel %vm12596_vm12, %v12433_v47, %v5883_v21  ;;  %v6010_v31 = vand.u32 2147483648, %v12441_v33  ;;  %v12613_v49 = vadd.f32 1.0, %v9638_v15  ;;  %v6008_v37 = vand.u32 2147483647, %v12441_v33 }
 0x5c5   : > { %v12617_v14 = vadd.f32 %v12466_v35, %v5897_v63  ;;  %vm5900_vm13 = vweird.f32 %v12466_v35  ;;  %v9640_v40 = vpop.eup %9639  ;;  %v5891_v55 = vor.u32 1.1754944e-38, %v5890_v3  ;;  %v5903_v6 = vand.u32 2147483647, %v12404_v60  ;;  %v12662_v19 = vpop.f32.mrf.mxu1 }
 0x5c6   : > { %v5905_v25 = vand.u32 2147483648, %v12404_v60  ;;  %v5926_v47 = vsub.f32 1.0, %v5925_v20  ;;  %9647 = vrcp.f32 %v12590_v57  ;;  %v6002_v21 = vmul.f32 %v12508_v42, %v6001_v24  ;;  %17085 = vst [vmem:[#allocation141_spill] sm:$0xff] %v12662_v19 }
 0x5c7   : > { %vm5899_vm14 = vweird.f32 %v12404_v60  ;;  %v5912_v63 = vmul.f32 %v12501_v29, %v5911_v61  ;;  %v12628_v15 = vpop.eup %9641  ;;  %9649 = vrcp.f32 %v12603_v9  ;;  %v12633_v3 = vsel %vm12584_vm8, %v5891_v55, %v5887_v52 }
 0x5c8   : > { %vm6004_vm15 = vweird.f32 %v12441_v33  ;;  %v6011_v53 = vor.u32 1.1754944e-38, %v6010_v31  ;;  %vm12638_vm0 = vmor %vm5899_vm14, %vm5900_vm13  ;;  %v9644_v60 = vpop.eup %9643  ;;  %9651 = vrcp.f32 %v12613_v49  ;;  %v12643_v24 = vadd.f32 1.0, %v9640_v40  ;;  %v12695_v22 = vpop.f32.mrf.mxu3 }
 0x5c9   : > { %v12578_v48 = vpop.permute.xlu1 %5412  ;;  %vm12645_vm10 = vcmp.eq.f32.partialorder %v6008_v37, 8.507059e+37  ;;  %v5902_v2 = vsel %vm12638_vm0, %v12466_v35, %v12617_v14  ;;  %vm5914_vm11 = vweird.f32 %v12435_v59  ;;  %v12654_v52 = vpop.eup %9645  ;;  %vm6005_vm9 = vweird.f32 %v12508_v42  ;;  %17091 = vst [vmem:[#allocation177_spill] sm:$0xff] %v12695_v22 }
 0x5ca   : > { %vm12657_vm7 = vcmp.eq.f32.partialorder %v5903_v6, 8.507059e+37  ;;  %v5906_v37 = vor.u32 1.1754944e-38, %v5905_v25  ;;  %v5927_v40 = vmul.f32 %v12550_v44, %v5926_v47  ;;  %v6003_v35 = vadd.f32 %v12508_v42, %v6002_v21  ;;  %vm12687_vm12 = vmor %vm6004_vm15, %vm6005_vm9 }
 0x5cb   : > { %v12607_v18 = vpop.permute.xlu0 %5416  ;;  %v5913_v14 = vadd.f32 %v12501_v29, %v5912_v63  ;;  %vm5915_vm8 = vweird.f32 %v12501_v29  ;;  %v12671_v5 = vadd.f32 1.0, %v9644_v60  ;;  %v5918_v51 = vand.u32 2147483647, %v12435_v59  ;;  %v12693_v60 = vpop.f32.mrf.mxu0 }
 0x5cc   : > { %v5920_v25 = vand.u32 2147483648, %v12435_v59  ;;  %v5955_v47 = vmul.f32 %v12628_v15, %v12537_v12  ;;  %v12677_v19 = vpop.eup %9647  ;;  %9653 = vrcp.f32 %v12643_v24  ;;  %vm5930_vm13 = vweird.f32 %v12550_v44  ;;  %17090 = vst [vmem:[#allocation176_spill] sm:$0xff] %v12693_v60  ;;  %v12701_v39 = vpop.permute.xlu2 %6116  ;;  %vm12711_vm15 = vmor %vm5914_vm11, %vm5915_vm8 }
 0x5cd   : > { %vm5944_vm14 = vweird.f32 %v12362_v4  ;;  %v5928_v22 = vadd.f32 %v12550_v44, %v5927_v40  ;;  %v5933_v8 = vand.u32 2147483647, %v12460_v50  ;;  %v5935_v59 = vand.u32 2147483648, %v12460_v50  ;;  %v12778_v60 = vpop.f32.mrf.mxu2 }
 0x5ce   : > { %v5921_v40 = vor.u32 1.1754944e-38, %v5920_v25  ;;  %vm5929_vm0 = vweird.f32 %v12460_v50  ;;  %v5956_v30 = vsub.f32 1.0, %v5955_v47  ;;  %9655 = vrcp.f32 %v12671_v5  ;;  %17100 = vst [vmem:[#allocation175_spill] sm:$0xff] %v12778_v60  ;;  %v17192_v60 = vld [vmem:[#allocation44_spill] sm:$0xff] }
 0x5cf   : > { %vm5919_vm11 = vcmp.eq.f32.partialorder %v5918_v51, 8.507059e+37  ;;  %vm12737_vm9 = vmor %vm5929_vm0, %vm5930_vm13  ;;  %vm5945_vm8 = vweird.f32 %v12424_v7  ;;  %v5950_v61 = vand.u32 2147483648, %v12362_v4  ;;  %vm5975_vm13 = vweird.f32 %v12654_v52 }
 0x5d0   : > { %v5932_v51 = vsel %vm12737_vm9, %v12550_v44, %v5928_v22  ;;  %v12764_v44 = vpop.f32.mrf.mxu1  ;;  %vm5974_vm9 = vweird.f32 %v12559_v62 }
 0x5d1   : > { %v6109_v31 = vpop.permute.xlu1 %6108  ;;  %17098 = vst [vmem:[#allocation217_spill] sm:$0xff] %v12764_v44 }
 0x5d2   : > { %v12666_v20 = vsel %vm4129_vm5, %v6109_v31, %v12494_v16 }
 0x5d3   : > { %17086 = vst [vmem:[#allocation143_spill] sm:$0xff] %v12666_v20  ;;  %v6107_v6 = vpop.permute.xlu0 %6106  ;;  %v6167_v33 = vmul.f32 %v12666_v20, %v12568_v38  ;;  %v6007_v38 = vsel %vm12687_vm12, %v12508_v42, %v6003_v35  ;;  %v17094_v20 = vsub.f32 1.0, %v12458_v56  ;;  %v12733_v42 = vsel %vm12657_vm7, %v5906_v37, %v5902_v2  ;;  %v1695_v63 = vpop.f32.mrf.mxu0 }
 0x5d4   : > { %v12681_v21 = vsel %vm4129_vm5, %v6107_v6, %v6109_v31  ;;  %v5970_v31 = vmul.f32 %v12654_v52, %v12559_v62  ;;  %v12699_v6 = vpop.eup %9649  ;;  %v12746_v50 = vsel %vm12645_vm10, %v6011_v53, %v6007_v38  ;;  %v5985_v2 = vmul.f32 %v12677_v19, %v12590_v57  ;;  %vm12784_vm10 = vmor %vm5944_vm14, %vm5945_vm8  ;;  %v12789_v38 = vpop.f32.mrf.mxu3 }
 0x5d5   : > { %17087 = vst [vmem:[#allocation169_spill] sm:$0xff] %v12681_v21  ;;  %v6166_v36 = vmul.f32 %v12681_v21, %v12573_v54  ;;  %v12717_v41 = vpop.eup %9651  ;;  %v5917_v54 = vsel %vm12711_vm15, %v12501_v29, %v5913_v14  ;;  %v5942_v21 = vmul.f32 %v12424_v7, %v17094_v20  ;;  %vm5934_vm7 = vcmp.eq.f32.partialorder %v5933_v8, 8.507059e+37  ;;  %v12802_v29 = vpop.permute.xlu2 %6122 }
 0x5d6   : > { %v5971_v56 = vsub.f32 1.0, %v5970_v31  ;;  %v12755_v55 = vpop.eup %9653  ;;  %v5936_v37 = vor.u32 1.1754944e-38, %v5935_v59  ;;  %v5948_v53 = vand.u32 2147483647, %v12362_v4  ;;  %v5957_v14 = vmul.f32 %v12628_v15, %v5956_v30  ;;  %17103 = vst [vmem:[#allocation225_spill] sm:$0xff] %v12789_v38 }
 0x5d7   : > { %v9553_v34 = vpack.i.bf16 %v6167_v33, %v6166_v36  ;;  %v12748_v36 = vsel %vm5919_vm11, %v5921_v40, %v5917_v54  ;;  %v5943_v35 = vadd.f32 %v12424_v7, %v5942_v21  ;;  %v6015_v22 = vmul.f32 %v12699_v6, %v12603_v9  ;;  %v9445_v54 = vld [vmem:[%s16335_s5 + $0x1d0] sm:$0xff]  ;;  %v12794_v59 = vpop.eup %9655 }
 0x5d8   : > { %v12775_v47 = vsel %vm5934_vm7, %v5936_v37, %v5932_v51  ;;  %v5972_v21 = vmul.f32 %v12654_v52, %v5971_v56  ;;  %v5986_v33 = vsub.f32 1.0, %v5985_v2  ;;  %vm5960_vm12 = vweird.f32 %v12628_v15  ;;  %9082 = vmatmul.msk.bf16.gmra.mxu2 %vm1212_vm1, %v9445_v54  ;;  %8962 = vmatmul.msk.bf16.gmra.mxu0 %vm1212_vm1, %v9445_v54  ;;  %vm12837_vm7 = vmor %vm5974_vm9, %vm5975_vm13 }
 0x5d9   : > { %v12741_v20 = vpop.permute.xlu1 %5418  ;;  %9554 = vrot.lane.b32.xlu1 %v9553_v34, %s10110_s24  ;;  %v5947_v4 = vsel %vm12784_vm10, %v12424_v7, %v5943_v35  ;;  %v5978_v40 = vand.u32 2147483647, %v12559_v62  ;;  %v5958_v51 = vadd.f32 %v12628_v15, %v5957_v14  ;;  %v6016_v2 = vsub.f32 1.0, %v6015_v22  ;;  %9022 = vmatmul.msk.bf16.gmra.mxu1 %vm1212_vm1, %v9445_v54 }
 0x5da   : > { %v5951_v37 = vor.u32 1.1754944e-38, %v5950_v61  ;;  %v5973_v7 = vadd.f32 %v12654_v52, %v5972_v21  ;;  %v5980_v35 = vand.u32 2147483648, %v12559_v62  ;;  %9142 = vmatmul.msk.bf16.gmra.mxu3 %vm1212_vm1, %v9445_v54  ;;  %vm5949_vm14 = vcmp.eq.f32.partialorder %v5948_v53, 8.507059e+37 }
 0x5db   : > { %v12759_v34 = vpop.permute.xlu0 %6112  ;;  %vm5959_vm15 = vweird.f32 %v12537_v12  ;;  %v5987_v14 = vmul.f32 %v12677_v19, %v5986_v33  ;;  %v6030_v61 = vmul.f32 %v12717_v41, %v12613_v49  ;;  %vm12841_vm8 = vcmp.eq.f32.partialorder %v5978_v40, 8.507059e+37 }
 0x5dc   : > { %17097 = vst [vmem:[#allocation179_spill] sm:$0xff] %v12759_v34  ;;  %v12771_v8 = vsel %vm4129_vm5, %v12494_v16, %v12759_v34  ;;  %v6169_v25 = vmul.f32 %v12759_v34, %v12633_v3  ;;  %v5963_v16 = vand.u32 2147483647, %v12537_v12  ;;  %v9160_v3 = vmul.f32 -1.442695, %v1695_v63  ;;  %vm12823_vm0 = vmor %vm5959_vm15, %vm5960_vm12 }
 0x5dd   : > { %17099 = vst [vmem:[#allocation224_spill] sm:$0xff] %v12771_v8  ;;  %v6168_v30 = vmul.f32 %v12771_v8, %v12582_v10  ;;  %v5965_v10 = vand.u32 2147483648, %v12537_v12  ;;  %v5952_v21 = vsel %vm5949_vm14, %v5951_v37, %v5947_v4  ;;  %v5981_v54 = vor.u32 1.1754944e-38, %v5980_v35  ;;  %v12883_v33 = vpop.permute.xlu2 %6128  ;;  %v17236_v8 = vld [vmem:[#allocation243_spill] sm:$0xff] }
 0x5de   : > { %9657 = vpow2.f32 %v9160_v3  ;;  %vm12827_vm11 = vcmp.eq.f32.partialorder %v5963_v16, 8.507059e+37  ;;  %v6017_v16 = vmul.f32 %v12699_v6, %v6016_v2  ;;  %vm5990_vm10 = vweird.f32 %v12677_v19  ;;  %v2004_v2 = vpop.f32.mrf.mxu1  ;;  %17117 = vst [vmem:[#allocation273_spill] sm:$0xff] %v12883_v33 }
 0x5df   : > { %v9558_v56 = vpack.i.bf16 %v6169_v25, %v6168_v30  ;;  %v5962_v30 = vsel %vm12823_vm0, %v12628_v15, %v5958_v51  ;;  %v5966_v31 = vor.u32 1.1754944e-38, %v5965_v10  ;;  %v5977_v15 = vsel %vm12837_vm7, %v12654_v52, %v5973_v7  ;;  %v12864_v7 = vpop.f32.mrf.mxu2 }
 0x5e0   : > { %v6031_v51 = vsub.f32 1.0, %v6030_v61  ;;  %vm5989_vm12 = vweird.f32 %v12590_v57  ;;  %v5995_v52 = vand.u32 2147483648, %v12590_v57  ;;  %17114 = vst [vmem:[#allocation272_spill] sm:$0xff] %v12864_v7  ;;  %vm6020_vm13 = vweird.f32 %v12699_v6 }
 0x5e1   : > { %v6115_v25 = vpop.permute.xlu1 %6114  ;;  %9559 = vrot.lane.b32.xlu2 %v9558_v56, %s10110_s24  ;;  %v5988_v56 = vadd.f32 %v12677_v19, %v5987_v14  ;;  %v12872_v14 = vsel %vm12827_vm11, %v5966_v31, %v5962_v30  ;;  %vm12876_vm14 = vmor %vm5989_vm12, %vm5990_vm10  ;;  %v6023_v61 = vand.u32 2147483647, %v12603_v9  ;;  %v6025_v63 = vand.u32 2147483648, %v12603_v9 }
 0x5e2   : > { %v12819_v22 = vsel %vm4129_vm5, %v6115_v25, %v12701_v39  ;;  %v2622_v25 = vpop.f32.mrf.mxu3  ;;  %v5982_v53 = vsel %vm12841_vm8, %v5981_v54, %v5977_v15  ;;  %vm6019_vm15 = vweird.f32 %v12603_v9  ;;  %v6032_v31 = vmul.f32 %v12717_v41, %v6031_v51 }
 0x5e3   : > { %17104 = vst [vmem:[#allocation227_spill] sm:$0xff] %v12819_v22  ;;  %v6119_v12 = vpop.permute.xlu0 %6118  ;;  %v6170_v10 = vmul.f32 %v12819_v22, %v12733_v42  ;;  %v6018_v42 = vadd.f32 %v12699_v6, %v6017_v16  ;;  %v5992_v30 = vsel %vm12876_vm14, %v12677_v19, %v5988_v56  ;;  %vm12902_vm11 = vmor %vm6019_vm15, %vm6020_vm13  ;;  %v6177_v54 = vmul.f32 %v12883_v33, %v12746_v50 }
 0x5e4   : > { %v12848_v62 = vsel %vm4129_vm5, %v12701_v39, %v6119_v12  ;;  %v9658_v4 = vpop.eup %9657  ;;  %v5993_v39 = vand.u32 2147483647, %v12590_v57  ;;  %vm6024_vm9 = vcmp.eq.f32.partialorder %v6023_v61, 8.507059e+37  ;;  %v6026_v51 = vor.u32 1.1754944e-38, %v6025_v63 }
 0x5e5   : > { %17113 = vst [vmem:[#allocation265_spill] sm:$0xff] %v12848_v62  ;;  %v6171_v40 = vmul.f32 %v12848_v62, %v12748_v36  ;;  %v12862_v37 = vadd.f32 1.0, %v9658_v4  ;;  %v6045_v36 = vmul.f32 %v12794_v59, %v12671_v5  ;;  %v6022_v15 = vsel %vm12902_vm11, %v12699_v6, %v6018_v42  ;;  %v9446_v6 = vld [vmem:[%s16335_s5 + $0x1d8] sm:$0xff]  ;;  %v17212_v62 = vld [vmem:[#allocation111_spill] sm:$0xff] }
 0x5e6   : > { %vm5994_vm0 = vcmp.eq.f32.partialorder %v5993_v39, 8.507059e+37  ;;  %v1697_v39 = vpop.f32.mrf.mxu0  ;;  %vm6035_vm7 = vweird.f32 %v12717_v41  ;;  %vm6034_vm8 = vweird.f32 %v12613_v49  ;;  %v6038_v50 = vand.u32 2147483647, %v12613_v49 }
 0x5e7   : > { %v9563_v35 = vpack.i.bf16 %v6171_v40, %v6170_v10  ;;  %9659 = vrcp.f32 %v12862_v37  ;;  %v5996_v40 = vor.u32 1.1754944e-38, %v5995_v52  ;;  %v6040_v57 = vand.u32 2147483648, %v12613_v49  ;;  %v12929_v61 = vpop.f32.mrf.mxu2  ;;  %vm12941_vm12 = vmor %vm6034_vm8, %vm6035_vm7 }
 0x5e8   : > { %17122 = vst [vmem:[#allocation275_spill] sm:$0xff] %v12929_v61  ;;  %vm6050_vm10 = vweird.f32 %v12794_v59  ;;  %8963 = vmatmul.msk.bf16.gmra.mxu0 %vm1212_vm1, %v9446_v6  ;;  %v6053_v3 = vand.u32 2147483647, %v12671_v5  ;;  %9083 = vmatmul.msk.bf16.gmra.mxu2 %vm1212_vm1, %v9446_v6  ;;  %vm6064_vm13 = vweird.f32 %v12643_v24  ;;  %vm6039_vm14 = vcmp.eq.f32.partialorder %v6038_v50, 8.507059e+37 }
 0x5e9   : > { %v12885_v16 = vpop.permute.xlu1 %6120  ;;  %9564 = vrot.lane.b32.xlu0 %v9563_v35, %s10110_s24  ;;  %v5997_v56 = vsel %vm5994_vm0, %v5996_v40, %v5992_v30  ;;  %v12916_v35 = vadd.f32 %v12717_v41, %v6032_v31  ;;  %v9164_v30 = vmul.f32 -1.442695, %v1697_v39  ;;  %v9161_v31 = vmul.f32 -1.442695, %v2004_v2  ;;  %9023 = vmatmul.msk.bf16.gmra.mxu1 %vm1212_vm1, %v9446_v6 }
 0x5ea   : > { %17118 = vst [vmem:[#allocation180_spill] sm:$0xff] %v12885_v16  ;;  %v12897_v4 = vsel %vm4129_vm5, %v6119_v12, %v12885_v16  ;;  %v6173_v10 = vmul.f32 %v12885_v16, %v5952_v21  ;;  %v6046_v12 = vsub.f32 1.0, %v6045_v36  ;;  %v6060_v21 = vmul.f32 %v12755_v55, %v12643_v24  ;;  %9143 = vmatmul.msk.bf16.gmra.mxu3 %vm1212_vm1, %v9446_v6  ;;  %v17211_v16 = vld [vmem:[#allocation242_spill] sm:$0xff] }
 0x5eb   : > { %17119 = vst [vmem:[#allocation172_spill] sm:$0xff] %v12897_v4  ;;  %v6172_v19 = vmul.f32 %v12897_v4, %v12775_v47  ;;  %v6125_v9 = vpop.permute.xlu0 %6124  ;;  %v12924_v36 = vsel %vm6024_vm9, %v6026_v51, %v6022_v15  ;;  %9661 = vpow2.f32 %v9164_v30  ;;  %v2624_v51 = vpop.f32.mrf.mxu3  ;;  %vm6065_vm1 = vweird.f32 %v12755_v55 }
 0x5ec   : > { %v6061_v47 = vsub.f32 1.0, %v6060_v21  ;;  %v6047_v63 = vmul.f32 %v12794_v59, %v6046_v12  ;;  %v12937_v40 = vsel %vm4129_vm5, %v12802_v29, %v6125_v9  ;;  %v6037_v12 = vsel %vm12941_vm12, %v12717_v41, %v12916_v35  ;;  %vm12985_vm11 = vmor %vm6064_vm13, %vm6065_vm1 }
 0x5ed   : > { %v9568_v52 = vpack.i.bf16 %v6173_v10, %v6172_v19  ;;  %v12922_v42 = vpop.eup %9659  ;;  %v2006_v10 = vpop.f32.mrf.mxu1  ;;  %17123 = vst [vmem:[#allocation313_spill] sm:$0xff] %v12937_v40  ;;  %v6055_v19 = vand.u32 2147483648, %v12671_v5  ;;  %v9163_v21 = vmul.f32 -1.442695, %v2622_v25  ;;  %9663 = vpow2.f32 %v9161_v31 }
 0x5ee   : > { %v6062_v15 = vmul.f32 %v12755_v55, %v6061_v47  ;;  %v3011_v29 = vmul.f32 %v12922_v42, %v12862_v37  ;;  %v9165_v47 = vmul.f32 -1.442695, %v2006_v10  ;;  %v6174_v38 = vmul.f32 %v12937_v40, %v12872_v14  ;;  %v17210_v40 = vld [vmem:[#allocation232_spill] sm:$0xff] }
 0x5ef   : > { %9569 = vrot.lane.b32.xlu1 %v9568_v52, %s10110_s24  ;;  %v6048_v35 = vadd.f32 %v12794_v59, %v6047_v63  ;;  %v9167_v30 = vmul.f32 -1.442695, %v2624_v51  ;;  %v6070_v10 = vand.u32 2147483648, %v12643_v24  ;;  %9665 = vpow2.f32 %v9163_v21  ;;  %v6135_v63 = vpop.permute.xlu2 %6134 }
 0x5f0   : > { %v6063_v6 = vadd.f32 %v12755_v55, %v6062_v15  ;;  %v3012_v14 = vsub.f32 1.0, %v3011_v29  ;;  %v6041_v44 = vor.u32 1.1754944e-38, %v6040_v57  ;;  %9667 = vpow2.f32 %v9165_v47 }
 0x5f1   : > { %v6127_v2 = vpop.permute.xlu1 %6126  ;;  %vm6049_vm15 = vweird.f32 %v12671_v5  ;;  %vm12979_vm0 = vcmp.eq.f32.partialorder %v6053_v3, 8.507059e+37  ;;  %9669 = vpow2.f32 %v9167_v30  ;;  %vm3015_vm8 = vweird.f32 %v12862_v37 }
 0x5f2   : > { %v12958_v39 = vsel %vm4129_vm5, %v6125_v9, %v6127_v2  ;;  %v12962_v52 = vsel %vm4129_vm5, %v6127_v2, %v12883_v33  ;;  %v6068_v9 = vand.u32 2147483647, %v12643_v24  ;;  %v6042_v15 = vsel %vm6039_vm14, %v6041_v44, %v6037_v12  ;;  %vm12991_vm9 = vmor %vm6049_vm15, %vm6050_vm10  ;;  %v17205_v33 = vld [vmem:[#allocation194_spill] sm:$0xff] }
 0x5f3   : > { %17126 = vst [vmem:[#allocation320_spill] sm:$0xff] %v12958_v39  ;;  %v6175_v49 = vmul.f32 %v12958_v39, %v5982_v53  ;;  %v6176_v41 = vmul.f32 %v12962_v52, %v5997_v56  ;;  %v6131_v25 = vpop.permute.xlu0 %6130  ;;  %v12974_v53 = vpop.f32.mrf.mxu2  ;;  %v6067_v5 = vsel %vm12985_vm11, %v12755_v55, %v6063_v6  ;;  %v6052_v29 = vsel %vm12991_vm9, %v12794_v59, %v6048_v35 }
 0x5f4   : > { %17127 = vst [vmem:[#allocation321_spill] sm:$0xff] %v12962_v52  ;;  %v9662_v56 = vpop.eup %9661  ;;  %vm6069_vm7 = vcmp.eq.f32.partialorder %v6068_v9, 8.507059e+37  ;;  %v6071_v44 = vor.u32 1.1754944e-38, %v6070_v10  ;;  %v3013_v21 = vmul.f32 %v12922_v42, %v3012_v14  ;;  %vm3016_vm10 = vweird.f32 %v12922_v42  ;;  %v17203_v52 = vld [vmem:[#allocation192_spill] sm:$0xff] }
 0x5f5   : > { %v9573_v2 = vpack.i.bf16 %v6175_v49, %v6174_v38  ;;  %v9578_v31 = vpack.i.bf16 %v6177_v54, %v6176_v41  ;;  %17128 = vst [vmem:[#allocation182_spill] sm:$0xff] %v12974_v53  ;;  %v6056_v54 = vor.u32 1.1754944e-38, %v6055_v19  ;;  %v9664_v57 = vpop.eup %9663  ;;  %v12998_v3 = vadd.f32 1.0, %v9662_v56  ;;  %vm13039_vm12 = vmor %vm3015_vm8, %vm3016_vm10 }
 0x5f6   : > { %v13003_v12 = vadd.f32 1.0, %v9664_v57  ;;  %v9666_v55 = vpop.eup %9665  ;;  %v6072_v41 = vsel %vm6069_vm7, %v6071_v44, %v6067_v5  ;;  %v3021_v56 = vand.u32 2147483648, %v12862_v37  ;;  %v3014_v38 = vadd.f32 %v12922_v42, %v3013_v21 }
 0x5f7   : > { %9574 = vrot.lane.b32.xlu2 %v9573_v2, %s10110_s24  ;;  %9579 = vrot.lane.b32.xlu0 %v9578_v31, %s10110_s24  ;;  %9671 = vrcp.f32 %v12998_v3  ;;  %v9668_v6 = vpop.eup %9667  ;;  %v13028_v31 = vadd.f32 1.0, %v9666_v55  ;;  %vm3075_vm13 = vweird.f32 %v12998_v3 }
 0x5f8   : > { %9673 = vrcp.f32 %v13003_v12  ;;  %v13030_v10 = vadd.f32 1.0, %v9668_v6  ;;  %v9670_v14 = vpop.eup %9669  ;;  %v3018_v21 = vsel %vm13039_vm12, %v12922_v42, %v3014_v38  ;;  %v3022_v55 = vor.u32 1.1754944e-38, %v3021_v56 }
 0x5f9   : > { %v6133_v19 = vpop.permute.xlu1 %6132  ;;  %9675 = vrcp.f32 %v13028_v31  ;;  %vm3030_vm15 = vweird.f32 %v13003_v12  ;;  %v3034_v38 = vand.u32 2147483647, %v13003_v12 }
 0x5fa   : > { %v13007_v51 = vsel %vm4129_vm5, %v6131_v25, %v6133_v19  ;;  %v13010_v47 = vsel %vm4129_vm5, %v6133_v19, %v6135_v63  ;;  %v6057_v25 = vsel %vm12979_vm0, %v6056_v54, %v6052_v29  ;;  %9677 = vrcp.f32 %v13030_v10 }
 0x5fb   : > { %17135 = vst [vmem:[#allocation323_spill] sm:$0xff] %v13007_v51  ;;  %v6178_v49 = vmul.f32 %v13007_v51, %v12924_v36  ;;  %v6179_v59 = vmul.f32 %v13010_v47, %v6042_v15  ;;  %v13016_v35 = vpop.permute.xlu0 %6136  ;;  %v2313_v24 = vpop.f32.mrf.mxu2  ;;  %v13044_v15 = vadd.f32 1.0, %v9670_v14  ;;  %v3019_v29 = vand.u32 2147483647, %v12862_v37  ;;  %v17198_v51 = vld [vmem:[#allocation146_spill] sm:$0xff] }
 0x5fc   : > { %17136 = vst [vmem:[#allocation185_spill] sm:$0xff] %v13010_v47  ;;  %v13024_v9 = vsel %vm4129_vm5, %v6135_v63, %v13016_v35  ;;  %v6181_v30 = vmul.f32 %v13016_v35, %v6072_v41  ;;  %v9162_v50 = vmul.f32 -1.442695, %v2313_v24  ;;  %v3079_v41 = vand.u32 2147483647, %v12998_v3  ;;  %v17196_v47 = vld [vmem:[#allocation144_spill] sm:$0xff] }
 0x5fd   : > { %17137 = vst [vmem:[#allocation183_spill] sm:$0xff] %v13016_v35  ;;  %v9583_v36 = vpack.i.bf16 %v6179_v59, %v6178_v49  ;;  %v6180_v2 = vmul.f32 %v13024_v9, %v6057_v25  ;;  %v9672_v57 = vpop.eup %9671  ;;  %9679 = vrcp.f32 %v13044_v15  ;;  %vm3020_vm1 = vcmp.eq.f32.partialorder %v3019_v29, 8.507059e+37  ;;  %v1700_v25 = vpop.f32.mrf.mxu0  ;;  %v17193_v35 = vld [vmem:[#allocation45_spill] sm:$0xff] }
 0x5fe   : > { %17138 = vst [vmem:[#allocation178_spill] sm:$0xff] %v13024_v9  ;;  %v13046_v5 = vpop.eup %9673  ;;  %v3071_v19 = vmul.f32 %v9672_v57, %v12998_v3  ;;  %vm3076_vm14 = vweird.f32 %v9672_v57  ;;  %9681 = vpow2.f32 %v9162_v50  ;;  %v9168_v56 = vmul.f32 -1.442695, %v1700_v25  ;;  %v9921_v25 = vld [vmem:[%s10300_s20] sm:$0xff]  ;;  %v17195_v9 = vld [vmem:[#allocation100_spill] sm:$0xff] }
 0x5ff   : > { %9584 = vrot.lane.b32.xlu1 %v9583_v36, %s10110_s24  ;;  %v9588_v63 = vpack.i.bf16 %v6181_v30, %v6180_v2  ;;  %v3026_v44 = vmul.f32 %v13046_v5, %v13003_v12  ;;  %v13059_v37 = vpop.eup %9675  ;;  %v3023_v30 = vsel %vm3020_vm1, %v3022_v55, %v3018_v21  ;;  %v3081_v36 = vand.u32 2147483648, %v12998_v3  ;;  %vm13071_vm0 = vmor %vm3075_vm13, %vm3076_vm14 }
 0x600   : > { %v3072_v49 = vsub.f32 1.0, %v3071_v19  ;;  %v13063_v42 = vpop.eup %9677  ;;  %v3056_v14 = vmul.f32 %v13059_v37, %v13028_v31  ;;  %vm3080_vm11 = vcmp.eq.f32.partialorder %v3079_v41, 8.507059e+37  ;;  %9683 = vpow2.f32 %v9168_v56  ;;  %v9922_v56 = vld [vmem:[%s10300_s20 + $0x18] sm:$0xff] }
 0x601   : > { %9589 = vrot.lane.b32.xlu2 %v9588_v63, %s10110_s24  ;;  %v3027_v59 = vsub.f32 1.0, %v3026_v44  ;;  %v3086_v63 = vmul.f32 %v13063_v42, %v13030_v10  ;;  %v3082_v19 = vor.u32 1.1754944e-38, %v3081_v36  ;;  %v3036_v44 = vand.u32 2147483648, %v13003_v12 }
 0x602   : > { %v3073_v6 = vmul.f32 %v9672_v57, %v3072_v49  ;;  %v3057_v21 = vsub.f32 1.0, %v3056_v14  ;;  %v6074_v36 = vmul.f32 %v9921_v25, %v3023_v30  ;;  %vm3031_vm9 = vweird.f32 %v13046_v5 }
 0x603   : > { %v3028_v2 = vmul.f32 %v13046_v5, %v3027_v59  ;;  %v2315_v24 = vpop.f32.mrf.mxu2  ;;  %v13077_v29 = vpop.eup %9679  ;;  %v3087_v55 = vsub.f32 1.0, %v3086_v63  ;;  %vm13093_vm7 = vmor %vm3030_vm15, %vm3031_vm9  ;;  %vm3090_vm8 = vweird.f32 %v13030_v10  ;;  %vm3035_vm10 = vcmp.eq.f32.partialorder %v3034_v38, 8.507059e+37 }
 0x604   : > { %v9166_v54 = vmul.f32 -1.442695, %v2315_v24  ;;  %v3074_v50 = vadd.f32 %v9672_v57, %v3073_v6  ;;  %v3116_v49 = vmul.f32 %v13077_v29, %v13044_v15  ;;  %v9682_v41 = vpop.eup %9681  ;;  %vm3091_vm12 = vweird.f32 %v13063_v42 }
 0x605   : > { %v3029_v3 = vadd.f32 %v13046_v5, %v3028_v2  ;;  %v3088_v24 = vmul.f32 %v13063_v42, %v3087_v55  ;;  %v13088_v14 = vadd.f32 1.0, %v9682_v41  ;;  %v1702_v55 = vpop.f32.mrf.mxu0  ;;  %vm3060_vm1 = vweird.f32 %v13028_v31  ;;  %vm13118_vm13 = vmor %vm3090_vm8, %vm3091_vm12 }
 0x606   : > { %9685 = vpow2.f32 %v9166_v54  ;;  %v3078_v59 = vsel %vm13071_vm0, %v9672_v57, %v3074_v50  ;;  %v3066_v57 = vand.u32 2147483648, %v13028_v31  ;;  %v3037_v54 = vor.u32 1.1754944e-38, %v3036_v44  ;;  %v9684_v41 = vpop.eup %9683 }
 0x607   : > { %v3083_v6 = vsel %vm3080_vm11, %v3082_v19, %v3078_v59  ;;  %v3033_v30 = vsel %vm13093_vm7, %v13046_v5, %v3029_v3  ;;  %v3058_v50 = vmul.f32 %v13059_v37, %v3057_v21  ;;  %v3117_v19 = vsub.f32 1.0, %v3116_v49  ;;  %v2627_v59 = vpop.f32.mrf.mxu3 }
 0x608   : > { %v6078_v2 = vmul.f32 %v9922_v56, %v3083_v6  ;;  %9687 = vrcp.f32 %v13088_v14  ;;  %v9172_v25 = vmul.f32 -1.442695, %v1702_v55  ;;  %v9171_v53 = vmul.f32 -1.442695, %v2627_v59 }
 0x609   : > { %v13105_v5 = vadd.f32 1.0, %v9684_v41  ;;  %v3038_v44 = vsel %vm3035_vm10, %v3037_v54, %v3033_v30  ;;  %v3089_v21 = vadd.f32 %v13063_v42, %v3088_v24  ;;  %v3094_v49 = vand.u32 2147483647, %v13030_v10  ;;  %v2009_v30 = vpop.f32.mrf.mxu1  ;;  %v9923_v54 = vld [vmem:[%s10300_s20 + $0x8] sm:$0xff] }
 0x60a   : > { %v6259_v6 = vpack.c.bf16 %v6078_v2, %v6074_v36  ;;  %9689 = vpow2.f32 %v9172_v25  ;;  %v3118_v36 = vmul.f32 %v13077_v29, %v3117_v19  ;;  %v3096_v24 = vand.u32 2147483648, %v13030_v10 }
 0x60b   : > { %v2318_v56 = vpop.f32.mrf.mxu2  ;;  %9691 = vrcp.f32 %v13105_v5  ;;  %v3093_v38 = vsel %vm13118_vm13, %v13063_v42, %v3089_v21  ;;  %vm3095_vm14 = vcmp.eq.f32.partialorder %v3094_v49, 8.507059e+37  ;;  %v6075_v19 = vmul.f32 %v9923_v54, %v3038_v44  ;;  %v9924_v44 = vld [vmem:[%s10300_s20 + $0x20] sm:$0xff] }
 0x60c   : > { %v9686_v63 = vpop.eup %9685  ;;  %v9170_v12 = vmul.f32 -1.442695, %v2318_v56  ;;  %6431 = vrot.lane.b32.xlu0 %v6259_v6, %s10105_s7  ;;  %v3097_v59 = vor.u32 1.1754944e-38, %v3096_v24  ;;  %v3059_v41 = vadd.f32 %v13059_v37, %v3058_v50  ;;  %vm3061_vm15 = vweird.f32 %v13059_v37 }
 0x60d   : > { %v13108_v3 = vadd.f32 1.0, %v9686_v63  ;;  %vm13136_vm0 = vmor %vm3060_vm1, %vm3061_vm15  ;;  %v3064_v6 = vand.u32 2147483647, %v13028_v31  ;;  %v3067_v25 = vor.u32 1.1754944e-38, %v3066_v57  ;;  %v3119_v63 = vadd.f32 %v13077_v29, %v3118_v36 }
 0x60e   : > { %v13128_v55 = vpop.eup %9687  ;;  %v3098_v56 = vsel %vm3095_vm14, %v3097_v59, %v3093_v38  ;;  %v3063_v50 = vsel %vm13136_vm0, %v13059_v37, %v3059_v41  ;;  %vm3120_vm11 = vweird.f32 %v13044_v15  ;;  %vm3121_vm7 = vweird.f32 %v13077_v29 }
 0x60f   : > { %9693 = vrcp.f32 %v13108_v3  ;;  %v3041_v10 = vmul.f32 %v13128_v55, %v13088_v14  ;;  %v6079_v21 = vmul.f32 %v9924_v44, %v3098_v56  ;;  %vm3065_vm9 = vcmp.eq.f32.partialorder %v3064_v6, 8.507059e+37  ;;  %vm13152_vm8 = vmor %vm3120_vm11, %vm3121_vm7 }
 0x610   : > { %9695 = vpow2.f32 %v9170_v12  ;;  %v9690_v12 = vpop.eup %9689  ;;  %v3124_v37 = vand.u32 2147483647, %v13044_v15  ;;  %v3126_v36 = vand.u32 2147483648, %v13044_v15  ;;  %v3068_v54 = vsel %vm3065_vm9, %v3067_v25, %v3063_v50 }
 0x611   : > { %9697 = vpow2.f32 %v9171_v53  ;;  %v3042_v53 = vsub.f32 1.0, %v3041_v10  ;;  %v13148_v49 = vpop.eup %9691  ;;  %v13150_v31 = vadd.f32 1.0, %v9690_v12  ;;  %v6260_v38 = vpack.c.bf16 %v6079_v21, %v6075_v19  ;;  %v2629_v21 = vpop.f32.mrf.mxu3 }
 0x612   : > { %v3131_v24 = vmul.f32 %v13148_v49, %v13105_v5  ;;  %v3123_v59 = vsel %vm13152_vm8, %v13077_v29, %v3119_v63  ;;  %vm3125_vm10 = vcmp.eq.f32.partialorder %v3124_v37, 8.507059e+37  ;;  %v3127_v15 = vor.u32 1.1754944e-38, %v3126_v36  ;;  %v2011_v57 = vpop.f32.mrf.mxu1  ;;  %v9925_v37 = vld [vmem:[%s10308_s19] sm:$0xff] }
 0x613   : > { %v2320_v41 = vpop.f32.mrf.mxu2  ;;  %9699 = vrcp.f32 %v13150_v31  ;;  %v3043_v56 = vmul.f32 %v13128_v55, %v3042_v53  ;;  %6433 = vrot.lane.b32.xlu1 %v6260_v38, %s10105_s7  ;;  %v9169_v29 = vmul.f32 -1.442695, %v2009_v30  ;;  %v6077_v36 = vmul.f32 %v9925_v37, %v3068_v54  ;;  %v9926_v30 = vld [vmem:[%s10308_s19 + $0x8] sm:$0xff] }
 0x614   : > { %v3132_v12 = vsub.f32 1.0, %v3131_v24  ;;  %v3128_v63 = vsel %vm3125_vm10, %v3127_v15, %v3123_v59  ;;  %v9174_v44 = vmul.f32 -1.442695, %v2320_v41  ;;  %vm3045_vm12 = vweird.f32 %v13088_v14 }
 0x615   : > { %v13158_v2 = vpop.eup %9693  ;;  %v3051_v53 = vand.u32 2147483648, %v13088_v14  ;;  %v6081_v38 = vmul.f32 %v9926_v30, %v3128_v63  ;;  %v9173_v59 = vmul.f32 -1.442695, %v2011_v57  ;;  %v3044_v54 = vadd.f32 %v13128_v55, %v3043_v56 }
 0x616   : > { %v9696_v10 = vpop.eup %9695  ;;  %v3101_v42 = vmul.f32 %v13158_v2, %v13108_v3  ;;  %vm3046_vm1 = vweird.f32 %v13128_v55  ;;  %vm3105_vm15 = vweird.f32 %v13108_v3  ;;  %vm3106_vm0 = vweird.f32 %v13158_v2 }
 0x617   : > { %v9698_v6 = vpop.eup %9697  ;;  %v13169_v19 = vadd.f32 1.0, %v9696_v10  ;;  %v9175_v10 = vmul.f32 -1.442695, %v2629_v21  ;;  %vm13190_vm13 = vmor %vm3045_vm12, %vm3046_vm1  ;;  %v3111_v37 = vand.u32 2147483648, %v13108_v3  ;;  %vm3135_vm9 = vweird.f32 %v13105_v5 }
 0x618   : > { %v3102_v25 = vsub.f32 1.0, %v3101_v42  ;;  %v13172_v50 = vadd.f32 1.0, %v9698_v6  ;;  %v3133_v42 = vmul.f32 %v13148_v49, %v3132_v12  ;;  %v6262_v6 = vpack.c.bf16 %v6081_v38, %v6077_v36  ;;  %vm13206_vm11 = vmor %vm3105_vm15, %vm3106_vm0 }
 0x619   : > { %9701 = vrcp.f32 %v13169_v19  ;;  %v13181_v41 = vpop.eup %9699  ;;  %v3048_v56 = vsel %vm13190_vm13, %v13128_v55, %v3044_v54  ;;  %v3052_v12 = vor.u32 1.1754944e-38, %v3051_v53  ;;  %v3109_v55 = vand.u32 2147483647, %v13108_v3 }
 0x61a   : > { %v3103_v24 = vmul.f32 %v13158_v2, %v3102_v25  ;;  %9703 = vrcp.f32 %v13172_v50  ;;  %v3191_v15 = vmul.f32 %v13181_v41, %v13150_v31  ;;  %v3049_v25 = vand.u32 2147483647, %v13088_v14  ;;  %6437 = vrot.lane.b32.xlu0 %v6262_v6, %s10105_s7 }
 0x61b   : > { %9705 = vpow2.f32 %v9169_v29  ;;  %v3141_v53 = vand.u32 2147483648, %v13105_v5  ;;  %v3112_v54 = vor.u32 1.1754944e-38, %v3111_v37  ;;  %vm3110_vm7 = vcmp.eq.f32.partialorder %v3109_v55, 8.507059e+37 }
 0x61c   : > { %9707 = vpow2.f32 %v9174_v44  ;;  %v3104_v63 = vadd.f32 %v13158_v2, %v3103_v24  ;;  %v3192_v21 = vsub.f32 1.0, %v3191_v15  ;;  %vm3050_vm14 = vcmp.eq.f32.partialorder %v3049_v25, 8.507059e+37 }
 0x61d   : > { %9709 = vpow2.f32 %v9175_v10  ;;  %v3053_v24 = vsel %vm3050_vm14, %v3052_v12, %v3048_v56  ;;  %v3134_v3 = vadd.f32 %v13148_v49, %v3133_v42  ;;  %vm3136_vm8 = vweird.f32 %v13148_v49 }
 0x61e   : > { %9711 = vpow2.f32 %v9173_v59  ;;  %v3193_v38 = vmul.f32 %v13181_v41, %v3192_v21  ;;  %v3108_v59 = vsel %vm13206_vm11, %v13158_v2, %v3104_v63  ;;  %vm13231_vm10 = vmor %vm3135_vm9, %vm3136_vm8  ;;  %v9927_v63 = vld [vmem:[%s10300_s20 + $0x10] sm:$0xff]  ;;  %v3139_v37 = vand.u32 2147483647, %v13105_v5 }
 0x61f   : > { %v13199_v44 = vpop.eup %9701  ;;  %v6076_v21 = vmul.f32 %v9927_v63, %v3053_v24  ;;  %v3113_v14 = vsel %vm3110_vm7, %v3112_v54, %v3108_v59  ;;  %v3138_v55 = vsel %vm13231_vm10, %v13148_v49, %v3134_v3  ;;  %vm3195_vm12 = vweird.f32 %v13150_v31  ;;  %v9929_v2 = vld [vmem:[%s10300_s20 + $0x30] sm:$0xff] }
 0x620   : > { %v13204_v57 = vpop.eup %9703  ;;  %v3161_v25 = vmul.f32 %v13199_v44, %v13169_v19  ;;  %v3194_v7 = vadd.f32 %v13181_v41, %v3193_v38  ;;  %vm3140_vm1 = vcmp.eq.f32.partialorder %v3139_v37, 8.507059e+37  ;;  %vm3196_vm13 = vweird.f32 %v13181_v41 }
 0x621   : > { %v9706_v36 = vpop.eup %9705  ;;  %v3176_v56 = vmul.f32 %v13204_v57, %v13172_v50  ;;  %v3199_v24 = vand.u32 2147483647, %v13150_v31  ;;  %vm13252_vm14 = vmor %vm3195_vm12, %vm3196_vm13  ;;  %v3201_v54 = vand.u32 2147483648, %v13150_v31  ;;  %vm3165_vm0 = vweird.f32 %v13169_v19 }
 0x622   : > { %v9708_v30 = vpop.eup %9707  ;;  %v13215_v10 = vadd.f32 1.0, %v9706_v36  ;;  %v3142_v36 = vor.u32 1.1754944e-38, %v3141_v53  ;;  %v3162_v49 = vsub.f32 1.0, %v3161_v25  ;;  %vm3180_vm11 = vweird.f32 %v13172_v50 }
 0x623   : > { %v9710_v15 = vpop.eup %9709  ;;  %v13220_v6 = vadd.f32 1.0, %v9708_v30  ;;  %v9928_v30 = vld [vmem:[%s10300_s20 + $0x28] sm:$0xff]  ;;  %vm3200_vm15 = vcmp.eq.f32.partialorder %v3199_v24, 8.507059e+37  ;;  %v3202_v25 = vor.u32 1.1754944e-38, %v3201_v54  ;;  %vm3166_vm9 = vweird.f32 %v13199_v44 }
 0x624   : > { %v9712_v29 = vpop.eup %9711  ;;  %9713 = vrcp.f32 %v13215_v10  ;;  %v13236_v42 = vadd.f32 1.0, %v9710_v15  ;;  %v6080_v61 = vmul.f32 %v9928_v30, %v3113_v14  ;;  %v3143_v5 = vsel %vm3140_vm1, %v3142_v36, %v3138_v55  ;;  %v9930_v30 = vld [vmem:[%s10300_s20 + $0x48] sm:$0xff]  ;;  %vm3167_vm7 = vmor %vm3165_vm0, %vm3166_vm9 }
 0x625   : > { %9715 = vrcp.f32 %v13220_v6  ;;  %v13238_v12 = vadd.f32 1.0, %v9712_v29  ;;  %v3198_v15 = vsel %vm13252_vm14, %v13181_v41, %v3194_v7  ;;  %v3177_v29 = vsub.f32 1.0, %v3176_v56 }
 0x626   : > { %9717 = vrcp.f32 %v13236_v42  ;;  %v6261_v59 = vpack.c.bf16 %v6080_v61, %v6076_v21  ;;  %v6082_v63 = vmul.f32 %v9929_v2, %v3143_v5  ;;  %v3163_v7 = vmul.f32 %v13199_v44, %v3162_v49 }
 0x627   : > { %9719 = vrcp.f32 %v13238_v12  ;;  %v3171_v41 = vand.u32 2147483648, %v13169_v19  ;;  %v3203_v14 = vsel %vm3200_vm15, %v3202_v25, %v3198_v15  ;;  %v3186_v5 = vand.u32 2147483648, %v13172_v50 }
 0x628   : > { %6435 = vrot.lane.b32.xlu2 %v6261_v59, %s10105_s7  ;;  %v6086_v24 = vmul.f32 %v9930_v30, %v3203_v14  ;;  %v3178_v59 = vmul.f32 %v13204_v57, %v3177_v29  ;;  %v3156_v49 = vand.u32 2147483648, %v13215_v10  ;;  %v3164_v2 = vadd.f32 %v13199_v44, %v3163_v7  ;;  %v9933_v30 = vld [vmem:[%s10308_s19 + $0x10] sm:$0xff] }
 0x629   : > { %v3169_v29 = vand.u32 2147483647, %v13169_v19  ;;  %vm3225_vm8 = vweird.f32 %v13220_v6  ;;  %v3229_v19 = vand.u32 2147483647, %v13220_v6  ;;  %vm3181_vm13 = vweird.f32 %v13204_v57 }
 0x62a   : > { %v13257_v38 = vpop.eup %9713  ;;  %v6263_v25 = vpack.c.bf16 %v6086_v24, %v6082_v63  ;;  %v3168_v7 = vsel %vm3167_vm7, %v13199_v44, %v3164_v2  ;;  %v3179_v24 = vadd.f32 %v13204_v57, %v3178_v59  ;;  %vm3182_vm15 = vmor %vm3180_vm11, %vm3181_vm13  ;;  %vm3240_vm9 = vweird.f32 %v13236_v42 }
 0x62b   : > { %v13262_v3 = vpop.eup %9715  ;;  %v3146_v61 = vmul.f32 %v13257_v38, %v13215_v10  ;;  %vm3170_vm10 = vcmp.eq.f32.partialorder %v3169_v29, 8.507059e+37  ;;  %vm3230_vm14 = vcmp.eq.f32.partialorder %v3229_v19, 8.507059e+37  ;;  %vm3150_vm11 = vweird.f32 %v13215_v10 }
 0x62c   : > { %v3221_v31 = vmul.f32 %v13262_v3, %v13220_v6  ;;  %v13271_v21 = vpop.eup %9717  ;;  %6439 = vrot.lane.b32.xlu1 %v6263_v25, %s10105_s7  ;;  %vm3226_vm12 = vweird.f32 %v13262_v3  ;;  %v3183_v59 = vsel %vm3182_vm15, %v13204_v57, %v3179_v24  ;;  %v3157_v24 = vor.u32 1.1754944e-38, %v3156_v49 }
 0x62d   : > { %v3147_v56 = vsub.f32 1.0, %v3146_v61  ;;  %v13275_v55 = vpop.eup %9719  ;;  %v3236_v36 = vmul.f32 %v13271_v21, %v13236_v42  ;;  %vm13300_vm1 = vmor %vm3225_vm8, %vm3226_vm12  ;;  %vm3241_vm7 = vweird.f32 %v13271_v21  ;;  %vm3151_vm12 = vweird.f32 %v13257_v38 }
 0x62e   : > { %v3222_v37 = vsub.f32 1.0, %v3221_v31  ;;  %v3206_v53 = vmul.f32 %v13275_v55, %v13238_v12  ;;  %vm13319_vm8 = vmor %vm3240_vm9, %vm3241_vm7  ;;  %vm3210_vm13 = vweird.f32 %v13238_v12  ;;  %vm3211_vm15 = vweird.f32 %v13275_v55 }
 0x62f   : > { %v3148_v54 = vmul.f32 %v13257_v38, %v3147_v56  ;;  %v3237_v61 = vsub.f32 1.0, %v3236_v36  ;;  %v3172_v56 = vor.u32 1.1754944e-38, %v3171_v41  ;;  %v3231_v41 = vand.u32 2147483648, %v13220_v6 }
 0x630   : > { %v3223_v15 = vmul.f32 %v13262_v3, %v3222_v37  ;;  %v3207_v31 = vsub.f32 1.0, %v3206_v53  ;;  %v3216_v49 = vand.u32 2147483648, %v13238_v12  ;;  %vm6230_vm7 = vcmask 171008  }
 0x631   : > { %v3238_v14 = vmul.f32 %v13271_v21, %v3237_v61  ;;  %v3173_v36 = vsel %vm3170_vm10, %v3172_v56, %v3168_v7  ;;  %v3184_v61 = vand.u32 2147483647, %v13172_v50  ;;  %v3232_v25 = vor.u32 1.1754944e-38, %v3231_v41 }
 0x632   : > { %v3224_v37 = vadd.f32 %v13262_v3, %v3223_v15  ;;  %v3208_v63 = vmul.f32 %v13275_v55, %v3207_v31  ;;  %v9931_v15 = vld [vmem:[%s10300_s20 + $0x40] sm:$0xff]  ;;  %v3187_v31 = vor.u32 1.1754944e-38, %v3186_v5  ;;  %v3244_v50 = vand.u32 2147483647, %v13236_v42 }
 0x633   : > { %v6084_v44 = vmul.f32 %v9931_v15, %v3173_v36  ;;  %v3239_v6 = vadd.f32 %v13271_v21, %v3238_v14  ;;  %vm3185_vm0 = vcmp.eq.f32.partialorder %v3184_v61, 8.507059e+37  ;;  %v3246_v5 = vand.u32 2147483648, %v13236_v42  ;;  %v9932_v14 = vld [vmem:[%s10300_s20 + $0x58] sm:$0xff] }
 0x634   : > { %v3228_v53 = vsel %vm13300_vm1, %v13262_v3, %v3224_v37  ;;  %v3188_v2 = vsel %vm3185_vm0, %v3187_v31, %v3183_v59  ;;  %vm3245_vm10 = vcmp.eq.f32.partialorder %v3244_v50, 8.507059e+37  ;;  %v3149_v7 = vadd.f32 %v13257_v38, %v3148_v54  ;;  %vm3152_vm1 = vmor %vm3150_vm11, %vm3151_vm12  ;;  %v9935_v31 = vld [vmem:[%s10300_s20 + $0x38] sm:$0xff] }
 0x635   : > { %v3233_v3 = vsel %vm3230_vm14, %v3232_v25, %v3228_v53  ;;  %v3243_v56 = vsel %vm13319_vm8, %v13271_v21, %v3239_v6  ;;  %v3247_v37 = vor.u32 1.1754944e-38, %v3246_v5  ;;  %v6085_v19 = vmul.f32 %v9933_v30, %v3188_v2  ;;  %v9934_v21 = vld [vmem:[%s10308_s19 + $0x18] sm:$0xff]  ;;  %vm3212_vm0 = vmor %vm3210_vm13, %vm3211_vm15 }
 0x636   : > { %v6088_v57 = vmul.f32 %v9932_v14, %v3233_v3  ;;  %v3154_v42 = vand.u32 2147483647, %v13215_v10  ;;  %v3209_v53 = vadd.f32 %v13275_v55, %v3208_v63  ;;  %v3153_v54 = vsel %vm3152_vm1, %v13257_v38, %v3149_v7  ;;  %v9936_v38 = vld [vmem:[%s10300_s20 + $0x50] sm:$0xff] }
 0x637   : > { %v3248_v41 = vsel %vm3245_vm10, %v3247_v37, %v3243_v56  ;;  %v3214_v10 = vand.u32 2147483647, %v13238_v12  ;;  %v3217_v25 = vor.u32 1.1754944e-38, %v3216_v49  ;;  %vm17215_vm8 = vcmask 719872  }
 0x638   : > { %v6265_v36 = vpack.c.bf16 %v6088_v57, %v6084_v44  ;;  %v6089_v15 = vmul.f32 %v9934_v21, %v3248_v41  ;;  %vm3155_vm14 = vcmp.eq.f32.partialorder %v3154_v42, 8.507059e+37  ;;  %v3213_v61 = vsel %vm3212_vm0, %v13275_v55, %v3209_v53  ;;  %vm17217_vm11 = vmmov %vm17215_vm8 }
 0x639   : > { %v3158_v44 = vsel %vm3155_vm14, %v3157_v24, %v3153_v54  ;;  %vm3215_vm9 = vcmp.eq.f32.partialorder %v3214_v10, 8.507059e+37  ;;  %vm17222_vm10 = vcmask 711680   ;;  %vm17231_vm1 = vcmask 703488   ;;  %vm17241_vm14 = vmmov %vm17215_vm8 }
 0x63a   : > { %6443 = vrot.lane.b32.xlu0 %v6265_v36, %s10105_s7  ;;  %v6266_v63 = vpack.c.bf16 %v6089_v15, %v6085_v19  ;;  %v6083_v6 = vmul.f32 %v9935_v31, %v3158_v44  ;;  %v3218_v59 = vsel %vm3215_vm9, %v3217_v25, %v3213_v61  ;;  %vm17224_vm12 = vmmov %vm17222_vm10 }
 0x63b   : > { %v6087_v3 = vmul.f32 %v9936_v38, %v3218_v59  ;;  %v9560_v55 = vpop.permute.xlu2 %9559  ;;  %vm17232_vm13 = vmmov %vm17231_vm1 }
 0x63c   : > { %6445 = vrot.lane.b32.xlu1 %v6266_v63, %s10105_s7  ;;  %v9562_v30 = vunpack.i.h.bf16 %v9560_v55  ;;  %v9561_v19 = vunpack.i.l.bf16 %v9560_v55  ;;  %vm17247_vm15 = vmmov %vm17222_vm10 }
 0x63d   : > { %v6264_v2 = vpack.c.bf16 %v6087_v3, %v6083_v6  ;;  %vm17252_vm0 = vmmov %vm17231_vm1 }
 0x63e   : > { %v6233_v53 = vsel %vm6230_vm7, %v9561_v19, %v9562_v30  ;;  %vm17259_vm9 = vmmov %vm17215_vm8 }
 0x63f   : > { %6441 = vrot.lane.b32.xlu2 %v6264_v2, %s10105_s7 }
 0x64b   : > { %v9555_v29 = vpop.permute.xlu1 %9554 }
 0x64c   : > { %v9557_v50 = vunpack.i.h.bf16 %v9555_v29  ;;  %v9556_v5 = vunpack.i.l.bf16 %v9555_v29 }
 0x64e   : > { %v6231_v56 = vsel %vm6230_vm7, %v9556_v5, %v9557_v50  ;;  %v6232_v21 = vsel %vm6230_vm7, %v9557_v50, %v9561_v19 }
 0x651   : > { %v9575_v49 = vpop.permute.xlu2 %9574 }
 0x652   : > { %v9577_v61 = vunpack.i.h.bf16 %v9575_v49  ;;  %v9576_v25 = vunpack.i.l.bf16 %v9575_v49  ;;  %v17164_v49 = vld [vmem:[#allocation67_spill] sm:$0xff] }
 0x654   : > { %v6237_v29 = vsel %vm6230_vm7, %v9576_v25, %v9577_v61 }
 0x656   : > { %v2014_v30 = vpop.f32.mrf.mxu1 }
 0x65b   : > { %v9565_v14 = vpop.permute.xlu0 %9564  ;;  %v9590_v31 = vpop.permute.xlu2 %9589 }
 0x65c   : > { %v9567_v12 = vunpack.i.h.bf16 %v9565_v14  ;;  %v9566_v57 = vunpack.i.l.bf16 %v9565_v14  ;;  %v9591_v38 = vunpack.i.l.bf16 %v9590_v31 }
 0x65e   : > { %v6234_v37 = vsel %vm6230_vm7, %v9566_v57, %v9567_v12  ;;  %v6267_v7 = vpack.c.bf16 %v9566_v57, %v9556_v5 }
 0x65f   : > { %v6268_v36 = vpack.c.bf16 %v6234_v37, %v6231_v56  ;;  %v9592_v37 = vunpack.i.h.bf16 %v9590_v31  ;;  %v17166_v31 = vld [vmem:[#allocation68_spill] sm:$0xff] }
 0x660   : > { %6447 = vrot.lane.b32.xlu2 %v6267_v7, %s10105_s7  ;;  %v1705_v7 = vpop.f32.mrf.mxu0 }
 0x661   : > { %v9570_v42 = vpop.permute.xlu1 %9569  ;;  %6449 = vrot.lane.b32.xlu0 %v6268_v36, %s10105_s7  ;;  %v6242_v19 = vsel %vm6230_vm7, %v9591_v38, %v9592_v37 }
 0x662   : > { %v9572_v41 = vunpack.i.h.bf16 %v9570_v42  ;;  %v9571_v24 = vunpack.i.l.bf16 %v9570_v42  ;;  %v2323_v42 = vpop.f32.mrf.mxu2 }
 0x664   : > { %v6235_v15 = vsel %vm6230_vm7, %v9567_v12, %v9571_v24  ;;  %v6236_v54 = vsel %vm6230_vm7, %v9571_v24, %v9572_v41  ;;  %v2632_v24 = vpop.f32.mrf.mxu3 }
 0x665   : > { %v6269_v44 = vpack.c.bf16 %v6235_v15, %v6232_v21  ;;  %v6270_v10 = vpack.c.bf16 %v6236_v54, %v6233_v53  ;;  %v2016_v21 = vpop.f32.mrf.mxu1 }
 0x667   : > { %6451 = vrot.lane.b32.xlu1 %v6269_v44, %s10105_s7 }
 0x668   : > { %6453 = vrot.lane.b32.xlu2 %v6270_v10, %s10105_s7  ;;  %v1707_v53 = vpop.f32.mrf.mxu0  ;;  %v17163_v10 = vld [vmem:[#allocation70_spill] sm:$0xff] }
 0x669   : > { %v9580_v63 = vpop.permute.xlu0 %9579 }
 0x66a   : > { %v9581_v6 = vunpack.i.l.bf16 %v9580_v63  ;;  %v9582_v57 = vunpack.i.h.bf16 %v9580_v63  ;;  %v2325_v15 = vpop.f32.mrf.mxu2  ;;  %v3483_v63 = vsel %vm3298_vm2, %v17164_v49, %v17163_v10 }
 0x66c   : > { %v6238_v50 = vsel %vm6230_vm7, %v9577_v61, %v9581_v6  ;;  %v6239_v36 = vsel %vm6230_vm7, %v9581_v6, %v9582_v57  ;;  %v2634_v54 = vpop.f32.mrf.mxu3  ;;  %v17165_v61 = vld [vmem:[#allocation72_spill] sm:$0xff]  ;;  %v17171_v57 = vld [vmem:[#allocation35_spill] sm:$0xff] }
 0x66d   : > { %v6274_v41 = vpack.c.bf16 %v6242_v19, %v6239_v36  ;;  %v3485_v6 = vsel %vm3298_vm2, %v17165_v61, %v17166_v31 }
 0x670   : > { %v1710_v44 = vpop.f32.mrf.mxu0 }
 0x671   : > { %v9585_v59 = vpop.permute.xlu1 %9584 }
 0x672   : > { %v9587_v3 = vunpack.i.h.bf16 %v9585_v59  ;;  %v9586_v2 = vunpack.i.l.bf16 %v9585_v59  ;;  %v17167_v59 = vld [vmem:[#allocation75_spill] sm:$0xff] }
 0x674   : > { %v6240_v5 = vsel %vm6230_vm7, %v9586_v2, %v9587_v3  ;;  %v6241_v14 = vsel %vm6230_vm7, %v9587_v3, %v9591_v38  ;;  %v6271_v12 = vpack.c.bf16 %v9586_v2, %v9576_v25  ;;  %v3484_v25 = vsel %vm3298_vm2, %v17163_v10, %v17165_v61  ;;  %v17168_v38 = vld [vmem:[#allocation73_spill] sm:$0xff]  ;;  %v17169_v2 = vld [vmem:[#allocation38_spill] sm:$0xff]  ;;  %v17180_v61 = vld [vmem:[#allocation40_spill] sm:$0xff] }
 0x675   : > { %v6273_v55 = vpack.c.bf16 %v6241_v14, %v6238_v50  ;;  %v6272_v56 = vpack.c.bf16 %v6240_v5, %v6237_v29  ;;  %v3486_v3 = vsel %vm3298_vm2, %v17168_v38, %v17167_v59  ;;  %v3514_v29 = vadd.f32 %v17166_v31, %v17169_v2  ;;  %v17170_v50 = vld [vmem:[#allocation69_spill] sm:$0xff]  ;;  %v2019_v14 = vpop.f32.mrf.mxu1  ;;  %v17181_v31 = vld [vmem:[#allocation42_spill] sm:$0xff] }
 0x676   : > { %6455 = vrot.lane.b32.xlu0 %v6271_v12, %s10105_s7  ;;  %v3487_v5 = vsel %vm3298_vm2, %v17167_v59, %v17170_v50  ;;  %v2328_v12 = vpop.f32.mrf.mxu2  ;;  %v17179_v10 = vld [vmem:[#allocation81_spill] sm:$0xff]  ;;  %v17182_v59 = vld [vmem:[#allocation50_spill] sm:$0xff] }
 0x677   : > { %6459 = vrot.lane.b32.xlu2 %v6273_v55, %s10105_s7  ;;  %6457 = vrot.lane.b32.xlu1 %v6272_v56, %s10105_s7  ;;  %v3511_v55 = vadd.f32 %v3483_v63, %v17171_v57  ;;  %v17172_v56 = vld [vmem:[#allocation36_spill] sm:$0xff]  ;;  %v2637_v63 = vpop.f32.mrf.mxu3  ;;  %v17183_v38 = vld [vmem:[#allocation77_spill] sm:$0xff]  ;;  %v17184_v2 = vld [vmem:[#allocation82_spill] sm:$0xff] }
 0x678   : > { %v3512_v37 = vadd.f32 %v3484_v25, %v17172_v56  ;;  %v3516_v25 = vadd.f32 %v3487_v5, %v17180_v61  ;;  %v17186_v56 = vld [vmem:[#allocation41_spill] sm:$0xff]  ;;  %v17190_v61 = vld [vmem:[#allocation104_spill] sm:$0xff] }
 0x67e   : > { %6461 = vrot.lane.b32.xlu0 %v6274_v41, %s10105_s7 }
 0x67f   : > { %7677 = vrot.lane.b32.xlu2 %v2323_v42, %s10105_s7  ;;  %7675 = vrot.lane.b32.xlu1 %v2014_v30, %s10105_s7  ;;  %v17174_v30 = vld [vmem:[#allocation76_spill] sm:$0xff]  ;;  %v17175_v42 = vld [vmem:[#allocation39_spill] sm:$0xff] }
 0x680   : > { %v3488_v19 = vsel %vm3298_vm2, %v17170_v50, %v17174_v30  ;;  %v3515_v41 = vadd.f32 %v3486_v3, %v17175_v42  ;;  %v13413_v3 = vadd.f32 %v17183_v38, %v17182_v59  ;;  %v17185_v50 = vld [vmem:[#allocation74_spill] sm:$0xff]  ;;  %v17187_v42 = vld [vmem:[#allocation84_spill] sm:$0xff] }
 0x681   : > { %v3492_v57 = vsel %vm3298_vm2, %v17185_v50, %v17184_v2 }
 0x686   : > { %7673 = vrot.lane.b32.xlu0 %v1705_v7, %s10105_s7  ;;  %v17173_v7 = vld [vmem:[#allocation37_spill] sm:$0xff] }
 0x687   : > { %7683 = vrot.lane.b32.xlu2 %v2016_v21, %s10105_s7  ;;  %7681 = vrot.lane.b32.xlu1 %v1707_v53, %s10105_s7  ;;  %v3513_v36 = vadd.f32 %v3485_v6, %v17173_v7  ;;  %v17177_v53 = vld [vmem:[#allocation78_spill] sm:$0xff]  ;;  %v3518_v6 = vadd.f32 %v17174_v30, %v17181_v31  ;;  %v3517_v7 = vadd.f32 %v3488_v19, %v17186_v56  ;;  %v17191_v31 = vld [vmem:[#allocation43_spill] sm:$0xff] }
 0x68e   : > { %7679 = vrot.lane.b32.xlu0 %v2632_v24, %s10105_s7  ;;  %v17176_v24 = vld [vmem:[#allocation71_spill] sm:$0xff] }
 0x68f   : > { %7687 = vrot.lane.b32.xlu1 %v2634_v54, %s10105_s7  ;;  %7689 = vrot.lane.b32.xlu2 %v1710_v44, %s10105_s7  ;;  %v3489_v21 = vsel %vm3298_vm2, %v17177_v53, %v17176_v24  ;;  %v17178_v54 = vld [vmem:[#allocation79_spill] sm:$0xff]  ;;  %v17188_v53 = vld [vmem:[#allocation102_spill] sm:$0xff] }
 0x690   : > { %v3490_v44 = vsel %vm3298_vm2, %v17176_v24, %v17178_v54  ;;  %v3491_v49 = vsel %vm3298_vm2, %v17178_v54, %v17179_v10  ;;  %v3493_v24 = vsel %vm3298_vm2, %v17184_v2, %v17187_v42  ;;  %v17189_v54 = vld [vmem:[#allocation99_spill] sm:$0xff]  ;;  %v3761_v30 = vsel %vm3575_vm3, %v17188_v53, %v17190_v61 }
 0x691   : > { %v3760_v5 = vsel %vm3575_vm3, %v17189_v54, %v17188_v53  ;;  %v3519_v59 = vadd.f32 %v3489_v21, %v17191_v31  ;;  %v3520_v50 = vadd.f32 %v3490_v44, %v17192_v60  ;;  %v3521_v19 = vadd.f32 %v3491_v49, %v17193_v35  ;;  %v17194_v2 = vld [vmem:[#allocation47_spill] sm:$0xff]  ;;  %v17197_v53 = vld [vmem:[#allocation136_spill] sm:$0xff] }
 0x692   : > { %v3523_v56 = vadd.f32 %v3492_v57, %v17194_v2  ;;  %v3762_v54 = vsel %vm3575_vm3, %v17190_v61, %v17195_v9  ;;  %v4038_v60 = vsel %vm3852_vm4, %v17196_v47, %v17198_v51  ;;  %v17199_v21 = vld [vmem:[#allocation48_spill] sm:$0xff]  ;;  %v3788_v44 = vadd.f32 %v3760_v5, %v3511_v55  ;;  %v17200_v49 = vld [vmem:[#allocation107_spill] sm:$0xff]  ;;  %v17202_v2 = vld [vmem:[#allocation101_spill] sm:$0xff] }
 0x693   : > { %v3524_v35 = vadd.f32 %v3493_v24, %v17199_v21  ;;  %v3791_v31 = vadd.f32 %v17195_v9, %v3514_v29  ;;  %v3764_v61 = vsel %vm3575_vm3, %v17200_v49, %v17202_v2  ;;  %v3790_v55 = vadd.f32 %v3762_v54, %v3513_v36  ;;  %v17207_v29 = vld [vmem:[#allocation103_spill] sm:$0xff]  ;;  %v17208_v21 = vld [vmem:[#allocation110_spill] sm:$0xff]  ;;  %v2021_v36 = vpop.f32.mrf.mxu1  ;;  %v2330_v54 = vpop.f32.mrf.mxu2 }
 0x694   : > { %v3793_v4 = vadd.f32 %v3764_v61, %v3516_v25 }
 0x696   : > { %7685 = vrot.lane.b32.xlu0 %v2325_v15, %s10105_s7  ;;  %v4037_v15 = vsel %vm3852_vm4, %v17197_v53, %v17196_v47  ;;  %v17204_v53 = vld [vmem:[#allocation184_spill] sm:$0xff]  ;;  %v4315_v47 = vsel %vm4129_vm5, %v17203_v52, %v17205_v33 }
 0x697   : > { %7693 = vrot.lane.b32.xlu1 %v2328_v12, %s10105_s7  ;;  %7695 = vrot.lane.b32.xlu2 %v2637_v63, %s10105_s7  ;;  %v3789_v12 = vadd.f32 %v3761_v30, %v3512_v37  ;;  %v17201_v63 = vld [vmem:[#allocation105_spill] sm:$0xff]  ;;  %v4314_v39 = vsel %vm4129_vm5, %v17204_v53, %v17203_v52  ;;  %v17206_v37 = vld [vmem:[#allocation108_spill] sm:$0xff]  ;;  %v4065_v5 = vadd.f32 %v4037_v15, %v3788_v44 }
 0x698   : > { %v3763_v57 = vsel %vm3575_vm3, %v17201_v63, %v17200_v49  ;;  %v3765_v24 = vsel %vm3575_vm3, %v17202_v2, %v17206_v37  ;;  %v3766_v49 = vsel %vm3575_vm3, %v17208_v21, %v17207_v29  ;;  %v17209_v63 = vld [vmem:[#allocation240_spill] sm:$0xff]  ;;  %v3767_v15 = vsel %vm3575_vm3, %v17207_v29, %v17212_v62  ;;  %v17216_v21 = vld [vmem:[#allocation290_spill] sm:$0xff] }
 0x699   : > { %v4066_v30 = vadd.f32 %v4038_v60, %v3789_v12  ;;  %v3792_v9 = vadd.f32 %v3763_v57, %v3515_v41  ;;  %v4591_v53 = vsel %vm4406_vm6, %v17210_v40, %v17209_v63  ;;  %v4592_v52 = vsel %vm4406_vm6, %v17209_v63, %v17211_v16  ;;  %v17213_v57 = vld [vmem:[#allocation288_spill] sm:$0xff] }
 0x69a   : > { %v4342_v41 = vadd.f32 %v4314_v39, %v4065_v5  ;;  %v3794_v44 = vadd.f32 %v3765_v24, %v3517_v7  ;;  %v3795_v12 = vadd.f32 %v17206_v37, %v3518_v6  ;;  %v17214_v2 = vld [vmem:[#allocation280_spill] sm:$0xff]  ;;  %v4869_v63 = vsel %vm17217_vm11, %v17213_v57, %v17216_v21  ;;  %v17218_v7 = vld [vmem:[#allocation149_spill] sm:$0xff]  ;;  %v17219_v6 = vld [vmem:[#allocation147_spill] sm:$0xff] }
 0x69b   : > { %v4343_v60 = vadd.f32 %v4315_v47, %v4066_v30  ;;  %v4868_v40 = vsel %vm17215_vm8, %v17214_v2, %v17213_v57  ;;  %v3796_v25 = vadd.f32 %v3766_v49, %v3519_v59  ;;  %v3797_v39 = vadd.f32 %v3767_v15, %v3520_v50  ;;  %v17220_v37 = vld [vmem:[#allocation336_spill] sm:$0xff]  ;;  %v17223_v30 = vld [vmem:[#allocation338_spill] sm:$0xff]  ;;  %v17225_v59 = vld [vmem:[#allocation113_spill] sm:$0xff] }
 0x69c   : > { %v4619_v61 = vadd.f32 %v4591_v53, %v4342_v41  ;;  %v4040_v47 = vsel %vm3852_vm4, %v17219_v6, %v17218_v7  ;;  %v17221_v24 = vld [vmem:[#allocation328_spill] sm:$0xff]  ;;  %v3768_v29 = vsel %vm3575_vm3, %v17212_v62, %v17225_v59  ;;  %v17226_v49 = vld [vmem:[#allocation114_spill] sm:$0xff]  ;;  %v17229_v41 = vld [vmem:[#allocation197_spill] sm:$0xff]  ;;  %v5422_v2 = vsel %vm17231_vm1, %v12217_v0, %v12356_v23 }
 0x69d   : > { %v4620_v34 = vadd.f32 %v4592_v52, %v4343_v60  ;;  %v5145_v5 = vsel %vm17222_vm10, %v17221_v24, %v17220_v37  ;;  %v17227_v53 = vld [vmem:[#allocation106_spill] sm:$0xff]  ;;  %v17230_v60 = vld [vmem:[#allocation195_spill] sm:$0xff]  ;;  %v5423_v62 = vsel %vm17232_vm13, %v12356_v23, %v12391_v45  ;;  %v3798_v24 = vadd.f32 %v3768_v29, %v3521_v19  ;;  %v17235_v0 = vld [vmem:[#allocation245_spill] sm:$0xff] }
 0x69e   : > { %7691 = vrot.lane.b32.xlu0 %v2019_v14, %s10105_s7  ;;  %v5146_v14 = vsel %vm17224_vm12, %v17220_v37, %v17223_v30  ;;  %v3769_v50 = vsel %vm3575_vm3, %v17227_v53, %v17226_v49  ;;  %v4896_v52 = vadd.f32 %v4868_v40, %v4619_v61  ;;  %v4317_v57 = vsel %vm4129_vm5, %v17230_v60, %v17229_v41  ;;  %v17233_v6 = vld [vmem:[#allocation139_spill] sm:$0xff]  ;;  %v1712_v61 = vpop.f32.mrf.mxu0  ;;  %v17234_v53 = vld [vmem:[#allocation142_spill] sm:$0xff]  ;;  %v17239_v29 = vld [vmem:[#allocation293_spill] sm:$0xff] }
 0x69f   : > { %7699 = vrot.lane.b32.xlu1 %v2021_v36, %s10105_s7  ;;  %7701 = vrot.lane.b32.xlu2 %v2330_v54, %s10105_s7  ;;  %v4897_v36 = vadd.f32 %v4869_v63, %v4620_v34  ;;  %v17228_v54 = vld [vmem:[#allocation116_spill] sm:$0xff]  ;;  %v4068_v37 = vadd.f32 %v17233_v6, %v3791_v31  ;;  %v4069_v40 = vadd.f32 %v4040_v47, %v3792_v9  ;;  %v17237_v23 = vld [vmem:[#allocation187_spill] sm:$0xff]  ;;  %v17238_v19 = vld [vmem:[#allocation150_spill] sm:$0xff] }
 0x6a0   : > { %v3770_v15 = vsel %vm3575_vm3, %v17226_v49, %v17228_v54  ;;  %v5173_v34 = vadd.f32 %v5145_v5, %v4896_v52  ;;  %v4039_v49 = vsel %vm3852_vm4, %v17198_v51, %v17233_v6  ;;  %v4041_v60 = vsel %vm3852_vm4, %v17218_v7, %v17234_v53  ;;  %v17240_v52 = vld [vmem:[#allocation291_spill] sm:$0xff]  ;;  %vm17262_vm11 = vmmov %vm17222_vm10 }
 0x6a1   : > { %v5174_v63 = vadd.f32 %v5146_v14, %v4897_v36  ;;  %v4594_v22 = vsel %vm4406_vm6, %v17236_v8, %v17235_v0  ;;  %v4345_v13 = vadd.f32 %v17237_v23, %v4068_v37  ;;  %v4346_v31 = vadd.f32 %v4317_v57, %v4069_v40  ;;  %v17242_v36 = vld [vmem:[#allocation145_spill] sm:$0xff]  ;;  %v17243_v8 = vld [vmem:[#allocation152_spill] sm:$0xff]  ;;  %v17244_v57 = vld [vmem:[#allocation235_spill] sm:$0xff] }
 0x6a2   : > { %v5450_v9 = vadd.f32 %v5422_v2, %v5173_v34  ;;  %v3800_v5 = vadd.f32 %v3769_v50, %v3523_v56  ;;  %v13521_v14 = vadd.f32 %v3770_v15, %v3524_v35  ;;  %v4042_v51 = vsel %vm3852_vm4, %v17234_v53, %v17238_v19  ;;  %v17245_v15 = vld [vmem:[#allocation341_spill] sm:$0xff]  ;;  %v17246_v37 = vld [vmem:[#allocation339_spill] sm:$0xff]  ;;  %vm17267_vm12 = vmmov %vm17252_vm0 }
 0x6a3   : > { %v5451_v47 = vadd.f32 %v5423_v62, %v5174_v63  ;;  %v4871_v7 = vsel %vm17241_vm14, %v17240_v52, %v17239_v29  ;;  %v4043_v6 = vsel %vm3852_vm4, %v17243_v8, %v17242_v36  ;;  %v4622_v2 = vadd.f32 %v17244_v57, %v4345_v13  ;;  %v17256_v52 = vld [vmem:[#allocation148_spill] sm:$0xff]  ;;  %vm17270_vm1 = vmmov %vm17252_vm0 }
 0x6a4   : > { %v4623_v62 = vadd.f32 %v4594_v22, %v4346_v31  ;;  %v4067_v56 = vadd.f32 %v4039_v49, %v3790_v55  ;;  %v4070_v35 = vadd.f32 %v4041_v60, %v3793_v4  ;;  %v4072_v50 = vadd.f32 %v17238_v19, %v3795_v12  ;;  %v17249_v31 = vld [vmem:[#allocation153_spill] sm:$0xff]  ;;  %v17250_v55 = vld [vmem:[#allocation198_spill] sm:$0xff]  ;;  %v17253_v60 = vld [vmem:[#allocation155_spill] sm:$0xff]  ;;  %v2639_v19 = vpop.f32.mrf.mxu3 }
 0x6a5   : > { %v5148_v40 = vsel %vm17247_vm15, %v17246_v37, %v17245_v15  ;;  %v4071_v34 = vadd.f32 %v4042_v51, %v3794_v44  ;;  %v4316_v63 = vsel %vm4129_vm5, %v17205_v33, %v17237_v23  ;;  %v13544_v53 = vadd.f32 %v4043_v6, %v3796_v25  ;;  %v17251_v12 = vld [vmem:[#allocation190_spill] sm:$0xff]  ;;  %v17254_v23 = vld [vmem:[#allocation331_spill] sm:$0xff]  ;;  %v17255_v51 = vld [vmem:[#allocation156_spill] sm:$0xff] }
 0x6a6   : > { %7697 = vrot.lane.b32.xlu0 %v1712_v61, %s10105_s7  ;;  %v17248_v61 = vld [vmem:[#allocation283_spill] sm:$0xff]  ;;  %v4900_v22 = vadd.f32 %v4871_v7, %v4623_v62  ;;  %v4044_v4 = vsel %vm3852_vm4, %v17242_v36, %v17249_v31  ;;  %v4319_v49 = vsel %vm4129_vm5, %v17251_v12, %v17250_v55  ;;  %v5425_v44 = vsel %vm17252_vm0, %v12409_v28, %v12443_v43  ;;  %v17257_v28 = vld [vmem:[#allocation246_spill] sm:$0xff]  ;;  %vm17274_vm13 = vmmov %vm17215_vm8 }
 0x6a7   : > { %7781 = vrot.lane.b32.xlu1 %v5450_v9, %s10105_s7  ;;  %7783 = vrot.lane.b32.xlu2 %v5451_v47, %s10105_s7  ;;  %v4899_v13 = vadd.f32 %v17248_v61, %v4622_v2  ;;  %v4045_v33 = vsel %vm3852_vm4, %v17249_v31, %v17253_v60  ;;  %v4593_v25 = vsel %vm4406_vm6, %v17211_v16, %v17244_v57  ;;  %v17258_v6 = vld [vmem:[#allocation238_spill] sm:$0xff]  ;;  %vm17277_vm14 = vmmov %vm17215_vm8 }
 0x6a8   : > { %v5177_v47 = vadd.f32 %v5148_v40, %v4900_v22  ;;  %v4046_v7 = vsel %vm3852_vm4, %v17256_v52, %v17255_v51  ;;  %v4344_v36 = vadd.f32 %v4316_v63, %v4067_v56  ;;  %v4349_v8 = vadd.f32 %v17250_v55, %v4072_v50  ;;  %v17260_v31 = vld [vmem:[#allocation294_spill] sm:$0xff]  ;;  %vm17279_vm15 = vmmov %vm17215_vm8 }
 0x6a9   : > { %v5176_v9 = vadd.f32 %v17254_v23, %v4899_v13  ;;  %v4596_v2 = vsel %vm4406_vm6, %v17258_v6, %v17257_v28  ;;  %v4348_v62 = vadd.f32 %v4319_v49, %v4071_v34  ;;  %v4870_v16 = vsel %vm17259_vm9, %v17216_v21, %v17248_v61  ;;  %v17261_v52 = vld [vmem:[#allocation286_spill] sm:$0xff]  ;;  %v17265_v49 = vld [vmem:[#allocation201_spill] sm:$0xff]  ;;  %vm17280_vm0 = vmmov %vm17222_vm10 }
 0x6aa   : > { %v5454_v37 = vadd.f32 %v5425_v44, %v5177_v47  ;;  %v4074_v40 = vadd.f32 %v4044_v4, %v3797_v39  ;;  %v4075_v13 = vadd.f32 %v4045_v33, %v3798_v24  ;;  %v4621_v22 = vadd.f32 %v4593_v25, %v4344_v36  ;;  %v17263_v61 = vld [vmem:[#allocation342_spill] sm:$0xff]  ;;  %v17266_v44 = vld [vmem:[#allocation193_spill] sm:$0xff]  ;;  %vm17284_vm9 = vmmov %vm17280_vm0 }
 0x6ab   : > { %v5453_v57 = vadd.f32 %v12264_v32, %v5176_v9  ;;  %v4873_v56 = vsel %vm17215_vm8, %v17261_v52, %v17260_v31  ;;  %v4625_v50 = vadd.f32 %v4596_v2, %v4348_v62  ;;  %v4626_v63 = vadd.f32 %v17257_v28, %v4349_v8  ;;  %v17264_v4 = vld [vmem:[#allocation334_spill] sm:$0xff]  ;;  %v17271_v28 = vld [vmem:[#allocation249_spill] sm:$0xff]  ;;  %v17273_v62 = vld [vmem:[#allocation251_spill] sm:$0xff] }
 0x6ac   : > { %v5147_v34 = vsel %vm17262_vm11, %v17223_v30, %v17254_v23  ;;  %v4077_v21 = vadd.f32 %v4046_v7, %v3800_v5  ;;  %v4318_v39 = vsel %vm4129_vm5, %v17229_v41, %v17251_v12  ;;  %v4898_v24 = vadd.f32 %v4870_v16, %v4621_v22  ;;  %v17268_v23 = vld [vmem:[#allocation158_spill] sm:$0xff]  ;;  %v17269_v12 = vld [vmem:[#allocation203_spill] sm:$0xff]  ;;  %vm17286_vm8 = vmmov %vm17280_vm0 }
 0x6ad   : > { %v5150_v55 = vsel %vm17222_vm10, %v17264_v4, %v17263_v61  ;;  %v4321_v33 = vsel %vm4129_vm5, %v17266_v44, %v17265_v49  ;;  %v4902_v25 = vadd.f32 %v4873_v56, %v4625_v50  ;;  %v4903_v30 = vadd.f32 %v17260_v31, %v4626_v63  ;;  %v17275_v31 = vld [vmem:[#allocation297_spill] sm:$0xff]  ;;  %v17278_v63 = vld [vmem:[#allocation299_spill] sm:$0xff]  ;;  %vm17289_vm11 = vmmov %vm17270_vm1 }
 0x6ae   : > { %7703 = vrot.lane.b32.xlu0 %v2639_v19, %s10105_s7  ;;  %v5424_v5 = vsel %vm17267_vm12, %v12391_v45, %v12264_v32  ;;  %v4047_v41 = vsel %vm3852_vm4, %v17255_v51, %v17268_v23  ;;  %v4322_v9 = vsel %vm4129_vm5, %v17265_v49, %v17269_v12  ;;  %v5175_v47 = vadd.f32 %v5147_v34, %v4898_v24  ;;  %v17272_v51 = vld [vmem:[#allocation241_spill] sm:$0xff]  ;;  %v17285_v49 = vld [vmem:[#allocation347_spill] sm:$0xff]  ;;  %vm17291_vm10 = vmmov %vm17270_vm1 }
 0x6af   : > { %7787 = vrot.lane.b32.xlu1 %v5453_v57, %s10105_s7  ;;  %7789 = vrot.lane.b32.xlu2 %v5454_v37, %s10105_s7  ;;  %v5427_v19 = vsel %vm17270_vm1, %v12311_v46, %v12451_v1  ;;  %v4347_v7 = vadd.f32 %v4318_v39, %v4070_v35  ;;  %v4595_v36 = vsel %vm4406_vm6, %v17235_v0, %v17258_v6  ;;  %v17276_v56 = vld [vmem:[#allocation289_spill] sm:$0xff]  ;;  %vm17292_vm12 = vmmov %vm17270_vm1 }
 0x6b0   : > { %v5179_v8 = vadd.f32 %v5150_v55, %v4902_v25  ;;  %v5180_v32 = vadd.f32 %v17263_v61, %v4903_v30  ;;  %v4351_v45 = vadd.f32 %v4321_v33, %v4074_v40  ;;  %v4598_v2 = vsel %vm4406_vm6, %v17272_v51, %v17271_v28  ;;  %v17282_v24 = vld [vmem:[#allocation345_spill] sm:$0xff]  ;;  %v17287_v25 = vld [vmem:[#allocation204_spill] sm:$0xff]  ;;  %vm17298_vm1 = vmmov %vm17274_vm13 }
 0x6b1   : > { %v4599_v16 = vsel %vm4406_vm6, %v17271_v28, %v17273_v62  ;;  %v5452_v57 = vadd.f32 %v5424_v5, %v5175_v47  ;;  %v4352_v37 = vadd.f32 %v4322_v9, %v4075_v13  ;;  %v4872_v35 = vsel %vm17274_vm13, %v17239_v29, %v17261_v52  ;;  %v17283_v61 = vld [vmem:[#allocation337_spill] sm:$0xff]  ;;  %v17288_v30 = vld [vmem:[#allocation196_spill] sm:$0xff]  ;;  %vm17302_vm13 = vmmov %vm17298_vm1 }
 0x6b2   : > { %v5456_v22 = vadd.f32 %v5427_v19, %v5179_v8  ;;  %v5457_v0 = vadd.f32 %v12451_v1, %v5180_v32  ;;  %v4078_v6 = vadd.f32 %v4047_v41, %v13521_v14  ;;  %v4624_v40 = vadd.f32 %v4595_v36, %v4347_v7  ;;  %v17281_v1 = vld [vmem:[#allocation200_spill] sm:$0xff] }
 0x6b3   : > { %v4875_v50 = vsel %vm17277_vm14, %v17276_v56, %v17275_v31  ;;  %v4876_v34 = vsel %vm17279_vm15, %v17275_v31, %v17278_v63  ;;  %v4628_v13 = vadd.f32 %v4598_v2, %v4351_v45  ;;  %v4629_v39 = vadd.f32 %v4599_v16, %v4352_v37  ;;  %v17293_v8 = vld [vmem:[#allocation248_spill] sm:$0xff]  ;;  %vm17304_vm14 = vmmov %vm17298_vm1 }
 0x6b4   : > { %v5149_v29 = vsel %vm17280_vm0, %v17245_v15, %v17264_v4  ;;  %v4320_v14 = vsel %vm4129_vm5, %v17281_v1, %v17266_v44  ;;  %v4901_v52 = vadd.f32 %v4872_v35, %v4624_v40  ;;  %v5152_v55 = vsel %vm17284_vm9, %v17283_v61, %v17282_v24  ;;  %v17290_v44 = vld [vmem:[#allocation206_spill] sm:$0xff]  ;;  %v17294_v28 = vld [vmem:[#allocation252_spill] sm:$0xff]  ;;  %vm17306_vm15 = vmmov %vm17280_vm0 }
 0x6b5   : > { %v5153_v33 = vsel %vm17286_vm8, %v17282_v24, %v17285_v49  ;;  %v4323_v15 = vsel %vm4129_vm5, %v17288_v30, %v17287_v25  ;;  %v4905_v4 = vadd.f32 %v4875_v50, %v4628_v13  ;;  %v4906_v5 = vadd.f32 %v4876_v34, %v4629_v39  ;;  %v17295_v2 = vld [vmem:[#allocation244_spill] sm:$0xff]  ;;  %v17303_v39 = vld [vmem:[#allocation302_spill] sm:$0xff]  ;;  %vm17309_vm9 = vmmov %vm17280_vm0 }
 0x6b6   : > { %7785 = vrot.lane.b32.xlu0 %v5452_v57, %s10105_s7  ;;  %v5426_v41 = vsel %vm17289_vm11, %v12443_v43, %v12311_v46  ;;  %v4324_v9 = vsel %vm4129_vm5, %v17287_v25, %v17290_v44  ;;  %v5178_v47 = vadd.f32 %v5149_v29, %v4901_v52  ;;  %v5429_v19 = vsel %vm17291_vm10, %v12365_v58, %v12510_v17  ;;  %v17296_v57 = vld [vmem:[#allocation254_spill] sm:$0xff]  ;;  %v17300_v50 = vld [vmem:[#allocation300_spill] sm:$0xff]  ;;  %v17310_v30 = vld [vmem:[#allocation109_spill] sm:$0xff] }
 0x6b7   : > { %7793 = vrot.lane.b32.xlu1 %v5456_v22, %s10105_s7  ;;  %7795 = vrot.lane.b32.xlu2 %v5457_v0, %s10105_s7  ;;  %v5430_v7 = vsel %vm17292_vm12, %v12510_v17, %v12578_v48  ;;  %v4350_v36 = vadd.f32 %v4320_v14, %v13544_v53  ;;  %v4597_v32 = vsel %vm4406_vm6, %v17293_v8, %v17272_v51  ;;  %v17297_v17 = vld [vmem:[#allocation296_spill] sm:$0xff]  ;;  %v17299_v51 = vld [vmem:[#allocation46_spill] sm:$0xff]  ;;  %vm17311_vm8 = vmmov %vm17291_vm10 }
 0x6b8   : > { %v5182_v46 = vadd.f32 %v5152_v55, %v4905_v4  ;;  %v5183_v43 = vadd.f32 %v5153_v33, %v4906_v5  ;;  %v4354_v45 = vadd.f32 %v4323_v15, %v4077_v21  ;;  %v4600_v16 = vsel %vm4406_vm6, %v17295_v2, %v17294_v28  ;;  %v17301_v34 = vld [vmem:[#allocation292_spill] sm:$0xff]  ;;  %vm17312_vm11 = vmmov %vm17311_vm8  ;;  %v17317_v2 = vld [vmem:[#allocation247_spill] sm:$0xff] }
 0x6b9   : > { %v4601_v37 = vsel %vm4406_vm6, %v17294_v28, %v17296_v57  ;;  %v5455_v35 = vadd.f32 %v5426_v41, %v5178_v47  ;;  %v4355_v22 = vadd.f32 %v4324_v9, %v4078_v6  ;;  %v4874_v53 = vsel %vm17298_vm1, %v17297_v17, %v17276_v56  ;;  %v17305_v56 = vld [vmem:[#allocation344_spill] sm:$0xff]  ;;  %vm17313_vm10 = vmmov %vm17311_vm8 }
 0x6ba   : > { %v5459_v0 = vadd.f32 %v5429_v19, %v5182_v46  ;;  %v5460_v40 = vadd.f32 %v5430_v7, %v5183_v43  ;;  %v3522_v31 = vadd.f32 %v17179_v10, %v17299_v51  ;;  %v4627_v21 = vadd.f32 %v4597_v32, %v4350_v36  ;;  %v17307_v24 = vld [vmem:[#allocation348_spill] sm:$0xff]  ;;  %v17314_v19 = vld [vmem:[#allocation151_spill] sm:$0xff]  ;;  %vm17320_vm12 = vmmov %vm17298_vm1 }
 0x6bb   : > { %v4877_v13 = vsel %vm17302_vm13, %v17301_v34, %v17300_v50  ;;  %v4878_v29 = vsel %vm17304_vm14, %v17300_v50, %v17303_v39  ;;  %v4631_v6 = vadd.f32 %v4600_v16, %v4354_v45  ;;  %v4632_v1 = vadd.f32 %v4601_v37, %v4355_v22  ;;  %v17308_v55 = vld [vmem:[#allocation340_spill] sm:$0xff]  ;;  %v17316_v45 = vld [vmem:[#allocation49_spill] sm:$0xff]  ;;  %v17318_v22 = vld [vmem:[#allocation295_spill] sm:$0xff] }
 0x6bc   : > { %v5151_v14 = vsel %vm17306_vm15, %v17305_v56, %v17283_v61  ;;  %v3799_v10 = vadd.f32 %v17225_v59, %v3522_v31  ;;  %v4904_v52 = vadd.f32 %v4874_v53, %v4627_v21  ;;  %v5154_v33 = vsel %vm17280_vm0, %v17308_v55, %v17307_v24  ;;  %v17321_v50 = vld [vmem:[#allocation133_spill] sm:$0xff]  ;;  %vm17322_vm1 = vmmov %vm17280_vm0 }
 0x6bd   : > { %v5155_v25 = vsel %vm17309_vm9, %v17307_v24, %v11912_v27  ;;  %v3803_v15 = vadd.f32 %v17310_v30, %v13413_v3  ;;  %v4908_v4 = vadd.f32 %v4877_v13, %v4631_v6  ;;  %v4909_v61 = vadd.f32 %v4878_v29, %v4632_v1  ;;  %vm17323_vm13 = vmmov %vm17311_vm8 }
 0x6be   : > { %7791 = vrot.lane.b32.xlu0 %v5455_v35, %s10105_s7  ;;  %v5428_v5 = vsel %vm17311_vm8, %v12496_v26, %v12365_v58  ;;  %v4076_v59 = vadd.f32 %v17253_v60, %v3799_v10  ;;  %v5181_v41 = vadd.f32 %v5151_v14, %v4904_v52  ;;  %v5431_v9 = vsel %vm17312_vm11, %v12430_v11, %v12607_v18  ;;  %v17315_v11 = vld [vmem:[#allocation199_spill] sm:$0xff]  ;;  %vm17384_vm15 = vmmov %vm17320_vm12 }
 0x6bf   : > { %7799 = vrot.lane.b32.xlu1 %v5459_v0, %s10105_s7  ;;  %7801 = vrot.lane.b32.xlu2 %v5460_v40, %s10105_s7  ;;  %v5432_v47 = vsel %vm17313_vm10, %v12607_v18, %v12741_v20  ;;  %v3494_v3 = vsel %vm3298_vm2, %v17187_v42, %v17183_v38  ;;  %v4080_v7 = vadd.f32 %v17314_v19, %v3803_v15  ;;  %v13711_v18 = vpop.permute.xlu2 %6435  ;;  %v6432_v42 = vpop.permute.xlu0 %6431  ;;  %v17319_v40 = vld [vmem:[#allocation343_spill] sm:$0xff]  ;;  %vm6492_vm14 = vcmask 523264   ;;  %vm17386_vm0 = vmmov %vm17320_vm12 }
 0x6c0   : > { %v5185_v36 = vadd.f32 %v5154_v33, %v4908_v4  ;;  %v5186_v8 = vadd.f32 %v5155_v25, %v4909_v61  ;;  %v4353_v58 = vadd.f32 %v17269_v12, %v4076_v59  ;;  %v5458_v26 = vadd.f32 %v5428_v5, %v5181_v41  ;;  %vm17389_vm9 = vmmov %vm17386_vm0 }
 0x6c1   : > { %v3771_v60 = vsel %vm3575_vm3, %v17228_v54, %v17310_v30  ;;  %v4357_v32 = vadd.f32 %v17315_v11, %v4080_v7  ;;  %v3525_v28 = vadd.f32 %v3494_v3, %v17316_v45  ;;  %v4048_v12 = vsel %vm3852_vm4, %v17268_v23, %v17314_v19  ;;  %v6434_v54 = vpop.permute.xlu1 %6433  ;;  %v9447_v19 = vld [vmem:[%s16336_s6] sm:$0xff]  ;;  %vm17390_vm8 = vmmov %vm17386_vm0 }
 0x6c2   : > { %v5462_v46 = vadd.f32 %v5431_v9, %v5185_v36  ;;  %v5463_v43 = vadd.f32 %v5432_v47, %v5186_v8  ;;  %v4630_v38 = vadd.f32 %v17273_v62, %v4353_v58  ;;  %v4325_v62 = vsel %vm4129_vm5, %v17290_v44, %v17315_v11  ;;  %v9448_v8 = vld [vmem:[%s16336_s6 + $0x8] sm:$0xff]  ;;  %v9449_v58 = vld [vmem:[%s16336_s6 + $0x10] sm:$0xff]  ;;  %vm17392_vm11 = vmmov %vm17386_vm0 }
 0x6c3   : > { %v4634_v16 = vadd.f32 %v17317_v2, %v4357_v32  ;;  %v3802_v37 = vadd.f32 %v3771_v60, %v3525_v28  ;;  %v4602_v23 = vsel %vm4406_vm6, %v17296_v57, %v17317_v2  ;;  %v6464_v47 = vsel %vm4129_vm5, %v6432_v42, %v6434_v54  ;;  %v9451_v60 = vld [vmem:[%s16336_s6 + $0x20] sm:$0xff]  ;;  %v9452_v11 = vld [vmem:[%s16336_s6 + $0x28] sm:$0xff]  ;;  %v9453_v32 = vld [vmem:[%s16336_s6 + $0x30] sm:$0xff] }
 0x6c4   : > { %v4907_v35 = vadd.f32 %v17278_v63, %v4630_v38  ;;  %v4879_v63 = vsel %vm17320_vm12, %v17303_v39, %v17318_v22  ;;  %v6465_v3 = vsel %vm4129_vm5, %v6434_v54, %v13711_v18  ;;  %v9455_v42 = vld [vmem:[%s16336_s6 + $0x40] sm:$0xff]  ;;  %vm17393_vm10 = vmmov %vm17386_vm0 }
 0x6c5   : > { %v4911_v17 = vadd.f32 %v17318_v22, %v4634_v16  ;;  %v4079_v53 = vadd.f32 %v4048_v12, %v3802_v37  ;;  %vm17394_vm12 = vmmov %vm17386_vm0 }
 0x6c6   : > { %7797 = vrot.lane.b32.xlu0 %v5458_v26, %s10105_s7  ;;  %v5184_v0 = vadd.f32 %v17285_v49, %v4907_v35  ;;  %v5156_v49 = vsel %vm17322_vm1, %v11912_v27, %v17319_v40  ;;  %v9450_v26 = vld [vmem:[%s16336_s6 + $0x18] sm:$0xff]  ;;  %vm17395_vm1 = vmmov %vm17386_vm0 }
 0x6c7   : > { %7805 = vrot.lane.b32.xlu1 %v5462_v46, %s10105_s7  ;;  %7807 = vrot.lane.b32.xlu2 %v5463_v43, %s10105_s7  ;;  %v5188_v51 = vadd.f32 %v17319_v40, %v4911_v17  ;;  %v4356_v31 = vadd.f32 %v4325_v62, %v4079_v53  ;;  %v6442_v34 = vpop.permute.xlu2 %6441  ;;  %v6438_v6 = vpop.permute.xlu0 %6437  ;;  %v9454_v46 = vld [vmem:[%s16336_s6 + $0x38] sm:$0xff] }
 0x6c8   : > { %v5461_v21 = vadd.f32 %v12578_v48, %v5184_v0  ;;  %v5433_v48 = vsel %vm17323_vm13, %v12741_v20, %v17321_v50  ;;  %v6466_v36 = vsel %vm4129_vm5, %v13711_v18, %v6438_v6  ;;  %vm17396_vm13 = vmmov %vm17386_vm0 }
 0x6c9   : > { %v5465_v44 = vadd.f32 %v17321_v50, %v5188_v51  ;;  %v4633_v13 = vadd.f32 %v4602_v23, %v4356_v31  ;;  %v6440_v57 = vpop.permute.xlu1 %6439 }
 0x6ca   : > { %v6467_v59 = vsel %vm4129_vm5, %v6440_v57, %v6442_v34  ;;  %v9456_v57 = vld [vmem:[%s16336_s6 + $0x48] sm:$0xff] }
 0x6cb   : > { %v4910_v29 = vadd.f32 %v4879_v63, %v4633_v13 }
 0x6cd   : > { %v5187_v39 = vadd.f32 %v5156_v49, %v4910_v29 }
 0x6ce   : > { %7803 = vrot.lane.b32.xlu0 %v5461_v21, %s10105_s7 }
 0x6cf   : > { %7811 = vrot.lane.b32.xlu1 %v5465_v44, %s10105_s7  ;;  %v5464_v1 = vadd.f32 %v5433_v48, %v5187_v39  ;;  %v6448_v56 = vpop.permute.xlu2 %6447  ;;  %v6444_v14 = vpop.permute.xlu0 %6443 }
 0x6d0   : > { %v6468_v41 = vsel %vm4129_vm5, %v6442_v34, %v6444_v14 }
 0x6d1   : > { %v6446_v10 = vpop.permute.xlu1 %6445 }
 0x6d2   : > { %v6469_v7 = vsel %vm4129_vm5, %v6444_v14, %v6446_v10 }
 0x6d6   : > { %7809 = vrot.lane.b32.xlu0 %v5464_v1, %s10105_s7 }
 0x6d7   : > { %v6450_v52 = vpop.permute.xlu0 %6449  ;;  %v6454_v24 = vpop.permute.xlu2 %6453 }
 0x6d8   : > { %v6470_v20 = vsel %vm4129_vm5, %v6448_v56, %v6450_v52 }
 0x6d9   : > { %v6452_v55 = vpop.permute.xlu1 %6451 }
 0x6da   : > { %v6471_v4 = vsel %vm4129_vm5, %v6450_v52, %v6452_v55  ;;  %v6472_v9 = vsel %vm4129_vm5, %v6452_v55, %v6454_v24 }
 0x6df   : > { %v6460_v33 = vpop.permute.xlu2 %6459 }
 0x6e7   : > { %v7678_v45 = vpop.permute.xlu2 %7677 }
 0x6e8   : > { %v6456_v27 = vpop.permute.xlu0 %6455 }
 0x6e9   : > { %v6458_v25 = vpop.permute.xlu1 %6457 }
 0x6ea   : > { %v6473_v30 = vsel %vm4129_vm5, %v6456_v27, %v6458_v25  ;;  %v6474_v15 = vsel %vm4129_vm5, %v6458_v25, %v6460_v33 }
 0x6eb   : > { %6557 = vmatpush.bf16.msrb.mxu0 %v6473_v30  ;;  %6666 = vmatpush.bf16.msrb.mxu1 %v6474_v15 }
 0x6ef   : > { %6558 = vmatpush.bf16.msrb.mxu0 %v6470_v20  ;;  %6667 = vmatpush.bf16.msrb.mxu1 %v6471_v4  ;;  %v7684_v62 = vpop.permute.xlu2 %7683 }
 0x6f0   : > { %v6462_v61 = vpop.permute.xlu0 %6461 }
 0x6f1   : > { %6884 = vmatpush.bf16.msrb.mxu3 %v6462_v61  ;;  %v6475_v5 = vsel %vm4129_vm5, %v6460_v33, %v6462_v61  ;;  %v7676_v43 = vpop.permute.xlu1 %7675 }
 0x6f2   : > { %6775 = vmatpush.bf16.msrb.mxu2 %v6475_v5  ;;  %v7706_v38 = vsel %vm4129_vm5, %v7676_v43, %v7678_v45 }
 0x6f3   : > { %6559 = vmatpush.bf16.msrb.mxu0 %v6467_v59  ;;  %6668 = vmatpush.bf16.msrb.mxu1 %v6468_v41 }
 0x6f5   : > { %6885 = vmatpush.bf16.msrb.mxu3 %v6454_v24 }
 0x6f6   : > { %6776 = vmatpush.bf16.msrb.mxu2 %v6472_v9 }
 0x6f7   : > { %6560 = vmatpush.bf16.msrb.mxu0 %v6464_v47  ;;  %6669 = vmatpush.bf16.msrb.mxu1 %v6465_v3 }
 0x6f8   : > { %v7674_v18 = vpop.permute.xlu0 %7673 }
 0x6f9   : > { %6886 = vmatpush.bf16.msrb.mxu3 %v6446_v10  ;;  %v7705_v28 = vsel %vm4129_vm5, %v7674_v18, %v7676_v43  ;;  %v7682_v37 = vpop.permute.xlu1 %7681  ;;  %v9457_v43 = vld [vmem:[%s16336_s6 + $0x50] sm:$0xff] }
 0x6fa   : > { %9288 = vmatmul.msk.bf16.vlgmr.msrb.gmra.mxu0 %vm6492_vm14, %v9447_v19  ;;  %9308 = vmatmul.msk.bf16.vlgmr.msrb.gmra.mxu1 %vm6492_vm14, %v9447_v19  ;;  %v7708_v22 = vsel %vm4129_vm5, %v7682_v37, %v7684_v62  ;;  %v9458_v37 = vld [vmem:[%s16336_s6 + $0x58] sm:$0xff] }
 0x6fb   : > { %6777 = vmatpush.bf16.msrb.mxu2 %v6469_v7 }
 0x6fd   : > { %6887 = vmatpush.bf16.msrb.mxu3 %v6438_v6  ;;  %v7690_v6 = vpop.permute.xlu2 %7689 }
 0x6ff   : > { %6778 = vmatpush.bf16.msrb.mxu2 %v6466_v36 }
 0x700   : > { %9348 = vmatmul.msk.bf16.vlgmr.msrb.gmra.mxu3 %vm6492_vm14, %v9447_v19  ;;  %v7680_v35 = vpop.permute.xlu0 %7679 }
 0x701   : > { %v7707_v31 = vsel %vm4129_vm5, %v7678_v45, %v7680_v35  ;;  %v7688_v21 = vpop.permute.xlu1 %7687 }
 0x702   : > { %9328 = vmatmul.msk.bf16.vlgmr.msrb.gmra.mxu2 %vm6492_vm14, %v9447_v19 }
 0x705   : > { %v7696_v4 = vpop.permute.xlu2 %7695 }
 0x708   : > { %v7686_v63 = vpop.permute.xlu0 %7685 }
 0x709   : > { %v7709_v48 = vsel %vm4129_vm5, %v7684_v62, %v7686_v63  ;;  %v7710_v56 = vsel %vm4129_vm5, %v7686_v63, %v7688_v21  ;;  %v7694_v55 = vpop.permute.xlu1 %7693 }
 0x70a   : > { %9289 = vmatmul.msk.bf16.gmra.mxu0 %vm6492_vm14, %v9448_v8  ;;  %9309 = vmatmul.msk.bf16.gmra.mxu1 %vm6492_vm14, %v9448_v8  ;;  %v7713_v59 = vsel %vm4129_vm5, %v7694_v55, %v7696_v4 }
 0x710   : > { %9349 = vmatmul.msk.bf16.gmra.mxu3 %vm6492_vm14, %v9448_v8  ;;  %v7692_v27 = vpop.permute.xlu0 %7691 }
 0x711   : > { %v7711_v25 = vsel %vm4129_vm5, %v7690_v6, %v7692_v27  ;;  %v7712_v20 = vsel %vm4129_vm5, %v7692_v27, %v7694_v55 }
 0x712   : > { %9329 = vmatmul.msk.bf16.gmra.mxu2 %vm6492_vm14, %v9448_v8 }
 0x71a   : > { %9290 = vmatmul.msk.bf16.gmra.mxu0 %vm6492_vm14, %v9449_v58  ;;  %9310 = vmatmul.msk.bf16.gmra.mxu1 %vm6492_vm14, %v9449_v58 }
 0x720   : > { %9350 = vmatmul.msk.bf16.gmra.mxu3 %vm6492_vm14, %v9449_v58 }
 0x722   : > { %9330 = vmatmul.msk.bf16.gmra.mxu2 %vm6492_vm14, %v9449_v58 }
 0x72a   : > { %9291 = vmatmul.msk.bf16.gmra.mxu0 %vm6492_vm14, %v9450_v26  ;;  %9311 = vmatmul.msk.bf16.gmra.mxu1 %vm6492_vm14, %v9450_v26 }
 0x730   : > { %9351 = vmatmul.msk.bf16.gmra.mxu3 %vm6492_vm14, %v9450_v26 }
 0x732   : > { %9331 = vmatmul.msk.bf16.gmra.mxu2 %vm6492_vm14, %v9450_v26 }
 0x73a   : > { %9292 = vmatmul.msk.bf16.gmra.mxu0 %vm6492_vm14, %v9451_v60  ;;  %9312 = vmatmul.msk.bf16.gmra.mxu1 %vm6492_vm14, %v9451_v60 }
 0x740   : > { %9352 = vmatmul.msk.bf16.gmra.mxu3 %vm6492_vm14, %v9451_v60 }
 0x742   : > { %9332 = vmatmul.msk.bf16.gmra.mxu2 %vm6492_vm14, %v9451_v60 }
 0x74a   : > { %9293 = vmatmul.msk.bf16.gmra.mxu0 %vm6492_vm14, %v9452_v11  ;;  %9313 = vmatmul.msk.bf16.gmra.mxu1 %vm6492_vm14, %v9452_v11 }
 0x750   : > { %9353 = vmatmul.msk.bf16.gmra.mxu3 %vm6492_vm14, %v9452_v11 }
 0x752   : > { %9333 = vmatmul.msk.bf16.gmra.mxu2 %vm6492_vm14, %v9452_v11 }
 0x75a   : > { %9294 = vmatmul.msk.bf16.gmra.mxu0 %vm6492_vm14, %v9453_v32  ;;  %9314 = vmatmul.msk.bf16.gmra.mxu1 %vm6492_vm14, %v9453_v32 }
 0x760   : > { %9354 = vmatmul.msk.bf16.gmra.mxu3 %vm6492_vm14, %v9453_v32 }
 0x762   : > { %9334 = vmatmul.msk.bf16.gmra.mxu2 %vm6492_vm14, %v9453_v32 }
 0x76a   : > { %9295 = vmatmul.msk.bf16.gmra.mxu0 %vm6492_vm14, %v9454_v46  ;;  %9315 = vmatmul.msk.bf16.gmra.mxu1 %vm6492_vm14, %v9454_v46 }
 0x770   : > { %9355 = vmatmul.msk.bf16.gmra.mxu3 %vm6492_vm14, %v9454_v46 }
 0x772   : > { %9335 = vmatmul.msk.bf16.gmra.mxu2 %vm6492_vm14, %v9454_v46 }
 0x777   : > { %v6562_v12 = vpop.f32.mrf.mxu0  ;;  %v6671_v2 = vpop.f32.mrf.mxu1 }
 0x778   : > { %v7733_v16 = vadd.f32 %v7705_v28, %v6562_v12  ;;  %v7734_v54 = vadd.f32 %v7706_v38, %v6671_v2 }
 0x77a   : > { %9721 = vtanh.f32 %v7733_v16  ;;  %9296 = vmatmul.msk.bf16.gmra.mxu0 %vm6492_vm14, %v9455_v42  ;;  %9316 = vmatmul.msk.bf16.gmra.mxu1 %vm6492_vm14, %v9455_v42 }
 0x77b   : > { %9723 = vtanh.f32 %v7734_v54 }
 0x77f   : > { %v6564_v17 = vpop.f32.mrf.mxu0  ;;  %v6673_v53 = vpop.f32.mrf.mxu1 }
 0x780   : > { %v9722_v0 = vpop.eup %9721  ;;  %v7737_v23 = vadd.f32 %v7708_v22, %v6564_v17  ;;  %9356 = vmatmul.msk.bf16.gmra.mxu3 %vm6492_vm14, %v9455_v42  ;;  %v7738_v39 = vadd.f32 %v7709_v48, %v6673_v53  ;;  %v13893_v17 = vpop.permute.xlu2 %7701 }
 0x781   : > { %v9724_v40 = vpop.eup %9723  ;;  %7909 = vrot.lane.b32.xlu2 %v9722_v0, %s10110_s24  ;;  %17330 = vst [vmem:[#allocation220_spill] sm:$0xff] %v13893_v17 }
 0x782   : > { %9725 = vtanh.f32 %v7737_v23  ;;  %7911 = vrot.lane.b32.xlu0 %v9724_v40, %s10110_s24  ;;  %9336 = vmatmul.msk.bf16.gmra.mxu2 %vm6492_vm14, %v9455_v42 }
 0x783   : > { %v6889_v51 = vpop.f32.mrf.mxu3 }
 0x784   : > { %v7736_v50 = vadd.f32 %v7680_v35, %v6889_v51 }
 0x785   : > { %v6780_v44 = vpop.f32.mrf.mxu2 }
 0x786   : > { %9727 = vtanh.f32 %v7736_v50  ;;  %v7735_v34 = vadd.f32 %v7707_v31, %v6780_v44  ;;  %v13904_v50 = vpop.permute.xlu1 %7699 }
 0x787   : > { %v6567_v13 = vpop.f32.mrf.mxu0  ;;  %v6676_v49 = vpop.f32.mrf.mxu1  ;;  %17332 = vst [vmem:[#allocation319_spill] sm:$0xff] %v13904_v50 }
 0x788   : > { %v9726_v29 = vpop.eup %9725  ;;  %9729 = vtanh.f32 %v7735_v34  ;;  %v7741_v61 = vadd.f32 %v7711_v25, %v6567_v13  ;;  %v7742_v5 = vadd.f32 %v7712_v20, %v6676_v49  ;;  %v13901_v31 = vpop.permute.xlu2 %7783  ;;  %v9459_v34 = vld [vmem:[%s16336_s6 + $0x60] sm:$0xff]  ;;  %v9460_v25 = vld [vmem:[%s16336_s6 + $0x68] sm:$0xff] }
 0x789   : > { %17331 = vst [vmem:[#allocation189_spill] sm:$0xff] %v13901_v31 }
 0x78a   : > { %7917 = vrot.lane.b32.xlu0 %v9726_v29, %s10110_s24  ;;  %9297 = vmatmul.msk.bf16.gmra.mxu0 %vm6492_vm14, %v9456_v57  ;;  %v13918_v29 = vpop.permute.xlu0 %7697 }
 0x78b   : > { %v6891_v1 = vpop.f32.mrf.mxu3  ;;  %9317 = vmatmul.msk.bf16.gmra.mxu1 %vm6492_vm14, %v9456_v57  ;;  %17334 = vst [vmem:[#allocation268_spill] sm:$0xff] %v13918_v29 }
 0x78c   : > { %v9728_v14 = vpop.eup %9727  ;;  %v7740_v10 = vadd.f32 %v7688_v21, %v6891_v1 }
 0x78d   : > { %v6782_v52 = vpop.f32.mrf.mxu2  ;;  %7915 = vrot.lane.b32.xlu2 %v9728_v14, %s10110_s24 }
 0x78e   : > { %v9730_v24 = vpop.eup %9729  ;;  %9731 = vtanh.f32 %v7740_v10  ;;  %v7739_v33 = vadd.f32 %v7710_v56, %v6782_v52  ;;  %v13920_v48 = vpop.permute.xlu1 %7781 }
 0x78f   : > { %9733 = vtanh.f32 %v7738_v39  ;;  %7913 = vrot.lane.b32.xlu1 %v9730_v24, %s10110_s24  ;;  %v13840_v30 = vpop.f32.mrf.mxu0  ;;  %v13842_v15 = vpop.f32.mrf.mxu1  ;;  %17335 = vst [vmem:[#allocation191_spill] sm:$0xff] %v13920_v48 }
 0x790   : > { %17324 = vst [vmem:[#allocation223_spill] sm:$0xff] %v13840_v30  ;;  %9735 = vtanh.f32 %v7739_v33  ;;  %9357 = vmatmul.msk.bf16.gmra.mxu3 %vm6492_vm14, %v9456_v57  ;;  %v13911_v13 = vpop.permute.xlu2 %7789 }
 0x791   : > { %17325 = vst [vmem:[#allocation186_spill] sm:$0xff] %v13842_v15  ;;  %9737 = vtanh.f32 %v7741_v61 }
 0x792   : > { %9337 = vmatmul.msk.bf16.gmra.mxu2 %vm6492_vm14, %v9456_v57  ;;  %9739 = vtanh.f32 %v7742_v5  ;;  %17333 = vst [vmem:[#allocation276_spill] sm:$0xff] %v13911_v13  ;;  %v13928_v10 = vpop.permute.xlu0 %7703 }
 0x793   : > { %v6894_v41 = vpop.f32.mrf.mxu3  ;;  %17337 = vst [vmem:[#allocation316_spill] sm:$0xff] %v13928_v10 }
 0x794   : > { %v9732_v9 = vpop.eup %9731  ;;  %v7744_v58 = vadd.f32 %v7696_v4, %v6894_v41 }
 0x795   : > { %v9734_v47 = vpop.eup %9733  ;;  %v6785_v3 = vpop.f32.mrf.mxu2  ;;  %7923 = vrot.lane.b32.xlu0 %v9732_v9, %s10110_s24 }
 0x796   : > { %v9736_v19 = vpop.eup %9735  ;;  %v7743_v7 = vadd.f32 %v7713_v59, %v6785_v3  ;;  %v13931_v52 = vpop.permute.xlu1 %7787 }
 0x797   : > { %7919 = vrot.lane.b32.xlu1 %v9734_v47, %s10110_s24  ;;  %v13850_v36 = vpop.f32.mrf.mxu0  ;;  %v13852_v8 = vpop.f32.mrf.mxu1  ;;  %7921 = vrot.lane.b32.xlu2 %v9736_v19, %s10110_s24  ;;  %17338 = vst [vmem:[#allocation230_spill] sm:$0xff] %v13931_v52 }
 0x798   : > { %17326 = vst [vmem:[#allocation271_spill] sm:$0xff] %v13850_v36  ;;  %9741 = vtanh.f32 %v7743_v7  ;;  %v9738_v60 = vpop.eup %9737  ;;  %v13924_v56 = vpop.permute.xlu2 %7795 }
 0x799   : > { %17327 = vst [vmem:[#allocation181_spill] sm:$0xff] %v13852_v8  ;;  %v9740_v11 = vpop.eup %9739  ;;  %9743 = vtanh.f32 %v7744_v58 }
 0x79a   : > { %9298 = vmatmul.msk.bf16.gmra.mxu0 %vm6492_vm14, %v9457_v43  ;;  %17336 = vst [vmem:[#allocation324_spill] sm:$0xff] %v13924_v56  ;;  %v13941_v20 = vpop.permute.xlu0 %7785 }
 0x79b   : > { %v13855_v26 = vpop.f32.mrf.mxu3  ;;  %9318 = vmatmul.msk.bf16.gmra.mxu1 %vm6492_vm14, %v9457_v43  ;;  %17340 = vst [vmem:[#allocation231_spill] sm:$0xff] %v13941_v20 }
 0x79c   : > { %17328 = vst [vmem:[#allocation188_spill] sm:$0xff] %v13855_v26 }
 0x79d   : > { %v13857_v32 = vpop.f32.mrf.mxu2 }
 0x79e   : > { %17329 = vst [vmem:[#allocation228_spill] sm:$0xff] %v13857_v32  ;;  %v9742_v46 = vpop.eup %9741  ;;  %v13945_v61 = vpop.permute.xlu1 %7793 }
 0x79f   : > { %7929 = vrot.lane.b32.xlu0 %v9742_v46, %s10110_s24  ;;  %7925 = vrot.lane.b32.xlu1 %v9738_v60, %s10110_s24  ;;  %v13864_v18 = vpop.f32.mrf.mxu0  ;;  %v13866_v45 = vpop.f32.mrf.mxu1  ;;  %17341 = vst [vmem:[#allocation278_spill] sm:$0xff] %v13945_v61 }
 0x7a0   : > { %7927 = vrot.lane.b32.xlu2 %v9740_v11, %s10110_s24  ;;  %9358 = vmatmul.msk.bf16.gmra.mxu3 %vm6492_vm14, %v9457_v43  ;;  %v9744_v38 = vpop.eup %9743  ;;  %v13933_v33 = vpop.permute.xlu2 %7801 }
 0x7a1   : > { %17339 = vst [vmem:[#allocation233_spill] sm:$0xff] %v13933_v33 }
 0x7a2   : > { %9338 = vmatmul.msk.bf16.gmra.mxu2 %vm6492_vm14, %v9457_v43  ;;  %v13954_v3 = vpop.permute.xlu0 %7791 }
 0x7a3   : > { %v6899_v28 = vpop.f32.mrf.mxu3  ;;  %17343 = vst [vmem:[#allocation234_spill] sm:$0xff] %v13954_v3 }
 0x7a4   : > { %v9461_v28 = vld [vmem:[%s16336_s6 + $0x70] sm:$0xff] }
 0x7a5   : > { %v13873_v42 = vpop.f32.mrf.mxu2 }
 0x7a6   : > { %v13956_v7 = vpop.permute.xlu1 %7799 }
 0x7a7   : > { %7931 = vrot.lane.b32.xlu1 %v9744_v38, %s10110_s24  ;;  %v13876_v12 = vpop.f32.mrf.mxu0  ;;  %v13878_v2 = vpop.f32.mrf.mxu1  ;;  %17344 = vst [vmem:[#allocation326_spill] sm:$0xff] %v13956_v7 }
 0x7a8   : > { %v13949_v41 = vpop.permute.xlu2 %7807 }
 0x7a9   : > { %17342 = vst [vmem:[#allocation226_spill] sm:$0xff] %v13949_v41 }
 0x7aa   : > { %9299 = vmatmul.msk.bf16.gmra.mxu0 %vm6492_vm14, %v9458_v37  ;;  %v13963_v43 = vpop.permute.xlu0 %7797 }
 0x7ab   : > { %v6900_v16 = vpop.f32.mrf.mxu3  ;;  %9319 = vmatmul.msk.bf16.gmra.mxu1 %vm6492_vm14, %v9458_v37  ;;  %17346 = vst [vmem:[#allocation236_spill] sm:$0xff] %v13963_v43 }
 0x7ad   : > { %v13880_v54 = vpop.f32.mrf.mxu2 }
 0x7ae   : > { %v13968_v38 = vpop.permute.xlu1 %7805 }
 0x7af   : > { %v13885_v35 = vpop.f32.mrf.mxu0  ;;  %v13887_v62 = vpop.f32.mrf.mxu1  ;;  %17347 = vst [vmem:[#allocation282_spill] sm:$0xff] %v13968_v38 }
 0x7b0   : > { %9359 = vmatmul.msk.bf16.gmra.mxu3 %vm6492_vm14, %v9458_v37 }
 0x7b2   : > { %9339 = vmatmul.msk.bf16.gmra.mxu2 %vm6492_vm14, %v9458_v37 }
 0x7b3   : > { %v6902_v22 = vpop.f32.mrf.mxu3 }
 0x7b5   : > { %v13895_v53 = vpop.f32.mrf.mxu2 }
 0x7b7   : > { %v6582_v0 = vpop.f32.mrf.mxu0  ;;  %v6691_v23 = vpop.f32.mrf.mxu1 }
 0x7b8   : > { %7003 = vrot.lane.b32.xlu2 %v6691_v23, %s10102_s21  ;;  %7001 = vrot.lane.b32.xlu1 %v6582_v0, %s10102_s21  ;;  %v13981_v23 = vpop.permute.xlu0 %7803 }
 0x7b9   : > { %17349 = vst [vmem:[#allocation330_spill] sm:$0xff] %v13981_v23 }
 0x7ba   : > { %9300 = vmatmul.msk.bf16.gmra.mxu0 %vm6492_vm14, %v9459_v34 }
 0x7bb   : > { %v6903_v40 = vpop.f32.mrf.mxu3  ;;  %9320 = vmatmul.msk.bf16.gmra.mxu1 %vm6492_vm14, %v9459_v34 }
 0x7bc   : > { %v13984_v40 = vpop.permute.xlu1 %7811 }
 0x7bd   : > { %v13899_v51 = vpop.f32.mrf.mxu2  ;;  %17350 = vst [vmem:[#allocation239_spill] sm:$0xff] %v13984_v40 }
 0x7bf   : > { %v6584_v21 = vpop.f32.mrf.mxu0  ;;  %v6693_v49 = vpop.f32.mrf.mxu1 }
 0x7c0   : > { %7009 = vrot.lane.b32.xlu2 %v6584_v21, %s10102_s21  ;;  %9360 = vmatmul.msk.bf16.gmra.mxu3 %vm6492_vm14, %v9459_v34 }
 0x7c2   : > { %9340 = vmatmul.msk.bf16.gmra.mxu2 %vm6492_vm14, %v9459_v34 }
 0x7c3   : > { %v6905_v63 = vpop.f32.mrf.mxu3 }
 0x7c4   : > { %7007 = vrot.lane.b32.xlu1 %v6905_v63, %s10102_s21 }
 0x7c5   : > { %v6800_v44 = vpop.f32.mrf.mxu2 }
 0x7c6   : > { %7005 = vrot.lane.b32.xlu0 %v6800_v44, %s10102_s21 }
 0x7c7   : > { %v6587_v39 = vpop.f32.mrf.mxu0  ;;  %v6696_v1 = vpop.f32.mrf.mxu1 }
 0x7ca   : > { %9301 = vmatmul.msk.bf16.gmra.mxu0 %vm6492_vm14, %v9460_v25 }
 0x7cb   : > { %v6907_v57 = vpop.f32.mrf.mxu3  ;;  %9321 = vmatmul.msk.bf16.gmra.mxu1 %vm6492_vm14, %v9460_v25 }
 0x7cc   : > { %7015 = vrot.lane.b32.xlu2 %v6907_v57, %s10102_s21 }
 0x7cd   : > { %v6802_v6 = vpop.f32.mrf.mxu2 }
 0x7ce   : > { %7011 = vrot.lane.b32.xlu0 %v6693_v49, %s10102_s21  ;;  %7013 = vrot.lane.b32.xlu1 %v6802_v6, %s10102_s21  ;;  %v9462_v49 = vld [vmem:[%s16336_s6 + $0x78] sm:$0xff] }
 0x7cf   : > { %v6589_v55 = vpop.f32.mrf.mxu0  ;;  %v6698_v27 = vpop.f32.mrf.mxu1 }
 0x7d0   : > { %9361 = vmatmul.msk.bf16.gmra.mxu3 %vm6492_vm14, %v9460_v25 }
 0x7d2   : > { %9341 = vmatmul.msk.bf16.gmra.mxu2 %vm6492_vm14, %v9460_v25 }
 0x7d3   : > { %v6910_v24 = vpop.f32.mrf.mxu3 }
 0x7d5   : > { %v6805_v14 = vpop.f32.mrf.mxu2 }
 0x7d6   : > { %7019 = vrot.lane.b32.xlu1 %v6696_v1, %s10102_s21  ;;  %7021 = vrot.lane.b32.xlu2 %v6805_v14, %s10102_s21 }
 0x7d7   : > { %7017 = vrot.lane.b32.xlu0 %v6587_v39, %s10102_s21  ;;  %v6592_v5 = vpop.f32.mrf.mxu0  ;;  %v6701_v9 = vpop.f32.mrf.mxu1 }
 0x7d8   : > { %v13998_v39 = vpop.permute.xlu0 %7809 }
 0x7d9   : > { %17353 = vst [vmem:[#allocation274_spill] sm:$0xff] %v13998_v39 }
 0x7da   : > { %9302 = vmatmul.msk.bf16.gmra.mxu0 %vm6492_vm14, %v9461_v28 }
 0x7db   : > { %v6912_v59 = vpop.f32.mrf.mxu3  ;;  %v13958_v58 = vpop.permute.xlu2 %7909  ;;  %9322 = vmatmul.msk.bf16.gmra.mxu1 %vm6492_vm14, %v9461_v28 }
 0x7dc   : > { %17345 = vst [vmem:[#allocation229_spill] sm:$0xff] %v13958_v58 }
 0x7dd   : > { %v6807_v4 = vpop.f32.mrf.mxu2 }
 0x7de   : > { %7027 = vrot.lane.b32.xlu2 %v6698_v27, %s10102_s21  ;;  %7025 = vrot.lane.b32.xlu1 %v6589_v55, %s10102_s21 }
 0x7df   : > { %7023 = vrot.lane.b32.xlu0 %v6910_v24, %s10102_s21  ;;  %v6594_v60 = vpop.f32.mrf.mxu0  ;;  %v6703_v11 = vpop.f32.mrf.mxu1 }
 0x7e0   : > { %9362 = vmatmul.msk.bf16.gmra.mxu3 %vm6492_vm14, %v9461_v28 }
 0x7e2   : > { %9342 = vmatmul.msk.bf16.gmra.mxu2 %vm6492_vm14, %v9461_v28  ;;  %v9463_v28 = vld [vmem:[%s16336_s6 + $0x80] sm:$0xff] }
 0x7e3   : > { %v6915_v19 = vpop.f32.mrf.mxu3 }
 0x7e5   : > { %v6810_v47 = vpop.f32.mrf.mxu2 }
 0x7e6   : > { %7031 = vrot.lane.b32.xlu1 %v6912_v59, %s10102_s21  ;;  %7085 = vrot.lane.b32.xlu2 %v6592_v5, %s10103_s23 }
 0x7e7   : > { %7029 = vrot.lane.b32.xlu0 %v6807_v4, %s10102_s21  ;;  %v13972_v16 = vpop.permute.xlu2 %7915  ;;  %v6597_v37 = vpop.f32.mrf.mxu0  ;;  %s10029_s21 = scalar_lea.hbm %s17769_s10, 192 }
 0x7e8   : > { %17348 = vst [vmem:[#allocation237_spill] sm:$0xff] %v13972_v16  ;;  %v6706_v0 = vpop.f32.mrf.mxu1 }
 0x7ea   : > { %9303 = vmatmul.msk.bf16.gmra.mxu0 %vm6492_vm14, %v9462_v49 }
 0x7eb   : > { %v6917_v22 = vpop.f32.mrf.mxu3  ;;  %9323 = vmatmul.msk.bf16.gmra.mxu1 %vm6492_vm14, %v9462_v49 }
 0x7ed   : > { %v6812_v46 = vpop.f32.mrf.mxu2 }
 0x7ee   : > { %7089 = vrot.lane.b32.xlu1 %v6810_v47, %s10103_s23  ;;  %7091 = vrot.lane.b32.xlu2 %v6915_v19, %s10103_s23 }
 0x7ef   : > { %7087 = vrot.lane.b32.xlu0 %v6701_v9, %s10103_s23  ;;  %v6599_v34 = vpop.f32.mrf.mxu0 }
 0x7f0   : > { %v6708_v6 = vpop.f32.mrf.mxu1  ;;  %9363 = vmatmul.msk.bf16.gmra.mxu3 %vm6492_vm14, %v9462_v49 }
 0x7f1   : > { %v13986_v21 = vpop.permute.xlu2 %7921 }
 0x7f2   : > { %17351 = vst [vmem:[#allocation281_spill] sm:$0xff] %v13986_v21  ;;  %9343 = vmatmul.msk.bf16.gmra.mxu2 %vm6492_vm14, %v9462_v49 }
 0x7f3   : > { %v6920_v44 = vpop.f32.mrf.mxu3 }
 0x7f4   : > { %v14011_v5 = vpop.permute.xlu0 %7911 }
 0x7f5   : > { %v6815_v63 = vpop.f32.mrf.mxu2  ;;  %17356 = vst [vmem:[#allocation285_spill] sm:$0xff] %v14011_v5 }
 0x7f6   : > { %7095 = vrot.lane.b32.xlu1 %v6703_v11, %s10103_s23  ;;  %7097 = vrot.lane.b32.xlu2 %v6812_v46, %s10103_s23 }
 0x7f7   : > { %7093 = vrot.lane.b32.xlu0 %v6594_v60, %s10103_s23  ;;  %v6602_v55 = vpop.f32.mrf.mxu0 }
 0x7f8   : > { %v6711_v27 = vpop.f32.mrf.mxu1 }
 0x7fa   : > { %v14000_v1 = vpop.permute.xlu2 %7927  ;;  %9304 = vmatmul.msk.bf16.gmra.mxu0 %vm6492_vm14, %v9463_v28 }
 0x7fb   : > { %17354 = vst [vmem:[#allocation277_spill] sm:$0xff] %v14000_v1  ;;  %v6922_v24 = vpop.f32.mrf.mxu3  ;;  %9324 = vmatmul.msk.bf16.gmra.mxu1 %vm6492_vm14, %v9463_v28 }
 0x7fc   : > { %v14020_v46 = vpop.permute.xlu0 %7917 }
 0x7fd   : > { %v6817_v14 = vpop.f32.mrf.mxu2  ;;  %17358 = vst [vmem:[#allocation327_spill] sm:$0xff] %v14020_v46 }
 0x7fe   : > { %7103 = vrot.lane.b32.xlu2 %v6706_v0, %s10103_s23  ;;  %7101 = vrot.lane.b32.xlu1 %v6597_v37, %s10103_s23 }
 0x7ff   : > { %7099 = vrot.lane.b32.xlu0 %v6917_v22, %s10103_s23  ;;  %v6604_v47 = vpop.f32.mrf.mxu0 }
 0x800   : > { %v6713_v19 = vpop.f32.mrf.mxu1  ;;  %9364 = vmatmul.msk.bf16.gmra.mxu3 %vm6492_vm14, %v9463_v28 }
 0x801   : > { %v13994_v57 = vpop.permute.xlu1 %7913 }
 0x802   : > { %17352 = vst [vmem:[#allocation279_spill] sm:$0xff] %v13994_v57  ;;  %9344 = vmatmul.msk.bf16.gmra.mxu2 %vm6492_vm14, %v9463_v28 }
 0x803   : > { %v6925_v9 = vpop.f32.mrf.mxu3 }
 0x805   : > { %v6820_v59 = vpop.f32.mrf.mxu2 }
 0x806   : > { %7107 = vrot.lane.b32.xlu1 %v6920_v44, %s10103_s23  ;;  %7109 = vrot.lane.b32.xlu2 %v6599_v34, %s10103_s23 }
 0x807   : > { %7105 = vrot.lane.b32.xlu0 %v6815_v63, %s10103_s23  ;;  %v6607_v22 = vpop.f32.mrf.mxu0  ;;  %v14032_v63 = vpop.permute.xlu0 %7923 }
 0x808   : > { %17359 = vst [vmem:[#allocation287_spill] sm:$0xff] %v14032_v63  ;;  %v6716_v49 = vpop.f32.mrf.mxu1  ;;  %v9465_v63 = vld [vmem:[%s16336_s6 + $0x90] sm:$0xff] }
 0x809   : > { %v14007_v25 = vpop.permute.xlu1 %7919 }
 0x80a   : > { %17355 = vst [vmem:[#allocation284_spill] sm:$0xff] %v14007_v25 }
 0x80b   : > { %v6927_v0 = vpop.f32.mrf.mxu3 }
 0x80d   : > { %v6822_v37 = vpop.f32.mrf.mxu2 }
 0x80e   : > { %7113 = vrot.lane.b32.xlu1 %v6817_v14, %s10103_s23  ;;  %7115 = vrot.lane.b32.xlu2 %v6922_v24, %s10103_s23 }
 0x80f   : > { %7111 = vrot.lane.b32.xlu0 %v6708_v6, %s10103_s23 }
 0x811   : > { %v14016_v60 = vpop.permute.xlu1 %7925 }
 0x812   : > { %v14009_v4 = vpop.permute.xlu2 %7003  ;;  %17357 = vst [vmem:[#allocation329_spill] sm:$0xff] %v14016_v60 }
 0x813   : > { %v6930_v14 = vpop.f32.mrf.mxu3 }
 0x815   : > { %v6825_v6 = vpop.f32.mrf.mxu2 }
 0x816   : > { %7171 = vrot.lane.b32.xlu1 %v6711_v27, %s10104_s26  ;;  %7173 = vrot.lane.b32.xlu2 %v6820_v59, %s10104_s26  ;;  %v6609_v59 = vpop.f32.mrf.mxu0 }
 0x817   : > { %7169 = vrot.lane.b32.xlu0 %v6602_v55, %s10104_s26  ;;  %v14046_v55 = vpop.permute.xlu0 %7929 }
 0x818   : > { %17361 = vst [vmem:[#allocation325_spill] sm:$0xff] %v14046_v55 }
 0x819   : > { %v14034_v44 = vpop.permute.xlu1 %7931 }
 0x81a   : > { %v14018_v11 = vpop.permute.xlu2 %7009  ;;  %17360 = vst [vmem:[#allocation322_spill] sm:$0xff] %v14034_v44 }
 0x81e   : > { %7179 = vrot.lane.b32.xlu2 %v6713_v19, %s10104_s26  ;;  %7177 = vrot.lane.b32.xlu1 %v6604_v47, %s10104_s26  ;;  %v6827_v47 = vpop.f32.mrf.mxu2  ;;  %v9464_v19 = vld [vmem:[%s16336_s6 + $0x88] sm:$0xff] }
 0x81f   : > { %7175 = vrot.lane.b32.xlu0 %v6925_v9, %s10104_s26  ;;  %v6718_v9 = vpop.f32.mrf.mxu1  ;;  %9345 = vmatmul.msk.bf16.gmra.mxu2 %vm6492_vm14, %v9464_v19 }
 0x820   : > { %9325 = vmatmul.msk.bf16.gmra.mxu1 %vm6492_vm14, %v9464_v19  ;;  %9305 = vmatmul.msk.bf16.gmra.mxu0 %vm6492_vm14, %v9464_v19 }
 0x821   : > { %9365 = vmatmul.msk.bf16.gmra.mxu3 %vm6492_vm14, %v9464_v19 }
 0x826   : > { %7183 = vrot.lane.b32.xlu1 %v6927_v0, %s10104_s26  ;;  %7185 = vrot.lane.b32.xlu2 %v6607_v22, %s10104_s26  ;;  %v14038_v34 = vpop.permute.xlu2 %7015  ;;  %v6830_v44 = vpop.f32.mrf.mxu2 }
 0x827   : > { %7181 = vrot.lane.b32.xlu0 %v6822_v37, %s10104_s26  ;;  %v6932_v37 = vpop.f32.mrf.mxu3 }
 0x82a   : > { %v14043_v24 = vpop.permute.xlu1 %7001 }
 0x82e   : > { %7189 = vrot.lane.b32.xlu1 %v6825_v6, %s10104_s26  ;;  %7191 = vrot.lane.b32.xlu2 %v6930_v14, %s10104_s26  ;;  %v6721_v6 = vpop.f32.mrf.mxu1  ;;  %v6832_v1 = vpop.f32.mrf.mxu2 }
 0x82f   : > { %7187 = vrot.lane.b32.xlu0 %v6716_v49, %s10104_s26  ;;  %v6612_v49 = vpop.f32.mrf.mxu0  ;;  %v6935_v14 = vpop.f32.mrf.mxu3  ;;  %9346 = vmatmul.msk.bf16.gmra.mxu2 %vm6492_vm14, %v9465_v63 }
 0x830   : > { %v14048_v27 = vpop.permute.xlu2 %7021  ;;  %9306 = vmatmul.msk.bf16.gmra.mxu0 %vm6492_vm14, %v9465_v63  ;;  %9326 = vmatmul.msk.bf16.gmra.mxu1 %vm6492_vm14, %v9465_v63 }
 0x831   : > { %9366 = vmatmul.msk.bf16.gmra.mxu3 %vm6492_vm14, %v9465_v63 }
 0x836   : > { %7195 = vrot.lane.b32.xlu1 %v6718_v9, %s10104_s26  ;;  %7197 = vrot.lane.b32.xlu2 %v6827_v47, %s10104_s26  ;;  %v14057_v28 = vpop.permute.xlu1 %7007  ;;  %v6835_v25 = vpop.f32.mrf.mxu2 }
 0x837   : > { %7193 = vrot.lane.b32.xlu0 %v6609_v59, %s10104_s26  ;;  %v6614_v55 = vpop.f32.mrf.mxu0  ;;  %v6937_v60 = vpop.f32.mrf.mxu3 }
 0x838   : > { %v14061_v22 = vpop.permute.xlu0 %7005  ;;  %v14063_v0 = vpop.permute.xlu2 %7027 }
 0x83e   : > { %7255 = vrot.lane.b32.xlu2 %v6721_v6, %s10105_s7  ;;  %7253 = vrot.lane.b32.xlu1 %v6612_v49, %s10105_s7  ;;  %v6723_v49 = vpop.f32.mrf.mxu1 }
 0x83f   : > { %7199 = vrot.lane.b32.xlu0 %v6932_v37, %s10104_s26 }
 0x840   : > { %v14069_v9 = vpop.permute.xlu0 %7011  ;;  %v14071_v59 = vpop.permute.xlu1 %7013 }
 0x841   : > { %v14073_v47 = vpop.permute.xlu2 %7085 }
 0x842   : > { %17362 = vst [vmem:[#allocation332_spill] sm:$0xff] %v14073_v47 }
 0x846   : > { %7259 = vrot.lane.b32.xlu1 %v6935_v14, %s10105_s7  ;;  %7261 = vrot.lane.b32.xlu2 %v6614_v55, %s10105_s7  ;;  %v6726_v14 = vpop.f32.mrf.mxu1 }
 0x847   : > { %7257 = vrot.lane.b32.xlu0 %v6830_v44, %s10105_s7  ;;  %v6617_v44 = vpop.f32.mrf.mxu0 }
 0x848   : > { %v14078_v19 = vpop.permute.xlu1 %7019 }
 0x849   : > { %v14080_v6 = vpop.permute.xlu0 %7017  ;;  %v14082_v37 = vpop.permute.xlu2 %7091 }
 0x84e   : > { %7265 = vrot.lane.b32.xlu1 %v6832_v1, %s10105_s7  ;;  %7267 = vrot.lane.b32.xlu2 %v6937_v60, %s10105_s7  ;;  %v6940_v60 = vpop.f32.mrf.mxu3  ;;  %v6728_v63 = vpop.f32.mrf.mxu1 }
 0x84f   : > { %7263 = vrot.lane.b32.xlu0 %v6723_v49, %s10105_s7  ;;  %v6619_v57 = vpop.f32.mrf.mxu0 }
 0x850   : > { %v14093_v55 = vpop.permute.xlu1 %7025 }
 0x851   : > { %v14096_v21 = vpop.permute.xlu0 %7023  ;;  %v14098_v46 = vpop.permute.xlu2 %7097 }
 0x856   : > { %7271 = vrot.lane.b32.xlu1 %v6726_v14, %s10105_s7  ;;  %7273 = vrot.lane.b32.xlu2 %v6835_v25, %s10105_s7  ;;  %v9466_v25 = vld [vmem:[%s16336_s6 + $0x98] sm:$0xff]  ;;  %v6837_v14 = vpop.f32.mrf.mxu2 }
 0x857   : > { %7269 = vrot.lane.b32.xlu0 %v6617_v44, %s10105_s7  ;;  %9327 = vmatmul.msk.bf16.gmra.mxu1 %vm6492_vm14, %v9466_v25 }
 0x858   : > { %v14103_v1 = vpop.permute.xlu1 %7031  ;;  %9307 = vmatmul.msk.bf16.gmra.mxu0 %vm6492_vm14, %v9466_v25  ;;  %9347 = vmatmul.msk.bf16.gmra.mxu2 %vm6492_vm14, %v9466_v25 }
 0x859   : > { %v14105_v49 = vpop.permute.xlu0 %7029  ;;  %v14107_v16 = vpop.permute.xlu2 %7103  ;;  %9367 = vmatmul.msk.bf16.gmra.mxu3 %vm6492_vm14, %v9466_v25  ;;  %vm17397_vm14 = vmmov %vm17386_vm0 }
 0x85e   : > { %7279 = vrot.lane.b32.xlu2 %v6728_v63, %s10105_s7  ;;  %7277 = vrot.lane.b32.xlu1 %v6619_v57, %s10105_s7  ;;  %v6622_v57 = vpop.f32.mrf.mxu0  ;;  %v6731_v63 = vpop.f32.mrf.mxu1 }
 0x85f   : > { %7275 = vrot.lane.b32.xlu0 %v6940_v60, %s10105_s7  ;;  %v6942_v60 = vpop.f32.mrf.mxu3  ;;  %v6840_v41 = vpop.f32.mrf.mxu2 }
 0x860   : > { %v14115_v44 = vpop.permute.xlu1 %7089 }
 0x861   : > { %17363 = vst [vmem:[#allocation333_spill] sm:$0xff] %v14115_v44  ;;  %v14117_v5 = vpop.permute.xlu0 %7087  ;;  %v14119_v58 = vpop.permute.xlu2 %7109 }
 0x862   : > { %17364 = vst [vmem:[#allocation335_spill] sm:$0xff] %v14117_v5 }
 0x866   : > { %7283 = vrot.lane.b32.xlu1 %v6942_v60, %s10105_s7  ;;  %7337 = vrot.lane.b32.xlu2 %v6622_v57, %s10106_s16  ;;  %v6624_v57 = vpop.f32.mrf.mxu0  ;;  %v6733_v33 = vpop.f32.mrf.mxu1 }
 0x867   : > { %7281 = vrot.lane.b32.xlu0 %v6837_v14, %s10105_s7  ;;  %v6945_v23 = vpop.f32.mrf.mxu3  ;;  %v6842_v56 = vpop.f32.mrf.mxu2  ;;  %s587_s7 = scalar_select %p586_p2, %s10087_s27, 1 }
 0x868   : > { %v14128_v38 = vpop.permute.xlu1 %7095 }
 0x869   : > { %v14130_v39 = vpop.permute.xlu0 %7093  ;;  %v14132_v40 = vpop.permute.xlu2 %7115 }
 0x86e   : > { %7341 = vrot.lane.b32.xlu1 %v6840_v41, %s10106_s16  ;;  %7343 = vrot.lane.b32.xlu2 %v6945_v23, %s10106_s16  ;;  %v6627_v23 = vpop.f32.mrf.mxu0  ;;  %v6736_v13 = vpop.f32.mrf.mxu1 }
 0x86f   : > { %7339 = vrot.lane.b32.xlu0 %v6731_v63, %s10106_s16  ;;  %v6947_v41 = vpop.f32.mrf.mxu3  ;;  %v6845_v3 = vpop.f32.mrf.mxu2 }
 0x870   : > { %v14137_v25 = vpop.permute.xlu1 %7101 }
 0x871   : > { %v14139_v60 = vpop.permute.xlu0 %7099  ;;  %v14141_v14 = vpop.permute.xlu2 %7173 }
 0x876   : > { %7347 = vrot.lane.b32.xlu1 %v6733_v33, %s10106_s16  ;;  %7349 = vrot.lane.b32.xlu2 %v6842_v56, %s10106_s16  ;;  %v6629_v48 = vpop.f32.mrf.mxu0 }
 0x877   : > { %7345 = vrot.lane.b32.xlu0 %v6624_v57, %s10106_s16  ;;  %v6950_v56 = vpop.f32.mrf.mxu3  ;;  %v6847_v20 = vpop.f32.mrf.mxu2 }
 0x878   : > { %v14146_v43 = vpop.permute.xlu1 %7107 }
 0x879   : > { %v14148_v63 = vpop.permute.xlu0 %7105  ;;  %v7180_v7 = vpop.permute.xlu2 %7179 }
 0x87e   : > { %7355 = vrot.lane.b32.xlu2 %v6736_v13, %s10106_s16  ;;  %7353 = vrot.lane.b32.xlu1 %v6627_v23, %s10106_s16  ;;  %v6738_v13 = vpop.f32.mrf.mxu1  ;;  %v6632_v26 = vpop.f32.mrf.mxu0 }
 0x87f   : > { %7351 = vrot.lane.b32.xlu0 %v6947_v41, %s10106_s16  ;;  %v6952_v52 = vpop.f32.mrf.mxu3  ;;  %v6850_v30 = vpop.f32.mrf.mxu2 }
 0x880   : > { %v14153_v33 = vpop.permute.xlu1 %7113 }
 0x881   : > { %v14155_v61 = vpop.permute.xlu0 %7111  ;;  %v7186_v57 = vpop.permute.xlu2 %7185 }
 0x886   : > { %7359 = vrot.lane.b32.xlu1 %v6950_v56, %s10106_s16  ;;  %7361 = vrot.lane.b32.xlu2 %v6629_v48, %s10106_s16  ;;  %v6741_v15 = vpop.f32.mrf.mxu1 }
 0x887   : > { %7357 = vrot.lane.b32.xlu0 %v6845_v3, %s10106_s16  ;;  %v6955_v17 = vpop.f32.mrf.mxu3 }
 0x888   : > { %v14160_v31 = vpop.permute.xlu1 %7171 }
 0x889   : > { %17365 = vst [vmem:[#allocation70_spill] sm:$0xff] %v14160_v31  ;;  %v14162_v23 = vpop.permute.xlu0 %7169  ;;  %v7192_v41 = vpop.permute.xlu2 %7191 }
 0x88a   : > { %17366 = vst [vmem:[#allocation67_spill] sm:$0xff] %v14162_v23 }
 0x88e   : > { %7365 = vrot.lane.b32.xlu1 %v6847_v20, %s10106_s16  ;;  %7367 = vrot.lane.b32.xlu2 %v6952_v52, %s10106_s16  ;;  %v6743_v50 = vpop.f32.mrf.mxu1 }
 0x88f   : > { %7363 = vrot.lane.b32.xlu0 %v6738_v13, %s10106_s16  ;;  %s9475_s16 = smul.u32 3, %s587_s7 }
 0x890   : > { %v7178_v56 = vpop.permute.xlu1 %7177 }
 0x891   : > { %v7176_v48 = vpop.permute.xlu0 %7175  ;;  %v14168_v3 = vsel %vm3852_vm4, %v7178_v56, %v7180_v7  ;;  %v7198_v32 = vpop.permute.xlu2 %7197  ;;  %s592_s14 = scalar_lea.vmem %s16330_s0, %s9475_s16 }
 0x892   : > { %v6634_v56 = vpop.f32.mrf.mxu0 }
 0x896   : > { %7423 = vrot.lane.b32.xlu1 %v6741_v15, %s10107_s1  ;;  %7425 = vrot.lane.b32.xlu2 %v6850_v30, %s10107_s1  ;;  %v6852_v15 = vpop.f32.mrf.mxu2 }
 0x897   : > { %7421 = vrot.lane.b32.xlu0 %v6632_v26, %s10107_s1 }
 0x898   : > { %v7184_v20 = vpop.permute.xlu1 %7183 }
 0x899   : > { %v7182_v52 = vpop.permute.xlu0 %7181  ;;  %v7256_v10 = vpop.permute.xlu2 %7255 }
 0x89a   : > { %v14174_v13 = vsel %vm3852_vm4, %v7180_v7, %v7182_v52  ;;  %v14177_v29 = vsel %vm3852_vm4, %v7182_v52, %v7184_v20  ;;  %v6637_v52 = vpop.f32.mrf.mxu0 }
 0x89e   : > { %7431 = vrot.lane.b32.xlu2 %v6743_v50, %s10107_s1  ;;  %7429 = vrot.lane.b32.xlu1 %v6634_v56, %s10107_s1  ;;  %v6957_v50 = vpop.f32.mrf.mxu3 }
 0x89f   : > { %7427 = vrot.lane.b32.xlu0 %v6955_v17, %s10107_s1  ;;  %v6746_v17 = vpop.f32.mrf.mxu1 }
 0x8a0   : > { %v7190_v30 = vpop.permute.xlu1 %7189 }
 0x8a1   : > { %v7188_v26 = vpop.permute.xlu0 %7187  ;;  %v14183_v23 = vsel %vm3852_vm4, %v7190_v30, %v7192_v41  ;;  %v14185_v31 = vpop.permute.xlu2 %7261 }
 0x8a2   : > { %v14188_v7 = vsel %vm3852_vm4, %v7186_v57, %v7188_v26  ;;  %v14191_v20 = vsel %vm3852_vm4, %v7188_v26, %v7190_v30  ;;  %v6855_v41 = vpop.f32.mrf.mxu2 }
 0x8a6   : > { %7435 = vrot.lane.b32.xlu1 %v6957_v50, %s10107_s1  ;;  %7437 = vrot.lane.b32.xlu2 %v6637_v52, %s10107_s1  ;;  %v6960_v30 = vpop.f32.mrf.mxu3 }
 0x8a7   : > { %7433 = vrot.lane.b32.xlu0 %v6852_v15, %s10107_s1  ;;  %v6639_v15 = vpop.f32.mrf.mxu0 }
 0x8a8   : > { %v7196_v56 = vpop.permute.xlu1 %7195 }
 0x8a9   : > { %v14197_v8 = vsel %vm3852_vm4, %v7196_v56, %v7198_v32  ;;  %v7194_v36 = vpop.permute.xlu0 %7193  ;;  %v7268_v57 = vpop.permute.xlu2 %7267 }
 0x8aa   : > { %17367 = vst [vmem:[#allocation72_spill] sm:$0xff] %v14197_v8  ;;  %v14200_v47 = vsel %vm3852_vm4, %v7194_v36, %v7196_v56  ;;  %v7035_v36 = vsel %vm3298_vm2, %v14061_v22, %v14057_v28  ;;  %v6857_v8 = vpop.f32.mrf.mxu2 }
 0x8ae   : > { %7441 = vrot.lane.b32.xlu1 %v6855_v41, %s10107_s1  ;;  %7443 = vrot.lane.b32.xlu2 %v6960_v30, %s10107_s1  ;;  %v6748_v41 = vpop.f32.mrf.mxu1  ;;  %v7059_v30 = vadd.f32 %v7035_v36, %v13873_v42 }
 0x8af   : > { %7439 = vrot.lane.b32.xlu0 %v6746_v17, %s10107_s1  ;;  %v7119_v17 = vsel %vm3575_vm3, %v14115_v44, %v14082_v37 }
 0x8b0   : > { %v7254_v26 = vpop.permute.xlu1 %7253 }
 0x8b1   : > { %v7200_v52 = vpop.permute.xlu0 %7199  ;;  %v14206_v50 = vsel %vm4129_vm5, %v7254_v26, %v7256_v10  ;;  %v14208_v5 = vpop.permute.xlu2 %7273  ;;  %v7203_v26 = vsel %vm3852_vm4, %v14141_v14, %v7176_v48  ;;  %v7036_v48 = vsel %vm3298_vm2, %v14018_v11, %v14069_v9  ;;  %v7121_v11 = vsel %vm3575_vm3, %v14128_v38, %v14098_v46 }
 0x8b2   : > { %17368 = vst [vmem:[#allocation68_spill] sm:$0xff] %v14206_v50  ;;  %v14214_v56 = vsel %vm3852_vm4, %v7198_v32, %v7200_v52  ;;  %v7143_v50 = vadd.f32 %v7119_v17, %v7059_v30  ;;  %v6962_v32 = vpop.f32.mrf.mxu3  ;;  %v6642_v52 = vpop.f32.mrf.mxu0 }
 0x8b3   : > { %17369 = vst [vmem:[#allocation75_spill] sm:$0xff] %v14214_v56  ;;  %v7038_v56 = vsel %vm3298_vm2, %v14071_v59, %v14038_v34  ;;  %v7122_v34 = vsel %vm3575_vm3, %v14098_v46, %v14139_v60 }
 0x8b4   : > { %v7227_v37 = vadd.f32 %v7203_v26, %v7143_v50  ;;  %v7062_v17 = vadd.f32 %v7038_v56, %v13880_v54  ;;  %v6860_v54 = vpop.f32.mrf.mxu2 }
 0x8b6   : > { %7447 = vrot.lane.b32.xlu1 %v6748_v41, %s10107_s1  ;;  %7449 = vrot.lane.b32.xlu2 %v6857_v8, %s10107_s1  ;;  %v7037_v8 = vsel %vm3298_vm2, %v14069_v9, %v14071_v59  ;;  %v6751_v41 = vpop.f32.mrf.mxu1  ;;  %v7060_v9 = vadd.f32 %v7036_v48, %v13864_v18  ;;  %v7040_v18 = vsel %vm3298_vm2, %v14078_v19, %v14048_v27 }
 0x8b7   : > { %7445 = vrot.lane.b32.xlu0 %v6639_v15, %s10107_s1  ;;  %v7061_v59 = vadd.f32 %v7037_v8, %v13866_v45 }
 0x8b8   : > { %v7260_v28 = vpop.permute.xlu1 %7259 }
 0x8b9   : > { %v7258_v44 = vpop.permute.xlu0 %7257  ;;  %v14228_v42 = vpop.permute.xlu2 %7279  ;;  %v7145_v60 = vadd.f32 %v7121_v11, %v7061_v59 }
 0x8ba   : > { %v14237_v15 = vsel %vm4129_vm5, %v7256_v10, %v7258_v44  ;;  %v7287_v36 = vsel %vm4129_vm5, %v7258_v44, %v7260_v28  ;;  %v7120_v10 = vsel %vm3575_vm3, %v14130_v39, %v14128_v38  ;;  %v7146_v44 = vadd.f32 %v7122_v34, %v7062_v17  ;;  %v6965_v26 = vpop.f32.mrf.mxu3  ;;  %v6644_v8 = vpop.f32.mrf.mxu0 }
 0x8bb   : > { %v14243_v50 = vadd.f32 %v7287_v36, %v7227_v37  ;;  %v7144_v30 = vadd.f32 %v7120_v10, %v7060_v9  ;;  %v7229_v38 = vadd.f32 %v14174_v13, %v7145_v60  ;;  %v7064_v36 = vadd.f32 %v7040_v18, %v13878_v2 }
 0x8bc   : > { %v7230_v46 = vadd.f32 %v14177_v29, %v7146_v44  ;;  %v7042_v2 = vsel %vm3298_vm2, %v14093_v55, %v14063_v0  ;;  %v7041_v9 = vsel %vm3298_vm2, %v14048_v27, %v14096_v21  ;;  %v7126_v55 = vsel %vm3575_vm3, %v14119_v58, %v14155_v61 }
 0x8bd   : > { %v7228_v45 = vadd.f32 %v14168_v3, %v7144_v30  ;;  %v7124_v3 = vsel %vm3575_vm3, %v14107_v16, %v14148_v63  ;;  %v7066_v30 = vadd.f32 %v7042_v2, %v13885_v35  ;;  %v7065_v21 = vadd.f32 %v7041_v9, %v13895_v53  ;;  %v17376_v2 = vld [vmem:[#allocation181_spill] sm:$0xff] }
 0x8be   : > { %7507 = vrot.lane.b32.xlu2 %v6751_v41, %s10108_s18  ;;  %7505 = vrot.lane.b32.xlu1 %v6642_v52, %s10108_s18  ;;  %v6753_v41 = vpop.f32.mrf.mxu1 }
 0x8bf   : > { %7451 = vrot.lane.b32.xlu0 %v6962_v32, %s10107_s1  ;;  %v7039_v32 = vsel %vm3298_vm2, %v14080_v6, %v14078_v19  ;;  %v7123_v19 = vsel %vm3575_vm3, %v14137_v25, %v14107_v16  ;;  %v7148_v6 = vadd.f32 %v7124_v3, %v7064_v36  ;;  %v7150_v27 = vadd.f32 %v7126_v55, %v7066_v30  ;;  %v17371_v3 = vld [vmem:[#allocation75_spill] sm:$0xff]  ;;  %v17377_v55 = vld [vmem:[#allocation70_spill] sm:$0xff] }
 0x8c0   : > { %v7266_v56 = vpop.permute.xlu1 %7265 }
 0x8c1   : > { %v7264_v39 = vpop.permute.xlu0 %7263  ;;  %v7290_v28 = vsel %vm4129_vm5, %v7266_v56, %v7268_v57  ;;  %v14264_v52 = vpop.permute.xlu2 %7337  ;;  %v7232_v17 = vadd.f32 %v14191_v20, %v7148_v6  ;;  %v17373_v6 = vld [vmem:[#allocation332_spill] sm:$0xff] }
 0x8c2   : > { %v7288_v29 = vsel %vm4129_vm5, %v14185_v31, %v7264_v39  ;;  %v7289_v37 = vsel %vm4129_vm5, %v7264_v39, %v7266_v56  ;;  %v14272_v48 = vadd.f32 %v7290_v28, %v7230_v46  ;;  %v7063_v31 = vadd.f32 %v7039_v32, %v13876_v12  ;;  %v6967_v60 = vpop.f32.mrf.mxu3  ;;  %v6647_v18 = vpop.f32.mrf.mxu0 }
 0x8c3   : > { %v14277_v13 = vadd.f32 %v7288_v29, %v7228_v45  ;;  %v14279_v57 = vadd.f32 %v7289_v37, %v7229_v38  ;;  %v7234_v56 = vadd.f32 %v14200_v47, %v7150_v27  ;;  %v7044_v38 = vsel %vm3298_vm2, %v14105_v49, %v14103_v1  ;;  %v17370_v37 = vld [vmem:[#allocation72_spill] sm:$0xff] }
 0x8c4   : > { %v7147_v34 = vadd.f32 %v7123_v19, %v7063_v31  ;;  %v7127_v32 = vsel %vm3575_vm3, %v14155_v61, %v14153_v33  ;;  %v7068_v1 = vadd.f32 %v7044_v38, %v13899_v51  ;;  %v7033_v61 = vsel %vm3298_vm2, %v14043_v24, %v14009_v4  ;;  %v17372_v31 = vld [vmem:[#allocation335_spill] sm:$0xff] }
 0x8c6   : > { %7511 = vrot.lane.b32.xlu1 %v6965_v26, %s10108_s18  ;;  %7513 = vrot.lane.b32.xlu2 %v6644_v8, %s10108_s18  ;;  %v7231_v16 = vadd.f32 %v14188_v7, %v7147_v34  ;;  %v6862_v7 = vpop.f32.mrf.mxu2  ;;  %v6756_v58 = vpop.f32.mrf.mxu1  ;;  %v7117_v34 = vsel %vm3575_vm3, %v17373_v6, %v17372_v31 }
 0x8c7   : > { %7509 = vrot.lane.b32.xlu0 %v6860_v54, %s10108_s18  ;;  %v7125_v54 = vsel %vm3575_vm3, %v14148_v63, %v14146_v43  ;;  %v7043_v63 = vsel %vm3298_vm2, %v14063_v0, %v14105_v49  ;;  %v7128_v0 = vsel %vm3575_vm3, %v14153_v33, %v14132_v40  ;;  %v7034_v40 = vsel %vm3298_vm2, %v14009_v4, %v14061_v22 }
 0x8c8   : > { %v7272_v11 = vpop.permute.xlu1 %7271  ;;  %v7149_v46 = vadd.f32 %v7125_v54, %v7065_v21  ;;  %v7067_v29 = vadd.f32 %v7043_v63, %v13887_v62  ;;  %v7152_v49 = vadd.f32 %v7128_v0, %v7068_v1 }
 0x8c9   : > { %v7292_v12 = vsel %vm4129_vm5, %v7272_v11, %v14208_v5  ;;  %v7270_v25 = vpop.permute.xlu0 %7269  ;;  %v14296_v10 = vpop.permute.xlu2 %7343 }
 0x8ca   : > { %v14301_v59 = vadd.f32 %v7292_v12, %v7232_v17  ;;  %v7291_v20 = vsel %vm4129_vm5, %v7270_v25, %v7272_v11  ;;  %v7233_v35 = vadd.f32 %v14183_v23, %v7149_v46  ;;  %v6970_v62 = vpop.f32.mrf.mxu3  ;;  %v7236_v8 = vadd.f32 %v17371_v3, %v7152_v49  ;;  %v17375_v17 = vld [vmem:[#allocation271_spill] sm:$0xff]  ;;  %v6649_v9 = vpop.f32.mrf.mxu0 }
 0x8cb   : > { %v14307_v44 = vadd.f32 %v7291_v20, %v7231_v16  ;;  %v7057_v11 = vadd.f32 %v7033_v61, %v17375_v17  ;;  %v7058_v16 = vadd.f32 %v7034_v40, %v17376_v2 }
 0x8cd   : > { %v7141_v30 = vadd.f32 %v7117_v34, %v7057_v11 }
 0x8ce   : > { %7517 = vrot.lane.b32.xlu1 %v6862_v7, %s10108_s18  ;;  %7519 = vrot.lane.b32.xlu2 %v6967_v60, %s10108_s18  ;;  %v6865_v28 = vpop.f32.mrf.mxu2  ;;  %v6758_v20 = vpop.f32.mrf.mxu1  ;;  %v7202_v7 = vsel %vm3852_vm4, %v17377_v55, %v14141_v14  ;;  %v17378_v60 = vld [vmem:[#allocation67_spill] sm:$0xff] }
 0x8cf   : > { %7515 = vrot.lane.b32.xlu0 %v6753_v41, %s10108_s18  ;;  %v17374_v41 = vld [vmem:[#allocation333_spill] sm:$0xff] }
 0x8d0   : > { %v7278_v26 = vpop.permute.xlu1 %7277  ;;  %v7118_v24 = vsel %vm3575_vm3, %v17372_v31, %v17374_v41 }
 0x8d1   : > { %v7276_v45 = vpop.permute.xlu0 %7275  ;;  %v7294_v43 = vsel %vm4129_vm5, %v7278_v26, %v14228_v42  ;;  %v14321_v53 = vpop.permute.xlu2 %7349  ;;  %v7142_v54 = vadd.f32 %v7118_v24, %v7058_v16 }
 0x8d2   : > { %v7293_v47 = vsel %vm4129_vm5, %v14208_v5, %v7276_v45  ;;  %v14331_v39 = vadd.f32 %v7294_v43, %v7234_v56  ;;  %v7151_v5 = vadd.f32 %v7127_v32, %v7067_v29  ;;  %v17379_v56 = vld [vmem:[#allocation68_spill] sm:$0xff]  ;;  %v6652_v32 = vpop.f32.mrf.mxu0  ;;  %v6972_v0 = vpop.f32.mrf.mxu3 }
 0x8d3   : > { %v14333_v23 = vadd.f32 %v7293_v47, %v7233_v35  ;;  %v7226_v21 = vadd.f32 %v7202_v7, %v7142_v54  ;;  %v17381_v54 = vld [vmem:[#allocation268_spill] sm:$0xff] }
 0x8d4   : > { %v7235_v51 = vadd.f32 %v17370_v37, %v7151_v5 }
 0x8d5   : > { %v7310_v14 = vadd.f32 %v14237_v15, %v7226_v21 }
 0x8d6   : > { %7523 = vrot.lane.b32.xlu1 %v6756_v58, %s10108_s18  ;;  %7525 = vrot.lane.b32.xlu2 %v6865_v28, %s10108_s18  ;;  %v6867_v58 = vpop.f32.mrf.mxu2  ;;  %v6761_v15 = vpop.f32.mrf.mxu1 }
 0x8d7   : > { %7521 = vrot.lane.b32.xlu0 %v6647_v18, %s10108_s18 }
 0x8d8   : > { %v7284_v33 = vpop.permute.xlu1 %7283 }
 0x8d9   : > { %v7282_v36 = vpop.permute.xlu0 %7281  ;;  %v14354_v19 = vpop.permute.xlu2 %7355 }
 0x8da   : > { %v7295_v4 = vsel %vm4129_vm5, %v14228_v42, %v7282_v36  ;;  %v7296_v22 = vsel %vm4129_vm5, %v7282_v36, %v7284_v33  ;;  %v7201_v42 = vsel %vm3852_vm4, %v17378_v60, %v17377_v55  ;;  %v6975_v40 = vpop.f32.mrf.mxu3 }
 0x8db   : > { %v14367_v12 = vadd.f32 %v7295_v4, %v7235_v51  ;;  %v14369_v25 = vadd.f32 %v7296_v22, %v7236_v8  ;;  %v7225_v27 = vadd.f32 %v7201_v42, %v7141_v30  ;;  %v17380_v30 = vld [vmem:[#allocation319_spill] sm:$0xff] }
 0x8dc   : > { %v7714_v21 = vsel %vm4129_vm5, %v17381_v54, %v17380_v30 }
 0x8dd   : > { %v7309_v26 = vadd.f32 %v17379_v56, %v7225_v27  ;;  %v17383_v27 = vld [vmem:[#allocation220_spill] sm:$0xff] }
 0x8de   : > { %7531 = vrot.lane.b32.xlu2 %v6758_v20, %s10108_s18  ;;  %7529 = vrot.lane.b32.xlu1 %v6649_v9, %s10108_s18  ;;  %v6763_v36 = vpop.f32.mrf.mxu1 }
 0x8df   : > { %7527 = vrot.lane.b32.xlu0 %v6970_v62, %s10108_s18  ;;  %v6654_v62 = vpop.f32.mrf.mxu0 }
 0x8e0   : > { %v7342_v46 = vpop.permute.xlu1 %7341 }
 0x8e1   : > { %v7340_v18 = vpop.permute.xlu0 %7339  ;;  %v7371_v35 = vsel %vm4406_vm6, %v7342_v46, %v14296_v10  ;;  %v7362_v45 = vpop.permute.xlu2 %7361 }
 0x8e2   : > { %v7369_v43 = vsel %vm4406_vm6, %v14264_v52, %v7340_v18  ;;  %v7370_v63 = vsel %vm4406_vm6, %v7340_v18, %v7342_v46  ;;  %v14388_v38 = vadd.f32 %v7371_v35, %v14243_v50  ;;  %v6870_v52 = vpop.f32.mrf.mxu2  ;;  %v6977_v6 = vpop.f32.mrf.mxu3 }
 0x8e3   : > { %v14390_v47 = vadd.f32 %v7369_v43, %v7309_v26  ;;  %v14392_v28 = vadd.f32 %v7370_v63, %v7310_v14  ;;  %v17385_v14 = vld [vmem:[#allocation223_spill] sm:$0xff]  ;;  %v17387_v43 = vld [vmem:[#allocation228_spill] sm:$0xff] }
 0x8e4   : > { %v7745_v18 = vadd.f32 %v7714_v21, %v17385_v14 }
 0x8e6   : > { %7535 = vrot.lane.b32.xlu1 %v6972_v0, %s10108_s18  ;;  %7589 = vrot.lane.b32.xlu2 %v6652_v32, %s10109_s13  ;;  %v6766_v17 = vpop.f32.mrf.mxu1  ;;  %9745 = vtanh.f32 %v7745_v18 }
 0x8e7   : > { %7533 = vrot.lane.b32.xlu0 %v6867_v58, %s10108_s18  ;;  %v6657_v41 = vpop.f32.mrf.mxu0 }
 0x8e8   : > { %v7348_v10 = vpop.permute.xlu1 %7347 }
 0x8e9   : > { %v7373_v29 = vsel %vm4406_vm6, %v7348_v10, %v14321_v53  ;;  %v7346_v50 = vpop.permute.xlu0 %7345  ;;  %v7368_v1 = vpop.permute.xlu2 %7367 }
 0x8ea   : > { %v14400_v5 = vadd.f32 %v7373_v29, %v14279_v57  ;;  %v7372_v49 = vsel %vm4406_vm6, %v7346_v50, %v7348_v10  ;;  %v6872_v31 = vpop.f32.mrf.mxu2  ;;  %v6980_v2 = vpop.f32.mrf.mxu3 }
 0x8eb   : > { %v14404_v61 = vadd.f32 %v7372_v49, %v14277_v13 }
 0x8ee   : > { %7593 = vrot.lane.b32.xlu1 %v6870_v52, %s10109_s13  ;;  %7595 = vrot.lane.b32.xlu2 %v6975_v40, %s10109_s13  ;;  %v6768_v29 = vpop.f32.mrf.mxu1 }
 0x8ef   : > { %7591 = vrot.lane.b32.xlu0 %v6761_v15, %s10109_s13  ;;  %v6659_v60 = vpop.f32.mrf.mxu0  ;;  %v17388_v15 = vld [vmem:[#allocation186_spill] sm:$0xff] }
 0x8f0   : > { %v7354_v33 = vpop.permute.xlu1 %7353 }
 0x8f1   : > { %v7352_v37 = vpop.permute.xlu0 %7351  ;;  %v7375_v51 = vsel %vm4406_vm6, %v7354_v33, %v14354_v19  ;;  %v14411_v57 = vpop.permute.xlu2 %7425  ;;  %v17391_v33 = vld [vmem:[#allocation188_spill] sm:$0xff] }
 0x8f2   : > { %v7374_v3 = vsel %vm4406_vm6, %v14321_v53, %v7352_v37  ;;  %v14416_v13 = vadd.f32 %v7375_v51, %v14307_v44  ;;  %v6875_v42 = vpop.f32.mrf.mxu2  ;;  %v6982_v0 = vpop.f32.mrf.mxu3  ;;  %v14496_v51 = vld [vmem:[%s592_s14] sm:$0x7] }
 0x8f3   : > { %v14419_v8 = vadd.f32 %v7374_v3, %v14272_v48  ;;  %v9746_v3 = vpop.eup %9745 }
 0x8f6   : > { %7599 = vrot.lane.b32.xlu1 %v6763_v36, %s10109_s13  ;;  %7601 = vrot.lane.b32.xlu2 %v6872_v31, %s10109_s13 }
 0x8f7   : > { %7597 = vrot.lane.b32.xlu0 %v6654_v62, %s10109_s13 }
 0x8f8   : > { %v7360_v34 = vpop.permute.xlu1 %7359 }
 0x8f9   : > { %v7358_v24 = vpop.permute.xlu0 %7357  ;;  %v14424_v4 = vpop.permute.xlu2 %7431 }
 0x8fa   : > { %v7376_v44 = vsel %vm4406_vm6, %v14354_v19, %v7358_v24  ;;  %v7377_v48 = vsel %vm4406_vm6, %v7358_v24, %v7360_v34  ;;  %v6877_v52 = vpop.f32.mrf.mxu2 }
 0x8fb   : > { %v14430_v53 = vadd.f32 %v7376_v44, %v14301_v59  ;;  %v14433_v22 = vadd.f32 %v7377_v48, %v14333_v23 }
 0x8fe   : > { %7607 = vrot.lane.b32.xlu2 %v6766_v17, %s10109_s13  ;;  %7605 = vrot.lane.b32.xlu1 %v6657_v41, %s10109_s13 }
 0x8ff   : > { %7603 = vrot.lane.b32.xlu0 %v6977_v6, %s10109_s13 }
 0x900   : > { %v7366_v11 = vpop.permute.xlu1 %7365 }
 0x901   : > { %v7364_v16 = vpop.permute.xlu0 %7363  ;;  %v7380_v19 = vsel %vm4406_vm6, %v7366_v11, %v7368_v1  ;;  %v14439_v9 = vpop.permute.xlu2 %7437 }
 0x902   : > { %v7378_v59 = vsel %vm4406_vm6, %v7362_v45, %v7364_v16  ;;  %v7379_v23 = vsel %vm4406_vm6, %v7364_v16, %v7366_v11  ;;  %v14444_v20 = vadd.f32 %v7380_v19, %v14369_v25  ;;  %v17382_v25 = vld [vmem:[#allocation316_spill] sm:$0xff] }
 0x903   : > { %v14447_v55 = vadd.f32 %v7378_v59, %v14331_v39  ;;  %v14450_v7 = vadd.f32 %v7379_v23, %v14367_v12  ;;  %v7716_v39 = vsel %vm4129_vm5, %v17383_v27, %v17382_v25  ;;  %v7715_v12 = vsel %vm4129_vm5, %v17380_v30, %v17383_v27 }
 0x904   : > { %v7747_v63 = vadd.f32 %v7716_v39, %v17387_v43  ;;  %v7746_v10 = vadd.f32 %v7715_v12, %v17388_v15  ;;  %v7748_v62 = vadd.f32 %v17382_v25, %v17391_v33  ;;  %v8128_v23 = vperm.slane %v14496_v51, 1 }
 0x905   : > { %v8127_v30 = vperm.slane %v14496_v51, 0 }
 0x906   : > { %7611 = vrot.lane.b32.xlu1 %v6980_v2, %s10109_s13  ;;  %7613 = vrot.lane.b32.xlu2 %v6659_v60, %s10109_s13  ;;  %9747 = vtanh.f32 %v7747_v63 }
 0x907   : > { %7609 = vrot.lane.b32.xlu0 %v6875_v42, %s10109_s13  ;;  %9749 = vtanh.f32 %v7746_v10 }
 0x908   : > { %v7424_v46 = vpop.permute.xlu1 %7423  ;;  %9751 = vtanh.f32 %v7748_v62 }
 0x909   : > { %v7454_v58 = vsel %vm17384_vm15, %v7424_v46, %v14411_v57  ;;  %v7422_v56 = vpop.permute.xlu0 %7421  ;;  %v7444_v26 = vpop.permute.xlu2 %7443  ;;  %vm17398_vm15 = vmmov %vm17386_vm0 }
 0x90a   : > { %v14470_v35 = vadd.f32 %v7454_v58, %v14392_v28  ;;  %v7453_v45 = vsel %vm17386_vm0, %v7422_v56, %v7424_v46 }
 0x90b   : > { %v14475_v32 = vadd.f32 %v7453_v45, %v14390_v47 }
 0x90c   : > { %v9748_v36 = vpop.eup %9747 }
 0x90d   : > { %v9750_v31 = vpop.eup %9749 }
 0x90e   : > { %7617 = vrot.lane.b32.xlu1 %v6877_v52, %s10109_s13  ;;  %7619 = vrot.lane.b32.xlu2 %v6982_v0, %s10109_s13  ;;  %v9752_v11 = vpop.eup %9751 }
 0x90f   : > { %7615 = vrot.lane.b32.xlu0 %v6768_v29, %s10109_s13 }
 0x910   : > { %v7430_v28 = vpop.permute.xlu1 %7429 }
 0x911   : > { %v7428_v47 = vpop.permute.xlu0 %7427  ;;  %v7456_v50 = vsel %vm17389_vm9, %v7430_v28, %v14424_v4  ;;  %v7450_v1 = vpop.permute.xlu2 %7449  ;;  %v17399_v28 = vld [vmem:[#allocation52_spill] sm:$0xff]  ;;  %vm17403_vm9 = vcmask 711680  }
 0x912   : > { %v7455_v49 = vsel %vm17390_vm8, %v14411_v57, %v7428_v47  ;;  %v14489_v40 = vadd.f32 %v7456_v50, %v14404_v61  ;;  %v8159_v57 = vsub.f32 1.0, %v14496_v51  ;;  %v17400_v47 = vld [vmem:[#allocation51_spill] sm:$0xff]  ;;  %vm17405_vm8 = vmmov %vm17403_vm9 }
 0x913   : > { %v14494_v37 = vadd.f32 %v7455_v49, %v14388_v38  ;;  %v3302_v50 = vsel %vm3298_vm2, %v17400_v47, %v17399_v28  ;;  %v17402_v49 = vld [vmem:[#allocation53_spill] sm:$0xff]  ;;  %v17419_v47 = vld [vmem:[#allocation59_spill] sm:$0xff] }
 0x914   : > { %v8162_v24 = vperm.slane %v8159_v57, 1  ;;  %v8161_v17 = vperm.slane %v8159_v57, 0 }
 0x916   : > { %7937 = vrot.lane.b32.xlu1 %v9748_v36, %s10110_s24  ;;  %7933 = vrot.lane.b32.xlu2 %v9746_v3, %s10110_s24  ;;  %v17404_v3 = vld [vmem:[#allocation55_spill] sm:$0xff] }
 0x917   : > { %7935 = vrot.lane.b32.xlu0 %v9750_v31, %s10110_s24 }
 0x918   : > { %v7436_v61 = vpop.permute.xlu1 %7435 }
 0x919   : > { %v7434_v6 = vpop.permute.xlu0 %7433  ;;  %v7508_v34 = vpop.permute.xlu2 %7507 }
 0x91a   : > { %v7457_v38 = vsel %vm17392_vm11, %v14424_v4, %v7434_v6  ;;  %v7458_v41 = vsel %vm17393_vm10, %v7434_v6, %v7436_v61  ;;  %vm17406_vm11 = vmmov %vm17405_vm8  ;;  %v17407_v61 = vld [vmem:[#allocation23_spill] sm:$0xff]  ;;  %vm17412_vm10 = vcmask 703488  }
 0x91b   : > { %v14506_v44 = vadd.f32 %v7457_v38, %v14400_v5  ;;  %v14509_v48 = vadd.f32 %v7458_v41, %v14419_v8  ;;  %v14581_v6 = vadd.f32 %v3302_v50, %v17407_v61  ;;  %v17408_v38 = vld [vmem:[#allocation19_spill] sm:$0xff]  ;;  %v17420_v50 = vld [vmem:[#allocation189_spill] sm:$0xff] }
 0x91c   : > { %v17424_v61 = vld [vmem:[#allocation21_spill] sm:$0xff] }
 0x91e   : > { %8166 = vrot.lane.b32.xlu1 %v8162_v24, %s10110_s24  ;;  %7939 = vrot.lane.b32.xlu2 %v9752_v11, %s10110_s24  ;;  %v17409_v24 = vld [vmem:[#allocation30_spill] sm:$0xff] }
 0x91f   : > { %8164 = vrot.lane.b32.xlu0 %v8161_v17, %s10110_s24  ;;  %v17410_v17 = vld [vmem:[#allocation57_spill] sm:$0xff] }
 0x920   : > { %v7442_v2 = vpop.permute.xlu1 %7441  ;;  %v14588_v11 = vadd.f32 %v17410_v17, %v17409_v24  ;;  %v17426_v24 = vld [vmem:[#allocation54_spill] sm:$0xff] }
 0x921   : > { %v7440_v16 = vpop.permute.xlu0 %7439  ;;  %v7461_v4 = vsel %vm17394_vm12, %v7442_v2, %v7444_v26  ;;  %v14515_v19 = vpop.permute.xlu2 %7513  ;;  %vm17414_vm12 = vmmov %vm17412_vm10 }
 0x922   : > { %v7459_v5 = vsel %vm17395_vm1, %v14439_v9, %v7440_v16  ;;  %v7460_v8 = vsel %vm17396_vm13, %v7440_v16, %v7442_v2  ;;  %v14521_v59 = vadd.f32 %v7461_v4, %v14433_v22  ;;  %vm17415_vm1 = vmmov %vm17412_vm10 }
 0x923   : > { %v14525_v60 = vadd.f32 %v7459_v5, %v14416_v13  ;;  %v14528_v42 = vadd.f32 %v7460_v8, %v14430_v53  ;;  %v17411_v5 = vld [vmem:[#allocation20_spill] sm:$0xff]  ;;  %vm17423_vm13 = vmmov %vm17405_vm8 }
 0x926   : > { %8132 = vrot.lane.b32.xlu1 %v8128_v23, %s10111_s8 }
 0x927   : > { %8130 = vrot.lane.b32.xlu0 %v8127_v30, %s10111_s8 }
 0x928   : > { %v7448_v9 = vpop.permute.xlu1 %7447 }
 0x929   : > { %v7463_v54 = vsel %vm17397_vm14, %v7448_v9, %v7450_v1  ;;  %v7446_v22 = vpop.permute.xlu0 %7445  ;;  %v14534_v21 = vpop.permute.xlu2 %7519  ;;  %vm17427_vm14 = vmmov %vm17405_vm8 }
 0x92a   : > { %v14537_v25 = vadd.f32 %v7463_v54, %v14450_v7  ;;  %v7462_v13 = vsel %vm17398_vm15, %v7446_v22, %v7448_v9  ;;  %v17413_v54 = vld [vmem:[#allocation58_spill] sm:$0xff]  ;;  %vm17435_vm15 = vmmov %vm17415_vm1 }
 0x92b   : > { %v14541_v53 = vadd.f32 %v7462_v13, %v14447_v55  ;;  %v8163_v55 = vperm.slane %v8159_v57, 2  ;;  %v3301_v22 = vsel %vm3298_vm2, %v17404_v3, %v17413_v54 }
 0x92d   : > { %8168 = vrot.lane.b32.xlu2 %v8163_v55, %s10110_s24 }
 0x930   : > { %v7506_v27 = vpop.permute.xlu1 %7505 }
 0x931   : > { %v7452_v39 = vpop.permute.xlu0 %7451  ;;  %v14543_v46 = vpop.permute.xlu2 %7525  ;;  %v7537_v31 = vsel %vm17405_vm8, %v7506_v27, %v7508_v34 }
 0x932   : > { %v7464_v12 = vsel %vm17386_vm0, %v7450_v1, %v7452_v39  ;;  %v17401_v1 = vld [vmem:[#allocation56_spill] sm:$0xff]  ;;  %v17416_v39 = vld [vmem:[#allocation22_spill] sm:$0xff]  ;;  %vm17438_vm0 = vmmov %vm17415_vm1 }
 0x933   : > { %v14547_v58 = vadd.f32 %v7464_v12, %v14444_v20  ;;  %v3299_v33 = vsel %vm3298_vm2, %v17402_v49, %v17401_v1  ;;  %v3300_v36 = vsel %vm3298_vm2, %v17401_v1, %v17404_v3  ;;  %v3330_v12 = vadd.f32 %v17413_v54, %v17416_v39  ;;  %v17421_v1 = vld [vmem:[#allocation191_spill] sm:$0xff] }
 0x934   : > { %v14584_v41 = vadd.f32 %v3299_v33, %v17408_v38  ;;  %v14594_v8 = vadd.f32 %v3300_v36, %v17411_v5  ;;  %v17425_v38 = vld [vmem:[#allocation62_spill] sm:$0xff]  ;;  %v17428_v5 = vld [vmem:[#allocation24_spill] sm:$0xff] }
 0x938   : > { %v7512_v56 = vpop.permute.xlu1 %7511 }
 0x939   : > { %v7510_v26 = vpop.permute.xlu0 %7509  ;;  %v14549_v14 = vpop.permute.xlu2 %7531 }
 0x93a   : > { %v7539_v62 = vsel %vm17403_vm9, %v7510_v26, %v7512_v56  ;;  %v7538_v57 = vsel %vm17406_vm11, %v7508_v34, %v7510_v26  ;;  %v7561_v34 = vadd.f32 %v7537_v31, %v14475_v32  ;;  %v17417_v56 = vld [vmem:[#allocation230_spill] sm:$0xff]  ;;  %v17418_v26 = vld [vmem:[#allocation231_spill] sm:$0xff]  ;;  %vm17460_vm11 = vmmov %vm17438_vm0 }
 0x93b   : > { %v7563_v2 = vadd.f32 %v7539_v62, %v14494_v37  ;;  %v7562_v23 = vadd.f32 %v7538_v57, %v14470_v35  ;;  %v7815_v32 = vsel %vm4129_vm5, %v17418_v26, %v17417_v56  ;;  %v7814_v49 = vsel %vm4129_vm5, %v17420_v50, %v17418_v26  ;;  %v17422_v62 = vld [vmem:[#allocation61_spill] sm:$0xff]  ;;  %v17434_v26 = vld [vmem:[#allocation64_spill] sm:$0xff] }
 0x93c   : > { %v3304_v3 = vsel %vm3298_vm2, %v17419_v47, %v17422_v62  ;;  %v17433_v56 = vld [vmem:[#allocation65_spill] sm:$0xff] }
 0x940   : > { %v14551_v7 = vpop.permute.xlu1 %7517 }
 0x941   : > { %v7516_v18 = vpop.permute.xlu0 %7515  ;;  %v7590_v45 = vpop.permute.xlu2 %7589 }
 0x942   : > { %v7541_v36 = vsel %vm17423_vm13, %v7516_v18, %v14551_v7 }
 0x948   : > { %v14553_v43 = vpop.permute.xlu1 %7523 }
 0x949   : > { %v14555_v63 = vpop.permute.xlu0 %7521  ;;  %v7596_v0 = vpop.permute.xlu2 %7595 }
 0x950   : > { %v14558_v15 = vpop.permute.xlu1 %7529 }
 0x951   : > { %v14560_v20 = vpop.permute.xlu0 %7527  ;;  %v14562_v10 = vpop.permute.xlu2 %7601 }
 0x958   : > { %v14564_v52 = vpop.permute.xlu1 %7535 }
 0x959   : > { %v14566_v29 = vpop.permute.xlu0 %7533  ;;  %v14591_v16 = vpop.permute.xlu2 %7607 }
 0x960   : > { %v7594_v4 = vpop.permute.xlu1 %7593 }
 0x961   : > { %v7592_v30 = vpop.permute.xlu0 %7591  ;;  %v7623_v9 = vsel %vm17412_vm10, %v7594_v4, %v7596_v0  ;;  %v3303_v0 = vsel %vm3298_vm2, %v17399_v28, %v17419_v47  ;;  %v3329_v28 = vadd.f32 %v3301_v22, %v17424_v61 }
 0x962   : > { %v7621_v13 = vsel %vm17414_vm12, %v7590_v45, %v7592_v30  ;;  %v7622_v37 = vsel %vm17415_vm1, %v7592_v30, %v7594_v4  ;;  %v7647_v27 = vadd.f32 %v7623_v9, %v7563_v2  ;;  %v7813_v45 = vsel %vm4129_vm5, %v17421_v1, %v17420_v50  ;;  %v17430_v9 = vld [vmem:[#allocation63_spill] sm:$0xff]  ;;  %v14655_v1 = vpop.permute.xlu2 %7613  ;;  %vm17477_vm1 = vmmov %vm17438_vm0 }
 0x963   : > { %v7645_v35 = vadd.f32 %v7621_v13, %v7561_v34  ;;  %v7646_v55 = vadd.f32 %v7622_v37, %v7562_v23  ;;  %v3305_v2 = vsel %vm3298_vm2, %v17426_v24, %v17425_v38  ;;  %v7540_v4 = vsel %vm17427_vm14, %v14515_v19, %v7516_v18  ;;  %v17429_v23 = vld [vmem:[#allocation26_spill] sm:$0xff]  ;;  %v17431_v13 = vld [vmem:[#allocation25_spill] sm:$0xff]  ;;  %v17432_v18 = vld [vmem:[#allocation27_spill] sm:$0xff] }
 0x964   : > { %v7839_v33 = vadd.f32 %v7815_v32, %v7647_v27  ;;  %v3332_v34 = vadd.f32 %v3303_v0, %v17428_v5  ;;  %v3334_v30 = vadd.f32 %v17422_v62, %v17429_v23  ;;  %v3306_v54 = vsel %vm3298_vm2, %v17425_v38, %v17430_v9  ;;  %v17436_v0 = vld [vmem:[#allocation28_spill] sm:$0xff]  ;;  %v17443_v24 = vld [vmem:[#allocation31_spill] sm:$0xff]  ;;  %v17445_v5 = vld [vmem:[#allocation85_spill] sm:$0xff] }
 0x965   : > { %v7837_v31 = vadd.f32 %v7813_v45, %v7645_v35  ;;  %v7838_v57 = vadd.f32 %v7814_v49, %v7646_v55  ;;  %v3333_v22 = vadd.f32 %v3304_v3, %v17431_v13  ;;  %v3307_v37 = vsel %vm3298_vm2, %v17430_v9, %v17410_v17  ;;  %v17437_v17 = vld [vmem:[#allocation60_spill] sm:$0xff] }
 0x966   : > { %9753 = vtanh.f32 %v7839_v33  ;;  %v7565_v27 = vadd.f32 %v7541_v36, %v14506_v44  ;;  %v14641_v39 = vadd.f32 %v3305_v2, %v17432_v18  ;;  %v3308_v32 = vsel %vm3298_vm2, %v17434_v26, %v17433_v56  ;;  %v17439_v33 = vld [vmem:[#allocation29_spill] sm:$0xff]  ;;  %v17441_v36 = vld [vmem:[#allocation278_spill] sm:$0xff]  ;;  %v17446_v9 = vld [vmem:[#allocation276_spill] sm:$0xff] }
 0x967   : > { %9755 = vtanh.f32 %v7837_v31  ;;  %v7564_v35 = vadd.f32 %v7540_v4, %v14489_v40  ;;  %v14650_v50 = vadd.f32 %v3306_v54, %v17436_v0  ;;  %v3309_v44 = vsel %vm3298_vm2, %v17433_v56, %v17437_v17  ;;  %v17440_v40 = vld [vmem:[#allocation66_spill] sm:$0xff]  ;;  %v17444_v4 = vld [vmem:[#allocation87_spill] sm:$0xff]  ;;  %v17448_v18 = vld [vmem:[#allocation80_spill] sm:$0xff] }
 0x968   : > { %9757 = vtanh.f32 %v7838_v57  ;;  %v7600_v19 = vpop.permute.xlu1 %7599  ;;  %v14659_v62 = vadd.f32 %v3307_v37, %v17439_v33  ;;  %v3310_v3 = vsel %vm3298_vm2, %v17437_v17, %v17440_v40  ;;  %v17442_v31 = vld [vmem:[#allocation234_spill] sm:$0xff]  ;;  %v3339_v2 = vadd.f32 %v3308_v32, %v17443_v24  ;;  %vm17449_vm2 = vmmov %vm17405_vm8  ;;  %v17454_v33 = vld [vmem:[#allocation83_spill] sm:$0xff] }
 0x969   : > { %v7625_v55 = vsel %vm17435_vm15, %v7600_v19, %v14562_v10  ;;  %v7598_v47 = vpop.permute.xlu0 %7597  ;;  %v7817_v57 = vsel %vm4129_vm5, %v17442_v31, %v17441_v36  ;;  %v3576_v23 = vsel %vm3575_vm3, %v17445_v5, %v17444_v4  ;;  %v7816_v54 = vsel %vm4129_vm5, %v17446_v9, %v17442_v31  ;;  %v17451_v0 = vld [vmem:[#allocation34_spill] sm:$0xff]  ;;  %vm17452_vm9 = vmmov %vm17449_vm2 }
 0x96a   : > { %v7649_v45 = vadd.f32 %v7625_v55, %v7565_v27  ;;  %v7624_v49 = vsel %vm17438_vm0, %v7598_v47, %v7600_v19  ;;  %v17447_v27 = vld [vmem:[#allocation32_spill] sm:$0xff]  ;;  %v3577_v56 = vsel %vm3575_vm3, %v17444_v4, %v17448_v18  ;;  %v7543_v26 = vsel %vm17449_vm2, %v14555_v63, %v14553_v43  ;;  %v17450_v55 = vld [vmem:[#allocation33_spill] sm:$0xff]  ;;  %v17455_v31 = vld [vmem:[#allocation90_spill] sm:$0xff] }
 0x96b   : > { %v7648_v61 = vadd.f32 %v7624_v49, %v7564_v35  ;;  %v3340_v19 = vadd.f32 %v3309_v44, %v17447_v27  ;;  %v3341_v47 = vadd.f32 %v3310_v3, %v17450_v55  ;;  %v3342_v17 = vadd.f32 %v17440_v40, %v17451_v0  ;;  %v17453_v49 = vld [vmem:[#allocation88_spill] sm:$0xff]  ;;  %v17458_v4 = vld [vmem:[#allocation93_spill] sm:$0xff]  ;;  %vm17459_vm8 = vmmov %vm17438_vm0 }
 0x96c   : > { %v9754_v38 = vpop.eup %9753  ;;  %v7841_v13 = vadd.f32 %v7817_v57, %v7649_v45  ;;  %v7542_v44 = vsel %vm17452_vm9, %v14551_v7, %v14534_v21  ;;  %v3604_v45 = vadd.f32 %v3576_v23, %v14584_v41  ;;  %v3578_v63 = vsel %vm3575_vm3, %v17448_v18, %v17453_v49  ;;  %v17456_v7 = vld [vmem:[#allocation91_spill] sm:$0xff]  ;;  %v17461_v27 = vld [vmem:[#allocation326_spill] sm:$0xff]  ;;  %v17462_v18 = vld [vmem:[#allocation236_spill] sm:$0xff] }
 0x96d   : > { %v9756_v37 = vpop.eup %9755  ;;  %v7840_v32 = vadd.f32 %v7816_v54, %v7648_v61  ;;  %8049 = vrot.lane.b32.xlu2 %v9754_v38, %s10110_s24  ;;  %v3579_v3 = vsel %vm3575_vm3, %v17455_v31, %v17454_v33  ;;  %v3605_v40 = vadd.f32 %v3577_v56, %v14594_v8  ;;  %v3607_v21 = vadd.f32 %v17453_v49, %v3330_v12  ;;  %v17457_v38 = vld [vmem:[#allocation89_spill] sm:$0xff]  ;;  %v17465_v55 = vld [vmem:[#allocation324_spill] sm:$0xff]  ;;  %vm17470_vm10 = vmmov %vm17449_vm2 }
 0x96e   : > { %v9758_v35 = vpop.eup %9757  ;;  %9759 = vtanh.f32 %v7841_v13  ;;  %8045 = vrot.lane.b32.xlu0 %v9756_v37, %s10110_s24  ;;  %v3580_v57 = vsel %vm3575_vm3, %v17454_v33, %v17456_v7  ;;  %v7567_v41 = vadd.f32 %v7543_v26, %v14525_v60  ;;  %v3615_v24 = vadd.f32 %v17457_v38, %v14588_v11  ;;  %v17468_v33 = vld [vmem:[#allocation96_spill] sm:$0xff]  ;;  %vm17471_vm12 = vmmov %vm17449_vm2 }
 0x96f   : > { %9761 = vtanh.f32 %v7840_v32  ;;  %8047 = vrot.lane.b32.xlu1 %v9758_v35, %s10110_s24  ;;  %v3581_v5 = vsel %vm3575_vm3, %v17456_v7, %v17458_v4  ;;  %v7566_v23 = vadd.f32 %v7542_v44, %v14509_v48  ;;  %v14711_v12 = vadd.f32 %v3578_v63, %v3329_v28  ;;  %v17463_v28 = vld [vmem:[#allocation94_spill] sm:$0xff]  ;;  %v17466_v44 = vld [vmem:[#allocation95_spill] sm:$0xff]  ;;  %v17467_v63 = vld [vmem:[#allocation97_spill] sm:$0xff] }
 0x970   : > { %v7606_v61 = vpop.permute.xlu1 %7605  ;;  %v14714_v54 = vadd.f32 %v3579_v3, %v14581_v6  ;;  %v3609_v11 = vadd.f32 %v3580_v57, %v3332_v34  ;;  %v14719_v37 = vadd.f32 %v17458_v4, %v3334_v30  ;;  %v7819_v48 = vsel %vm4129_vm5, %v17462_v18, %v17461_v27  ;;  %v17464_v35 = vld [vmem:[#allocation86_spill] sm:$0xff]  ;;  %v14732_v34 = vpop.permute.xlu2 %7619  ;;  %v17469_v7 = vld [vmem:[#allocation92_spill] sm:$0xff]  ;;  %vm17484_vm13 = vmmov %vm17449_vm2 }
 0x971   : > { %v7604_v9 = vpop.permute.xlu0 %7603  ;;  %v7627_v8 = vsel %vm17459_vm8, %v7606_v61, %v14591_v16  ;;  %v14724_v32 = vadd.f32 %v3581_v5, %v3333_v22  ;;  %v3582_v6 = vsel %vm3575_vm3, %v17464_v35, %v17463_v28  ;;  %v3583_v49 = vsel %vm3575_vm3, %v17463_v28, %v17466_v44  ;;  %v17473_v5 = vld [vmem:[#allocation119_spill] sm:$0xff]  ;;  %vm17486_vm14 = vmmov %vm17449_vm2 }
 0x972   : > { %v7626_v60 = vsel %vm17460_vm11, %v14562_v10, %v7604_v9  ;;  %v7651_v13 = vadd.f32 %v7627_v8, %v7567_v41  ;;  %v7818_v10 = vsel %vm4129_vm5, %v17441_v36, %v17465_v55  ;;  %v3584_v22 = vsel %vm3575_vm3, %v17466_v44, %v17457_v38  ;;  %v17472_v38 = vld [vmem:[#allocation98_spill] sm:$0xff]  ;;  %vm17487_vm15 = vmmov %vm17449_vm2 }
 0x973   : > { %v7650_v56 = vadd.f32 %v7626_v60, %v7566_v23  ;;  %v3585_v31 = vsel %vm3575_vm3, %v17468_v33, %v17467_v63  ;;  %v3586_v36 = vsel %vm3575_vm3, %v17467_v63, %v17469_v7  ;;  %v7544_v57 = vsel %vm17470_vm10, %v14553_v43, %v14543_v46  ;;  %v17474_v23 = vld [vmem:[#allocation117_spill] sm:$0xff]  ;;  %vm17492_vm2 = vmmov %vm17438_vm0 }
 0x974   : > { %v9760_v26 = vpop.eup %9759  ;;  %v7843_v30 = vadd.f32 %v7819_v48, %v7651_v13  ;;  %v7545_v41 = vsel %vm17471_vm12, %v14543_v46, %v14560_v20  ;;  %v14754_v61 = vadd.f32 %v3582_v6, %v14641_v39  ;;  %v3587_v4 = vsel %vm3575_vm3, %v17469_v7, %v17472_v38  ;;  %v17475_v39 = vld [vmem:[#allocation112_spill] sm:$0xff]  ;;  %vm17476_vm3 = vmmov %vm17438_vm0 }
 0x975   : > { %v9762_v0 = vpop.eup %9761  ;;  %v7842_v3 = vadd.f32 %v7818_v10, %v7650_v56  ;;  %v3853_v9 = vsel %vm3852_vm4, %v17474_v23, %v17473_v5  ;;  %v14764_v43 = vadd.f32 %v3583_v49, %v14650_v50  ;;  %v14767_v46 = vadd.f32 %v3584_v22, %v14659_v62  ;;  %v17480_v10 = vld [vmem:[#allocation122_spill] sm:$0xff]  ;;  %v17491_v23 = vld [vmem:[#allocation127_spill] sm:$0xff]  ;;  %vm17493_vm9 = vmmov %vm17438_vm0 }
 0x976   : > { %9763 = vtanh.f32 %v7843_v30  ;;  %8051 = vrot.lane.b32.xlu0 %v9762_v0, %s10110_s24  ;;  %v14769_v20 = vadd.f32 %v3585_v31, %v3339_v2  ;;  %v3854_v8 = vsel %vm3852_vm4, %v17473_v5, %v17475_v39  ;;  %v14774_v13 = vadd.f32 %v3586_v36, %v3340_v19  ;;  %v17478_v19 = vld [vmem:[#allocation120_spill] sm:$0xff]  ;;  %v17483_v0 = vld [vmem:[#allocation330_spill] sm:$0xff]  ;;  %vm17525_vm11 = vmmov %vm17470_vm10 }
 0x977   : > { %9765 = vtanh.f32 %v7842_v3  ;;  %8053 = vrot.lane.b32.xlu1 %v9760_v26, %s10110_s24  ;;  %v14777_v18 = vadd.f32 %v17472_v38, %v3342_v17  ;;  %v7568_v48 = vadd.f32 %v7544_v57, %v14528_v42  ;;  %v7569_v50 = vadd.f32 %v7545_v41, %v14521_v59  ;;  %v17479_v59 = vld [vmem:[#allocation115_spill] sm:$0xff]  ;;  %v17485_v3 = vld [vmem:[#allocation121_spill] sm:$0xff]  ;;  %v17489_v38 = vld [vmem:[#allocation126_spill] sm:$0xff] }
 0x978   : > { %v7612_v60 = vpop.permute.xlu1 %7611  ;;  %v14781_v26 = vadd.f32 %v3587_v4, %v3341_v47  ;;  %v14783_v62 = vadd.f32 %v3853_v9, %v3604_v45  ;;  %v14788_v35 = vadd.f32 %v3854_v8, %v3605_v40  ;;  %v3855_v17 = vsel %vm3852_vm4, %v17475_v39, %v17478_v19  ;;  %v17481_v45 = vld [vmem:[#allocation123_spill] sm:$0xff]  ;;  %v14820_v57 = vpop.permute.xlu2 %7933  ;;  %v17488_v41 = vld [vmem:[#allocation125_spill] sm:$0xff]  ;;  %vm17531_vm12 = vmmov %vm17438_vm0 }
 0x979   : > { %v7610_v56 = vpop.permute.xlu0 %7609  ;;  %v3856_v47 = vsel %vm3852_vm4, %v17480_v10, %v17479_v59  ;;  %v3857_v30 = vsel %vm3852_vm4, %v17479_v59, %v17481_v45  ;;  %v14806_v22 = vadd.f32 %v17478_v19, %v3607_v21  ;;  %v7548_v63 = vsel %vm17484_vm13, %v14566_v29, %v14564_v52 }
 0x97a   : > { %v7628_v2 = vsel %vm17476_vm3, %v14591_v16, %v7610_v56  ;;  %v7629_v28 = vsel %vm17477_vm1, %v7610_v56, %v7612_v60  ;;  %v17482_v16 = vld [vmem:[#allocation233_spill] sm:$0xff]  ;;  %v14812_v7 = vadd.f32 %v17485_v3, %v3615_v24  ;;  %v7547_v36 = vsel %vm17487_vm15, %v14549_v14, %v14566_v29  ;;  %v17495_v56 = vld [vmem:[#allocation128_spill] sm:$0xff]  ;;  %vm17539_vm3 = vmmov %vm17438_vm0 }
 0x97b   : > { %v7652_v6 = vadd.f32 %v7628_v2, %v7568_v48  ;;  %v7653_v42 = vadd.f32 %v7629_v28, %v7569_v50  ;;  %v7820_v40 = vsel %vm4129_vm5, %v17461_v27, %v17482_v16  ;;  %v7821_v44 = vsel %vm4129_vm5, %v17482_v16, %v17483_v0  ;;  %v17494_v50 = vld [vmem:[#allocation129_spill] sm:$0xff]  ;;  %v17496_v2 = vld [vmem:[#allocation239_spill] sm:$0xff]  ;;  %vm17547_vm1 = vmmov %vm17470_vm10 }
 0x97c   : > { %v9764_v55 = vpop.eup %9763  ;;  %v7546_v27 = vsel %vm17486_vm14, %v14558_v15, %v14549_v14  ;;  %v3883_v52 = vadd.f32 %v3855_v17, %v14711_v12  ;;  %v14826_v21 = vadd.f32 %v3856_v47, %v14714_v54  ;;  %v14828_v24 = vadd.f32 %v3857_v30, %v3609_v11  ;;  %v17490_v14 = vld [vmem:[#allocation118_spill] sm:$0xff]  ;;  %v17498_v17 = vld [vmem:[#allocation124_spill] sm:$0xff]  ;;  %vm17554_vm14 = vmmov %vm17438_vm0 }
 0x97d   : > { %v9766_v49 = vpop.eup %9765  ;;  %v7844_v33 = vadd.f32 %v7820_v40, %v7652_v6  ;;  %v7845_v31 = vadd.f32 %v7821_v44, %v7653_v42  ;;  %v3858_v15 = vsel %vm3852_vm4, %v17481_v45, %v17488_v41  ;;  %v3859_v29 = vsel %vm3852_vm4, %v17490_v14, %v17489_v38  ;;  %v17499_v42 = vld [vmem:[#allocation226_spill] sm:$0xff]  ;;  %v17506_v14 = vld [vmem:[#allocation157_spill] sm:$0xff]  ;;  %vm17558_vm15 = vmmov %vm17547_vm1 }
 0x97e   : > { %8057 = vrot.lane.b32.xlu0 %v9764_v55, %s10110_s24  ;;  %8055 = vrot.lane.b32.xlu2 %v9766_v49, %s10110_s24  ;;  %v7572_v4 = vadd.f32 %v7548_v63, %v14547_v58  ;;  %v3860_v12 = vsel %vm3852_vm4, %v17489_v38, %v17491_v23  ;;  %v7570_v54 = vadd.f32 %v7546_v27, %v14541_v53  ;;  %v17500_v55 = vld [vmem:[#allocation282_spill] sm:$0xff] }
 0x97f   : > { %9767 = vtanh.f32 %v7844_v33  ;;  %v7571_v11 = vadd.f32 %v7547_v36, %v14537_v25  ;;  %v3861_v8 = vsel %vm3852_vm4, %v17491_v23, %v17485_v3  ;;  %v3862_v53 = vsel %vm3852_vm4, %v17495_v56, %v17494_v50  ;;  %v17497_v25 = vld [vmem:[#allocation274_spill] sm:$0xff]  ;;  %v17503_v3 = vld [vmem:[#allocation159_spill] sm:$0xff]  ;;  %v17508_v23 = vld [vmem:[#allocation165_spill] sm:$0xff] }
 0x980   : > { %9769 = vtanh.f32 %v7845_v31  ;;  %v7618_v5 = vpop.permute.xlu1 %7617  ;;  %v7824_v28 = vsel %vm4129_vm5, %v17497_v25, %v17496_v2  ;;  %v3863_v6 = vsel %vm3852_vm4, %v17494_v50, %v17498_v17  ;;  %v7823_v59 = vsel %vm4129_vm5, %v17499_v42, %v17497_v25  ;;  %v17501_v63 = vld [vmem:[#allocation130_spill] sm:$0xff]  ;;  %v17512_v2 = vld [vmem:[#allocation163_spill] sm:$0xff] }
 0x981   : > { %v7616_v9 = vpop.permute.xlu0 %7615  ;;  %v7632_v39 = vsel %vm17438_vm0, %v7618_v5, %v14732_v34  ;;  %v3887_v45 = vadd.f32 %v3858_v15, %v14724_v32  ;;  %v3888_v30 = vadd.f32 %v17488_v41, %v14719_v37  ;;  %v3889_v44 = vadd.f32 %v3859_v29, %v14754_v61  ;;  %v17504_v36 = vld [vmem:[#allocation154_spill] sm:$0xff]  ;;  %v7940_v15 = vpop.permute.xlu2 %7939  ;;  %v17507_v29 = vld [vmem:[#allocation164_spill] sm:$0xff] }
 0x982   : > { %v7630_v58 = vsel %vm17492_vm2, %v14655_v1, %v7616_v9  ;;  %v7631_v60 = vsel %vm17493_vm9, %v7616_v9, %v7618_v5  ;;  %v7656_v48 = vadd.f32 %v7632_v39, %v7572_v4  ;;  %v7822_v1 = vsel %vm4129_vm5, %v17500_v55, %v17499_v42  ;;  %v17518_v55 = vld [vmem:[#allocation168_spill] sm:$0xff] }
 0x983   : > { %v7654_v19 = vadd.f32 %v7630_v58, %v7570_v54  ;;  %v7655_v34 = vadd.f32 %v7631_v60, %v7571_v11  ;;  %v3890_v49 = vadd.f32 %v3860_v12, %v14764_v43  ;;  %v3864_v33 = vsel %vm3852_vm4, %v17498_v17, %v17501_v63  ;;  %v17502_v43 = vld [vmem:[#allocation161_spill] sm:$0xff]  ;;  %v17510_v11 = vld [vmem:[#allocation207_spill] sm:$0xff] }
 0x984   : > { %v7848_v10 = vadd.f32 %v7824_v28, %v7656_v48  ;;  %v3891_v31 = vadd.f32 %v3861_v8, %v14767_v46  ;;  %v3893_v32 = vadd.f32 %v3862_v53, %v14769_v20  ;;  %v3894_v37 = vadd.f32 %v3863_v6, %v14774_v13  ;;  %v17505_v13 = vld [vmem:[#allocation162_spill] sm:$0xff]  ;;  %v17509_v54 = vld [vmem:[#allocation209_spill] sm:$0xff]  ;;  %v17511_v48 = vld [vmem:[#allocation167_spill] sm:$0xff] }
 0x985   : > { %v9768_v47 = vpop.eup %9767  ;;  %v7846_v16 = vadd.f32 %v7822_v1, %v7654_v19  ;;  %v7847_v40 = vadd.f32 %v7823_v59, %v7655_v34  ;;  %v3896_v61 = vadd.f32 %v17501_v63, %v14777_v18  ;;  %v4130_v27 = vsel %vm4129_vm5, %v17503_v3, %v17502_v43  ;;  %v17513_v28 = vld [vmem:[#allocation205_spill] sm:$0xff]  ;;  %v17514_v19 = vld [vmem:[#allocation212_spill] sm:$0xff] }
 0x986   : > { %v9770_v0 = vpop.eup %9769  ;;  %9771 = vtanh.f32 %v7848_v10  ;;  %8059 = vrot.lane.b32.xlu1 %v9768_v47, %s10110_s24  ;;  %v4131_v41 = vsel %vm4129_vm5, %v17502_v43, %v17504_v36  ;;  %v3895_v20 = vadd.f32 %v3864_v33, %v14781_v26  ;;  %v4132_v38 = vsel %vm4129_vm5, %v17504_v36, %v17505_v13  ;;  %v17515_v17 = vld [vmem:[#allocation257_spill] sm:$0xff]  ;;  %v17519_v1 = vld [vmem:[#allocation160_spill] sm:$0xff]  ;;  %v17524_v33 = vld [vmem:[#allocation303_spill] sm:$0xff] }
 0x987   : > { %9773 = vtanh.f32 %v7846_v16  ;;  %8061 = vrot.lane.b32.xlu2 %v9770_v0, %s10110_s24  ;;  %v4133_v18 = vsel %vm4129_vm5, %v17507_v29, %v17506_v14  ;;  %v4134_v12 = vsel %vm4129_vm5, %v17506_v14, %v17508_v23  ;;  %v4407_v26 = vsel %vm4406_vm6, %v17510_v11, %v17509_v54  ;;  %v17520_v16 = vld [vmem:[#allocation253_spill] sm:$0xff]  ;;  %v17533_v29 = vld [vmem:[#allocation171_spill] sm:$0xff] }
 0x988   : > { %9775 = vtanh.f32 %v7847_v40  ;;  %v7938_v46 = vpop.permute.xlu1 %7937  ;;  %v4158_v8 = vadd.f32 %v4130_v27, %v14783_v62  ;;  %v4159_v58 = vadd.f32 %v4131_v41, %v14788_v35  ;;  %v4161_v60 = vadd.f32 %v17505_v13, %v14806_v22  ;;  %v17516_v62 = vld [vmem:[#allocation255_spill] sm:$0xff]  ;;  %v17521_v40 = vld [vmem:[#allocation260_spill] sm:$0xff]  ;;  %v17523_v63 = vld [vmem:[#allocation305_spill] sm:$0xff] }
 0x989   : > { %v7936_v4 = vpop.permute.xlu0 %7935  ;;  %v14894_v5 = vsel %vm6230_vm7, %v7938_v46, %v7940_v15  ;;  %v4135_v50 = vsel %vm4129_vm5, %v17508_v23, %v17511_v48  ;;  %v4160_v53 = vadd.f32 %v4132_v38, %v3883_v52  ;;  %v4169_v25 = vadd.f32 %v17512_v2, %v14812_v7  ;;  %v17527_v36 = vld [vmem:[#allocation301_spill] sm:$0xff]  ;;  %v17528_v41 = vld [vmem:[#allocation308_spill] sm:$0xff]  ;;  %v17530_v13 = vld [vmem:[#allocation350_spill] sm:$0xff] }
 0x98a   : > { %v14904_v9 = vsel %vm6230_vm7, %v14820_v57, %v7936_v4  ;;  %v14907_v39 = vsel %vm6230_vm7, %v7936_v4, %v7938_v46  ;;  %v4410_v34 = vsel %vm4406_vm6, %v17514_v19, %v17513_v28  ;;  %vm17517_vm4 = vcmask 719872   ;;  %v17529_v15 = vld [vmem:[#allocation352_spill] sm:$0xff]  ;;  %v17532_v14 = vld [vmem:[#allocation173_spill] sm:$0xff]  ;;  %v17534_v4 = vld [vmem:[#allocation166_spill] sm:$0xff] }
 0x98b   : > { %v4684_v35 = vsel %vm17517_vm4, %v17516_v62, %v17515_v17  ;;  %v4162_v22 = vadd.f32 %v4133_v18, %v14826_v21  ;;  %v4163_v42 = vadd.f32 %v4134_v12, %v14828_v24  ;;  %v4136_v52 = vsel %vm4129_vm5, %v17519_v1, %v17518_v55  ;;  %vm17522_vm8 = vmmov %vm17517_vm4  ;;  %v17526_v21 = vld [vmem:[#allocation170_spill] sm:$0xff] }
 0x98c   : > { %v9772_v56 = vpop.eup %9771  ;;  %v4435_v59 = vadd.f32 %v4407_v26, %v4158_v8  ;;  %v4164_v7 = vadd.f32 %v4135_v50, %v3887_v45  ;;  %v4165_v47 = vadd.f32 %v17511_v48, %v3888_v30  ;;  %v4687_v0 = vsel %vm17522_vm8, %v17521_v40, %v17520_v16  ;;  %v17535_v26 = vld [vmem:[#allocation174_spill] sm:$0xff]  ;;  %vm17551_vm13 = vmmov %vm17517_vm4 }
 0x98d   : > { %v9774_v6 = vpop.eup %9773  ;;  %v4961_v43 = vsel %vm17525_vm11, %v17524_v33, %v17523_v63  ;;  %v4137_v24 = vsel %vm4129_vm5, %v17518_v55, %v17526_v21  ;;  %v4439_v3 = vadd.f32 %v4410_v34, %v4162_v22  ;;  %v4166_v45 = vadd.f32 %v4136_v52, %v3889_v44  ;;  %v17536_v48 = vld [vmem:[#allocation202_spill] sm:$0xff]  ;;  %v17541_v52 = vld [vmem:[#allocation213_spill] sm:$0xff]  ;;  %vm17565_vm2 = vmmov %vm17517_vm4 }
 0x98e   : > { %v9776_v10 = vpop.eup %9775  ;;  %8063 = vrot.lane.b32.xlu0 %v9774_v6, %s10110_s24  ;;  %v4712_v27 = vadd.f32 %v4684_v35, %v4435_v59  ;;  %v4138_v30 = vsel %vm4129_vm5, %v17526_v21, %v17512_v2  ;;  %v4964_v46 = vsel %vm17470_vm10, %v17528_v41, %v17527_v36  ;;  %v5238_v38 = vsel %vm17531_vm12, %v17530_v13, %v17529_v15  ;;  %v17538_v2 = vld [vmem:[#allocation355_spill] sm:$0xff]  ;;  %v17540_v34 = vld [vmem:[#allocation210_spill] sm:$0xff]  ;;  %vm17566_vm9 = vmmov %vm17565_vm2 }
 0x98f   : > { %8065 = vrot.lane.b32.xlu1 %v9776_v10, %s10110_s24  ;;  %8067 = vrot.lane.b32.xlu2 %v9772_v56, %s10110_s24  ;;  %v4139_v18 = vsel %vm4129_vm5, %v17533_v29, %v17532_v14  ;;  %v4140_v44 = vsel %vm4129_vm5, %v17532_v14, %v17534_v4  ;;  %v4716_v23 = vadd.f32 %v4687_v0, %v4439_v3  ;;  %v17537_v56 = vld [vmem:[#allocation349_spill] sm:$0xff]  ;;  %v17542_v40 = vld [vmem:[#allocation250_spill] sm:$0xff]  ;;  %v17556_v29 = vld [vmem:[#allocation219_spill] sm:$0xff] }
 0x990   : > { %v4989_v12 = vadd.f32 %v4961_v43, %v4712_v27  ;;  %v4167_v11 = vadd.f32 %v4137_v24, %v3890_v49  ;;  %v4141_v8 = vsel %vm4129_vm5, %v17534_v4, %v17535_v26  ;;  %v4408_v50 = vsel %vm4406_vm6, %v17509_v54, %v17536_v48  ;;  %vm17543_vm5 = vmmov %vm17517_vm4  ;;  %v17555_v14 = vld [vmem:[#allocation221_spill] sm:$0xff] }
 0x991   : > { %v5241_v19 = vsel %vm17539_vm3, %v17538_v2, %v17537_v56  ;;  %v4409_v62 = vsel %vm4406_vm6, %v17536_v48, %v17540_v34  ;;  %v4993_v35 = vadd.f32 %v4964_v46, %v4716_v23  ;;  %v8129_v49 = vperm.slane %v14496_v51, 2  ;;  %v17544_v51 = vld [vmem:[#allocation211_spill] sm:$0xff]  ;;  %v17553_v46 = vld [vmem:[#allocation346_spill] sm:$0xff]  ;;  %vm17569_vm4 = vmmov %vm17565_vm2 }
 0x992   : > { %v5266_v6 = vadd.f32 %v5238_v38, %v4989_v12  ;;  %v4168_v22 = vadd.f32 %v4138_v30, %v3891_v31  ;;  %v4170_v55 = vadd.f32 %v4139_v18, %v3893_v32  ;;  %v4171_v1 = vadd.f32 %v4140_v44, %v3894_v37  ;;  %v17545_v37 = vld [vmem:[#allocation215_spill] sm:$0xff]  ;;  %v17552_v30 = vld [vmem:[#allocation218_spill] sm:$0xff]  ;;  %vm17573_vm8 = vmmov %vm17565_vm2 }
 0x993   : > { %v4411_v59 = vsel %vm4406_vm6, %v17513_v28, %v17541_v52  ;;  %v4172_v54 = vadd.f32 %v4141_v8, %v3895_v20  ;;  %v4173_v10 = vadd.f32 %v17535_v26, %v3896_v61  ;;  %v4685_v0 = vsel %vm17543_vm5, %v17515_v17, %v17542_v40  ;;  %v17546_v28 = vld [vmem:[#allocation298_spill] sm:$0xff]  ;;  %vm17577_vm11 = vmmov %vm17565_vm2 }
 0x994   : > { %v5270_v33 = vadd.f32 %v5241_v19, %v4993_v35  ;;  %v4436_v43 = vadd.f32 %v4408_v50, %v4159_v58  ;;  %v4437_v21 = vadd.f32 %v4409_v62, %v4160_v53  ;;  %v4438_v24 = vadd.f32 %v17540_v34, %v4161_v60  ;;  %v17548_v58 = vld [vmem:[#allocation216_spill] sm:$0xff]  ;;  %v17557_v44 = vld [vmem:[#allocation306_spill] sm:$0xff]  ;;  %v17560_v19 = vld [vmem:[#allocation353_spill] sm:$0xff] }
 0x995   : > { %v4446_v31 = vadd.f32 %v17544_v51, %v4169_v25  ;;  %v4440_v32 = vadd.f32 %v4411_v59, %v4163_v42  ;;  %v4412_v3 = vsel %vm4406_vm6, %v17541_v52, %v17545_v37  ;;  %v4962_v61 = vsel %vm17547_vm1, %v17523_v63, %v17546_v28  ;;  %v17549_v53 = vld [vmem:[#allocation208_spill] sm:$0xff]  ;;  %v17550_v25 = vld [vmem:[#allocation258_spill] sm:$0xff]  ;;  %v17561_v62 = vld [vmem:[#allocation263_spill] sm:$0xff] }
 0x996   : > { %v9176_v20 = vmul.f32 -1.442695, %v5266_v6  ;;  %v4442_v17 = vadd.f32 %v17545_v37, %v4165_v47  ;;  %v4413_v60 = vsel %vm4406_vm6, %v17549_v53, %v17548_v58  ;;  %v4713_v27 = vadd.f32 %v4685_v0, %v4436_v43  ;;  %v17559_v12 = vld [vmem:[#allocation214_spill] sm:$0xff]  ;;  %v17563_v43 = vld [vmem:[#allocation311_spill] sm:$0xff]  ;;  %vm17579_vm10 = vmmov %vm17565_vm2 }
 0x997   : > { %8134 = vrot.lane.b32.xlu2 %v8129_v49, %s10111_s8  ;;  %v4686_v42 = vsel %vm17551_vm13, %v17542_v40, %v17550_v25  ;;  %v4414_v41 = vsel %vm4406_vm6, %v17548_v58, %v17552_v30  ;;  %v4715_v63 = vadd.f32 %v17550_v25, %v4438_v24  ;;  %v5239_v13 = vsel %vm17554_vm14, %v17529_v15, %v17553_v46  ;;  %v17575_v25 = vld [vmem:[#allocation269_spill] sm:$0xff]  ;;  %vm17581_vm12 = vmmov %vm17565_vm2 }
 0x998   : > { %v9180_v47 = vmul.f32 -1.442695, %v5270_v33  ;;  %v4415_v38 = vsel %vm4406_vm6, %v17552_v30, %v17544_v51  ;;  %v4416_v18 = vsel %vm4406_vm6, %v17556_v29, %v17555_v14  ;;  %v4990_v4 = vadd.f32 %v4962_v61, %v4713_v27  ;;  %v17562_v33 = vld [vmem:[#allocation222_spill] sm:$0xff]  ;;  %v17564_v51 = vld [vmem:[#allocation261_spill] sm:$0xff]  ;;  %vm17584_vm3 = vmmov %vm17547_vm1 }
 0x999   : > { %v4963_v23 = vsel %vm17558_vm15, %v17546_v28, %v17557_v44  ;;  %v4417_v26 = vsel %vm4406_vm6, %v17555_v14, %v17559_v12  ;;  %v4714_v8 = vadd.f32 %v4686_v42, %v4437_v21  ;;  %v4992_v15 = vadd.f32 %v17557_v44, %v4715_v63  ;;  %v17570_v61 = vld [vmem:[#allocation266_spill] sm:$0xff]  ;;  %v17576_v42 = vld [vmem:[#allocation267_spill] sm:$0xff]  ;;  %vm17585_vm5 = vmmov %vm17547_vm1 }
 0x99a   : > { %9777 = vpow2.f32 %v9176_v20  ;;  %v4441_v48 = vadd.f32 %v4412_v3, %v4164_v7  ;;  %v4443_v50 = vadd.f32 %v4413_v60, %v4166_v45  ;;  %v5267_v2 = vadd.f32 %v5239_v13, %v4990_v4  ;;  %v17572_v20 = vld [vmem:[#allocation259_spill] sm:$0xff]  ;;  %vm17589_vm13 = vmmov %vm17547_vm1 }
 0x99b   : > { %v5240_v34 = vsel %vm17438_vm0, %v17553_v46, %v17560_v19  ;;  %v4719_v35 = vadd.f32 %v17561_v62, %v4442_v17  ;;  %v4991_v6 = vadd.f32 %v4963_v23, %v4714_v8  ;;  %v5269_v49 = vadd.f32 %v17560_v19, %v4992_v15  ;;  %v17580_v23 = vld [vmem:[#allocation270_spill] sm:$0xff]  ;;  %v17583_v15 = vld [vmem:[#allocation309_spill] sm:$0xff]  ;;  %v17586_v19 = vld [vmem:[#allocation312_spill] sm:$0xff] }
 0x99c   : > { %9779 = vpow2.f32 %v9180_v47  ;;  %v4444_v52 = vadd.f32 %v4414_v41, %v4167_v11  ;;  %v4445_v59 = vadd.f32 %v4415_v38, %v4168_v22  ;;  %v4447_v40 = vadd.f32 %v4416_v18, %v4170_v55  ;;  %v17567_v22 = vld [vmem:[#allocation264_spill] sm:$0xff]  ;;  %v17578_v41 = vld [vmem:[#allocation262_spill] sm:$0xff]  ;;  %vm17592_vm14 = vmmov %vm17438_vm0 }
 0x99d   : > { %v4448_v0 = vadd.f32 %v4417_v26, %v4171_v1  ;;  %v4418_v7 = vsel %vm4406_vm6, %v17559_v12, %v17562_v33  ;;  %v4450_v45 = vadd.f32 %v17562_v33, %v4173_v10  ;;  %v4996_v21 = vadd.f32 %v17563_v43, %v4719_v35  ;;  %v17568_v55 = vld [vmem:[#allocation256_spill] sm:$0xff]  ;;  %vm17571_vm6 = vmmov %vm17565_vm2  ;;  %v17582_v26 = vld [vmem:[#allocation307_spill] sm:$0xff] }
 0x99e   : > { %v5268_v24 = vadd.f32 %v5240_v34, %v4991_v6  ;;  %v4688_v37 = vsel %vm17565_vm2, %v17520_v16, %v17564_v51  ;;  %v4689_v11 = vsel %vm17566_vm9, %v17564_v51, %v17561_v62  ;;  %v4690_v1 = vsel %vm17569_vm4, %v17568_v55, %v17567_v22  ;;  %v17574_v16 = vld [vmem:[#allocation358_spill] sm:$0xff]  ;;  %v17587_v34 = vld [vmem:[#allocation304_spill] sm:$0xff]  ;;  %vm17593_vm15 = vmmov %vm17547_vm1 }
 0x99f   : > { %v9177_v3 = vmul.f32 -1.442695, %v5267_v2  ;;  %v4691_v10 = vsel %vm17571_vm6, %v17567_v22, %v17570_v61  ;;  %v4692_v17 = vsel %vm17573_vm8, %v17570_v61, %v17572_v20  ;;  %v9179_v58 = vmul.f32 -1.442695, %v5269_v49  ;;  %v17588_v35 = vld [vmem:[#allocation314_spill] sm:$0xff]  ;;  %vm17596_vm0 = vmmov %vm17547_vm1 }
 0x9a0   : > { %v9778_v28 = vpop.eup %9777  ;;  %v5273_v53 = vadd.f32 %v17574_v16, %v4996_v21  ;;  %v4449_v60 = vadd.f32 %v4418_v7, %v4172_v54  ;;  %v4723_v27 = vadd.f32 %v17572_v20, %v4446_v31  ;;  %v4693_v30 = vsel %vm17577_vm11, %v17576_v42, %v17575_v25  ;;  %v17595_v21 = vld [vmem:[#allocation315_spill] sm:$0xff]  ;;  %vm17597_vm2 = vmmov %vm17592_vm14  ;;  %v17598_v22 = vld [vmem:[#allocation310_spill] sm:$0xff] }
 0x9a1   : > { %v4694_v63 = vsel %vm17579_vm10, %v17575_v25, %v17578_v41  ;;  %v4717_v13 = vadd.f32 %v4688_v37, %v4440_v32  ;;  %v4718_v47 = vadd.f32 %v4689_v11, %v4441_v48  ;;  %v4720_v38 = vadd.f32 %v4690_v1, %v4443_v50  ;;  %vm17599_vm9 = vmmov %vm17596_vm0  ;;  %v17602_v20 = vld [vmem:[#allocation359_spill] sm:$0xff]  ;;  %v17605_v25 = vld [vmem:[#allocation360_spill] sm:$0xff] }
 0x9a2   : > { %v9780_v46 = vpop.eup %9779  ;;  %v9178_v14 = vmul.f32 -1.442695, %v5268_v24  ;;  %v4721_v29 = vadd.f32 %v4691_v10, %v4444_v52  ;;  %v4722_v18 = vadd.f32 %v4692_v17, %v4445_v59  ;;  %9781 = vpow2.f32 %v9177_v3  ;;  %v17591_v52 = vld [vmem:[#allocation356_spill] sm:$0xff]  ;;  %vm17601_vm4 = vmmov %vm17596_vm0  ;;  %v17603_v17 = vld [vmem:[#allocation351_spill] sm:$0xff] }
 0x9a3   : > { %v15046_v4 = vadd.f32 1.0, %v9778_v28  ;;  %v4724_v54 = vadd.f32 %v4693_v30, %v4447_v40  ;;  %v4725_v31 = vadd.f32 %v4694_v63, %v4448_v0  ;;  %9783 = vpow2.f32 %v9179_v58  ;;  %v17600_v28 = vld [vmem:[#allocation318_spill] sm:$0xff]  ;;  %vm17604_vm6 = vmmov %vm17597_vm2 }
 0x9a4   : > { %v9183_v44 = vmul.f32 -1.442695, %v5273_v53  ;;  %v4695_v12 = vsel %vm17581_vm12, %v17578_v41, %v17580_v23  ;;  %v5000_v8 = vadd.f32 %v17582_v26, %v4723_v27  ;;  %v4965_v32 = vsel %vm17584_vm3, %v17527_v36, %v17583_v15  ;;  %v17590_v36 = vld [vmem:[#allocation354_spill] sm:$0xff]  ;;  %vm17606_vm8 = vmmov %vm17597_vm2 }
 0x9a5   : > { %v15055_v48 = vadd.f32 1.0, %v9780_v46  ;;  %v4727_v50 = vadd.f32 %v17580_v23, %v4450_v45  ;;  %v4966_v2 = vsel %vm17585_vm5, %v17583_v15, %v17563_v43  ;;  %v4967_v62 = vsel %vm17547_vm1, %v17587_v34, %v17586_v19  ;;  %v17594_v43 = vld [vmem:[#allocation317_spill] sm:$0xff]  ;;  %vm17607_vm11 = vmmov %vm17597_vm2 }
 0x9a6   : > { %9785 = vpow2.f32 %v9178_v14  ;;  %v4968_v6 = vsel %vm17589_vm13, %v17586_v19, %v17588_v35  ;;  %v5277_v49 = vadd.f32 %v17590_v36, %v5000_v8  ;;  %v5242_v59 = vsel %vm17592_vm14, %v17537_v56, %v17591_v52  ;;  %vm17610_vm10 = vmmov %vm17597_vm2 }
 0x9a7   : > { %9787 = vrcp.f32 %v15046_v4  ;;  %v4726_v40 = vadd.f32 %v4695_v12, %v4449_v60  ;;  %v4994_v0 = vadd.f32 %v4965_v32, %v4717_v13  ;;  %v4969_v33 = vsel %vm17593_vm15, %v17588_v35, %v17582_v26  ;;  %v17611_v26 = vld [vmem:[#allocation357_spill] sm:$0xff]  ;;  %vm17612_vm12 = vmmov %vm17597_vm2 }
 0x9a8   : > { %9789 = vpow2.f32 %v9183_v44  ;;  %v9782_v7 = vpop.eup %9781  ;;  %v4995_v45 = vadd.f32 %v4966_v2, %v4718_v47  ;;  %v4970_v24 = vsel %vm17596_vm0, %v17595_v21, %v17594_v43  ;;  %v5243_v51 = vsel %vm17597_vm2, %v17591_v52, %v17574_v16  ;;  %vm17614_vm3 = vmmov %vm17597_vm2 }
 0x9a9   : > { %9791 = vrcp.f32 %v15055_v48  ;;  %v9784_v56 = vpop.eup %9783  ;;  %v4997_v37 = vadd.f32 %v4967_v62, %v4720_v38  ;;  %v4998_v11 = vadd.f32 %v4968_v6, %v4721_v29  ;;  %v4971_v55 = vsel %vm17599_vm9, %v17594_v43, %v17598_v22 }
 0x9aa   : > { %v5271_v1 = vadd.f32 %v5242_v59, %v4994_v0  ;;  %v4999_v3 = vadd.f32 %v4969_v33, %v4722_v18  ;;  %v4972_v61 = vsel %vm17601_vm4, %v17598_v22, %v17600_v28  ;;  %v9187_v10 = vmul.f32 -1.442695, %v5277_v49  ;;  %v17608_v18 = vld [vmem:[#allocation362_spill] sm:$0xff] }
 0x9ab   : > { %v5244_v58 = vsel %vm17604_vm6, %v17603_v17, %v17602_v20  ;;  %v5001_v16 = vadd.f32 %v4970_v24, %v4724_v54  ;;  %v15091_v60 = vadd.f32 1.0, %v9782_v7  ;;  %v5272_v27 = vadd.f32 %v5243_v51, %v4995_v45  ;;  %v17609_v54 = vld [vmem:[#allocation361_spill] sm:$0xff] }
 0x9ac   : > { %v9786_v53 = vpop.eup %9785  ;;  %v5245_v42 = vsel %vm17606_vm8, %v17602_v20, %v17605_v25  ;;  %v5002_v41 = vadd.f32 %v4971_v55, %v4725_v31  ;;  %v5004_v63 = vadd.f32 %v17600_v28, %v4727_v50  ;;  %v15099_v46 = vadd.f32 1.0, %v9784_v56  ;;  %v17613_v50 = vld [vmem:[#allocation363_spill] sm:$0xff] }
 0x9ad   : > { %v15096_v30 = vpop.eup %9787  ;;  %v5246_v13 = vsel %vm17607_vm11, %v17605_v25, %v17590_v36  ;;  %v5003_v38 = vadd.f32 %v4972_v61, %v4726_v40  ;;  %v9181_v14 = vmul.f32 -1.442695, %v5271_v1  ;;  %v5274_v29 = vadd.f32 %v5244_v58, %v4997_v37 }
 0x9ae   : > { %v9790_v47 = vpop.eup %9789  ;;  %v5247_v44 = vsel %vm17610_vm10, %v17609_v54, %v17608_v18  ;;  %v15109_v12 = vadd.f32 1.0, %v9786_v53  ;;  %9793 = vpow2.f32 %v9187_v10  ;;  %v5275_v31 = vadd.f32 %v5245_v42, %v4998_v11  ;;  %v17625_v54 = vld [vmem:[#allocation169_spill] sm:$0xff] }
 0x9af   : > { %v15107_v23 = vpop.eup %9791  ;;  %v5248_v8 = vsel %vm17612_vm12, %v17608_v18, %v17611_v26  ;;  %9795 = vrcp.f32 %v15091_v60  ;;  %v9182_v15 = vmul.f32 -1.442695, %v5272_v27  ;;  %v5276_v32 = vadd.f32 %v5246_v13, %v4999_v3 }
 0x9b0   : > { %v5249_v2 = vsel %vm17614_vm3, %v17611_v26, %v17613_v50  ;;  %9797 = vrcp.f32 %v15099_v46  ;;  %v15119_v19 = vadd.f32 1.0, %v9790_v47  ;;  %v5278_v34 = vadd.f32 %v5247_v44, %v5001_v16 }
 0x9b1   : > { %v5531_v62 = vmul.f32 %v15096_v30, %v15046_v4  ;;  %9799 = vpow2.f32 %v9181_v14  ;;  %v9184_v35 = vmul.f32 -1.442695, %v5274_v29  ;;  %v5279_v6 = vadd.f32 %v5248_v8, %v5002_v41 }
 0x9b2   : > { %v5591_v36 = vmul.f32 %v15107_v23, %v15055_v48  ;;  %9801 = vrcp.f32 %v15109_v12  ;;  %v9185_v49 = vmul.f32 -1.442695, %v5275_v31  ;;  %v5280_v52 = vadd.f32 %v5249_v2, %v5003_v38 }
 0x9b3   : > { %9803 = vpow2.f32 %v9182_v15  ;;  %v9186_v59 = vmul.f32 -1.442695, %v5276_v32  ;;  %v5281_v40 = vadd.f32 %v17613_v50, %v5004_v63  ;;  %v9188_v33 = vmul.f32 -1.442695, %v5278_v34 }
 0x9b4   : > { %v9794_v0 = vpop.eup %9793  ;;  %9805 = vrcp.f32 %v15119_v19  ;;  %v5532_v7 = vsub.f32 1.0, %v5531_v62  ;;  %v9189_v43 = vmul.f32 -1.442695, %v5279_v6  ;;  %v5592_v21 = vsub.f32 1.0, %v5591_v36 }
 0x9b5   : > { %v15128_v45 = vpop.eup %9795  ;;  %9807 = vpow2.f32 %v9184_v35  ;;  %v9190_v51 = vmul.f32 -1.442695, %v5280_v52  ;;  %v9191_v37 = vmul.f32 -1.442695, %v5281_v40  ;;  %v15134_v22 = vadd.f32 1.0, %v9794_v0 }
 0x9b6   : > { %v15130_v24 = vpop.eup %9797  ;;  %9809 = vpow2.f32 %v9185_v49  ;;  %v5533_v55 = vmul.f32 %v15096_v30, %v5532_v7  ;;  %v5593_v3 = vmul.f32 %v15107_v23, %v5592_v21  ;;  %v5539_v17 = vand.u32 2147483647, %v15046_v4 }
 0x9b7   : > { %v9800_v56 = vpop.eup %9799  ;;  %9811 = vpow2.f32 %v9186_v59  ;;  %v5576_v28 = vmul.f32 %v15130_v24, %v15099_v46  ;;  %v5541_v58 = vand.u32 2147483648, %v15046_v4  ;;  %vm5536_vm5 = vweird.f32 %v15096_v30 }
 0x9b8   : > { %v15132_v11 = vpop.eup %9801  ;;  %9813 = vpow2.f32 %v9188_v33  ;;  %v15142_v10 = vadd.f32 1.0, %v9800_v56  ;;  %v5534_v27 = vadd.f32 %v15096_v30, %v5533_v55  ;;  %v5594_v42 = vadd.f32 %v15107_v23, %v5593_v3 }
 0x9b9   : > { %v9804_v1 = vpop.eup %9803  ;;  %9815 = vpow2.f32 %v9189_v43  ;;  %vm5596_vm1 = vweird.f32 %v15107_v23  ;;  %v5577_v41 = vsub.f32 1.0, %v5576_v28  ;;  %vm5535_vm13 = vweird.f32 %v15046_v4 }
 0x9ba   : > { %v15140_v61 = vpop.eup %9805  ;;  %9817 = vpow2.f32 %v9190_v51  ;;  %v15147_v16 = vadd.f32 1.0, %v9804_v1  ;;  %v5601_v38 = vand.u32 2147483648, %v15055_v48  ;;  %vm15162_vm14 = vmor %vm5535_vm13, %vm5536_vm5  ;;  %vm15166_vm15 = vcmp.eq.f32.partialorder %v5539_v17, 8.507059e+37 }
 0x9bb   : > { %v9808_v20 = vpop.eup %9807  ;;  %9819 = vpow2.f32 %v9191_v37  ;;  %v5636_v63 = vmul.f32 %v15140_v61, %v15119_v19  ;;  %vm5595_vm0 = vweird.f32 %v15055_v48  ;;  %v5599_v44 = vand.u32 2147483647, %v15055_v48 }
 0x9bc   : > { %v9810_v53 = vpop.eup %9809  ;;  %9821 = vrcp.f32 %v15134_v22  ;;  %v15156_v47 = vadd.f32 1.0, %v9808_v20  ;;  %v5538_v26 = vsel %vm15162_vm14, %v15096_v30, %v5534_v27  ;;  %v5542_v8 = vor.u32 1.1754944e-38, %v5541_v58  ;;  %vm15180_vm2 = vmor %vm5595_vm0, %vm5596_vm1 }
 0x9bd   : > { %v9812_v25 = vpop.eup %9811  ;;  %9823 = vrcp.f32 %v15142_v10  ;;  %v15160_v29 = vadd.f32 1.0, %v9810_v53  ;;  %v5598_v48 = vsel %vm15180_vm2, %v15107_v23, %v5594_v42  ;;  %v5578_v2 = vmul.f32 %v15130_v24, %v5577_v41 }
 0x9be   : > { %v9814_v13 = vpop.eup %9813  ;;  %9825 = vrcp.f32 %v15147_v16  ;;  %v15173_v4 = vadd.f32 1.0, %v9812_v25  ;;  %v5637_v34 = vsub.f32 1.0, %v5636_v63  ;;  %v5602_v35 = vor.u32 1.1754944e-38, %v5601_v38 }
 0x9bf   : > { %v9816_v14 = vpop.eup %9815  ;;  %v15184_v50 = vadd.f32 1.0, %v9814_v13  ;;  %9827 = vrcp.f32 %v15156_v47  ;;  %v5546_v6 = vmul.f32 %v15128_v45, %v15091_v60  ;;  %v15202_v23 = vsel %vm15166_vm15, %v5542_v8, %v5538_v26  ;;  %v15268_v8 = vpop.permute.xlu0 %8164 }
 0x9c0   : > { %v9818_v31 = vpop.eup %9817  ;;  %v15193_v30 = vadd.f32 1.0, %v9816_v14  ;;  %9829 = vrcp.f32 %v15160_v29  ;;  %vm5600_vm9 = vcmp.eq.f32.partialorder %v5599_v44, 8.507059e+37  ;;  %v5584_v40 = vand.u32 2147483647, %v15099_v46 }
 0x9c1   : > { %v9820_v32 = vpop.eup %9819  ;;  %v15198_v36 = vadd.f32 1.0, %v9818_v31  ;;  %9831 = vrcp.f32 %v15173_v4  ;;  %v15209_v59 = vsel %vm5600_vm9, %v5602_v35, %v5598_v48  ;;  %v5579_v0 = vadd.f32 %v15130_v24, %v5578_v2  ;;  %v17626_v31 = vld [vmem:[#allocation227_spill] sm:$0xff]  ;;  %v15283_v2 = vpop.permute.xlu1 %8166 }
 0x9c2   : > { %v15190_v62 = vpop.eup %9821  ;;  %v15207_v52 = vadd.f32 1.0, %v9820_v32  ;;  %9833 = vrcp.f32 %v15184_v50  ;;  %vm5581_vm4 = vweird.f32 %v15130_v24  ;;  %v5638_v33 = vmul.f32 %v15140_v61, %v5637_v34 }
 0x9c3   : > { %v15204_v49 = vpop.eup %9823  ;;  %9835 = vrcp.f32 %v15193_v30  ;;  %v5586_v43 = vand.u32 2147483648, %v15099_v46  ;;  %v5547_v21 = vsub.f32 1.0, %v5546_v6  ;;  %v5561_v51 = vmul.f32 %v15132_v11, %v15109_v12 }
 0x9c4   : > { %v15216_v7 = vpop.eup %9825  ;;  %9837 = vrcp.f32 %v15198_v36  ;;  %vm5580_vm6 = vweird.f32 %v15099_v46  ;;  %v5696_v56 = vmul.f32 %v15190_v62, %v15134_v22  ;;  %v5606_v37 = vmul.f32 %v15204_v49, %v15142_v10 }
 0x9c5   : > { %v15228_v55 = vpop.eup %9827  ;;  %9839 = vrcp.f32 %v15207_v52  ;;  %v8001_v1 = vsub.f32 1.0, %v15202_v23  ;;  %v8005_v3 = vsub.f32 1.0, %v15209_v59  ;;  %vm15235_vm8 = vmor %vm5580_vm6, %vm5581_vm4  ;;  %vm15239_vm11 = vcmp.eq.f32.partialorder %v5584_v40, 8.507059e+37 }
 0x9c6   : > { %v15243_v20 = vpop.eup %9829  ;;  %v5583_v17 = vsel %vm15235_vm8, %v15130_v24, %v5579_v0  ;;  %v5639_v58 = vadd.f32 %v15140_v61, %v5638_v33  ;;  %vm5641_vm10 = vweird.f32 %v15140_v61  ;;  %v5621_v53 = vmul.f32 %v15216_v7, %v15147_v16 }
 0x9c7   : > { %v15252_v27 = vpop.eup %9831  ;;  %v5587_v25 = vor.u32 1.1754944e-38, %v5586_v43  ;;  %v5646_v42 = vand.u32 2147483648, %v15119_v19  ;;  %v5548_v41 = vmul.f32 %v15128_v45, %v5547_v21  ;;  %v5562_v63 = vsub.f32 1.0, %v5561_v51 }
 0x9c8   : > { %v15256_v13 = vpop.eup %9833  ;;  %vm5640_vm12 = vweird.f32 %v15119_v19  ;;  %v5644_v24 = vand.u32 2147483647, %v15119_v19  ;;  %v5697_v38 = vsub.f32 1.0, %v5696_v56  ;;  %v5607_v14 = vsub.f32 1.0, %v5606_v37  ;;  %v15350_v19 = vpop.permute.xlu0 %8130 }
 0x9c9   : > { %v15260_v18 = vpop.eup %9835  ;;  %v15263_v44 = vmul.f32 %v8001_v1, %v17625_v54  ;;  %v15266_v26 = vmul.f32 %v8005_v3, %v17626_v31  ;;  %v15272_v15 = vsel %vm15239_vm11, %v5587_v25, %v5583_v17  ;;  %vm15276_vm3 = vmor %vm5640_vm12, %vm5641_vm10  ;;  %v5554_v32 = vand.u32 2147483647, %v15091_v60 }
 0x9ca   : > { %v15281_v48 = vpop.eup %9837  ;;  %v5643_v34 = vsel %vm15276_vm3, %v15140_v61, %v5639_v58  ;;  %vm5550_vm5 = vweird.f32 %v15091_v60  ;;  %v5556_v35 = vand.u32 2147483648, %v15091_v60  ;;  %v5622_v6 = vsub.f32 1.0, %v5621_v53 }
 0x9cb   : > { %v15290_v40 = vpop.eup %9839  ;;  %v5647_v0 = vor.u32 1.1754944e-38, %v5646_v42  ;;  %v5549_v33 = vadd.f32 %v15128_v45, %v5548_v41  ;;  %vm5551_vm1 = vweird.f32 %v15128_v45  ;;  %v5563_v43 = vmul.f32 %v15132_v11, %v5562_v63 }
 0x9cc   : > { %vm5645_vm13 = vcmp.eq.f32.partialorder %v5644_v24, 8.507059e+37  ;;  %vm5565_vm14 = vweird.f32 %v15109_v12  ;;  %v5698_v21 = vmul.f32 %v15190_v62, %v5697_v38  ;;  %v5608_v61 = vmul.f32 %v15204_v49, %v5607_v14  ;;  %vm15308_vm2 = vmor %vm5550_vm5, %vm5551_vm1  ;;  %v15338_v14 = vpop.permute.xlu2 %8168 }
 0x9cd   : > { %v15298_v51 = vsel %vm5645_vm13, %v5647_v0, %v5643_v34  ;;  %vm15300_vm15 = vcmp.eq.f32.partialorder %v5554_v32, 8.507059e+37  ;;  %vm5566_vm0 = vweird.f32 %v15132_v11  ;;  %v5571_v37 = vand.u32 2147483648, %v15109_v12 }
 0x9ce   : > { %v5557_v3 = vor.u32 1.1754944e-38, %v5556_v35  ;;  %v5569_v28 = vand.u32 2147483647, %v15109_v12  ;;  %vm5700_vm9 = vweird.f32 %v15134_v22  ;;  %v5623_v46 = vmul.f32 %v15216_v7, %v5622_v6  ;;  %vm15331_vm8 = vmor %vm5565_vm14, %vm5566_vm0  ;;  %v15363_v35 = vpop.permute.xlu1 %8132 }
 0x9cf   : > { %v5553_v17 = vsel %vm15308_vm2, %v15128_v45, %v5549_v33  ;;  %v5564_v58 = vadd.f32 %v15132_v11, %v5563_v43  ;;  %vm5701_vm4 = vweird.f32 %v15190_v62  ;;  %v5756_v60 = vmul.f32 %v15290_v40, %v15207_v52 }
 0x9d0   : > { %v5699_v53 = vadd.f32 %v15190_v62, %v5698_v21  ;;  %v5609_v25 = vadd.f32 %v15204_v49, %v5608_v61  ;;  %vm5611_vm6 = vweird.f32 %v15204_v49  ;;  %v5651_v42 = vmul.f32 %v15228_v55, %v15156_v47  ;;  %vm15342_vm11 = vmor %vm5700_vm9, %vm5701_vm4 }
 0x9d1   : > { %v5572_v41 = vor.u32 1.1754944e-38, %v5571_v37  ;;  %v5704_v63 = vand.u32 2147483647, %v15134_v22  ;;  %v5706_v24 = vand.u32 2147483648, %v15134_v22  ;;  %v5616_v38 = vand.u32 2147483648, %v15142_v10 }
 0x9d2   : > { %vm5610_vm10 = vweird.f32 %v15142_v10  ;;  %v5614_v12 = vand.u32 2147483647, %v15142_v10  ;;  %v5624_v31 = vadd.f32 %v15216_v7, %v5623_v46  ;;  %vm5626_vm12 = vweird.f32 %v15216_v7 }
 0x9d3   : > { %v5568_v32 = vsel %vm15331_vm8, %v15132_v11, %v5564_v58  ;;  %vm15357_vm3 = vmor %vm5610_vm10, %vm5611_vm6  ;;  %vm5625_vm5 = vweird.f32 %v15147_v16  ;;  %v5631_v10 = vand.u32 2147483648, %v15147_v16  ;;  %v5757_v34 = vsub.f32 1.0, %v5756_v60 }
 0x9d4   : > { %v5703_v6 = vsel %vm15342_vm11, %v15190_v62, %v5699_v53  ;;  %v5613_v11 = vsel %vm15357_vm3, %v15204_v49, %v5609_v25  ;;  %v5629_v0 = vand.u32 2147483647, %v15147_v16  ;;  %v5652_v33 = vsub.f32 1.0, %v5651_v42  ;;  %vm15376_vm13 = vmor %vm5625_vm5, %vm5626_vm12  ;;  %v8050_v54 = vpop.permute.xlu2 %8049 }
 0x9d5   : > { %v5558_v43 = vsel %vm15300_vm15, %v5557_v3, %v5553_v17  ;;  %vm5570_vm1 = vcmp.eq.f32.partialorder %v5569_v28, 8.507059e+37  ;;  %v5707_v21 = vor.u32 1.1754944e-38, %v5706_v24  ;;  %v5617_v61 = vor.u32 1.1754944e-38, %v5616_v38 }
 0x9d6   : > { %v5573_v62 = vsel %vm5570_vm1, %v5572_v41, %v5568_v32  ;;  %vm5705_vm14 = vcmp.eq.f32.partialorder %v5704_v63, 8.507059e+37  ;;  %vm5615_vm0 = vcmp.eq.f32.partialorder %v5614_v12, 8.507059e+37  ;;  %v5628_v16 = vsel %vm15376_vm13, %v15216_v7, %v5624_v31 }
 0x9d7   : > { %v15383_v49 = vsel %vm5705_vm14, %v5707_v21, %v5703_v6  ;;  %v15385_v56 = vsel %vm5615_vm0, %v5617_v61, %v5613_v11  ;;  %v5632_v1 = vor.u32 1.1754944e-38, %v5631_v10  ;;  %v5758_v3 = vmul.f32 %v15290_v40, %v5757_v34  ;;  %v17643_v34 = vld [vmem:[#allocation143_spill] sm:$0xff]  ;;  %v17644_v21 = vld [vmem:[#allocation224_spill] sm:$0xff] }
 0x9d8   : > { %v8004_v28 = vsub.f32 1.0, %v15272_v15  ;;  %vm5630_vm15 = vcmp.eq.f32.partialorder %v5629_v0, 8.507059e+37  ;;  %v5653_v46 = vmul.f32 %v15228_v55, %v5652_v33  ;;  %v5659_v17 = vand.u32 2147483647, %v15156_v47 }
 0x9d9   : > { %v8008_v58 = vsub.f32 1.0, %v15298_v51  ;;  %v8002_v60 = vsub.f32 1.0, %v5558_v43  ;;  %v8003_v53 = vsub.f32 1.0, %v5573_v62  ;;  %v15392_v25 = vsel %vm5630_vm15, %v5632_v1, %v5628_v16 }
 0x9da   : > { %v8012_v7 = vsub.f32 1.0, %v15383_v49  ;;  %v8006_v42 = vsub.f32 1.0, %v15385_v56  ;;  %v5766_v45 = vand.u32 2147483648, %v15207_v52  ;;  %vm5655_vm2 = vweird.f32 %v15156_v47 }
 0x9db   : > { %v15399_v63 = vadd.f32 %v15290_v40, %v5758_v3  ;;  %vm5656_vm9 = vweird.f32 %v15228_v55  ;;  %v5661_v24 = vand.u32 2147483648, %v15156_v47  ;;  %v5666_v38 = vmul.f32 %v15243_v20, %v15160_v29 }
 0x9dc   : > { %v8007_v32 = vsub.f32 1.0, %v15392_v25  ;;  %v5654_v22 = vadd.f32 %v15228_v55, %v5653_v46  ;;  %vm15408_vm4 = vcmp.eq.f32.partialorder %v5659_v17, 8.507059e+37  ;;  %v8018_v6 = vmul.f32 %v8002_v60, %v17643_v34  ;;  %vm15427_vm8 = vmor %vm5655_vm2, %vm5656_vm9 }
 0x9dd   : > { %v5681_v33 = vmul.f32 %v15252_v27, %v15173_v4  ;;  %v8019_v61 = vmul.f32 %v8003_v53, %v17644_v21  ;;  %v5662_v1 = vor.u32 1.1754944e-38, %v5661_v24  ;;  %v5667_v3 = vsub.f32 1.0, %v5666_v38  ;;  %v17647_v53 = vld [vmem:[#allocation179_spill] sm:$0xff] }
 0x9de   : > { %vm5671_vm6 = vweird.f32 %v15243_v20  ;;  %v5674_v46 = vand.u32 2147483647, %v15160_v29  ;;  %v8096_v17 = vmul.f32 %v8050_v54, %v15272_v15  ;;  %v15439_v15 = vsel %vm6230_vm7, %v15283_v2, %v15338_v14 }
 0x9df   : > { %vm5670_vm11 = vweird.f32 %v15160_v29  ;;  %v5682_v47 = vsub.f32 1.0, %v5681_v33  ;;  %v8020_v24 = vmul.f32 %v8004_v28, %v17647_v53  ;;  %vm5685_vm10 = vweird.f32 %v15173_v4 }
 0x9e0   : > { %v8046_v41 = vpop.permute.xlu0 %8045  ;;  %vm5686_vm12 = vweird.f32 %v15252_v27  ;;  %v5726_v28 = vmul.f32 %v15260_v18, %v15193_v30  ;;  %vm15465_vm3 = vcmp.eq.f32.partialorder %v5674_v46, 8.507059e+37  ;;  %vm15495_vm1 = vmor %vm5670_vm11, %vm5671_vm6  ;;  %vm5746_vm13 = vweird.f32 %v15281_v48 }
 0x9e1   : > { %v8093_v12 = vmul.f32 %v8046_v41, %v15202_v23  ;;  %v8048_v31 = vpop.permute.xlu1 %8047  ;;  %vm15515_vm14 = vmor %vm5685_vm10, %vm5686_vm12  ;;  %vm5745_vm0 = vweird.f32 %v15198_v36  ;;  %vm5761_vm15 = vweird.f32 %v15290_v40  ;;  %vm5716_vm2 = vweird.f32 %v15256_v13 }
 0x9e2   : > { %v8069_v11 = vsel %vm6230_vm7, %v8046_v41, %v8048_v31  ;;  %v8070_v0 = vsel %vm6230_vm7, %v8048_v31, %v8050_v54  ;;  %vm5715_vm9 = vweird.f32 %v15184_v50  ;;  %vm15574_vm10 = vmor %vm5745_vm0, %vm5746_vm13 }
 0x9e3   : > { %v8109_v23 = vadd.f32 %v8093_v12, %v15263_v44  ;;  %v8094_v37 = vmul.f32 %v8069_v11, %v5558_v43  ;;  %v8095_v16 = vmul.f32 %v8070_v0, %v5573_v62  ;;  %v15434_v43 = vsel %vm6230_vm7, %v15268_v8, %v15283_v2  ;;  %vm15540_vm6 = vmor %vm5715_vm9, %vm5716_vm2 }
 0x9e4   : > { %v5658_v62 = vsel %vm15427_vm8, %v15228_v55, %v5654_v22  ;;  %v5676_v12 = vand.u32 2147483648, %v15160_v29  ;;  %v5668_v2 = vmul.f32 %v15243_v20, %v5667_v3  ;;  %v5711_v55 = vmul.f32 %v15256_v13, %v15184_v50 }
 0x9e5   : > { %v8176_v60 = vmul.f32 %v15268_v8, %v8109_v23  ;;  %v8110_v41 = vadd.f32 %v8094_v37, %v8018_v6  ;;  %v8111_v31 = vadd.f32 %v8095_v16, %v8019_v61  ;;  %v8112_v22 = vadd.f32 %v8096_v17, %v8020_v24  ;;  %v8056_v6 = vpop.permute.xlu2 %8055  ;;  %v17650_v17 = vld [vmem:[#allocation265_spill] sm:$0xff] }
 0x9e6   : > { %v5663_v33 = vsel %vm15408_vm4, %v5662_v1, %v5658_v62  ;;  %v5689_v23 = vand.u32 2147483647, %v15173_v4  ;;  %v5741_v16 = vmul.f32 %v15281_v48, %v15198_v36  ;;  %v8022_v10 = vmul.f32 %v8006_v42, %v17650_v17 }
 0x9e7   : > { %v8177_v38 = vmul.f32 %v15434_v43, %v8110_v41  ;;  %v8178_v54 = vmul.f32 %v15439_v15, %v8111_v31  ;;  %8208 = vrot.lane.b32.xlu0 %v8176_v60, %s10110_s24  ;;  %v5677_v60 = vor.u32 1.1754944e-38, %v5676_v12  ;;  %v5669_v41 = vadd.f32 %v15243_v20, %v5668_v2  ;;  %v17653_v12 = vld [vmem:[#allocation172_spill] sm:$0xff] }
 0x9e8   : > { %v8052_v34 = vpop.permute.xlu0 %8051  ;;  %v5691_v31 = vand.u32 2147483648, %v15173_v4  ;;  %v5712_v46 = vsub.f32 1.0, %v5711_v55  ;;  %v5727_v44 = vsub.f32 1.0, %v5726_v28  ;;  %v8179_v62 = vmul.f32 %v15338_v14, %v8112_v22  ;;  %v17656_v28 = vld [vmem:[#allocation180_spill] sm:$0xff] }
 0x9e9   : > { %v8097_v11 = vmul.f32 %v8052_v34, %v15209_v59  ;;  %8210 = vrot.lane.b32.xlu1 %v8177_v38, %s10110_s24  ;;  %v8054_v0 = vpop.permute.xlu1 %8053  ;;  %8212 = vrot.lane.b32.xlu2 %v8178_v54, %s10110_s24  ;;  %v5683_v59 = vmul.f32 %v15252_v27, %v5682_v47  ;;  %v8009_v38 = vsub.f32 1.0, %v5663_v33  ;;  %vm15481_vm5 = vcmp.eq.f32.partialorder %v5689_v23, 8.507059e+37 }
 0x9ea   : > { %v8071_v21 = vsel %vm6230_vm7, %v8052_v34, %v8054_v0  ;;  %v8072_v61 = vsel %vm6230_vm7, %v8054_v0, %v8056_v6  ;;  %v8100_v54 = vmul.f32 %v8056_v6, %v15298_v51  ;;  %v8023_v34 = vmul.f32 %v8007_v32, %v17653_v12  ;;  %v17657_v0 = vld [vmem:[#allocation313_spill] sm:$0xff] }
 0x9eb   : > { %v8113_v3 = vadd.f32 %v8097_v11, %v15266_v26  ;;  %v8098_v1 = vmul.f32 %v8071_v21, %v15385_v56  ;;  %v8099_v53 = vmul.f32 %v8072_v61, %v15392_v25  ;;  %v5684_v26 = vadd.f32 %v15252_v27, %v5683_v59 }
 0x9ec   : > { %v5742_v56 = vsub.f32 1.0, %v5741_v16  ;;  %v8024_v22 = vmul.f32 %v8008_v58, %v17656_v28  ;;  %v5673_v32 = vsel %vm15495_vm1, %v15243_v20, %v5669_v41  ;;  %v5713_v6 = vmul.f32 %v15256_v13, %v5712_v46 }
 0x9ed   : > { %v8180_v47 = vmul.f32 %v15268_v8, %v8113_v3  ;;  %v8114_v24 = vadd.f32 %v8098_v1, %v8022_v10  ;;  %v5728_v11 = vmul.f32 %v15260_v18, %v5727_v44  ;;  %v8115_v29 = vadd.f32 %v8099_v53, %v8023_v34  ;;  %v8062_v17 = vpop.permute.xlu2 %8061 }
 0x9ee   : > { %v8025_v23 = vmul.f32 %v8009_v38, %v17657_v0  ;;  %v5692_v20 = vor.u32 1.1754944e-38, %v5691_v31  ;;  %v5688_v58 = vsel %vm15515_vm14, %v15252_v27, %v5684_v26  ;;  %v5749_v61 = vand.u32 2147483647, %v15198_v36 }
 0x9ef   : > { %v8181_v2 = vmul.f32 %v15434_v43, %v8114_v24  ;;  %8214 = vrot.lane.b32.xlu0 %v8179_v62, %s10110_s24  ;;  %v5751_v59 = vand.u32 2147483648, %v15198_v36  ;;  %v8116_v16 = vadd.f32 %v8100_v54, %v8024_v22  ;;  %v5678_v3 = vsel %vm15465_vm3, %v5677_v60, %v5673_v32 }
 0x9f0   : > { %v8058_v25 = vpop.permute.xlu0 %8057  ;;  %v5714_v10 = vadd.f32 %v15256_v13, %v5713_v6  ;;  %v5729_v27 = vadd.f32 %v15260_v18, %v5728_v11  ;;  %vm5731_vm4 = vweird.f32 %v15260_v18  ;;  %v8182_v1 = vmul.f32 %v15439_v15, %v8115_v29  ;;  %v17666_v6 = vld [vmem:[#allocation321_spill] sm:$0xff] }
 0x9f1   : > { %v8101_v21 = vmul.f32 %v8058_v25, %v5663_v33  ;;  %8216 = vrot.lane.b32.xlu1 %v8180_v47, %s10110_s24  ;;  %8218 = vrot.lane.b32.xlu2 %v8181_v2, %s10110_s24  ;;  %v5743_v33 = vmul.f32 %v15281_v48, %v5742_v56  ;;  %v5693_v31 = vsel %vm15481_vm5, %v5692_v20, %v5688_v58  ;;  %v5721_v37 = vand.u32 2147483648, %v15184_v50  ;;  %v17664_v2 = vld [vmem:[#allocation273_spill] sm:$0xff] }
 0x9f2   : > { %v8010_v60 = vsub.f32 1.0, %v5678_v3  ;;  %v5752_v44 = vor.u32 1.1754944e-38, %v5751_v59  ;;  %vm5730_vm8 = vweird.f32 %v15193_v30  ;;  %v8183_v47 = vmul.f32 %v15338_v14, %v8116_v16 }
 0x9f3   : > { %v8117_v4 = vadd.f32 %v8101_v21, %v8025_v23  ;;  %v5744_v46 = vadd.f32 %v15281_v48, %v5743_v33  ;;  %v8104_v53 = vmul.f32 %v8062_v17, %v15383_v49  ;;  %v5719_v24 = vand.u32 2147483647, %v15184_v50  ;;  %vm15549_vm11 = vmor %vm5730_vm8, %vm5731_vm4 }
 0x9f4   : > { %v5736_v26 = vand.u32 2147483648, %v15193_v30  ;;  %v8011_v42 = vsub.f32 1.0, %v5693_v31  ;;  %v5718_v54 = vsel %vm15540_vm6, %v15256_v13, %v5714_v10  ;;  %v5733_v12 = vsel %vm15549_vm11, %v15260_v18, %v5729_v27  ;;  %v17665_v13 = vld [vmem:[#allocation320_spill] sm:$0xff] }
 0x9f5   : > { %v8184_v41 = vmul.f32 %v15268_v8, %v8117_v4  ;;  %v5734_v34 = vand.u32 2147483647, %v15193_v30  ;;  %v8028_v50 = vmul.f32 %v8012_v7, %v17664_v2  ;;  %v5722_v22 = vor.u32 1.1754944e-38, %v5721_v37  ;;  %v8068_v10 = vpop.permute.xlu2 %8067 }
 0x9f6   : > { %v8026_v32 = vmul.f32 %v8010_v60, %v17665_v13  ;;  %v8027_v11 = vmul.f32 %v8011_v42, %v17666_v6  ;;  %v5748_v7 = vsel %vm15574_vm10, %v15281_v48, %v5744_v46  ;;  %vm5720_vm12 = vcmp.eq.f32.partialorder %v5719_v24, 8.507059e+37  ;;  %v17673_v46 = vld [vmem:[#allocation178_spill] sm:$0xff]  ;;  %v17674_v42 = vld [vmem:[#allocation131_spill] sm:$0xff]  ;;  %v17677_v13 = vld [vmem:[#allocation137_spill] sm:$0xff] }
 0x9f7   : > { %8220 = vrot.lane.b32.xlu0 %v8182_v1, %s10110_s24  ;;  %v8120_v49 = vadd.f32 %v8104_v53, %v8028_v50  ;;  %v5723_v21 = vsel %vm5720_vm12, %v5722_v22, %v5718_v54  ;;  %vm5735_vm3 = vcmp.eq.f32.partialorder %v5734_v34, 8.507059e+37  ;;  %vm5760_vm5 = vweird.f32 %v15207_v52  ;;  %v17675_v50 = vld [vmem:[#allocation134_spill] sm:$0xff]  ;;  %v17678_v6 = vld [vmem:[#allocation135_spill] sm:$0xff] }
 0x9f8   : > { %v8060_v56 = vpop.permute.xlu1 %8059  ;;  %v5764_v51 = vand.u32 2147483647, %v15207_v52  ;;  %vm5750_vm1 = vcmp.eq.f32.partialorder %v5749_v61, 8.507059e+37  ;;  %vm15585_vm13 = vmor %vm5760_vm5, %vm5761_vm15  ;;  %v8013_v61 = vsub.f32 1.0, %v5723_v21  ;;  %v5767_v4 = vor.u32 1.1754944e-38, %v5766_v45  ;;  %v17672_v52 = vld [vmem:[#allocation185_spill] sm:$0xff] }
 0x9f9   : > { %v8073_v55 = vsel %vm6230_vm7, %v8058_v25, %v8060_v56  ;;  %v8074_v28 = vsel %vm6230_vm7, %v8060_v56, %v8062_v17  ;;  %8224 = vrot.lane.b32.xlu2 %v8184_v41, %s10110_s24  ;;  %8222 = vrot.lane.b32.xlu1 %v8183_v47, %s10110_s24  ;;  %v5737_v25 = vor.u32 1.1754944e-38, %v5736_v26  ;;  %v5753_v33 = vsel %vm5750_vm1, %v5752_v44, %v5748_v7  ;;  %v17671_v41 = vld [vmem:[#allocation323_spill] sm:$0xff] }
 0x9fa   : > { %v8102_v18 = vmul.f32 %v8073_v55, %v5678_v3  ;;  %v8103_v29 = vmul.f32 %v8074_v28, %v5693_v31  ;;  %v8187_v59 = vmul.f32 %v15338_v14, %v8120_v49  ;;  %v5763_v16 = vsel %vm15585_vm13, %v15290_v40, %v15399_v63  ;;  %v17676_v28 = vld [vmem:[#allocation183_spill] sm:$0xff]  ;;  %v17680_v49 = vld [vmem:[#allocation132_spill] sm:$0xff] }
 0x9fb   : > { %v5738_v36 = vsel %vm5735_vm3, %v5737_v25, %v5733_v12  ;;  %vm5765_vm14 = vcmp.eq.f32.partialorder %v5764_v51, 8.507059e+37  ;;  %v8015_v27 = vsub.f32 1.0, %v5753_v33  ;;  %v8029_v31 = vmul.f32 %v8013_v61, %v17671_v41  ;;  %v17684_v61 = vld [vmem:[#allocation140_spill] sm:$0xff] }
 0x9fc   : > { %v8118_v0 = vadd.f32 %v8102_v18, %v8026_v32  ;;  %v8119_v23 = vadd.f32 %v8103_v29, %v8027_v11  ;;  %v8014_v3 = vsub.f32 1.0, %v5738_v36  ;;  %v5768_v40 = vsel %vm5765_vm14, %v5767_v4, %v5763_v16  ;;  %v17679_v18 = vld [vmem:[#allocation175_spill] sm:$0xff] }
 0x9fd   : > { %v8031_v44 = vmul.f32 %v8015_v27, %v17673_v46  ;;  %v9144_v56 = vmul.f32 -1.442695, %v17674_v42  ;;  %v8016_v54 = vsub.f32 1.0, %v5768_v40  ;;  %v8108_v12 = vmul.f32 %v8068_v10, %v5768_v40 }
 0x9fe   : > { %v8185_v48 = vmul.f32 %v15434_v43, %v8118_v0  ;;  %v8186_v58 = vmul.f32 %v15439_v15, %v8119_v23  ;;  %v8030_v45 = vmul.f32 %v8014_v3, %v17672_v52  ;;  %v9145_v55 = vmul.f32 -1.442695, %v17675_v50  ;;  %v17681_v0 = vld [vmem:[#allocation138_spill] sm:$0xff] }
 0x9ff   : > { %v8032_v22 = vmul.f32 %v8016_v54, %v17676_v28  ;;  %9841 = vpow2.f32 %v9144_v56  ;;  %v9147_v32 = vmul.f32 -1.442695, %v17677_v13  ;;  %v9148_v11 = vmul.f32 -1.442695, %v17678_v6 }
 0xa00   : > { %v8064_v17 = vpop.permute.xlu0 %8063  ;;  %8226 = vrot.lane.b32.xlu0 %v8185_v48, %s10110_s24  ;;  %9843 = vpow2.f32 %v9145_v55  ;;  %v9146_v29 = vmul.f32 -1.442695, %v17679_v18  ;;  %v9149_v7 = vmul.f32 -1.442695, %v17680_v49  ;;  %v9151_v23 = vmul.f32 -1.442695, %v17681_v0 }
 0xa01   : > { %v8066_v1 = vpop.permute.xlu1 %8065  ;;  %v8105_v37 = vmul.f32 %v8064_v17, %v5723_v21  ;;  %8230 = vrot.lane.b32.xlu2 %v8187_v59, %s10110_s24  ;;  %8228 = vrot.lane.b32.xlu1 %v8186_v58, %s10110_s24  ;;  %9845 = vpow2.f32 %v9147_v32  ;;  %v9152_v4 = vmul.f32 -1.442695, %v17684_v61  ;;  %v17690_v55 = vld [vmem:[#allocation182_spill] sm:$0xff] }
 0xa02   : > { %v8076_v63 = vsel %vm6230_vm7, %v8066_v1, %v8068_v10  ;;  %v8075_v60 = vsel %vm6230_vm7, %v8064_v17, %v8066_v1  ;;  %9847 = vpow2.f32 %v9148_v11  ;;  %v17685_v17 = vld [vmem:[#allocation275_spill] sm:$0xff]  ;;  %v9158_v28 = vmul.f32 -1.442695, %v17690_v55 }
 0xa03   : > { %v8107_v62 = vmul.f32 %v8076_v63, %v5753_v33  ;;  %v8106_v47 = vmul.f32 %v8075_v60, %v5738_v36  ;;  %v8121_v53 = vadd.f32 %v8105_v37, %v8029_v31  ;;  %9849 = vpow2.f32 %v9146_v29  ;;  %v17683_v33 = vld [vmem:[#allocation272_spill] sm:$0xff] }
 0xa04   : > { %9851 = vpow2.f32 %v9149_v7  ;;  %v9150_v59 = vmul.f32 -1.442695, %v17683_v33  ;;  %v9154_v10 = vmul.f32 -1.442695, %v17685_v17  ;;  %v17686_v63 = vld [vmem:[#allocation176_spill] sm:$0xff] }
 0xa05   : > { %v8123_v24 = vadd.f32 %v8107_v62, %v8031_v44  ;;  %v8122_v38 = vadd.f32 %v8106_v47, %v8030_v45  ;;  %v8188_v26 = vmul.f32 %v15268_v8, %v8121_v53  ;;  %v8124_v8 = vadd.f32 %v8108_v12, %v8032_v22  ;;  %v17687_v62 = vld [vmem:[#allocation177_spill] sm:$0xff] }
 0xa06   : > { %v9156_v52 = vmul.f32 -1.442695, %v17686_v63  ;;  %v9155_v47 = vmul.f32 -1.442695, %v17687_v62  ;;  %v17689_v12 = vld [vmem:[#allocation225_spill] sm:$0xff] }
 0xa07   : > { %v8190_v34 = vmul.f32 %v15439_v15, %v8123_v24  ;;  %v8189_v2 = vmul.f32 %v15434_v43, %v8122_v38  ;;  %v8191_v15 = vmul.f32 %v15338_v14, %v8124_v8  ;;  %v9842_v43 = vpop.eup %9841  ;;  %v17682_v14 = vld [vmem:[#allocation141_spill] sm:$0xff] }
 0xa08   : > { %8232 = vrot.lane.b32.xlu0 %v8188_v26, %s10110_s24  ;;  %v9844_v30 = vpop.eup %9843  ;;  %v15621_v25 = vadd.f32 1.0, %v9842_v43  ;;  %v9153_v20 = vmul.f32 -1.442695, %v17682_v14  ;;  %v17688_v24 = vld [vmem:[#allocation217_spill] sm:$0xff] }
 0xa09   : > { %8234 = vrot.lane.b32.xlu1 %v8189_v2, %s10110_s24  ;;  %8236 = vrot.lane.b32.xlu2 %v8190_v34, %s10110_s24  ;;  %v9846_v21 = vpop.eup %9845  ;;  %v15624_v51 = vadd.f32 1.0, %v9844_v30  ;;  %v9157_v38 = vmul.f32 -1.442695, %v17688_v24  ;;  %v9159_v34 = vmul.f32 -1.442695, %v17689_v12 }
 0xa0a   : > { %v9848_v36 = vpop.eup %9847  ;;  %9853 = vrcp.f32 %v15621_v25  ;;  %v15628_v48 = vadd.f32 1.0, %v9846_v21  ;;  %vm2711_vm0 = vweird.f32 %v15621_v25  ;;  %v2717_v7 = vand.u32 2147483648, %v15621_v25 }
 0xa0b   : > { %9855 = vpow2.f32 %v9151_v23  ;;  %v15630_v58 = vadd.f32 1.0, %v9848_v36  ;;  %v9850_v16 = vpop.eup %9849  ;;  %v2715_v36 = vand.u32 2147483647, %v15621_v25  ;;  %vm2726_vm2 = vweird.f32 %v15624_v51 }
 0xa0c   : > { %9857 = vrcp.f32 %v15624_v51  ;;  %v9852_v3 = vpop.eup %9851  ;;  %v15640_v41 = vadd.f32 1.0, %v9850_v16 }
 0xa0d   : > { %9859 = vpow2.f32 %v9153_v20  ;;  %v15644_v37 = vadd.f32 1.0, %v9852_v3  ;;  %vm2716_vm8 = vcmp.eq.f32.partialorder %v2715_v36, 8.507059e+37  ;;  %vm2771_vm10 = vweird.f32 %v15630_v58 }
 0xa0e   : > { %9861 = vrcp.f32 %v15628_v48  ;;  %vm2741_vm5 = vweird.f32 %v15640_v41 }
 0xa0f   : > { %9863 = vrcp.f32 %v15630_v58 }
 0xa10   : > { %8238 = vrot.lane.b32.xlu0 %v8191_v15, %s10110_s24  ;;  %v15637_v27 = vpop.eup %9853  ;;  %9865 = vpow2.f32 %v9150_v59  ;;  %v2732_v59 = vand.u32 2147483648, %v15624_v51 }
 0xa11   : > { %v9856_v1 = vpop.eup %9855  ;;  %9867 = vpow2.f32 %v9152_v4  ;;  %v2707_v40 = vmul.f32 %v15637_v27, %v15621_v25  ;;  %vm2712_vm15 = vweird.f32 %v15637_v27  ;;  %v2730_v4 = vand.u32 2147483647, %v15624_v51 }
 0xa12   : > { %v15642_v31 = vpop.eup %9857  ;;  %9869 = vpow2.f32 %v9154_v10  ;;  %v15649_v60 = vadd.f32 1.0, %v9856_v1  ;;  %vm15704_vm4 = vmor %vm2711_vm0, %vm2712_vm15  ;;  %v2718_v25 = vor.u32 1.1754944e-38, %v2717_v7  ;;  %vm2756_vm0 = vweird.f32 %v15628_v48 }
 0xa13   : > { %v9860_v45 = vpop.eup %9859  ;;  %v2722_v44 = vmul.f32 %v15642_v31, %v15624_v51  ;;  %9871 = vrcp.f32 %v15640_v41  ;;  %v2708_v56 = vsub.f32 1.0, %v2707_v40  ;;  %vm2727_vm9 = vweird.f32 %v15642_v31 }
 0xa14   : > { %v15651_v46 = vpop.eup %9861  ;;  %9873 = vrcp.f32 %v15644_v37  ;;  %v15661_v42 = vadd.f32 1.0, %v9860_v45  ;;  %vm15719_vm6 = vmor %vm2726_vm2, %vm2727_vm9  ;;  %vm15737_vm11 = vcmp.eq.f32.partialorder %v2730_v4, 8.507059e+37  ;;  %vm2816_vm2 = vweird.f32 %v15649_v60 }
 0xa15   : > { %v15657_v53 = vpop.eup %9863  ;;  %9875 = vpow2.f32 %v9156_v52  ;;  %v2723_v50 = vsub.f32 1.0, %v2722_v44  ;;  %v2709_v32 = vmul.f32 %v15637_v27, %v2708_v56  ;;  %v15678_v11 = vmul.f32 %v15651_v46, %v15628_v48 }
 0xa16   : > { %v9866_v26 = vpop.eup %9865  ;;  %9877 = vrcp.f32 %v15649_v60  ;;  %v2767_v8 = vmul.f32 %v15657_v53, %v15630_v58  ;;  %vm2772_vm12 = vweird.f32 %v15657_v53  ;;  %vm2757_vm15 = vweird.f32 %v15651_v46 }
 0xa17   : > { %v9868_v54 = vpop.eup %9867  ;;  %9879 = vpow2.f32 %v9155_v47  ;;  %v15666_v22 = vadd.f32 1.0, %v9866_v26  ;;  %v2724_v29 = vmul.f32 %v15642_v31, %v2723_v50  ;;  %v2710_v21 = vadd.f32 %v15637_v27, %v2709_v32  ;;  %vm15774_vm3 = vmor %vm2771_vm10, %vm2772_vm12 }
 0xa18   : > { %v9870_v2 = vpop.eup %9869  ;;  %9881 = vpow2.f32 %v9157_v38  ;;  %v15680_v15 = vadd.f32 1.0, %v9868_v54  ;;  %v2768_v0 = vsub.f32 1.0, %v2767_v8  ;;  %v2753_v17 = vsub.f32 1.0, %v15678_v11 }
 0xa19   : > { %v15670_v13 = vpop.eup %9871  ;;  %9883 = vrcp.f32 %v15661_v42  ;;  %v15682_v43 = vadd.f32 1.0, %v9870_v2  ;;  %v2725_v61 = vadd.f32 %v15642_v31, %v2724_v29  ;;  %v2714_v52 = vsel %vm15704_vm4, %v15637_v27, %v2710_v21  ;;  %vm15839_vm4 = vmor %vm2756_vm0, %vm2757_vm15 }
 0xa1a   : > { %v15674_v6 = vpop.eup %9873  ;;  %9885 = vpow2.f32 %v9159_v34  ;;  %v2737_v49 = vmul.f32 %v15670_v13, %v15640_v41  ;;  %v2769_v45 = vmul.f32 %v15657_v53, %v2768_v0  ;;  %v2733_v47 = vor.u32 1.1754944e-38, %v2732_v59 }
 0xa1b   : > { %v9876_v18 = vpop.eup %9875  ;;  %9887 = vpow2.f32 %v9158_v28  ;;  %v2782_v62 = vmul.f32 %v15674_v6, %v15644_v37  ;;  %v2729_v24 = vsel %vm15719_vm6, %v15642_v31, %v2725_v61  ;;  %v15749_v56 = vsel %vm2716_vm8, %v2718_v25, %v2714_v52 }
 0xa1c   : > { %v15687_v30 = vpop.eup %9877  ;;  %9889 = vrcp.f32 %v15666_v22  ;;  %v15697_v20 = vadd.f32 1.0, %v9876_v18  ;;  %v2738_v63 = vsub.f32 1.0, %v2737_v49  ;;  %v2777_v54 = vand.u32 2147483648, %v15630_v58 }
 0xa1d   : > { %v9880_v23 = vpop.eup %9879  ;;  %9891 = vrcp.f32 %v15682_v43  ;;  %v2812_v31 = vmul.f32 %v15687_v30, %v15649_v60  ;;  %v2770_v34 = vadd.f32 %v15657_v53, %v2769_v45  ;;  %v2775_v2 = vand.u32 2147483647, %v15630_v58 }
 0xa1e   : > { %v9882_v14 = vpop.eup %9881  ;;  %9893 = vrcp.f32 %v15680_v15  ;;  %v15715_v10 = vadd.f32 1.0, %v9880_v23  ;;  %v2739_v50 = vmul.f32 %v15670_v13, %v2738_v63  ;;  %v15768_v32 = vsel %vm15737_vm11, %v2733_v47, %v2729_v24 }
 0xa1f   : > { %v15709_v16 = vpop.eup %9883  ;;  %9895 = vrcp.f32 %v15697_v20  ;;  %v15732_v51 = vadd.f32 1.0, %v9882_v14  ;;  %v7861_v29 = vsub.f32 1.0, %v15749_v56  ;;  %vm2742_vm1 = vweird.f32 %v15670_v13 }
 0xa20   : > { %v9886_v3 = vpop.eup %9885  ;;  %v15747_v26 = vmul.f32 %v15709_v16, %v15661_v42  ;;  %9897 = vrcp.f32 %v15715_v10  ;;  %v2778_v58 = vor.u32 1.1754944e-38, %v2777_v54  ;;  %v2813_v0 = vsub.f32 1.0, %v2812_v31  ;;  %vm15801_vm14 = vmor %vm2741_vm5, %vm2742_vm1 }
 0xa21   : > { %v9888_v40 = vpop.eup %9887  ;;  %v15760_v55 = vadd.f32 1.0, %v9886_v3  ;;  %9899 = vrcp.f32 %v15732_v51  ;;  %v7862_v23 = vsub.f32 1.0, %v15768_v32  ;;  %v2774_v21 = vsel %vm15774_vm3, %v15657_v53, %v2770_v34  ;;  %v9937_v3 = vld [vmem:[%s10300_s20] sm:$0xff] }
 0xa22   : > { %v15727_v44 = vpop.eup %9889  ;;  %v15764_v8 = vadd.f32 1.0, %v9888_v40  ;;  %vm2776_vm13 = vcmp.eq.f32.partialorder %v2775_v2, 8.507059e+37  ;;  %v15797_v36 = vadd.f32 %v15670_v13, %v2739_v50  ;;  %v2843_v14 = vsub.f32 1.0, %v15747_v26 }
 0xa23   : > { %v15743_v27 = vpop.eup %9891  ;;  %v2797_v28 = vmul.f32 %v15727_v44, %v15666_v22  ;;  %9901 = vrcp.f32 %v15760_v55  ;;  %v2754_v59 = vmul.f32 %v15651_v46, %v2753_v17  ;;  %v2783_v61 = vsub.f32 1.0, %v2782_v62  ;;  %v9938_v17 = vld [vmem:[%s10300_s20 + $0x8] sm:$0xff] }
 0xa24   : > { %v15754_v12 = vpop.eup %9893  ;;  %v15780_v18 = vmul.f32 %v15743_v27, %v15682_v43  ;;  %9903 = vrcp.f32 %v15764_v8  ;;  %v15811_v25 = vmul.f32 %v9937_v3, %v7861_v29  ;;  %v15813_v40 = vsel %vm2776_vm13, %v2778_v58, %v2774_v21 }
 0xa25   : > { %v15785_v49 = vpop.eup %9895  ;;  %v15789_v7 = vmul.f32 %v15754_v12, %v15680_v15  ;;  %v2798_v1 = vsub.f32 1.0, %v2797_v28  ;;  %v2745_v63 = vand.u32 2147483647, %v15640_v41  ;;  %v2747_v52 = vand.u32 2147483648, %v15640_v41 }
 0xa26   : > { %v15806_v4 = vpop.eup %9897  ;;  %v2858_v53 = vsub.f32 1.0, %v15780_v18  ;;  %v2814_v45 = vmul.f32 %v15687_v30, %v2813_v0  ;;  %v15819_v62 = vmul.f32 %v9938_v17, %v7862_v23  ;;  %v2744_v47 = vsel %vm15801_vm14, %v15670_v13, %v15797_v36 }
 0xa27   : > { %v15827_v24 = vpop.eup %9899  ;;  %v2755_v38 = vadd.f32 %v15651_v46, %v2754_v59  ;;  %v2760_v41 = vand.u32 2147483647, %v15628_v48  ;;  %v2762_v54 = vand.u32 2147483648, %v15628_v48  ;;  %v2784_v31 = vmul.f32 %v15674_v6, %v2783_v61 }
 0xa28   : > { %vm2817_vm9 = vweird.f32 %v15687_v30  ;;  %v2820_v13 = vand.u32 2147483647, %v15649_v60  ;;  %v2799_v34 = vmul.f32 %v15727_v44, %v2798_v1  ;;  %v2815_v28 = vadd.f32 %v15687_v30, %v2814_v45 }
 0xa29   : > { %v15837_v2 = vpop.eup %9901  ;;  %v2822_v48 = vand.u32 2147483648, %v15649_v60  ;;  %vm2786_vm6 = vweird.f32 %v15644_v37  ;;  %vm2787_vm8 = vweird.f32 %v15674_v6  ;;  %v2790_v18 = vand.u32 2147483647, %v15644_v37  ;;  %vm15861_vm3 = vmor %vm2816_vm2, %vm2817_vm9 }
 0xa2a   : > { %v15847_v11 = vpop.eup %9903  ;;  %v2792_v29 = vand.u32 2147483648, %v15644_v37  ;;  %vm2801_vm11 = vweird.f32 %v15666_v22  ;;  %vm2802_vm10 = vweird.f32 %v15727_v44  ;;  %vm15853_vm12 = vcmp.eq.f32.partialorder %v2745_v63, 8.507059e+37  ;;  %vm15870_vm5 = vmor %vm2786_vm6, %vm2787_vm8 }
 0xa2b   : > { %v2748_v0 = vor.u32 1.1754944e-38, %v2747_v52  ;;  %v2785_v21 = vadd.f32 %v15674_v6, %v2784_v31  ;;  %v2807_v37 = vand.u32 2147483648, %v15666_v22  ;;  %v2759_v36 = vsel %vm15839_vm4, %v15651_v46, %v2755_v38  ;;  %vm15887_vm14 = vmor %vm2801_vm11, %vm2802_vm10 }
 0xa2c   : > { %v2800_v59 = vadd.f32 %v15727_v44, %v2799_v34  ;;  %v2805_v60 = vand.u32 2147483647, %v15666_v22  ;;  %v2828_v61 = vsub.f32 1.0, %v15789_v7  ;;  %vm15877_vm1 = vcmp.eq.f32.partialorder %v2760_v41, 8.507059e+37 }
 0xa2d   : > { %v2763_v1 = vor.u32 1.1754944e-38, %v2762_v54  ;;  %vm15881_vm13 = vcmp.eq.f32.partialorder %v2820_v13, 8.507059e+37  ;;  %v2859_v52 = vmul.f32 %v15743_v27, %v2858_v53  ;;  %v2819_v7 = vsel %vm15861_vm3, %v15687_v30, %v2815_v28 }
 0xa2e   : > { %v2823_v45 = vor.u32 1.1754944e-38, %v2822_v48  ;;  %vm15895_vm0 = vcmp.eq.f32.partialorder %v2790_v18, 8.507059e+37  ;;  %v2793_v38 = vor.u32 1.1754944e-38, %v2792_v29  ;;  %v2789_v22 = vsel %vm15870_vm5, %v15674_v6, %v2785_v21 }
 0xa2f   : > { %v2808_v41 = vor.u32 1.1754944e-38, %v2807_v37  ;;  %vm2861_vm15 = vweird.f32 %v15682_v43  ;;  %vm2862_vm2 = vweird.f32 %v15743_v27  ;;  %v2804_v53 = vsel %vm15887_vm14, %v15727_v44, %v2800_v59  ;;  %v15953_v59 = vpop.permute.xlu2 %8134 }
 0xa30   : > { %vm2806_vm9 = vcmp.eq.f32.partialorder %v2805_v60, 8.507059e+37  ;;  %v2867_v30 = vand.u32 2147483648, %v15682_v43  ;;  %v2829_v54 = vmul.f32 %v15754_v12, %v2828_v61  ;;  %v7865_v31 = vsub.f32 1.0, %v15813_v40  ;;  %vm15920_vm4 = vmor %vm2861_vm15, %vm2862_vm2 }
 0xa31   : > { %v15912_v13 = vsel %vm15853_vm12, %v2748_v0, %v2744_v47  ;;  %v2860_v6 = vadd.f32 %v15743_v27, %v2859_v52  ;;  %v2865_v34 = vand.u32 2147483647, %v15682_v43  ;;  %v15918_v50 = vsel %vm15877_vm1, %v2763_v1, %v2759_v36  ;;  %v9939_v52 = vld [vmem:[%s10300_s20 + $0x18] sm:$0xff] }
 0xa32   : > { %vm2831_vm6 = vweird.f32 %v15680_v15  ;;  %vm2832_vm8 = vweird.f32 %v15754_v12  ;;  %v2837_v28 = vand.u32 2147483648, %v15680_v15  ;;  %v15929_v47 = vsel %vm15881_vm13, %v2823_v45, %v2819_v7  ;;  %v9940_v45 = vld [vmem:[%s10300_s20 + $0x10] sm:$0xff] }
 0xa33   : > { %v15933_v43 = vsel %vm15895_vm0, %v2793_v38, %v2789_v22  ;;  %v15935_v48 = vsel %vm2806_vm9, %v2808_v41, %v2804_v53  ;;  %v2872_v18 = vmul.f32 %v15806_v4, %v15715_v10  ;;  %v7863_v29 = vsub.f32 1.0, %v15912_v13  ;;  %vm15946_vm10 = vmor %vm2831_vm6, %vm2832_vm8  ;;  %v9941_v41 = vld [vmem:[%s10308_s19] sm:$0xff] }
 0xa34   : > { %v2868_v58 = vor.u32 1.1754944e-38, %v2867_v30  ;;  %v2830_v0 = vadd.f32 %v15754_v12, %v2829_v54  ;;  %v2835_v23 = vand.u32 2147483647, %v15680_v15  ;;  %v7864_v21 = vsub.f32 1.0, %v15918_v50  ;;  %v9943_v54 = vld [vmem:[%s10300_s20 + $0x20] sm:$0xff] }
 0xa35   : > { %v2864_v37 = vsel %vm15920_vm4, %v15743_v27, %v2860_v6  ;;  %vm2866_vm11 = vcmp.eq.f32.partialorder %v2865_v34, 8.507059e+37  ;;  %v2844_v33 = vmul.f32 %v15709_v16, %v2843_v14  ;;  %v7868_v15 = vsub.f32 1.0, %v15929_v47  ;;  %v9944_v34 = vld [vmem:[%s10300_s20 + $0x28] sm:$0xff] }
 0xa36   : > { %v7866_v60 = vsub.f32 1.0, %v15933_v43  ;;  %v7867_v61 = vsub.f32 1.0, %v15935_v48  ;;  %v2838_v27 = vor.u32 1.1754944e-38, %v2837_v28  ;;  %vm2846_vm12 = vweird.f32 %v15661_v42 }
 0xa37   : > { %vm2847_vm3 = vweird.f32 %v15709_v16  ;;  %v2852_v26 = vand.u32 2147483648, %v15661_v42  ;;  %v2873_v14 = vsub.f32 1.0, %v2872_v18  ;;  %v15961_v3 = vsel %vm2866_vm11, %v2868_v58, %v2864_v37  ;;  %v17727_v37 = vld [vmem:[#allocation279_spill] sm:$0xff] }
 0xa38   : > { %v2834_v1 = vsel %vm15946_vm10, %v15754_v12, %v2830_v0  ;;  %vm15966_vm5 = vcmp.eq.f32.partialorder %v2835_v23, 8.507059e+37  ;;  %v2887_v46 = vmul.f32 %v15785_v49, %v15697_v20  ;;  %v15973_v7 = vmul.f32 %v9939_v52, %v7865_v31  ;;  %v9942_v12 = vld [vmem:[%s10308_s19 + $0x8] sm:$0xff]  ;;  %vm15994_vm1 = vmor %vm2846_vm12, %vm2847_vm3  ;;  %v17725_v0 = vld [vmem:[#allocation229_spill] sm:$0xff] }
 0xa39   : > { %v7879_v17 = vmul.f32 %v9940_v45, %v7863_v29  ;;  %v2845_v38 = vadd.f32 %v15709_v16, %v2844_v33  ;;  %v2850_v22 = vand.u32 2147483647, %v15661_v42  ;;  %v15979_v53 = vmul.f32 %v9941_v41, %v7864_v21  ;;  %v17726_v21 = vld [vmem:[#allocation285_spill] sm:$0xff] }
 0xa3a   : > { %v15982_v30 = vmul.f32 %v9942_v12, %v7868_v15  ;;  %v15985_v6 = vmul.f32 %v9943_v54, %v7866_v60  ;;  %v15988_v44 = vmul.f32 %v9944_v34, %v7867_v61  ;;  %v7871_v28 = vsub.f32 1.0, %v15961_v3 }
 0xa3b   : > { %v16001_v18 = vsel %vm15966_vm5, %v2838_v27, %v2834_v1  ;;  %v2853_v29 = vor.u32 1.1754944e-38, %v2852_v26  ;;  %v2874_v58 = vmul.f32 %v15806_v4, %v2873_v14  ;;  %v7969_v23 = vmul.f32 %v17725_v0, %v15749_v56 }
 0xa3c   : > { %v7941_v42 = vsel %vm6230_vm7, %v17725_v0, %v17726_v21  ;;  %v7942_v36 = vsel %vm6230_vm7, %v17726_v21, %v17727_v37  ;;  %v2888_v33 = vsub.f32 1.0, %v2887_v46  ;;  %v2849_v15 = vsel %vm15994_vm1, %v15709_v16, %v2845_v38  ;;  %v17733_v0 = vld [vmem:[#allocation284_spill] sm:$0xff] }
 0xa3d   : > { %vm2851_vm13 = vcmp.eq.f32.partialorder %v2850_v22, 8.507059e+37  ;;  %v2880_v60 = vand.u32 2147483647, %v15715_v10  ;;  %v2882_v61 = vand.u32 2147483648, %v15715_v10  ;;  %v7869_v56 = vsub.f32 1.0, %v16001_v18 }
 0xa3e   : > { %vm2876_vm14 = vweird.f32 %v15715_v10  ;;  %vm2877_vm0 = vweird.f32 %v15806_v4  ;;  %vm2891_vm15 = vweird.f32 %v15697_v20  ;;  %v7970_v26 = vmul.f32 %v7941_v42, %v15768_v32 }
 0xa3f   : > { %v7971_v14 = vmul.f32 %v7942_v36, %v15912_v13  ;;  %v2902_v16 = vmul.f32 %v15827_v24, %v15732_v51  ;;  %vm8136_vm2 = vcmask 343040   ;;  %v7985_v1 = vadd.f32 %v7969_v23, %v15811_v25  ;;  %vm16032_vm9 = vmor %vm2876_vm14, %vm2877_vm0  ;;  %v17732_v25 = vld [vmem:[#allocation237_spill] sm:$0xff]  ;;  %v17734_v23 = vld [vmem:[#allocation327_spill] sm:$0xff] }
 0xa40   : > { %v16028_v63 = vsel %vm2851_vm13, %v2853_v29, %v2849_v15  ;;  %v2875_v46 = vadd.f32 %v15806_v4, %v2874_v58  ;;  %v2889_v10 = vmul.f32 %v15785_v49, %v2888_v33  ;;  %vm16036_vm4 = vcmp.eq.f32.partialorder %v2880_v60, 8.507059e+37 }
 0xa41   : > { %v2883_v13 = vor.u32 1.1754944e-38, %v2882_v61  ;;  %vm2892_vm6 = vweird.f32 %v15785_v49  ;;  %v2895_v45 = vand.u32 2147483647, %v15697_v20  ;;  %v7943_v38 = vsel %vm6230_vm7, %v17727_v37, %v17732_v25 }
 0xa42   : > { %v16047_v22 = vsel %vm8136_vm2, %v15350_v19, %v15363_v35  ;;  %v16051_v41 = vsel %vm8136_vm2, %v15363_v35, %v15953_v59  ;;  %v8143_v12 = vmul.f32 %v15350_v19, %v7985_v1  ;;  %v7986_v54 = vadd.f32 %v7970_v26, %v15819_v62  ;;  %vm16073_vm8 = vmor %vm2891_vm15, %vm2892_vm6 }
 0xa43   : > { %v16017_v27 = vpop.permute.xlu2 %8212  ;;  %v7987_v34 = vadd.f32 %v7971_v14, %v7879_v17  ;;  %v2897_v31 = vand.u32 2147483648, %v15697_v20  ;;  %v2903_v29 = vsub.f32 1.0, %v2902_v16  ;;  %v7944_v21 = vsel %vm6230_vm7, %v17734_v23, %v17733_v0 }
 0xa44   : > { %v2879_v42 = vsel %vm16032_vm9, %v15806_v4, %v2875_v46  ;;  %v2890_v35 = vadd.f32 %v15785_v49, %v2889_v10  ;;  %v7972_v36 = vmul.f32 %v7943_v38, %v15918_v50  ;;  %v2910_v62 = vand.u32 2147483647, %v15732_v51 }
 0xa45   : > { %v8144_v17 = vmul.f32 %v16047_v22, %v7986_v54  ;;  %v8145_v15 = vmul.f32 %v16051_v41, %v7987_v34  ;;  %v7973_v60 = vmul.f32 %v17734_v23, %v15813_v40  ;;  %v2917_v50 = vmul.f32 %v15847_v11, %v15764_v8  ;;  %v17742_v23 = vld [vmem:[#allocation287_spill] sm:$0xff] }
 0xa46   : > { %v7974_v40 = vmul.f32 %v7944_v21, %v15933_v43  ;;  %v2904_v14 = vmul.f32 %v15827_v24, %v2903_v29  ;;  %v7870_v46 = vsub.f32 1.0, %v16028_v63  ;;  %vm16088_vm11 = vcmp.eq.f32.partialorder %v2895_v45, 8.507059e+37 }
 0xa47   : > { %v2898_v52 = vor.u32 1.1754944e-38, %v2897_v31  ;;  %vm2906_vm10 = vweird.f32 %v15732_v51  ;;  %v7988_v25 = vadd.f32 %v7972_v36, %v15979_v53  ;;  %v2894_v43 = vsel %vm16073_vm8, %v15785_v49, %v2890_v35 }
 0xa48   : > { %vm2907_vm12 = vweird.f32 %v15827_v24  ;;  %v2912_v38 = vand.u32 2147483648, %v15732_v51  ;;  %v7989_v45 = vadd.f32 %v7973_v60, %v15973_v7  ;;  %v16107_v53 = vsel %vm16036_vm4, %v2883_v13, %v2879_v42  ;;  %v17745_v60 = vld [vmem:[#allocation329_spill] sm:$0xff] }
 0xa49   : > { %v2918_v34 = vsub.f32 1.0, %v2917_v50  ;;  %v7990_v49 = vadd.f32 %v7974_v40, %v15985_v6  ;;  %v2905_v31 = vadd.f32 %v15827_v24, %v2904_v14  ;;  %vm16111_vm3 = vcmp.eq.f32.partialorder %v2910_v62, 8.507059e+37  ;;  %vm16127_vm5 = vmor %vm2906_vm10, %vm2907_vm12  ;;  %v9946_v14 = vld [vmem:[%s10300_s20 + $0x38] sm:$0xff] }
 0xa4a   : > { %v8146_v7 = vmul.f32 %v15953_v59, %v7988_v25  ;;  %v16121_v32 = vsel %vm16088_vm11, %v2898_v52, %v2894_v43  ;;  %v8147_v21 = vmul.f32 %v15350_v19, %v7989_v45  ;;  %v2913_v35 = vor.u32 1.1754944e-38, %v2912_v38  ;;  %v17746_v25 = vld [vmem:[#allocation277_spill] sm:$0xff] }
 0xa4b   : > { %v16085_v16 = vpop.permute.xlu2 %8218  ;;  %v8148_v36 = vmul.f32 %v16047_v22, %v7990_v49  ;;  %v2919_v51 = vmul.f32 %v15847_v11, %v2918_v34  ;;  %v2909_v4 = vsel %vm16127_vm5, %v15827_v24, %v2905_v31  ;;  %vm2921_vm1 = vweird.f32 %v15764_v8  ;;  %v17749_v34 = vld [vmem:[#allocation325_spill] sm:$0xff]  ;;  %v17750_v49 = vld [vmem:[#allocation322_spill] sm:$0xff] }
 0xa4c   : > { %vm2922_vm13 = vweird.f32 %v15847_v11  ;;  %v2927_v24 = vand.u32 2147483648, %v15764_v8  ;;  %v7947_v43 = vsel %vm6230_vm7, %v17745_v60, %v17746_v25  ;;  %v7949_v31 = vsel %vm6230_vm7, %v17749_v34, %v17750_v49 }
 0xa4d   : > { %v2920_v52 = vadd.f32 %v15847_v11, %v2919_v51  ;;  %vm16174_vm14 = vmor %vm2921_vm1, %vm2922_vm13  ;;  %vm2936_vm15 = vweird.f32 %v15760_v55  ;;  %vm2937_vm2 = vweird.f32 %v15837_v2  ;;  %v9947_v51 = vld [vmem:[%s10300_s20 + $0x40] sm:$0xff]  ;;  %vm17757_vm6 = vcmask 703488  }
 0xa4e   : > { %vm16221_vm9 = vmor %vm2936_vm15, %vm2937_vm2 }
 0xa4f   : > { %vm17759_vm8 = vmmov %vm17757_vm6 }
 0xa50   : > { %vm17760_vm11 = vmmov %vm17757_vm6 }
 0xa51   : > { %vm17761_vm10 = vmmov %vm17757_vm6 }
 0xa52   : > { %vm17762_vm12 = vmmov %vm17757_vm6 }
 0xa53   : > { %v8225_v10 = vpop.permute.xlu2 %8224 }
 0xa59   : > { %v8209_v58 = vpop.permute.xlu0 %8208 }
 0xa5a   : > { %v8268_v37 = vadd.f32 %v8209_v58, %v8143_v12  ;;  %v17739_v12 = vld [vmem:[#allocation281_spill] sm:$0xff] }
 0xa5b   : > { %v8211_v33 = vpop.permute.xlu1 %8210  ;;  %v7945_v54 = vsel %vm6230_vm7, %v17733_v0, %v17739_v12  ;;  %v7946_v0 = vsel %vm6230_vm7, %v17739_v12, %v17742_v23 }
 0xa5c   : > { %v8240_v61 = vsel %vm6230_vm7, %v8209_v58, %v8211_v33  ;;  %v8241_v26 = vsel %vm6230_vm7, %v8211_v33, %v16017_v27  ;;  %8300 = vrot.lane.b32.xlu1 %v8268_v37, %s10109_s13  ;;  %v7975_v42 = vmul.f32 %v7945_v54, %v15935_v48  ;;  %v7977_v48 = vmul.f32 %v17745_v60, %v16001_v18 }
 0xa5d   : > { %v8269_v20 = vadd.f32 %v8240_v61, %v8144_v17  ;;  %v8270_v1 = vadd.f32 %v8241_v26, %v8145_v15  ;;  %v2932_v17 = vmul.f32 %v15837_v2, %v15760_v55  ;;  %v7976_v15 = vmul.f32 %v7946_v0, %v15929_v47  ;;  %v9945_v61 = vld [vmem:[%s10300_s20 + $0x30] sm:$0xff] }
 0xa5e   : > { %v7885_v26 = vmul.f32 %v9945_v61, %v7869_v56  ;;  %v2925_v47 = vand.u32 2147483647, %v15764_v8  ;;  %v7991_v40 = vadd.f32 %v7975_v42, %v15988_v44  ;;  %v7873_v18 = vsub.f32 1.0, %v16121_v32 }
 0xa5f   : > { %8302 = vrot.lane.b32.xlu2 %v8269_v20, %s10109_s13  ;;  %8304 = vrot.lane.b32.xlu0 %v8270_v1, %s10109_s13  ;;  %v7886_v20 = vmul.f32 %v9946_v14, %v7870_v46  ;;  %v7872_v1 = vsub.f32 1.0, %v16107_v53  ;;  %v16163_v56 = vsel %vm16111_vm3, %v2913_v35, %v2909_v4  ;;  %v2933_v44 = vsub.f32 1.0, %v2932_v17  ;;  %vm17763_vm3 = vmmov %vm17757_vm6 }
 0xa60   : > { %v7992_v46 = vadd.f32 %v7976_v15, %v15982_v30  ;;  %v7993_v38 = vadd.f32 %v7977_v48, %v7885_v26  ;;  %v8149_v54 = vmul.f32 %v16051_v41, %v7991_v40  ;;  %v7948_v30 = vsel %vm6230_vm7, %v17746_v25, %v17749_v34  ;;  %vm17764_vm5 = vmmov %vm17763_vm3 }
 0xa61   : > { %v8215_v58 = vpop.permute.xlu0 %8214  ;;  %vm16185_vm0 = vcmp.eq.f32.partialorder %v2925_v47, 8.507059e+37  ;;  %v2934_v42 = vmul.f32 %v15837_v2, %v2933_v44  ;;  %v7887_v17 = vmul.f32 %v9947_v51, %v7871_v28  ;;  %v7874_v26 = vsub.f32 1.0, %v16163_v56  ;;  %v8231_v28 = vpop.permute.xlu2 %8230  ;;  %vm17765_vm1 = vmmov %vm17763_vm3 }
 0xa62   : > { %v8242_v13 = vsel %vm6230_vm7, %v16017_v27, %v8215_v58  ;;  %v2928_v58 = vor.u32 1.1754944e-38, %v2927_v24  ;;  %v8150_v6 = vmul.f32 %v15953_v59, %v7992_v46  ;;  %v7981_v24 = vmul.f32 %v14820_v57, %v16121_v32  ;;  %vm17766_vm13 = vmmov %vm17765_vm1 }
 0xa63   : > { %v8271_v37 = vadd.f32 %v8242_v13, %v8146_v7  ;;  %v8217_v62 = vpop.permute.xlu1 %8216  ;;  %v8151_v7 = vmul.f32 %v15350_v19, %v7993_v38  ;;  %v7978_v13 = vmul.f32 %v7947_v43, %v16028_v63  ;;  %v2940_v63 = vand.u32 2147483647, %v15760_v55 }
 0xa64   : > { %v8243_v33 = vsel %vm6230_vm7, %v8217_v62, %v16085_v16  ;;  %v8272_v27 = vadd.f32 %v8217_v62, %v8147_v21  ;;  %v2924_v21 = vsel %vm16174_vm14, %v15847_v11, %v2920_v52  ;;  %v2942_v11 = vand.u32 2147483648, %v15760_v55  ;;  %vm17767_vm14 = vmmov %vm17765_vm1 }
 0xa65   : > { %v8273_v50 = vadd.f32 %v8243_v33, %v8148_v36  ;;  %8306 = vrot.lane.b32.xlu1 %v8271_v37, %s10109_s13  ;;  %v7980_v37 = vmul.f32 %v7949_v31, %v16107_v53  ;;  %v8276_v36 = vadd.f32 %v8225_v10, %v8151_v7  ;;  %v9948_v33 = vld [vmem:[%s10308_s19 + $0x10] sm:$0xff]  ;;  %v2929_v53 = vsel %vm16185_vm0, %v2928_v58, %v2924_v21  ;;  %vm17770_vm0 = vmmov %vm17765_vm1 }
 0xa66   : > { %v7994_v15 = vadd.f32 %v7978_v13, %v7886_v20  ;;  %v2935_v60 = vadd.f32 %v15837_v2, %v2934_v42  ;;  %v7875_v47 = vsub.f32 1.0, %v2929_v53  ;;  %vm16225_vm4 = vcmp.eq.f32.partialorder %v2940_v63, 8.507059e+37 }
 0xa67   : > { %8308 = vrot.lane.b32.xlu2 %v8272_v27, %s10109_s13  ;;  %8310 = vrot.lane.b32.xlu0 %v8273_v50, %s10109_s13  ;;  %v7888_v27 = vmul.f32 %v9948_v33, %v7872_v1  ;;  %v9949_v50 = vld [vmem:[%s10300_s20 + $0x48] sm:$0xff]  ;;  %v2943_v14 = vor.u32 1.1754944e-38, %v2942_v11  ;;  %v7982_v57 = vmul.f32 %v14904_v9, %v16163_v56  ;;  %v7983_v32 = vmul.f32 %v14907_v39, %v2929_v53 }
 0xa68   : > { %v7889_v61 = vmul.f32 %v9949_v50, %v7873_v18  ;;  %v8152_v20 = vmul.f32 %v16047_v22, %v7994_v15  ;;  %v2939_v46 = vsel %vm16221_vm9, %v15837_v2, %v2935_v60 }
 0xa69   : > { %v8221_v12 = vpop.permute.xlu0 %8220  ;;  %v7996_v4 = vadd.f32 %v7980_v37, %v7888_v27  ;;  %v2944_v2 = vsel %vm16225_vm4, %v2943_v14, %v2939_v46 }
 0xa6a   : > { %v8244_v8 = vsel %vm6230_vm7, %v16085_v16, %v8221_v12  ;;  %v7979_v16 = vmul.f32 %v7948_v30, %v15961_v3  ;;  %v7997_v34 = vadd.f32 %v7981_v24, %v7889_v61  ;;  %v9951_v30 = vld [vmem:[%s10300_s20 + $0x58] sm:$0xff]  ;;  %v7876_v31 = vsub.f32 1.0, %v2944_v2 }
 0xa6b   : > { %v8274_v23 = vadd.f32 %v8244_v8, %v8149_v54  ;;  %v8223_v0 = vpop.permute.xlu1 %8222  ;;  %v8154_v44 = vmul.f32 %v15953_v59, %v7996_v4  ;;  %v7891_v49 = vmul.f32 %v9951_v30, %v7875_v47  ;;  %v8237_v8 = vpop.permute.xlu2 %8236 }
 0xa6c   : > { %v8245_v35 = vsel %vm6230_vm7, %v8221_v12, %v8223_v0  ;;  %v7995_v48 = vadd.f32 %v7979_v16, %v7887_v17  ;;  %v9950_v12 = vld [vmem:[%s10300_s20 + $0x50] sm:$0xff]  ;;  %v8155_v39 = vmul.f32 %v15350_v19, %v7997_v34  ;;  %v9952_v16 = vld [vmem:[%s10308_s19 + $0x18] sm:$0xff]  ;;  %s16266_s20 = scalar_lea.vmem [#allocation9], %s9472_s17  ;;  %s9476_s17 = smul.u32 96, %s10087_s27 }
 0xa6d   : > { %v8275_v62 = vadd.f32 %v8245_v35, %v8150_v6  ;;  %8312 = vrot.lane.b32.xlu1 %v8274_v23, %s10109_s13  ;;  %v7890_v54 = vmul.f32 %v9950_v12, %v7874_v26  ;;  %v7999_v56 = vadd.f32 %v7983_v32, %v7891_v49  ;;  %v7984_v6 = vmul.f32 %v14894_v5, %v2944_v2  ;;  %s8383_s12 = sshll.u32 %s16266_s20, 4  ;;  %s8369_s27 = scalar_lea.sflag [#allocation4], %s10294_s11  ;;  %s8384_s12 = int_to_ptr.vmem [resolvable:$true] %s8383_s12 }
 0xa6e   : > { %v8153_v52 = vmul.f32 %v16051_v41, %v7995_v48  ;;  %v7892_v19 = vmul.f32 %v9952_v16, %v7876_v31  ;;  %s8382_s23 = scalar_lea.hbm %s17769_s10, %s9476_s17 }
 0xa6f   : > { %8314 = vrot.lane.b32.xlu2 %v8275_v62, %s10109_s13  ;;  %8316 = vrot.lane.b32.xlu0 %v8276_v36, %s10109_s13  ;;  %v7998_v9 = vadd.f32 %v7982_v57, %v7890_v54  ;;  %v8157_v0 = vmul.f32 %v16051_v41, %v7999_v56  ;;  %s8385_s22 = sshll.u32 %s8382_s23, 4  ;;  %s8386_s22 = int_to_ptr.hbm [resolvable:$true] %s8385_s22 }
 0xa70   : > { %s10023_s30 = sshra.s32 %s8386_s22, 4  ;;  %s10024_s30 = int_to_ptr.hbm [resolvable:$true] %s10023_s30 }
 0xa71   : > { %v8156_v7 = vmul.f32 %v16047_v22, %v7998_v9  ;;  %v8000_v22 = vadd.f32 %v7984_v6, %v7892_v19  ;;  %s10025_s26 = scalar_lea.hbm %s10024_s30, 96  ;;  %p10030_p6 = scmp.lt.s32.totalorder %s10024_s30, %s17769_s10 }
 0xa72   : > { %v8227_v1 = vpop.permute.xlu0 %8226  ;;  %p10026_p3 = scmp.ne.s32.totalorder %s10024_s30, %s10025_s26  ;;  %p10031_p7 = scmp.lt.s32.totalorder %s10029_s21, %s10025_s26 }
 0xa73   : > { %v8246_v55 = vsel %vm6230_vm7, %v8225_v10, %v8227_v1  ;;  %v8229_v18 = vpop.permute.xlu1 %8228  ;;  %v8158_v41 = vmul.f32 %v15953_v59, %v8000_v22 }
 0xa74   : > { %v8277_v25 = vadd.f32 %v8246_v55, %v8152_v20  ;;  %v8247_v43 = vsel %vm6230_vm7, %v8227_v1, %v8229_v18  ;;  %v8248_v38 = vsel %vm6230_vm7, %v8229_v18, %v8231_v28  ;;  %p10027_p4 = pnand %p10026_p3, %p10205_p9  ;;  %p10032_p8 = por %p10031_p7, %p10030_p6 }
 0xa75   : > { %v8278_v10 = vadd.f32 %v8247_v43, %v8153_v52  ;;  %v8279_v45 = vadd.f32 %v8248_v38, %v8154_v44 }
 0xa76   : > { %8318 = vrot.lane.b32.xlu1 %v8277_v25, %s10109_s13  ;;  %p10028_p5 = pneg %p10027_p4 }
 0xa77   : > { %8320 = vrot.lane.b32.xlu2 %v8278_v10, %s10109_s13  ;;  %8322 = vrot.lane.b32.xlu0 %v8279_v45, %s10109_s13 }
 0xa78   : > { %p10033_p10 = pnand %p10032_p8, %p10028_p5 }
 0xa7a   : > { %v8233_v29 = vpop.permute.xlu0 %8232 }
 0xa7b   : > { %v8280_v58 = vadd.f32 %v8233_v29, %v8155_v39  ;;  %v8235_v23 = vpop.permute.xlu1 %8234 }
 0xa7c   : > { %v8249_v13 = vsel %vm6230_vm7, %v8233_v29, %v8235_v23  ;;  %v8250_v21 = vsel %vm6230_vm7, %v8235_v23, %v8237_v8 }
 0xa7d   : > { %v8281_v42 = vadd.f32 %v8249_v13, %v8156_v7  ;;  %v8282_v35 = vadd.f32 %v8250_v21, %v8157_v0 }
 0xa7e   : > { %8324 = vrot.lane.b32.xlu1 %v8280_v58, %s10109_s13 }
 0xa7f   : > { %8326 = vrot.lane.b32.xlu2 %v8281_v42, %s10109_s13  ;;  %8328 = vrot.lane.b32.xlu0 %v8282_v35, %s10109_s13 }
 0xa82   : > { %v8239_v37 = vpop.permute.xlu0 %8238 }
 0xa83   : > { %v8251_v5 = vsel %vm6230_vm7, %v8237_v8, %v8239_v37  ;;  %vm17758_vm7 = vmmov %vm17757_vm6 }
 0xa84   : > { %v8283_v36 = vadd.f32 %v8251_v5, %v8158_v41 }
 0xa86   : > { %8330 = vrot.lane.b32.xlu1 %v8283_v36, %s10109_s13 }
 0xab9   : > { %v8303_v62 = vpop.permute.xlu2 %8302 }
 0xac1   : > { %v8309_v59 = vpop.permute.xlu2 %8308 }
 0xac9   : > { %v8315_v60 = vpop.permute.xlu2 %8314 }
 0xace   : > { %v8301_v63 = vpop.permute.xlu1 %8300 }
 0xacf   : > { %v8332_v11 = vsel %vm17757_vm6, %v8301_v63, %v8303_v62 }
 0xad0   : > { %8356 = vst [vmem:[%s16266_s20] sm:$0xff] %v8332_v11 }
 0xad1   : > { %v8305_v51 = vpop.permute.xlu0 %8304  ;;  %v8321_v26 = vpop.permute.xlu2 %8320 }
 0xad2   : > { %v8333_v17 = vsel %vm17758_vm7, %v8303_v62, %v8305_v51 }
 0xad3   : > { %8357 = vst [vmem:[%s16266_s20 + $0x8] sm:$0xff] %v8333_v17 }
 0xad7   : > { %v8307_v33 = vpop.permute.xlu1 %8306 }
 0xad8   : > { %v8334_v27 = vsel %vm17759_vm8, %v8305_v51, %v8307_v33 }
 0xad9   : > { %8358 = vst [vmem:[%s16266_s20 + $0x10] sm:$0xff] %v8334_v27  ;;  %v8311_v53 = vpop.permute.xlu0 %8310  ;;  %v8327_v20 = vpop.permute.xlu2 %8326 }
 0xada   : > { %v8335_v15 = vsel %vm17760_vm11, %v8309_v59, %v8311_v53 }
 0xadb   : > { %8359 = vst [vmem:[%s16266_s20 + $0x18] sm:$0xff] %v8335_v15 }
 0xadf   : > { %v8313_v48 = vpop.permute.xlu1 %8312 }
 0xae0   : > { %v8336_v4 = vsel %vm17761_vm10, %v8311_v53, %v8313_v48  ;;  %v8337_v50 = vsel %vm17762_vm12, %v8313_v48, %v8315_v60 }
 0xae1   : > { %8360 = vst [vmem:[%s16266_s20 + $0x20] sm:$0xff] %v8336_v4  ;;  %v8317_v61 = vpop.permute.xlu0 %8316 }
 0xae2   : > { %8361 = vst [vmem:[%s16266_s20 + $0x28] sm:$0xff] %v8337_v50 }
 0xae8   : > { %v8319_v3 = vpop.permute.xlu1 %8318 }
 0xae9   : > { %v8338_v28 = vsel %vm17763_vm3, %v8317_v61, %v8319_v3  ;;  %v8339_v47 = vsel %vm17764_vm5, %v8319_v3, %v8321_v26  ;;  %v8323_v40 = vpop.permute.xlu0 %8322 }
 0xaea   : > { %8362 = vst [vmem:[%s16266_s20 + $0x30] sm:$0xff] %v8338_v28  ;;  %v8340_v14 = vsel %vm17765_vm1, %v8321_v26, %v8323_v40 }
 0xaeb   : > { %8363 = vst [vmem:[%s16266_s20 + $0x38] sm:$0xff] %v8339_v47 }
 0xaec   : > { %8364 = vst [vmem:[%s16266_s20 + $0x40] sm:$0xff] %v8340_v14 }
 0xaf0   : > { %v8325_v1 = vpop.permute.xlu1 %8324 }
 0xaf1   : > { %v8341_v24 = vsel %vm17766_vm13, %v8325_v1, %v8327_v20  ;;  %v8329_v55 = vpop.permute.xlu0 %8328 }
 0xaf2   : > { %8365 = vst [vmem:[%s16266_s20 + $0x48] sm:$0xff] %v8341_v24  ;;  %v8342_v18 = vsel %vm17767_vm14, %v8327_v20, %v8329_v55 }
 0xaf3   : > { %8366 = vst [vmem:[%s16266_s20 + $0x50] sm:$0xff] %v8342_v18 }
 0xaf8   : > { %v8331_v52 = vpop.permute.xlu1 %8330 }
 0xaf9   : > { %v8343_v44 = vsel %vm17770_vm0, %v8329_v55, %v8331_v52 }
 0xafa   : > { %8367 = vst [vmem:[%s16266_s20 + $0x58] sm:$0xff] %v8343_v44 }
 0xafb   : > { %10036 = shalt.err (!%p10033_p10)
}
 0xafc   : > { %s10112_s11 = smov 384   ;;  %s10113_s1 = smov 24  }
 0xafd   : > { %9481 = dma.vmem_to_hbm [thread:$0]  (%p10205_p9), %s8384_s12, 1536, %s8386_s22, %s8369_s27, %s10112_s11, %s10112_s11, %s10113_s1  }
 0xafe PF: > { %s17771_s18 = sld [smem:[#allocation13_spill]]  ;;  %p9484_p13 = pnand %p8565_p12, %p10212_p11 }
 0xb00   : > { %p9485_p0 = pneg %p9484_p13 }
 0xb04   : > { %s8400_s8 = sand.u32 1, %s17771_s18  }
 0xb05   : > { %s8401_s20 = scalar_lea.sflag [#allocation4], %s8400_s8 }
 0xb06   : > { %10070 = dma.done.wait (%p9485_p0), %s8401_s20, 1536  }
 0xb07   : > { %10072 = vsyncadd (%p9485_p0), %s8401_s20, 4294965760  ;;  %s26_s29 = sadd.s32 1, %s10095_s29   ;;  %s17773_s17 = sld [smem:[#allocation14_spill]] }
 0xb08   : > { %p23_p1 = scmp.ge.s32.totalorder %s26_s29, 4   ;;  %s17774_s26 = sld [smem:[#allocation17_spill]] }
 0xb09   : > { %s17775_s19 = sld [smem:[#allocation15_spill]]  ;;  %s17776_s24 = smov %s10079_s25 }
 0xb0a   : > { %s17778_s27 = smov %s10091_s28 }
 0xb0b   :  { %25 = sbr.rel (!%p23_p1) target bundleno = 11 (0xb), region = 198 }
 0xb0d   : > { %s17777_s25 = smov %s17773_s17 }
 0xb0f   : > { %s17779_s28 = smov %s17775_s19 }
 0xb10   :  { %8407 = vsyncpa [#allocation3], 1 }
 0xb11   :  { %8409 = vsyncpa [#allocation3 + $0x1], 1 }
 0xb12   :  { %8410 = vsyncpa [#allocation6], 1 }
 0xb13   :  { %8412 = vsyncpa [#allocation6 + $0x1], 1 }
 0xb14   :  { %8413 = vsyncpa [#allocation4], 1 }
 0xb15   :  { %8415 = vsyncpa [#allocation4 + $0x1], 1 }

</bundles_post_ra>
